<compile_context>
chip_gen: v6e
topology: v6e:2x2x1
jax: 0.10.0
libtpu: 0.0.40
codegen_flags: <defaults>
</compile_context>

<pallas_src>
import math

import jax
import jax.numpy as jnp
from jax.experimental import pallas as pl
from jax.experimental.pallas import tpu as pltpu

# Full-f32 matmuls everywhere (kernel and pure-JAX reference) for tight parity.
jax.config.update("jax_default_matmul_precision", "highest")

# ----------------------- small, module-consistent shapes ---------------------
B = 2            # batch
S = 16           # sequence length (must be <= MAX_SEQ - 1, power of two here)
E = 64           # embed_dim
H = 8            # num_heads (as in the module)
HD = E // H      # head dim
N_SKILL = 10
MAX_SEQ = 32
LN_EPS = 1e-5
BS = B * S       # flattened batch*seq rows
R = H * S        # head-stacked rows per batch element (128)
LOG_S = S.bit_length() - 1
assert S & (S - 1) == 0, "S must be a power of two (mask uses shifts/ands)"


# ------------------------------- Pallas kernel -------------------------------
def sakt_kernel(e_ref, x_ref,
                wq_ref, bq_ref, wkv_ref, bkv_ref,
                wo_ref, bo_ref,
                ln_w_ref, ln_b_ref,
                w1_ref, b1_ref, w2_ref, b2_ref,
                wp_ref, bp_ref,
                pred_ref, attw_ref):
    e = e_ref[...]                                   # (BS, E) query-side embedding
    x = x_ref[...]                                   # (BS, E) key/value-side embedding

    scale = jnp.float32(1.0 / math.sqrt(HD))

    # ---- fused projections: two wide MXU matmuls, biases folded into one add --
    q = (jnp.dot(e, wq_ref[...], preferred_element_type=jnp.float32)
         + bq_ref[...]) * scale                      # (BS, E)
    kv = (jnp.dot(x, wkv_ref[...], preferred_element_type=jnp.float32)
          + bkv_ref[...])                            # (BS, 2E): [K | V]

    # ---- masks / constants hoisted out of the static batch loop ---------------
    row = jax.lax.broadcasted_iota(jnp.int32, (R, R), 0)
    col = jax.lax.broadcasted_iota(jnp.int32, (R, R), 1)
    same_head = (row >> LOG_S) == (col >> LOG_S)          # same (head) block
    causal = (col & (S - 1)) <= (row & (S - 1))           # future mask inside block
    allowed = jnp.logical_and(same_head, causal)
    neg = jnp.float32(-1e30)
    inv_h = jnp.float32(1.0 / H)

    attn_rows = []     # per-batch (S, E) concatenated head outputs
    attw_rows = []     # per-batch (S, S) head-averaged attention weights
    for b in range(B):                               # static unroll, B == 2
        qb = q[b * S:(b + 1) * S, :]                 # (S, E)
        kvb = kv[b * S:(b + 1) * S, :]               # (S, 2E)

        # stack heads along the sublane axis: (H*S, HD) = (128, 8)
        q_s = jnp.concatenate(
            [qb[:, h * HD:(h + 1) * HD] for h in range(H)], axis=0)
        k_s = jnp.concatenate(
            [kvb[:, h * HD:(h + 1) * HD] for h in range(H)], axis=0)
        v_s = jnp.concatenate(
            [kvb[:, E + h * HD:E + (h + 1) * HD] for h in range(H)], axis=0)

        # all-head scores in ONE matmul; keep only same-head causal blocks
        s = jax.lax.dot_general(q_s, k_s, (((1,), (1,)), ((), ())),
                                preferred_element_type=jnp.float32)   # (R, R)
        s = jnp.where(allowed, s, neg)

        # single stacked softmax: one max / exp / sum / reciprocal for all heads
        m = jnp.max(s, axis=-1, keepdims=True)
        p_un = jnp.exp(s - m)                        # masked entries underflow to 0
        denom = jnp.sum(p_un, axis=-1, keepdims=True)
        p = p_un * pl.reciprocal(denom, approx=False)

        # all-head P @ V in ONE matmul (off-block probabilities are exactly zero)
        ho = jnp.dot(p, v_s, preferred_element_type=jnp.float32)      # (R, HD)

        # un-stack heads back to (S, E), head-concatenated along lanes
        attn_rows.append(jnp.concatenate(
            [ho[h * S:(h + 1) * S, :] for h in range(H)], axis=1))

        # head-averaged attention weights: mean of the (h, h) diagonal blocks
        aw = p[0:S, 0:S]
        for h in range(1, H):
            o = h * S
            aw = aw + p[o:o + S, o:o + S]
        attw_rows.append(aw * inv_h)

    attw_ref[...] = jnp.concatenate(attw_rows, axis=0)                # (BS, S)

    # ---- fused output projection (single (BS,E)@(E,E) matmul) ------------------
    attn = jnp.concatenate(attn_rows, axis=0)                         # (BS, E)
    attn = (jnp.dot(attn, wo_ref[...], preferred_element_type=jnp.float32)
            + bo_ref[...])

    ln_w = ln_w_ref[...]
    ln_b = ln_b_ref[...]

    def layer_norm(z):
        mu = jnp.mean(z, axis=-1, keepdims=True)
        var = jnp.mean((z - mu) ** 2, axis=-1, keepdims=True)
        return (z - mu) * jax.lax.rsqrt(var + LN_EPS) * ln_w + ln_b

    # att_output = LN(att_output + e); dropout layers are identity in eval mode
    att_out = layer_norm(attn + e)

    # FFN
    hdn = jnp.maximum(
        jnp.dot(att_out, w1_ref[...], preferred_element_type=jnp.float32)
        + b1_ref[...], 0.0)
    ffn = (jnp.dot(hdn, w2_ref[...], preferred_element_type=jnp.float32)
           + b2_ref[...])
    x2 = layer_norm(ffn + att_out)

    # prediction head
    logit = (jnp.dot(x2, wp_ref[...], preferred_element_type=jnp.float32)
             + bp_ref[...])
    pred_ref[...] = jax.nn.sigmoid(logit)                             # (BS, 1)


# --------------------------------- wrapper -----------------------------------
WEIGHT_KEYS = ("wq_t", "bq", "wkv_t", "bkv", "wo_t", "bo",
               "ln_w", "ln_b", "w1_t", "b1", "w2_t", "b2", "wp_t", "bp")


def sakt_forward(x_ids, q_ids, params):
    # embedding gathers + positional add in plain JAX glue
    x = jnp.take(params["embedding"], x_ids, axis=0)                       # (B, S, E)
    pos = jnp.take(params["pos_embedding"], jnp.arange(S), axis=0)[None]   # (1, S, E)
    x = (x + pos).reshape(BS, E)
    e = jnp.take(params["e_embedding"], q_ids, axis=0).reshape(BS, E)

    weights = [params[k] for k in WEIGHT_KEYS]
    vmem = pl.BlockSpec(memory_space=pltpu.MemorySpace.VMEM)

    pred_flat, attw_flat = pl.pallas_call(
        sakt_kernel,
        out_shape=(jax.ShapeDtypeStruct((BS, 1), jnp.float32),
                   jax.ShapeDtypeStruct((BS, S), jnp.float32)),
        in_specs=[vmem] * (2 + len(weights)),
        out_specs=(vmem, vmem),
    )(e, x, *weights)

    # TODO(synk): pred is stored as (B*S, 1) in-kernel; a fully lane-dense (B, S)
    # store would need a sublane->lane relayout that costs more than this tiny
    # masked store saves.
    return pred_flat.reshape(B, S), attw_flat.reshape(B, S, S)


# ----------------------------- pure-JAX reference ----------------------------
def sakt_ref(x_ids, q_ids, p):
    x = (jnp.take(p["embedding"], x_ids, axis=0)
         + jnp.take(p["pos_embedding"], jnp.arange(S), axis=0)[None])
    e = jnp.take(p["e_embedding"], q_ids, axis=0)
    scale = 1.0 / math.sqrt(HD)
    mask = jnp.triu(jnp.ones((S, S), bool), k=1)

    def ln(z):
        mu = z.mean(-1, keepdims=True)
        var = ((z - mu) ** 2).mean(-1, keepdims=True)
        return (z - mu) / jnp.sqrt(var + LN_EPS) * p["ln_w"] + p["ln_b"]

    preds, attws = [], []
    for b in range(B):
        eb, xb = e[b], x[b]
        q = (eb @ p["wq_t"] + p["bq"]) * scale
        kv = xb @ p["wkv_t"] + p["bkv"]
        k, v = kv[:, :E], kv[:, E:]
        heads = []
        aw = jnp.zeros((S, S), jnp.float32)
        for h in range(H):
            qh = q[:, h * HD:(h + 1) * HD]
            kh = k[:, h * HD:(h + 1) * HD]
            vh = v[:, h * HD:(h + 1) * HD]
            s = jnp.where(mask, -1e30, qh @ kh.T)
            pr = jax.nn.softmax(s, axis=-1)
            aw = aw + pr
            heads.append(pr @ vh)
        attn = jnp.concatenate(heads, axis=1) @ p["wo_t"] + p["bo"]
        ao = ln(attn + eb)
        f = jnp.maximum(ao @ p["w1_t"] + p["b1"], 0.0) @ p["w2_t"] + p["b2"]
        x2 = ln(f + ao)
        preds.append(jax.nn.sigmoid(x2 @ p["wp_t"] + p["bp"])[:, 0])
        attws.append(aw / H)
    return jnp.stack(preds), jnp.stack(attws)


# ----------------------------------- main ------------------------------------
def make_params(key):
    ks = jax.random.split(key, 16)
    n = iter(range(16))

    def init(shape, scale=0.1):
        return jax.random.normal(ks[next(n)], shape, dtype=jnp.float32) * scale

    return {
        "embedding":     init((2 * N_SKILL + 1, E)),
        "pos_embedding": init((MAX_SEQ - 1, E)),
        "e_embedding":   init((N_SKILL + 1, E)),
        # fused attention projections, pre-transposed for x @ W + b
        "wq_t": init((E, E)),       "bq":  init((1, E)),
        "wkv_t": init((E, 2 * E)),  "bkv": init((1, 2 * E)),
        "wo_t": init((E, E)),       "bo":  init((1, E)),
        # layer norm (shared between the two applications, as in the module)
        "ln_w": jnp.ones((1, E), jnp.float32),
        "ln_b": jnp.zeros((1, E), jnp.float32),
        # FFN
        "w1_t": init((E, E)), "b1": init((1, E)),
        "w2_t": init((E, E)), "b2": init((1, E)),
        # prediction head
        "wp_t": init((E, 1)), "bp": init((1, 1)),
    }


if __name__ == "__main__":
    root = jax.random.PRNGKey(0)
    k_par, k_x, k_q = jax.random.split(root, 3)

    params = make_params(k_par)
    x_ids = jax.random.randint(k_x, (B, S), 0, 2 * N_SKILL + 1, dtype=jnp.int32)
    q_ids = jax.random.randint(k_q, (B, S), 0, N_SKILL + 1, dtype=jnp.int32)

    pred, attw = sakt_forward(x_ids, q_ids, params)
    jax.block_until_ready((pred, attw))

    pred_ref, attw_ref = sakt_ref(x_ids, q_ids, params)
    assert pred.shape == (B, S) and attw.shape == (B, S, S)
    assert jnp.allclose(pred, pred_ref, atol=1e-4, rtol=1e-4)
    assert jnp.allclose(attw, attw_ref, atol=1e-4, rtol=1e-4)

    print("KERNEL_OK")
</pallas_src>

<mosaic_0001>
module attributes {stable_mosaic.version = 11 : i64} {
  func.func @sakt_kernel(%arg0: memref<32x64xf32, #tpu.memory_space<vmem>>, %arg1: memref<32x64xf32, #tpu.memory_space<vmem>>, %arg2: memref<64x64xf32, #tpu.memory_space<vmem>>, %arg3: memref<1x64xf32, #tpu.memory_space<vmem>>, %arg4: memref<64x128xf32, #tpu.memory_space<vmem>>, %arg5: memref<1x128xf32, #tpu.memory_space<vmem>>, %arg6: memref<64x64xf32, #tpu.memory_space<vmem>>, %arg7: memref<1x64xf32, #tpu.memory_space<vmem>>, %arg8: memref<1x64xf32, #tpu.memory_space<vmem>>, %arg9: memref<1x64xf32, #tpu.memory_space<vmem>>, %arg10: memref<64x64xf32, #tpu.memory_space<vmem>>, %arg11: memref<1x64xf32, #tpu.memory_space<vmem>>, %arg12: memref<64x64xf32, #tpu.memory_space<vmem>>, %arg13: memref<1x64xf32, #tpu.memory_space<vmem>>, %arg14: memref<64x1xf32, #tpu.memory_space<vmem>>, %arg15: memref<1x1xf32, #tpu.memory_space<vmem>>, %arg16: memref<32x1xf32, #tpu.memory_space<vmem>>, %arg17: memref<32x16xf32, #tpu.memory_space<vmem>>) attributes {dimension_semantics = [], scalar_prefetch = 0 : i64, scratch_operands = 0 : i64, tpu.core_type = #tpu.core_type<tc>} {
    %c0 = arith.constant 0 : index
    %c0_0 = arith.constant 0 : index
    %0 = vector.load %arg0[%c0, %c0_0] : memref<32x64xf32, #tpu.memory_space<vmem>>, vector<32x64xf32>
    %c0_1 = arith.constant 0 : index
    %c0_2 = arith.constant 0 : index
    %1 = vector.load %arg1[%c0_1, %c0_2] : memref<32x64xf32, #tpu.memory_space<vmem>>, vector<32x64xf32>
    %c0_3 = arith.constant 0 : index
    %c0_4 = arith.constant 0 : index
    %2 = vector.load %arg2[%c0_3, %c0_4] : memref<64x64xf32, #tpu.memory_space<vmem>>, vector<64x64xf32>
    %cst = arith.constant dense<0.000000e+00> : vector<32x64xf32>
    %3 = tpu.matmul %0, %2, %cst {dimension_numbers = #tpu.dot_dimension_numbers<[1], [0], [0], [1], [0, 0, 1, 1], [], []>, precision = #tpu.contract_precision<fp32>} : vector<32x64xf32>, vector<64x64xf32>, vector<32x64xf32> -> vector<32x64xf32>
    %c0_5 = arith.constant 0 : index
    %c0_6 = arith.constant 0 : index
    %4 = vector.load %arg3[%c0_5, %c0_6] : memref<1x64xf32, #tpu.memory_space<vmem>>, vector<1x64xf32>
    %5 = vector.broadcast %4 : vector<1x64xf32> to vector<32x64xf32>
    %6 = arith.addf %3, %5 : vector<32x64xf32>
    %cst_7 = arith.constant 0.353553385 : f32
    %7 = vector.broadcast %cst_7 : f32 to vector<32x64xf32>
    %8 = arith.mulf %6, %7 : vector<32x64xf32>
    %c0_8 = arith.constant 0 : index
    %c0_9 = arith.constant 0 : index
    %9 = vector.load %arg4[%c0_8, %c0_9] : memref<64x128xf32, #tpu.memory_space<vmem>>, vector<64x128xf32>
    %cst_10 = arith.constant dense<0.000000e+00> : vector<32x128xf32>
    %10 = tpu.matmul %1, %9, %cst_10 {dimension_numbers = #tpu.dot_dimension_numbers<[1], [0], [0], [1], [0, 0, 1, 1], [], []>, precision = #tpu.contract_precision<fp32>} : vector<32x64xf32>, vector<64x128xf32>, vector<32x128xf32> -> vector<32x128xf32>
    %c0_11 = arith.constant 0 : index
    %c0_12 = arith.constant 0 : index
    %11 = vector.load %arg5[%c0_11, %c0_12] : memref<1x128xf32, #tpu.memory_space<vmem>>, vector<1x128xf32>
    %12 = vector.broadcast %11 : vector<1x128xf32> to vector<32x128xf32>
    %13 = arith.addf %10, %12 : vector<32x128xf32>
    %14 = tpu.iota {dimensions = array<i32: 0>} : vector<128x128xi32>
    %15 = tpu.iota {dimensions = array<i32: 1>} : vector<128x128xi32>
    %c4_i32 = arith.constant 4 : i32
    %16 = vector.broadcast %c4_i32 : i32 to vector<128x128xi32>
    %17 = arith.shrsi %14, %16 : vector<128x128xi32>
    %c4_i32_13 = arith.constant 4 : i32
    %18 = vector.broadcast %c4_i32_13 : i32 to vector<128x128xi32>
    %19 = arith.shrsi %15, %18 : vector<128x128xi32>
    %20 = arith.cmpi eq, %17, %19 : vector<128x128xi32>
    %c15_i32 = arith.constant 15 : i32
    %21 = vector.broadcast %c15_i32 : i32 to vector<128x128xi32>
    %22 = arith.andi %15, %21 : vector<128x128xi32>
    %c15_i32_14 = arith.constant 15 : i32
    %23 = vector.broadcast %c15_i32_14 : i32 to vector<128x128xi32>
    %24 = arith.andi %14, %23 : vector<128x128xi32>
    %25 = arith.cmpi sle, %22, %24 : vector<128x128xi32>
    %26 = arith.andi %20, %25 : vector<128x128xi1>
    %27 = vector.extract_strided_slice %8 {offsets = [0, 0], sizes = [16, 64], strides = [1, 1]} : vector<32x64xf32> to vector<16x64xf32>
    %28 = vector.extract_strided_slice %13 {offsets = [0, 0], sizes = [16, 128], strides = [1, 1]} : vector<32x128xf32> to vector<16x128xf32>
    %29 = vector.extract_strided_slice %27 {offsets = [0, 0], sizes = [16, 8], strides = [1, 1]} : vector<16x64xf32> to vector<16x8xf32>
    %30 = vector.extract_strided_slice %27 {offsets = [0, 8], sizes = [16, 8], strides = [1, 1]} : vector<16x64xf32> to vector<16x8xf32>
    %31 = vector.extract_strided_slice %27 {offsets = [0, 16], sizes = [16, 8], strides = [1, 1]} : vector<16x64xf32> to vector<16x8xf32>
    %32 = vector.extract_strided_slice %27 {offsets = [0, 24], sizes = [16, 8], strides = [1, 1]} : vector<16x64xf32> to vector<16x8xf32>
    %33 = vector.extract_strided_slice %27 {offsets = [0, 32], sizes = [16, 8], strides = [1, 1]} : vector<16x64xf32> to vector<16x8xf32>
    %34 = vector.extract_strided_slice %27 {offsets = [0, 40], sizes = [16, 8], strides = [1, 1]} : vector<16x64xf32> to vector<16x8xf32>
    %35 = vector.extract_strided_slice %27 {offsets = [0, 48], sizes = [16, 8], strides = [1, 1]} : vector<16x64xf32> to vector<16x8xf32>
    %36 = vector.extract_strided_slice %27 {offsets = [0, 56], sizes = [16, 8], strides = [1, 1]} : vector<16x64xf32> to vector<16x8xf32>
    %37 = tpu.concatenate %29, %30, %31, %32, %33, %34, %35, %36 in 0 : vector<16x8xf32>, vector<16x8xf32>, vector<16x8xf32>, vector<16x8xf32>, vector<16x8xf32>, vector<16x8xf32>, vector<16x8xf32>, vector<16x8xf32> -> vector<128x8xf32>
    %38 = vector.extract_strided_slice %28 {offsets = [0, 0], sizes = [16, 8], strides = [1, 1]} : vector<16x128xf32> to vector<16x8xf32>
    %39 = vector.extract_strided_slice %28 {offsets = [0, 8], sizes = [16, 8], strides = [1, 1]} : vector<16x128xf32> to vector<16x8xf32>
    %40 = vector.extract_strided_slice %28 {offsets = [0, 16], sizes = [16, 8], strides = [1, 1]} : vector<16x128xf32> to vector<16x8xf32>
    %41 = vector.extract_strided_slice %28 {offsets = [0, 24], sizes = [16, 8], strides = [1, 1]} : vector<16x128xf32> to vector<16x8xf32>
    %42 = vector.extract_strided_slice %28 {offsets = [0, 32], sizes = [16, 8], strides = [1, 1]} : vector<16x128xf32> to vector<16x8xf32>
    %43 = vector.extract_strided_slice %28 {offsets = [0, 40], sizes = [16, 8], strides = [1, 1]} : vector<16x128xf32> to vector<16x8xf32>
    %44 = vector.extract_strided_slice %28 {offsets = [0, 48], sizes = [16, 8], strides = [1, 1]} : vector<16x128xf32> to vector<16x8xf32>
    %45 = vector.extract_strided_slice %28 {offsets = [0, 56], sizes = [16, 8], strides = [1, 1]} : vector<16x128xf32> to vector<16x8xf32>
    %46 = tpu.concatenate %38, %39, %40, %41, %42, %43, %44, %45 in 0 : vector<16x8xf32>, vector<16x8xf32>, vector<16x8xf32>, vector<16x8xf32>, vector<16x8xf32>, vector<16x8xf32>, vector<16x8xf32>, vector<16x8xf32> -> vector<128x8xf32>
    %47 = vector.extract_strided_slice %28 {offsets = [0, 64], sizes = [16, 8], strides = [1, 1]} : vector<16x128xf32> to vector<16x8xf32>
    %48 = vector.extract_strided_slice %28 {offsets = [0, 72], sizes = [16, 8], strides = [1, 1]} : vector<16x128xf32> to vector<16x8xf32>
    %49 = vector.extract_strided_slice %28 {offsets = [0, 80], sizes = [16, 8], strides = [1, 1]} : vector<16x128xf32> to vector<16x8xf32>
    %50 = vector.extract_strided_slice %28 {offsets = [0, 88], sizes = [16, 8], strides = [1, 1]} : vector<16x128xf32> to vector<16x8xf32>
    %51 = vector.extract_strided_slice %28 {offsets = [0, 96], sizes = [16, 8], strides = [1, 1]} : vector<16x128xf32> to vector<16x8xf32>
    %52 = vector.extract_strided_slice %28 {offsets = [0, 104], sizes = [16, 8], strides = [1, 1]} : vector<16x128xf32> to vector<16x8xf32>
    %53 = vector.extract_strided_slice %28 {offsets = [0, 112], sizes = [16, 8], strides = [1, 1]} : vector<16x128xf32> to vector<16x8xf32>
    %54 = vector.extract_strided_slice %28 {offsets = [0, 120], sizes = [16, 8], strides = [1, 1]} : vector<16x128xf32> to vector<16x8xf32>
    %55 = tpu.concatenate %47, %48, %49, %50, %51, %52, %53, %54 in 0 : vector<16x8xf32>, vector<16x8xf32>, vector<16x8xf32>, vector<16x8xf32>, vector<16x8xf32>, vector<16x8xf32>, vector<16x8xf32>, vector<16x8xf32> -> vector<128x8xf32>
    %cst_15 = arith.constant dense<0.000000e+00> : vector<128x128xf32>
    %56 = tpu.matmul %37, %46, %cst_15 {dimension_numbers = #tpu.dot_dimension_numbers<[1], [1], [0], [0], [0, 0, 1, 0], [], []>, precision = #tpu.contract_precision<fp32>} : vector<128x8xf32>, vector<128x8xf32>, vector<128x128xf32> -> vector<128x128xf32>
    %cst_16 = arith.constant -1.000000e+30 : f32
    %57 = vector.broadcast %cst_16 : f32 to vector<128x128xf32>
    %58 = arith.select %26, %56, %57 : vector<128x128xi1>, vector<128x128xf32>
    %cst_17 = arith.constant dense<0xFF800000> : vector<128xf32>
    %59 = vector.multi_reduction <maximumf>, %58, %cst_17 [1] : vector<128x128xf32> to vector<128xf32>
    %60 = vector.shape_cast %59 : vector<128xf32> to vector<128x1xf32>
    %61 = vector.broadcast %60 : vector<128x1xf32> to vector<128x128xf32>
    %62 = arith.subf %58, %61 : vector<128x128xf32>
    %63 = math.exp %62 : vector<128x128xf32>
    %cst_18 = arith.constant dense<0.000000e+00> : vector<128xf32>
    %64 = vector.multi_reduction <add>, %63, %cst_18 [1] : vector<128x128xf32> to vector<128xf32>
    %65 = vector.shape_cast %64 : vector<128xf32> to vector<128x1xf32>
    %66 = tpu.reciprocal %65 : vector<128x1xf32> -> vector<128x1xf32>
    %67 = vector.broadcast %66 : vector<128x1xf32> to vector<128x128xf32>
    %68 = arith.mulf %63, %67 : vector<128x128xf32>
    %cst_19 = arith.constant dense<0.000000e+00> : vector<128x8xf32>
    %69 = tpu.matmul %68, %55, %cst_19 {dimension_numbers = #tpu.dot_dimension_numbers<[1], [0], [0], [1], [0, 0, 1, 1], [], []>, precision = #tpu.contract_precision<fp32>} : vector<128x128xf32>, vector<128x8xf32>, vector<128x8xf32> -> vector<128x8xf32>
    %70 = vector.extract_strided_slice %69 {offsets = [0, 0], sizes = [16, 8], strides = [1, 1]} : vector<128x8xf32> to vector<16x8xf32>
    %71 = vector.extract_strided_slice %69 {offsets = [16, 0], sizes = [16, 8], strides = [1, 1]} : vector<128x8xf32> to vector<16x8xf32>
    %72 = vector.extract_strided_slice %69 {offsets = [32, 0], sizes = [16, 8], strides = [1, 1]} : vector<128x8xf32> to vector<16x8xf32>
    %73 = vector.extract_strided_slice %69 {offsets = [48, 0], sizes = [16, 8], strides = [1, 1]} : vector<128x8xf32> to vector<16x8xf32>
    %74 = vector.extract_strided_slice %69 {offsets = [64, 0], sizes = [16, 8], strides = [1, 1]} : vector<128x8xf32> to vector<16x8xf32>
    %75 = vector.extract_strided_slice %69 {offsets = [80, 0], sizes = [16, 8], strides = [1, 1]} : vector<128x8xf32> to vector<16x8xf32>
    %76 = vector.extract_strided_slice %69 {offsets = [96, 0], sizes = [16, 8], strides = [1, 1]} : vector<128x8xf32> to vector<16x8xf32>
    %77 = vector.extract_strided_slice %69 {offsets = [112, 0], sizes = [16, 8], strides = [1, 1]} : vector<128x8xf32> to vector<16x8xf32>
    %78 = tpu.concatenate %70, %71, %72, %73, %74, %75, %76, %77 in 1 : vector<16x8xf32>, vector<16x8xf32>, vector<16x8xf32>, vector<16x8xf32>, vector<16x8xf32>, vector<16x8xf32>, vector<16x8xf32>, vector<16x8xf32> -> vector<16x64xf32>
    %79 = vector.extract_strided_slice %68 {offsets = [0, 0], sizes = [16, 16], strides = [1, 1]} : vector<128x128xf32> to vector<16x16xf32>
    %80 = vector.extract_strided_slice %68 {offsets = [16, 16], sizes = [16, 16], strides = [1, 1]} : vector<128x128xf32> to vector<16x16xf32>
    %81 = arith.addf %79, %80 : vector<16x16xf32>
    %82 = vector.extract_strided_slice %68 {offsets = [32, 32], sizes = [16, 16], strides = [1, 1]} : vector<128x128xf32> to vector<16x16xf32>
    %83 = arith.addf %81, %82 : vector<16x16xf32>
    %84 = vector.extract_strided_slice %68 {offsets = [48, 48], sizes = [16, 16], strides = [1, 1]} : vector<128x128xf32> to vector<16x16xf32>
    %85 = arith.addf %83, %84 : vector<16x16xf32>
    %86 = vector.extract_strided_slice %68 {offsets = [64, 64], sizes = [16, 16], strides = [1, 1]} : vector<128x128xf32> to vector<16x16xf32>
    %87 = arith.addf %85, %86 : vector<16x16xf32>
    %88 = vector.extract_strided_slice %68 {offsets = [80, 80], sizes = [16, 16], strides = [1, 1]} : vector<128x128xf32> to vector<16x16xf32>
    %89 = arith.addf %87, %88 : vector<16x16xf32>
    %90 = vector.extract_strided_slice %68 {offsets = [96, 96], sizes = [16, 16], strides = [1, 1]} : vector<128x128xf32> to vector<16x16xf32>
    %91 = arith.addf %89, %90 : vector<16x16xf32>
    %92 = vector.extract_strided_slice %68 {offsets = [112, 112], sizes = [16, 16], strides = [1, 1]} : vector<128x128xf32> to vector<16x16xf32>
    %93 = arith.addf %91, %92 : vector<16x16xf32>
    %cst_20 = arith.constant 1.250000e-01 : f32
    %94 = vector.broadcast %cst_20 : f32 to vector<16x16xf32>
    %95 = arith.mulf %93, %94 : vector<16x16xf32>
    %96 = vector.extract_strided_slice %8 {offsets = [16, 0], sizes = [16, 64], strides = [1, 1]} : vector<32x64xf32> to vector<16x64xf32>
    %97 = vector.extract_strided_slice %13 {offsets = [16, 0], sizes = [16, 128], strides = [1, 1]} : vector<32x128xf32> to vector<16x128xf32>
    %98 = vector.extract_strided_slice %96 {offsets = [0, 0], sizes = [16, 8], strides = [1, 1]} : vector<16x64xf32> to vector<16x8xf32>
    %99 = vector.extract_strided_slice %96 {offsets = [0, 8], sizes = [16, 8], strides = [1, 1]} : vector<16x64xf32> to vector<16x8xf32>
    %100 = vector.extract_strided_slice %96 {offsets = [0, 16], sizes = [16, 8], strides = [1, 1]} : vector<16x64xf32> to vector<16x8xf32>
    %101 = vector.extract_strided_slice %96 {offsets = [0, 24], sizes = [16, 8], strides = [1, 1]} : vector<16x64xf32> to vector<16x8xf32>
    %102 = vector.extract_strided_slice %96 {offsets = [0, 32], sizes = [16, 8], strides = [1, 1]} : vector<16x64xf32> to vector<16x8xf32>
    %103 = vector.extract_strided_slice %96 {offsets = [0, 40], sizes = [16, 8], strides = [1, 1]} : vector<16x64xf32> to vector<16x8xf32>
    %104 = vector.extract_strided_slice %96 {offsets = [0, 48], sizes = [16, 8], strides = [1, 1]} : vector<16x64xf32> to vector<16x8xf32>
    %105 = vector.extract_strided_slice %96 {offsets = [0, 56], sizes = [16, 8], strides = [1, 1]} : vector<16x64xf32> to vector<16x8xf32>
    %106 = tpu.concatenate %98, %99, %100, %101, %102, %103, %104, %105 in 0 : vector<16x8xf32>, vector<16x8xf32>, vector<16x8xf32>, vector<16x8xf32>, vector<16x8xf32>, vector<16x8xf32>, vector<16x8xf32>, vector<16x8xf32> -> vector<128x8xf32>
    %107 = vector.extract_strided_slice %97 {offsets = [0, 0], sizes = [16, 8], strides = [1, 1]} : vector<16x128xf32> to vector<16x8xf32>
    %108 = vector.extract_strided_slice %97 {offsets = [0, 8], sizes = [16, 8], strides = [1, 1]} : vector<16x128xf32> to vector<16x8xf32>
    %109 = vector.extract_strided_slice %97 {offsets = [0, 16], sizes = [16, 8], strides = [1, 1]} : vector<16x128xf32> to vector<16x8xf32>
    %110 = vector.extract_strided_slice %97 {offsets = [0, 24], sizes = [16, 8], strides = [1, 1]} : vector<16x128xf32> to vector<16x8xf32>
    %111 = vector.extract_strided_slice %97 {offsets = [0, 32], sizes = [16, 8], strides = [1, 1]} : vector<16x128xf32> to vector<16x8xf32>
    %112 = vector.extract_strided_slice %97 {offsets = [0, 40], sizes = [16, 8], strides = [1, 1]} : vector<16x128xf32> to vector<16x8xf32>
    %113 = vector.extract_strided_slice %97 {offsets = [0, 48], sizes = [16, 8], strides = [1, 1]} : vector<16x128xf32> to vector<16x8xf32>
    %114 = vector.extract_strided_slice %97 {offsets = [0, 56], sizes = [16, 8], strides = [1, 1]} : vector<16x128xf32> to vector<16x8xf32>
    %115 = tpu.concatenate %107, %108, %109, %110, %111, %112, %113, %114 in 0 : vector<16x8xf32>, vector<16x8xf32>, vector<16x8xf32>, vector<16x8xf32>, vector<16x8xf32>, vector<16x8xf32>, vector<16x8xf32>, vector<16x8xf32> -> vector<128x8xf32>
    %116 = vector.extract_strided_slice %97 {offsets = [0, 64], sizes = [16, 8], strides = [1, 1]} : vector<16x128xf32> to vector<16x8xf32>
    %117 = vector.extract_strided_slice %97 {offsets = [0, 72], sizes = [16, 8], strides = [1, 1]} : vector<16x128xf32> to vector<16x8xf32>
    %118 = vector.extract_strided_slice %97 {offsets = [0, 80], sizes = [16, 8], strides = [1, 1]} : vector<16x128xf32> to vector<16x8xf32>
    %119 = vector.extract_strided_slice %97 {offsets = [0, 88], sizes = [16, 8], strides = [1, 1]} : vector<16x128xf32> to vector<16x8xf32>
    %120 = vector.extract_strided_slice %97 {offsets = [0, 96], sizes = [16, 8], strides = [1, 1]} : vector<16x128xf32> to vector<16x8xf32>
    %121 = vector.extract_strided_slice %97 {offsets = [0, 104], sizes = [16, 8], strides = [1, 1]} : vector<16x128xf32> to vector<16x8xf32>
    %122 = vector.extract_strided_slice %97 {offsets = [0, 112], sizes = [16, 8], strides = [1, 1]} : vector<16x128xf32> to vector<16x8xf32>
    %123 = vector.extract_strided_slice %97 {offsets = [0, 120], sizes = [16, 8], strides = [1, 1]} : vector<16x128xf32> to vector<16x8xf32>
    %124 = tpu.concatenate %116, %117, %118, %119, %120, %121, %122, %123 in 0 : vector<16x8xf32>, vector<16x8xf32>, vector<16x8xf32>, vector<16x8xf32>, vector<16x8xf32>, vector<16x8xf32>, vector<16x8xf32>, vector<16x8xf32> -> vector<128x8xf32>
    %cst_21 = arith.constant dense<0.000000e+00> : vector<128x128xf32>
    %125 = tpu.matmul %106, %115, %cst_21 {dimension_numbers = #tpu.dot_dimension_numbers<[1], [1], [0], [0], [0, 0, 1, 0], [], []>, precision = #tpu.contract_precision<fp32>} : vector<128x8xf32>, vector<128x8xf32>, vector<128x128xf32> -> vector<128x128xf32>
    %cst_22 = arith.constant -1.000000e+30 : f32
    %126 = vector.broadcast %cst_22 : f32 to vector<128x128xf32>
    %127 = arith.select %26, %125, %126 : vector<128x128xi1>, vector<128x128xf32>
    %cst_23 = arith.constant dense<0xFF800000> : vector<128xf32>
    %128 = vector.multi_reduction <maximumf>, %127, %cst_23 [1] : vector<128x128xf32> to vector<128xf32>
    %129 = vector.shape_cast %128 : vector<128xf32> to vector<128x1xf32>
    %130 = vector.broadcast %129 : vector<128x1xf32> to vector<128x128xf32>
    %131 = arith.subf %127, %130 : vector<128x128xf32>
    %132 = math.exp %131 : vector<128x128xf32>
    %cst_24 = arith.constant dense<0.000000e+00> : vector<128xf32>
    %133 = vector.multi_reduction <add>, %132, %cst_24 [1] : vector<128x128xf32> to vector<128xf32>
    %134 = vector.shape_cast %133 : vector<128xf32> to vector<128x1xf32>
    %135 = tpu.reciprocal %134 : vector<128x1xf32> -> vector<128x1xf32>
    %136 = vector.broadcast %135 : vector<128x1xf32> to vector<128x128xf32>
    %137 = arith.mulf %132, %136 : vector<128x128xf32>
    %cst_25 = arith.constant dense<0.000000e+00> : vector<128x8xf32>
    %138 = tpu.matmul %137, %124, %cst_25 {dimension_numbers = #tpu.dot_dimension_numbers<[1], [0], [0], [1], [0, 0, 1, 1], [], []>, precision = #tpu.contract_precision<fp32>} : vector<128x128xf32>, vector<128x8xf32>, vector<128x8xf32> -> vector<128x8xf32>
    %139 = vector.extract_strided_slice %138 {offsets = [0, 0], sizes = [16, 8], strides = [1, 1]} : vector<128x8xf32> to vector<16x8xf32>
    %140 = vector.extract_strided_slice %138 {offsets = [16, 0], sizes = [16, 8], strides = [1, 1]} : vector<128x8xf32> to vector<16x8xf32>
    %141 = vector.extract_strided_slice %138 {offsets = [32, 0], sizes = [16, 8], strides = [1, 1]} : vector<128x8xf32> to vector<16x8xf32>
    %142 = vector.extract_strided_slice %138 {offsets = [48, 0], sizes = [16, 8], strides = [1, 1]} : vector<128x8xf32> to vector<16x8xf32>
    %143 = vector.extract_strided_slice %138 {offsets = [64, 0], sizes = [16, 8], strides = [1, 1]} : vector<128x8xf32> to vector<16x8xf32>
    %144 = vector.extract_strided_slice %138 {offsets = [80, 0], sizes = [16, 8], strides = [1, 1]} : vector<128x8xf32> to vector<16x8xf32>
    %145 = vector.extract_strided_slice %138 {offsets = [96, 0], sizes = [16, 8], strides = [1, 1]} : vector<128x8xf32> to vector<16x8xf32>
    %146 = vector.extract_strided_slice %138 {offsets = [112, 0], sizes = [16, 8], strides = [1, 1]} : vector<128x8xf32> to vector<16x8xf32>
    %147 = tpu.concatenate %139, %140, %141, %142, %143, %144, %145, %146 in 1 : vector<16x8xf32>, vector<16x8xf32>, vector<16x8xf32>, vector<16x8xf32>, vector<16x8xf32>, vector<16x8xf32>, vector<16x8xf32>, vector<16x8xf32> -> vector<16x64xf32>
    %148 = vector.extract_strided_slice %137 {offsets = [0, 0], sizes = [16, 16], strides = [1, 1]} : vector<128x128xf32> to vector<16x16xf32>
    %149 = vector.extract_strided_slice %137 {offsets = [16, 16], sizes = [16, 16], strides = [1, 1]} : vector<128x128xf32> to vector<16x16xf32>
    %150 = arith.addf %148, %149 : vector<16x16xf32>
    %151 = vector.extract_strided_slice %137 {offsets = [32, 32], sizes = [16, 16], strides = [1, 1]} : vector<128x128xf32> to vector<16x16xf32>
    %152 = arith.addf %150, %151 : vector<16x16xf32>
    %153 = vector.extract_strided_slice %137 {offsets = [48, 48], sizes = [16, 16], strides = [1, 1]} : vector<128x128xf32> to vector<16x16xf32>
    %154 = arith.addf %152, %153 : vector<16x16xf32>
    %155 = vector.extract_strided_slice %137 {offsets = [64, 64], sizes = [16, 16], strides = [1, 1]} : vector<128x128xf32> to vector<16x16xf32>
    %156 = arith.addf %154, %155 : vector<16x16xf32>
    %157 = vector.extract_strided_slice %137 {offsets = [80, 80], sizes = [16, 16], strides = [1, 1]} : vector<128x128xf32> to vector<16x16xf32>
    %158 = arith.addf %156, %157 : vector<16x16xf32>
    %159 = vector.extract_strided_slice %137 {offsets = [96, 96], sizes = [16, 16], strides = [1, 1]} : vector<128x128xf32> to vector<16x16xf32>
    %160 = arith.addf %158, %159 : vector<16x16xf32>
    %161 = vector.extract_strided_slice %137 {offsets = [112, 112], sizes = [16, 16], strides = [1, 1]} : vector<128x128xf32> to vector<16x16xf32>
    %162 = arith.addf %160, %161 : vector<16x16xf32>
    %cst_26 = arith.constant 1.250000e-01 : f32
    %163 = vector.broadcast %cst_26 : f32 to vector<16x16xf32>
    %164 = arith.mulf %162, %163 : vector<16x16xf32>
    %165 = tpu.concatenate %95, %164 in 0 : vector<16x16xf32>, vector<16x16xf32> -> vector<32x16xf32>
    %c0_27 = arith.constant 0 : index
    %c0_28 = arith.constant 0 : index
    %166 = vector.load %arg17[%c0_27, %c0_28] : memref<32x16xf32, #tpu.memory_space<vmem>>, vector<32x16xf32>
    tpu.vector_store %arg17[%c0_27, %c0_28], %165 {strides = array<i32>} : memref<32x16xf32, #tpu.memory_space<vmem>>, vector<32x16xf32>,
    %167 = tpu.concatenate %78, %147 in 0 : vector<16x64xf32>, vector<16x64xf32> -> vector<32x64xf32>
    %c0_29 = arith.constant 0 : index
    %c0_30 = arith.constant 0 : index
    %168 = vector.load %arg6[%c0_29, %c0_30] : memref<64x64xf32, #tpu.memory_space<vmem>>, vector<64x64xf32>
    %cst_31 = arith.constant dense<0.000000e+00> : vector<32x64xf32>
    %169 = tpu.matmul %167, %168, %cst_31 {dimension_numbers = #tpu.dot_dimension_numbers<[1], [0], [0], [1], [0, 0, 1, 1], [], []>, precision = #tpu.contract_precision<fp32>} : vector<32x64xf32>, vector<64x64xf32>, vector<32x64xf32> -> vector<32x64xf32>
    %c0_32 = arith.constant 0 : index
    %c0_33 = arith.constant 0 : index
    %170 = vector.load %arg7[%c0_32, %c0_33] : memref<1x64xf32, #tpu.memory_space<vmem>>, vector<1x64xf32>
    %171 = vector.broadcast %170 : vector<1x64xf32> to vector<32x64xf32>
    %172 = arith.addf %169, %171 : vector<32x64xf32>
    %c0_34 = arith.constant 0 : index
    %c0_35 = arith.constant 0 : index
    %173 = vector.load %arg8[%c0_34, %c0_35] : memref<1x64xf32, #tpu.memory_space<vmem>>, vector<1x64xf32>
    %c0_36 = arith.constant 0 : index
    %c0_37 = arith.constant 0 : index
    %174 = vector.load %arg9[%c0_36, %c0_37] : memref<1x64xf32, #tpu.memory_space<vmem>>, vector<1x64xf32>
    %175 = arith.addf %172, %0 : vector<32x64xf32>
    %cst_38 = arith.constant dense<0.000000e+00> : vector<32xf32>
    %176 = vector.multi_reduction <add>, %175, %cst_38 [1] : vector<32x64xf32> to vector<32xf32>
    %177 = vector.shape_cast %176 : vector<32xf32> to vector<32x1xf32>
    %cst_39 = arith.constant 6.400000e+01 : f32
    %178 = vector.broadcast %cst_39 : f32 to vector<32x1xf32>
    %179 = arith.divf %177, %178 : vector<32x1xf32>
    %180 = vector.broadcast %179 : vector<32x1xf32> to vector<32x64xf32>
    %181 = arith.subf %175, %180 : vector<32x64xf32>
    %182 = arith.mulf %181, %181 : vector<32x64xf32>
    %cst_40 = arith.constant dense<0.000000e+00> : vector<32xf32>
    %183 = vector.multi_reduction <add>, %182, %cst_40 [1] : vector<32x64xf32> to vector<32xf32>
    %184 = vector.shape_cast %183 : vector<32xf32> to vector<32x1xf32>
    %cst_41 = arith.constant 6.400000e+01 : f32
    %185 = vector.broadcast %cst_41 : f32 to vector<32x1xf32>
    %186 = arith.divf %184, %185 : vector<32x1xf32>
    %187 = vector.broadcast %179 : vector<32x1xf32> to vector<32x64xf32>
    %188 = arith.subf %175, %187 : vector<32x64xf32>
    %cst_42 = arith.constant 9.99999974E-6 : f32
    %189 = vector.broadcast %cst_42 : f32 to vector<32x1xf32>
    %190 = arith.addf %186, %189 : vector<32x1xf32>
    %191 = math.rsqrt %190 : vector<32x1xf32>
    %192 = vector.broadcast %191 : vector<32x1xf32> to vector<32x64xf32>
    %193 = arith.mulf %188, %192 : vector<32x64xf32>
    %194 = vector.broadcast %173 : vector<1x64xf32> to vector<32x64xf32>
    %195 = arith.mulf %193, %194 : vector<32x64xf32>
    %196 = vector.broadcast %174 : vector<1x64xf32> to vector<32x64xf32>
    %197 = arith.addf %195, %196 : vector<32x64xf32>
    %c0_43 = arith.constant 0 : index
    %c0_44 = arith.constant 0 : index
    %198 = vector.load %arg10[%c0_43, %c0_44] : memref<64x64xf32, #tpu.memory_space<vmem>>, vector<64x64xf32>
    %cst_45 = arith.constant dense<0.000000e+00> : vector<32x64xf32>
    %199 = tpu.matmul %197, %198, %cst_45 {dimension_numbers = #tpu.dot_dimension_numbers<[1], [0], [0], [1], [0, 0, 1, 1], [], []>, precision = #tpu.contract_precision<fp32>} : vector<32x64xf32>, vector<64x64xf32>, vector<32x64xf32> -> vector<32x64xf32>
    %c0_46 = arith.constant 0 : index
    %c0_47 = arith.constant 0 : index
    %200 = vector.load %arg11[%c0_46, %c0_47] : memref<1x64xf32, #tpu.memory_space<vmem>>, vector<1x64xf32>
    %201 = vector.broadcast %200 : vector<1x64xf32> to vector<32x64xf32>
    %202 = arith.addf %199, %201 : vector<32x64xf32>
    %cst_48 = arith.constant 0.000000e+00 : f32
    %203 = vector.broadcast %cst_48 : f32 to vector<32x64xf32>
    %204 = arith.maximumf %202, %203 : vector<32x64xf32>
    %c0_49 = arith.constant 0 : index
    %c0_50 = arith.constant 0 : index
    %205 = vector.load %arg12[%c0_49, %c0_50] : memref<64x64xf32, #tpu.memory_space<vmem>>, vector<64x64xf32>
    %cst_51 = arith.constant dense<0.000000e+00> : vector<32x64xf32>
    %206 = tpu.matmul %204, %205, %cst_51 {dimension_numbers = #tpu.dot_dimension_numbers<[1], [0], [0], [1], [0, 0, 1, 1], [], []>, precision = #tpu.contract_precision<fp32>} : vector<32x64xf32>, vector<64x64xf32>, vector<32x64xf32> -> vector<32x64xf32>
    %c0_52 = arith.constant 0 : index
    %c0_53 = arith.constant 0 : index
    %207 = vector.load %arg13[%c0_52, %c0_53] : memref<1x64xf32, #tpu.memory_space<vmem>>, vector<1x64xf32>
    %208 = vector.broadcast %207 : vector<1x64xf32> to vector<32x64xf32>
    %209 = arith.addf %206, %208 : vector<32x64xf32>
    %210 = arith.addf %209, %197 : vector<32x64xf32>
    %cst_54 = arith.constant dense<0.000000e+00> : vector<32xf32>
    %211 = vector.multi_reduction <add>, %210, %cst_54 [1] : vector<32x64xf32> to vector<32xf32>
    %212 = vector.shape_cast %211 : vector<32xf32> to vector<32x1xf32>
    %cst_55 = arith.constant 6.400000e+01 : f32
    %213 = vector.broadcast %cst_55 : f32 to vector<32x1xf32>
    %214 = arith.divf %212, %213 : vector<32x1xf32>
    %215 = vector.broadcast %214 : vector<32x1xf32> to vector<32x64xf32>
    %216 = arith.subf %210, %215 : vector<32x64xf32>
    %217 = arith.mulf %216, %216 : vector<32x64xf32>
    %cst_56 = arith.constant dense<0.000000e+00> : vector<32xf32>
    %218 = vector.multi_reduction <add>, %217, %cst_56 [1] : vector<32x64xf32> to vector<32xf32>
    %219 = vector.shape_cast %218 : vector<32xf32> to vector<32x1xf32>
    %cst_57 = arith.constant 6.400000e+01 : f32
    %220 = vector.broadcast %cst_57 : f32 to vector<32x1xf32>
    %221 = arith.divf %219, %220 : vector<32x1xf32>
    %222 = vector.broadcast %214 : vector<32x1xf32> to vector<32x64xf32>
    %223 = arith.subf %210, %222 : vector<32x64xf32>
    %cst_58 = arith.constant 9.99999974E-6 : f32
    %224 = vector.broadcast %cst_58 : f32 to vector<32x1xf32>
    %225 = arith.addf %221, %224 : vector<32x1xf32>
    %226 = math.rsqrt %225 : vector<32x1xf32>
    %227 = vector.broadcast %226 : vector<32x1xf32> to vector<32x64xf32>
    %228 = arith.mulf %223, %227 : vector<32x64xf32>
    %229 = vector.broadcast %173 : vector<1x64xf32> to vector<32x64xf32>
    %230 = arith.mulf %228, %229 : vector<32x64xf32>
    %231 = vector.broadcast %174 : vector<1x64xf32> to vector<32x64xf32>
    %232 = arith.addf %230, %231 : vector<32x64xf32>
    %c0_59 = arith.constant 0 : index
    %c0_60 = arith.constant 0 : index
    %233 = vector.load %arg14[%c0_59, %c0_60] : memref<64x1xf32, #tpu.memory_space<vmem>>, vector<64x1xf32>
    %cst_61 = arith.constant dense<0.000000e+00> : vector<32x1xf32>
    %234 = tpu.matmul %232, %233, %cst_61 {dimension_numbers = #tpu.dot_dimension_numbers<[1], [0], [0], [1], [0, 0, 1, 1], [], []>, precision = #tpu.contract_precision<fp32>} : vector<32x64xf32>, vector<64x1xf32>, vector<32x1xf32> -> vector<32x1xf32>
    %c0_62 = arith.constant 0 : index
    %c0_63 = arith.constant 0 : index
    %235 = vector.load %arg15[%c0_62, %c0_63] : memref<1x1xf32, #tpu.memory_space<vmem>>, vector<1x1xf32>
    %236 = vector.broadcast %235 : vector<1x1xf32> to vector<32x1xf32>
    %237 = arith.addf %234, %236 : vector<32x1xf32>
    %238 = arith.negf %237 : vector<32x1xf32>
    %239 = math.exp %238 : vector<32x1xf32>
    %cst_64 = arith.constant 1.000000e+00 : f32
    %240 = vector.broadcast %cst_64 : f32 to vector<32x1xf32>
    %241 = arith.addf %240, %239 : vector<32x1xf32>
    %242 = arith.divf %240, %241 : vector<32x1xf32>
    %c0_65 = arith.constant 0 : index
    %c0_66 = arith.constant 0 : index
    %243 = vector.load %arg16[%c0_65, %c0_66] : memref<32x1xf32, #tpu.memory_space<vmem>>, vector<32x1xf32>
    tpu.vector_store %arg16[%c0_65, %c0_66], %242 {strides = array<i32>} : memref<32x1xf32, #tpu.memory_space<vmem>>, vector<32x1xf32>,
    return
  }
}

</mosaic_0001>

<bundles_post_ra>
// kernel: tpu_custom_call.1
= control target key start
LH: loop header
LB: loop body
LE: loop exit
PB: predicated region body
PF: predicated region fallthrough
CT: control target
= control target key end

     0   :  { %s20232_s0 = inlined_call_operand.hbm [shape: f32[32,64], index: 0, kind: input, shape index: {}]   ;;  %s20233_s1 = inlined_call_operand.hbm [shape: f32[32,64], index: 1, kind: input, shape index: {}]   ;;  %s20234_s2 = inlined_call_operand.vmem [shape: f32[64,64], index: 2, kind: input, shape index: {}]   ;;  %s20235_s3 = inlined_call_operand.vmem [shape: f32[1,64], index: 3, kind: input, shape index: {}]   ;;  %s20236_s4 = inlined_call_operand.hbm [shape: f32[64,128], index: 4, kind: input, shape index: {}]   ;;  %s20237_s5 = inlined_call_operand.vmem [shape: f32[1,128], index: 5, kind: input, shape index: {}]   ;;  %s20238_s6 = inlined_call_operand.hbm [shape: f32[64,64], index: 6, kind: input, shape index: {}]   ;;  %s20239_s7 = inlined_call_operand.vmem [shape: f32[1,64], index: 7, kind: input, shape index: {}]   ;;  %s20240_s8 = inlined_call_operand.vmem [shape: f32[1,64], index: 8, kind: input, shape index: {}]   ;;  %s20241_s9 = inlined_call_operand.vmem [shape: f32[1,64], index: 9, kind: input, shape index: {}]   ;;  %s20242_s10 = inlined_call_operand.hbm [shape: f32[64,64], index: 10, kind: input, shape index: {}]   ;;  %s20243_s11 = inlined_call_operand.vmem [shape: f32[1,64], index: 11, kind: input, shape index: {}]   ;;  %s20244_s12 = inlined_call_operand.hbm [shape: f32[64,64], index: 12, kind: input, shape index: {}]   ;;  %s20245_s13 = inlined_call_operand.vmem [shape: f32[1,64], index: 13, kind: input, shape index: {}]   ;;  %s20246_s14 = inlined_call_operand.vmem [shape: f32[64,1], index: 14, kind: input, shape index: {}]   ;;  %s20247_s15 = inlined_call_operand.<no memory space> [shape: f32[1,1], index: 15, kind: input, shape index: {}]   ;;  %s20248_s16 = inlined_call_operand.vmem [shape: f32[32,1], index: 16, kind: output, shape index: {0}]   ;;  %s20249_s17 = inlined_call_operand.vmem [shape: f32[32,16], index: 17, kind: output, shape index: {1}]  }
   0x1   :  { %20678 = sst [smem:[#allocation173_spill]] %s20232_s0  ;;  %v23_v0 = vstv %s20247_s15 }
   0x2   :  { %20679 = sst [smem:[#allocation174_spill]] %s20233_s1  ;;  %24 = vst [vmem:[#allocation2] sm:$0x1] %v23_v0 }
   0x3   :  { %25 = vsyncpa [#allocation4], 0 }
   0x4   :  { %26 = vsyncpa [#allocation6], 0 }
   0x5   :  { %27 = vsyncpa [#allocation9], 0 }
   0x6   :  { %28 = vsyncpa [#allocation12], 0  ;;  %s14368_s26 = smov [#allocation5]   ;;  %s14369_s28 = smov [#allocation8]  }
   0x7   :  { %s46_s27 = sshll.u32 %s14368_s26, 4  ;;  %s76_s29 = sshll.u32 %s14369_s28, 4  ;;  %s47_s27 = int_to_ptr.vmem [resolvable:$true] %s46_s27  ;;  %s77_s29 = int_to_ptr.vmem [resolvable:$true] %s76_s29 }
   0x8   :  { %s14248_s0 = scalar_lea.vmem %s47_s27, 512  ;;  %p14253_p1 = scmp.lt.s32.totalorder %s47_s27, %s47_s27 }
   0x9   :  { %p14249_p0 = scmp.ne.s32.totalorder %s47_s27, %s14248_s0  ;;  %p14254_p2 = scmp.lt.s32.totalorder %s14248_s0, %s14248_s0 }
   0xb   :  { %p14255_p3 = por %p14254_p2, %p14253_p1 }
   0xd   :  { %p14256_p4 = pnand %p14255_p3, %p14249_p0 }
   0xf   :  { %14259 = shalt.err (!%p14256_p4)
}
  0x10   :  { %s14370_s30 = smov 128   ;;  %s14371_s15 = smov 8  }
  0x11   :  { %s20680_s1 = sld [smem:[#allocation174_spill]]  ;;  %s14268_s20 = scalar_lea.vmem %s77_s29, 1024 }
  0x12   :  { %p14269_p5 = scmp.ne.s32.totalorder %s77_s29, %s14268_s20  ;;  %p14273_p6 = scmp.lt.s32.totalorder %s77_s29, %s77_s29 }
  0x13   :  { %p14274_p7 = scmp.lt.s32.totalorder %s14268_s20, %s14268_s20 }
  0x15   :  { %p14275_p8 = por %p14274_p7, %p14273_p6 }
  0x17   :  { %52 = dma.hbm_to_vmem [thread:$0]  %s20680_s1, 512, %s47_s27, [#allocation6], %s14370_s30, %s14370_s30, %s14371_s15  }
  0x18   :  { %p14276_p9 = pnand %p14275_p8, %p14269_p5 }
  0x1a   :  { %14279 = shalt.err (!%p14276_p9)
}
  0x1b   :  { %82 = dma.hbm_to_vmem [thread:$0]  %s20238_s6, 1024, %s77_s29, [#allocation9], %s14370_s30, %s14370_s30, %s14371_s15  }
  0x1c   :  { %s14372_s23 = smov [#allocation3]   ;;  %s14373_s25 = smov [#allocation7]  }
  0x1d   :  { %s34_s24 = sshll.u32 %s14372_s23, 4  ;;  %s62_s26 = sshll.u32 %s14373_s25, 4  ;;  %s35_s24 = int_to_ptr.vmem [resolvable:$true] %s34_s24  ;;  %s63_s26 = int_to_ptr.vmem [resolvable:$true] %s62_s26 }
  0x1e   :  { %s14288_s27 = scalar_lea.vmem %s35_s24, 512  ;;  %p14293_p11 = scmp.lt.s32.totalorder %s35_s24, %s35_s24 }
  0x1f   :  { %p14289_p10 = scmp.ne.s32.totalorder %s35_s24, %s14288_s27  ;;  %p14294_p12 = scmp.lt.s32.totalorder %s14288_s27, %s14288_s27 }
  0x21   :  { %p14295_p13 = por %p14294_p12, %p14293_p11 }
  0x23   :  { %p14296_p0 = pnand %p14295_p13, %p14289_p10 }
  0x25   :  { %14299 = shalt.err (!%p14296_p0)
}
  0x26   :  { %s20681_s18 = sld [smem:[#allocation173_spill]]  ;;  %s14308_s6 = scalar_lea.vmem %s63_s26, 1024 }
  0x27   :  { %p14309_p1 = scmp.ne.s32.totalorder %s63_s26, %s14308_s6  ;;  %p14313_p2 = scmp.lt.s32.totalorder %s63_s26, %s63_s26 }
  0x28   :  { %p14314_p3 = scmp.lt.s32.totalorder %s14308_s6, %s14308_s6 }
  0x2a   :  { %p14315_p4 = por %p14314_p3, %p14313_p2 }
  0x2c   :  { %40 = dma.hbm_to_vmem [thread:$0]  %s20681_s18, 512, %s35_s24, [#allocation4], %s14370_s30, %s14370_s30, %s14371_s15  }
  0x2d   :  { %p14316_p5 = pnand %p14315_p4, %p14309_p1 }
  0x2f   :  { %14319 = shalt.err (!%p14316_p5)
}
  0x30   :  { %68 = dma.hbm_to_vmem [thread:$0]  %s20236_s4, 1024, %s63_s26, [#allocation6], %s14370_s30, %s14370_s30, %s14371_s15  }
  0x31   :  { %s14374_s1 = smov [#allocation10]   ;;  %s14375_s21 = smov [#allocation11]  }
  0x32   :  { %s94_s20 = sshll.u32 %s14374_s1, 4  ;;  %s108_s22 = sshll.u32 %s14375_s21, 4  ;;  %s95_s20 = int_to_ptr.vmem [resolvable:$true] %s94_s20  ;;  %s109_s22 = int_to_ptr.vmem [resolvable:$true] %s108_s22 }
  0x33   :  { %s14328_s23 = scalar_lea.vmem %s95_s20, 1024  ;;  %p14333_p7 = scmp.lt.s32.totalorder %s95_s20, %s95_s20 }
  0x34   :  { %p14329_p6 = scmp.ne.s32.totalorder %s95_s20, %s14328_s23  ;;  %p14334_p8 = scmp.lt.s32.totalorder %s14328_s23, %s14328_s23 }
  0x36   :  { %p14335_p9 = por %p14334_p8, %p14333_p7 }
  0x38   :  { %p14336_p10 = pnand %p14335_p9, %p14329_p6 }
  0x3a   :  { %14339 = shalt.err (!%p14336_p10)
}
  0x3b   :  { %100 = dma.hbm_to_vmem [thread:$0]  %s20242_s10, 1024, %s95_s20, [#allocation9], %s14370_s30, %s14370_s30, %s14371_s15  }
  0x3c   :  { %s14348_s4 = scalar_lea.vmem %s109_s22, 1024  ;;  %p14353_p12 = scmp.lt.s32.totalorder %s109_s22, %s109_s22 }
  0x3d   :  { %p14349_p11 = scmp.ne.s32.totalorder %s109_s22, %s14348_s4  ;;  %p14354_p13 = scmp.lt.s32.totalorder %s14348_s4, %s14348_s4 }
  0x3f   :  { %p14355_p0 = por %p14354_p13, %p14353_p12 }
  0x41   :  { %p14356_p1 = pnand %p14355_p0, %p14349_p11 }
  0x43   :  { %14359 = shalt.err (!%p14356_p1)
}
  0x44   :  { %114 = dma.hbm_to_vmem [thread:$0]  %s20244_s12, 1024, %s109_s22, [#allocation12], %s14370_s30, %s14370_s30, %s14371_s15  }
  0x45   :  { %14360 = dma.done.wait [#allocation4], 512  }
  0x46   :  { %14361 = vsyncadd [#allocation4], 4294966784 }
  0x47   :  { %14362 = dma.done.wait [#allocation6], 1536  }
  0x48   :  { %14363 = vsyncadd [#allocation6], 4294965760 }
  0x49   :  { %14364 = dma.done.wait [#allocation9], 2048  }
  0x4a   :  { %14365 = vsyncadd [#allocation9], 4294965248 }
  0x4b   :  { %14366 = dma.done.wait [#allocation12], 1024  }
  0x4c   :  { %14367 = vsyncadd [#allocation12], 4294966272  ;;  %v154_v1 = vld [vmem:[%s20234_s2 + $0x38] sm:$0xff]  ;;  %v153_v2 = vld [vmem:[%s20234_s2 + $0x30] sm:$0xff]  ;;  %vm20380_vm0 = vcmask 523264   ;;  %vm20384_vm1 = vcmask 64512  }
  0x4d   :  { %v152_v3 = vld [vmem:[%s20234_s2 + $0x28] sm:$0xff]  ;;  %v14528_v4 = vand.u32 4294901760, %v154_v1  ;;  %v14530_v5 = vand.u32 4294901760, %v153_v2  ;;  %v151_v7 = vld [vmem:[%s20234_s2 + $0x20] sm:$0xff]  ;;  %v150_v8 = vld [vmem:[%s20234_s2 + $0x18] sm:$0xff]  ;;  %s14376_s10 = smov 80  }
  0x4e   :  { %v14532_v6 = vand.u32 4294901760, %v152_v3  ;;  %v149_v9 = vld [vmem:[%s20234_s2 + $0x10] sm:$0xff]  ;;  %v14543_v10 = vand.u32 4294901760, %v151_v7  ;;  %v14545_v11 = vand.u32 4294901760, %v150_v8  ;;  %v148_v13 = vld [vmem:[%s20234_s2 + $0x8] sm:$0xff]  ;;  %v147_v14 = vld [vmem:[%s20234_s2] sm:$0xff] }
  0x4f   :  { %v14547_v12 = vand.u32 4294901760, %v149_v9  ;;  %v139_v15 = vld [vmem:[#allocation3] sm:$0xff]  ;;  %11914 = vmatprep.subr.mxu0 %v14528_v4  ;;  %v14557_v16 = vsub.f32 %v154_v1, %v14528_v4  ;;  %v14560_v17 = vsub.f32 %v153_v2, %v14530_v5  ;;  %v14562_v18 = vand.u32 4294901760, %v148_v13  ;;  %v140_v20 = vld [vmem:[#allocation3 + $0x8] sm:$0xff]  ;;  %v141_v38 = vld [vmem:[#allocation3 + $0x10] sm:$0xff]  ;;  %s14377_s28 = smov 72  }
  0x50   :  { %v14565_v19 = vsub.f32 %v152_v3, %v14532_v6  ;;  %11915 = vmatpush3.msra.mxu0 %v14528_v4  ;;  %v14568_v21 = vand.u32 4294901760, %v147_v14  ;;  %v14571_v22 = vsub.f32 %v151_v7, %v14543_v10  ;;  %v164_v23 = vsel %vm20380_vm0, %v139_v15, 0  ;;  %v142_v43 = vld [vmem:[#allocation3 + $0x18] sm:$0xff]  ;;  %s14378_s0 = smov 88   ;;  %s14379_s18 = smov 96  }
  0x51   :  { %v14575_v24 = vsub.f32 %v150_v8, %v14545_v11  ;;  %11916 = vmatprep.subr.mxu0 %v14530_v5  ;;  %v14579_v25 = vand.u32 4294901760, %v14557_v16  ;;  %v14582_v26 = vand.u32 4294901760, %v14560_v17  ;;  %v14587_v28 = vand.u32 4294901760, %v164_v23  ;;  %s14380_s6 = smov 104   ;;  %s14381_s29 = smov 112  }
  0x52   :  { %v14585_v27 = vand.u32 4294901760, %v14565_v19  ;;  %11917 = vmatpush3.msra.mxu0 %v14530_v5  ;;  %v14591_v29 = vand.u32 4294901760, %v14571_v22  ;;  %v167_v31 = vsel %vm20380_vm0, %v140_v20, 0  ;;  %v14598_v32 = vsub.f32 %v149_v9, %v14547_v12  ;;  %v852_v20 = vld [vmem:[#allocation7 + $0x38] sm:$0xff]  ;;  %s14382_s12 = smov 120   ;;  %s14383_s30 = smov 64  }
  0x53   :  { %v14594_v30 = vand.u32 4294901760, %v14575_v24  ;;  %11918 = vmatprep.subr.mxu0 %v14532_v6  ;;  %v308_v33 = vsub.f32 %v14557_v16, %v14579_v25  ;;  %v315_v34 = vsub.f32 %v14560_v17, %v14582_v26  ;;  %v14608_v36 = vsub.f32 %v164_v23, %v14587_v28  ;;  %11952 = vmatprep.mubr.f32.mxu1 %v14587_v28  ;;  %s14385_s21 = smov 24   ;;  %s14386_s22 = smov 32  }
  0x54   :  { %v322_v35 = vsub.f32 %v14565_v19, %v14585_v27  ;;  %11919 = vmatpush3.msra.mxu0 %v14532_v6  ;;  %v14611_v37 = vand.u32 4294901760, %v167_v31  ;;  %v329_v41 = vsub.f32 %v14571_v22, %v14591_v29  ;;  %v14625_v47 = vand.u32 4294901760, %v14598_v32  ;;  %s14387_s23 = smov 40   ;;  %s14388_s24 = smov 48  }
  0x55   :  { %11920 = vmatprep.subr.mxu0 %v14543_v10  ;;  %v309_v39 = vand.u32 4294901760, %v308_v33  ;;  %v316_v40 = vand.u32 4294901760, %v315_v34  ;;  %v250_v42 = vand.u32 4294901760, %v14608_v36  ;;  %v336_v45 = vsub.f32 %v14575_v24, %v14594_v30  ;;  %s14389_s25 = smov 56  }
  0x56   :  { %11921 = vmatpush3.msra.mxu0 %v14543_v10  ;;  %v323_v44 = vand.u32 4294901760, %v322_v35  ;;  %v14622_v46 = vsub.f32 %v167_v31, %v14611_v37  ;;  %v14632_v49 = vsub.f32 %v148_v13, %v14562_v18  ;;  %v14635_v50 = vsub.f32 %v147_v14, %v14568_v21  ;;  %v847_v35 = vld [vmem:[#allocation7 + $0x10] sm:$0xff] }
  0x57   :  { %11922 = vmatprep.subr.mxu0 %v14545_v11  ;;  %11936 = vmatprep.subr.mxu1 %v309_v39  ;;  %v251_v48 = vsub.f32 %v14608_v36, %v250_v42  ;;  %v170_v51 = vsel %vm20380_vm0, %v141_v38, 0  ;;  %v173_v54 = vsel %vm20380_vm0, %v142_v43, 0  ;;  %v330_v55 = vand.u32 4294901760, %v329_v41 }
  0x58   :  { %11923 = vmatpush3.msra.mxu0 %v14545_v11  ;;  %11937 = vmatpush3.msra.mxu1 %v309_v39  ;;  %v260_v52 = vand.u32 4294901760, %v14622_v46  ;;  %v14640_v53 = vand.u32 4294901760, %v170_v51  ;;  %v14645_v56 = vand.u32 4294901760, %v14632_v49  ;;  %v14647_v57 = vand.u32 4294901760, %v173_v54 }
  0x59   :  { %11924 = vmatprep.subr.mxu0 %v14547_v12  ;;  %11938 = vmatprep.subr.mxu1 %v316_v40  ;;  %v343_v59 = vsub.f32 %v14598_v32, %v14625_v47  ;;  %v14656_v60 = vand.u32 4294901760, %v14635_v50  ;;  %v252_v61 = vand.u32 4294901760, %v251_v48  ;;  %v337_v62 = vand.u32 4294901760, %v336_v45 }
  0x5a   :  { %11925 = vmatpush3.msra.mxu0 %v14547_v12  ;;  %11939 = vmatpush3.msra.mxu1 %v316_v40  ;;  %v261_v58 = vsub.f32 %v14622_v46, %v260_v52  ;;  %v14660_v63 = vsub.f32 %v170_v51, %v14640_v53  ;;  %v350_v1 = vsub.f32 %v14632_v49, %v14645_v56  ;;  %v14734_v23 = vand.u32 4294901760, %v852_v20  ;;  %v846_v40 = vld [vmem:[#allocation7 + $0x8] sm:$0xff] }
  0x5b   :  { %11926 = vmatprep.subr.mxu0 %v14562_v18  ;;  %11940 = vmatprep.subr.mxu1 %v323_v44  ;;  %v14667_v2 = vsub.f32 %v173_v54, %v14647_v57  ;;  %v344_v3 = vand.u32 4294901760, %v343_v59  ;;  %v357_v7 = vsub.f32 %v14635_v50, %v14656_v60  ;;  %v145_v54 = vld [vmem:[#allocation5 + $0x10] sm:$0xff] }
  0x5c   :  { %11927 = vmatpush3.msra.mxu0 %v14562_v18  ;;  %11941 = vmatpush3.msra.mxu1 %v323_v44  ;;  %v262_v0 = vand.u32 4294901760, %v261_v58  ;;  %v270_v8 = vand.u32 4294901760, %v14660_v63  ;;  %v351_v9 = vand.u32 4294901760, %v350_v1  ;;  %v845_v44 = vld [vmem:[#allocation7] sm:$0xff] }
  0x5d   :  { %11928 = vmatprep.subr.mxu0 %v14568_v21  ;;  %11942 = vmatprep.subr.mxu1 %v330_v55  ;;  %v280_v13 = vand.u32 4294901760, %v14667_v2  ;;  %v358_v14 = vand.u32 4294901760, %v357_v7 }
  0x5e   :  { %11929 = vmatpush3.msra.mxu0 %v14568_v21  ;;  %11943 = vmatpush3.msra.mxu1 %v330_v55  ;;  %v271_v15 = vsub.f32 %v14660_v63, %v270_v8 }
  0x5f   :  { %11930 = vmatprep.mubr.f32.mxu0 %v252_v61  ;;  %11944 = vmatprep.subr.mxu1 %v337_v62 }
  0x60   :  { %11958 = vmatprep.subr.mxu0 %v14557_v16  ;;  %11931 = vmatmul.mubr.f32.vlgmr.msra.gmra.mxu0 %v262_v0 }
  0x61   :  { %11945 = vmatpush3.msra.mxu1 %v337_v62  ;;  %11959 = vmatpush3.msra.mxu0 %v14557_v16  ;;  %v281_v16 = vsub.f32 %v14667_v2, %v280_v13 }
  0x62   :  { %11946 = vmatprep.subr.mxu1 %v344_v3  ;;  %11960 = vmatprep.subr.mxu0 %v14560_v17 }
  0x63   :  { %11947 = vmatpush3.msra.mxu1 %v344_v3  ;;  %11961 = vmatpush3.msra.mxu0 %v14560_v17  ;;  %v272_v17 = vand.u32 4294901760, %v271_v15 }
  0x64   :  { %11948 = vmatprep.subr.mxu1 %v351_v9  ;;  %11962 = vmatprep.subr.mxu0 %v14565_v19 }
  0x65   :  { %11949 = vmatpush3.msra.mxu1 %v351_v9  ;;  %11963 = vmatpush3.msra.mxu0 %v14565_v19  ;;  %v282_v19 = vand.u32 4294901760, %v281_v16 }
  0x66   :  { %11950 = vmatprep.subr.mxu1 %v358_v14  ;;  %11964 = vmatprep.subr.mxu0 %v14571_v22 }
  0x67   :  { %11951 = vmatpush3.msra.mxu1 %v358_v14  ;;  %11965 = vmatpush3.msra.mxu0 %v14571_v22  ;;  %v851_v22 = vld [vmem:[#allocation7 + $0x30] sm:$0xff] }
  0x68   :  { %11953 = vmatmul.mubr.f32.vlgmr.msra.gmra.mxu1 %v14611_v37  ;;  %11966 = vmatprep.subr.mxu0 %v14575_v24 }
  0x69   :  { %11980 = vmatprep.subr.mxu1 %v14528_v4  ;;  %11967 = vmatpush3.msra.mxu0 %v14575_v24  ;;  %v14741_v24 = vand.u32 4294901760, %v851_v22 }
  0x6a   :  { %11981 = vmatpush3.msra.mxu1 %v14528_v4  ;;  %11968 = vmatprep.subr.mxu0 %v14598_v32 }
  0x6b   :  { %11982 = vmatprep.subr.mxu1 %v14530_v5  ;;  %11933 = vmatprep.mubr.f32.mxu0 %v272_v17 }
  0x6c   :  { %11969 = vmatpush3.msra.mxu0 %v14598_v32  ;;  %11983 = vmatpush3.msra.mxu1 %v14530_v5  ;;  %v14759_v32 = vsub.f32 %v851_v22, %v14741_v24 }
  0x6d   :  { %11934 = vmatmul.mubr.f32.gmra.mxu0 %v282_v19  ;;  %11970 = vmatprep.subr.mxu0 %v14632_v49 }
  0x6e   :  { %11984 = vmatprep.subr.mxu1 %v14532_v6  ;;  %11971 = vmatpush3.msra.mxu0 %v14632_v49 }
  0x6f   :  { %11985 = vmatpush3.msra.mxu1 %v14532_v6  ;;  %11972 = vmatprep.subr.mxu0 %v14635_v50 }
  0x70   :  { %11986 = vmatprep.subr.mxu1 %v14543_v10  ;;  %11973 = vmatpush3.msra.mxu0 %v14635_v50 }
  0x71   :  { %11974 = vmatprep.mubr.f32.mxu0 %v14608_v36  ;;  %11987 = vmatpush3.msra.mxu1 %v14543_v10 }
  0x72   :  { %11975 = vmatmul.mubr.f32.vlgmr.msra.gmra.mxu0 %v14622_v46  ;;  %11988 = vmatprep.subr.mxu1 %v14545_v11  ;;  %v14803_v46 = vand.u32 4294901760, %v846_v40 }
  0x73   :  { %12002 = vmatprep.subr.mxu0 %v14579_v25  ;;  %11989 = vmatpush3.msra.mxu1 %v14545_v11 }
  0x74   :  { %12003 = vmatpush3.msra.mxu0 %v14579_v25  ;;  %11955 = vmatprep.mubr.f32.mxu1 %v14640_v53  ;;  %v850_v25 = vld [vmem:[#allocation7 + $0x28] sm:$0xff]  ;;  %v14839_v59 = vsub.f32 %v846_v40, %v14803_v46 }
  0x75   :  { %11990 = vmatprep.subr.mxu1 %v14547_v12  ;;  %12004 = vmatprep.subr.mxu0 %v14582_v26 }
  0x76   :  { %11956 = vmatmul.mubr.f32.gmra.mxu1 %v14647_v57  ;;  %12005 = vmatpush3.msra.mxu0 %v14582_v26  ;;  %v143_v26 = vld [vmem:[#allocation5] sm:$0xff]  ;;  %v14864_v7 = vand.u32 4294901760, %v14839_v59 }
  0x77   :  { %11991 = vmatpush3.msra.mxu1 %v14547_v12  ;;  %11977 = vmatprep.mubr.f32.mxu0 %v14660_v63  ;;  %v861_v31 = vsel %vm20380_vm0, %v143_v26, 0  ;;  %v867_v63 = vsel %vm20380_vm0, %v145_v54, 0 }
  0x78   :  { %11992 = vmatprep.subr.mxu1 %v14562_v18  ;;  %12006 = vmatprep.subr.mxu0 %v14585_v27  ;;  %v14771_v36 = vand.u32 4294901760, %v861_v31  ;;  %v1047_v19 = vsub.f32 %v14839_v59, %v14864_v7 }
  0x79   :  { %11978 = vmatmul.mubr.f32.gmra.mxu0 %v14667_v2  ;;  %11993 = vmatpush3.msra.mxu1 %v14562_v18 }
  0x7a   :  { %12007 = vmatpush3.msra.mxu0 %v14585_v27  ;;  %11994 = vmatprep.subr.mxu1 %v14568_v21  ;;  %v14749_v27 = vsub.f32 %v852_v20, %v14734_v23  ;;  %v14799_v45 = vsub.f32 %v861_v31, %v14771_v36 }
  0x7b   :  { %12008 = vmatprep.subr.mxu0 %v14591_v29  ;;  %11995 = vmatpush3.msra.mxu1 %v14568_v21 }
  0x7c   :  { %11996 = vmatprep.mubr.f32.mxu1 %v250_v42  ;;  %12009 = vmatpush3.msra.mxu0 %v14591_v29  ;;  %v144_v29 = vld [vmem:[#allocation5 + $0x8] sm:$0xff]  ;;  %v14789_v42 = vand.u32 4294901760, %v847_v35 }
  0x7d   :  { %11997 = vmatmul.mubr.f32.vlgmr.msra.gmra.mxu1 %v260_v52  ;;  %12010 = vmatprep.subr.mxu0 %v14594_v30  ;;  %v864_v34 = vsel %vm20380_vm0, %v144_v29, 0 }
  0x7e   :  { %12024 = vmatprep.subr.mxu1 %v14528_v4  ;;  %12011 = vmatpush3.msra.mxu0 %v14594_v30  ;;  %v14753_v30 = vand.u32 4294901760, %v850_v25  ;;  %v14785_v41 = vand.u32 4294901760, %v864_v34  ;;  %v14826_v52 = vsub.f32 %v847_v35, %v14789_v42 }
  0x7f   :  { %12025 = vmatpush3.msra.mxu1 %v14528_v4  ;;  %12012 = vmatprep.subr.mxu0 %v14625_v47  ;;  %v849_v4 = vld [vmem:[#allocation7 + $0x20] sm:$0xff] }
  0x80   :  { %12026 = vmatprep.subr.mxu1 %v14530_v5  ;;  %11999 = vmatprep.mubr.f32.mxu1 %v270_v8  ;;  %v14763_v33 = vand.u32 4294901760, %v849_v4  ;;  %v14778_v39 = vsub.f32 %v850_v25, %v14753_v30  ;;  %v14816_v50 = vsub.f32 %v864_v34, %v14785_v41  ;;  %v14850_v0 = vand.u32 4294901760, %v14826_v52 }
  0x81   :  { %12013 = vmatpush3.msra.mxu0 %v14625_v47  ;;  %12027 = vmatpush3.msra.mxu1 %v14530_v5  ;;  %v848_v5 = vld [vmem:[#allocation7 + $0x18] sm:$0xff]  ;;  %v14866_v8 = vand.u32 4294901760, %v867_v63 }
  0x82   :  { %12000 = vmatmul.mubr.f32.gmra.mxu1 %v280_v13  ;;  %12014 = vmatprep.subr.mxu0 %v14645_v56  ;;  %v14775_v38 = vand.u32 4294901760, %v848_v5  ;;  %v14792_v43 = vsub.f32 %v849_v4, %v14763_v33  ;;  %v14806_v47 = vand.u32 4294901760, %v14778_v39  ;;  %v957_v62 = vand.u32 4294901760, %v14816_v50 }
  0x83   :  { %12028 = vmatprep.subr.mxu1 %v14532_v6  ;;  %12015 = vmatpush3.msra.mxu0 %v14645_v56  ;;  %v947_v56 = vand.u32 4294901760, %v14799_v45  ;;  %v1040_v14 = vsub.f32 %v14826_v52, %v14850_v0  ;;  %v14886_v20 = vsub.f32 %v867_v63, %v14866_v8  ;;  %v1048_v4 = vand.u32 4294901760, %v1047_v19 }
  0x84   :  { %12029 = vmatpush3.msra.mxu1 %v14532_v6  ;;  %12016 = vmatprep.subr.mxu0 %v14656_v60  ;;  %v14769_v6 = vand.u32 4294901760, %v14749_v27  ;;  %v14809_v48 = vsub.f32 %v848_v5, %v14775_v38  ;;  %v14823_v51 = vand.u32 4294901760, %v14792_v43  ;;  %v958_v9 = vsub.f32 %v14816_v50, %v957_v62 }
  0x85   :  { %12030 = vmatprep.subr.mxu1 %v14543_v10  ;;  %12017 = vmatpush3.msra.mxu0 %v14656_v60  ;;  %v146_v60 = vld [vmem:[#allocation5 + $0x18] sm:$0xff]  ;;  %v967_v29 = vand.u32 4294901760, %v14886_v20 }
  0x86   :  { %12018 = vmatprep.mubr.f32.mxu0 %v14587_v28  ;;  %12031 = vmatpush3.msra.mxu1 %v14543_v10  ;;  %v14783_v10 = vand.u32 4294901760, %v14759_v32  ;;  %v14836_v58 = vand.u32 4294901760, %v14809_v48  ;;  %v959_v22 = vand.u32 4294901760, %v958_v9 }
  0x87   :  { %12019 = vmatmul.mubr.f32.vlgmr.msra.gmra.mxu0 %v14611_v37  ;;  %12032 = vmatprep.subr.mxu1 %v14545_v11  ;;  %v968_v34 = vsub.f32 %v14886_v20, %v967_v29 }
  0x88   :  { %12046 = vmatprep.subr.mxu0 %v14734_v23  ;;  %12033 = vmatpush3.msra.mxu1 %v14545_v11  ;;  %v1005_v11 = vsub.f32 %v14749_v27, %v14769_v6  ;;  %v1012_v49 = vsub.f32 %v14759_v32, %v14783_v10  ;;  %v1033_v3 = vsub.f32 %v14809_v48, %v14836_v58 }
  0x89   :  { %12047 = vmatpush3.msra.mxu0 %v14734_v23  ;;  %12034 = vmatprep.subr.mxu1 %v14547_v12 }
  0x8a   :  { %12048 = vmatprep.subr.mxu0 %v14741_v24  ;;  %12021 = vmatprep.mubr.f32.mxu0 %v14640_v53  ;;  %v1006_v55 = vand.u32 4294901760, %v1005_v11  ;;  %v1013_v61 = vand.u32 4294901760, %v1012_v49  ;;  %v1034_v17 = vand.u32 4294901760, %v1033_v3 }
  0x8b   :  { %12035 = vmatpush3.msra.mxu1 %v14547_v12  ;;  %12049 = vmatpush3.msra.mxu0 %v14741_v24  ;;  %v14820_v12 = vand.u32 4294901760, %v845_v44 }
  0x8c   :  { %12022 = vmatmul.mubr.f32.gmra.mxu0 %v14647_v57  ;;  %12036 = vmatprep.subr.mxu1 %v14562_v18 }
  0x8d   :  { %12050 = vmatprep.subr.mxu0 %v14753_v30  ;;  %12037 = vmatpush3.msra.mxu1 %v14562_v18  ;;  %v1019_v18 = vsub.f32 %v14778_v39, %v14806_v47  ;;  %v14853_v1 = vsub.f32 %v845_v44, %v14820_v12 }
  0x8e   :  { %12051 = vmatpush3.msra.mxu0 %v14753_v30  ;;  %12038 = vmatprep.subr.mxu1 %v14568_v21 }
  0x8f   :  { %12052 = vmatprep.subr.mxu0 %v14763_v33  ;;  %12039 = vmatpush3.msra.mxu1 %v14568_v21  ;;  %v1026_v21 = vsub.f32 %v14792_v43, %v14823_v51  ;;  %v1020_v2 = vand.u32 4294901760, %v1019_v18  ;;  %v14876_v15 = vand.u32 4294901760, %v14853_v1 }
  0x90   :  { %12040 = vmatprep.mubr.f32.mxu1 %v14587_v28  ;;  %12053 = vmatpush3.msra.mxu0 %v14763_v33  ;;  %v948_v28 = vsub.f32 %v14799_v45, %v947_v56 }
  0x91   :  { %12041 = vmatmul.mubr.f32.vlgmr.msra.gmra.mxu1 %v14611_v37  ;;  %12054 = vmatprep.subr.mxu0 %v14775_v38  ;;  %v870_v37 = vsel %vm20380_vm0, %v146_v60, 0  ;;  %v1027_v13 = vand.u32 4294901760, %v1026_v21  ;;  %v1054_v25 = vsub.f32 %v14853_v1, %v14876_v15 }
  0x92   :  { %12068 = vmatprep.subr.mxu1 %v1006_v55  ;;  %12055 = vmatpush3.msra.mxu0 %v14775_v38  ;;  %v14878_v16 = vand.u32 4294901760, %v870_v37 }
  0x93   :  { %12069 = vmatpush3.msra.mxu1 %v1006_v55  ;;  %12056 = vmatprep.subr.mxu0 %v14789_v42  ;;  %v1055_v31 = vand.u32 4294901760, %v1054_v25 }
  0x94   :  { %12070 = vmatprep.subr.mxu1 %v1013_v61  ;;  %12043 = vmatprep.mubr.f32.mxu1 %v14640_v53  ;;  %v949_v53 = vand.u32 4294901760, %v948_v28  ;;  %v14893_v26 = vsub.f32 %v870_v37, %v14878_v16 }
  0x95   :  { %12057 = vmatpush3.msra.mxu0 %v14789_v42  ;;  %12071 = vmatpush3.msra.mxu1 %v1013_v61 }
  0x96   :  { %12044 = vmatmul.mubr.f32.gmra.mxu1 %v14647_v57  ;;  %12058 = vmatprep.subr.mxu0 %v14803_v46  ;;  %v1041_v57 = vand.u32 4294901760, %v1040_v14  ;;  %v977_v5 = vand.u32 4294901760, %v14893_v26 }
  0x97   :  { %12072 = vmatprep.subr.mxu1 %v1020_v2  ;;  %12059 = vmatpush3.msra.mxu0 %v14803_v46 }
  0x98   :  { %12073 = vmatpush3.msra.mxu1 %v1020_v2  ;;  %12060 = vmatprep.subr.mxu0 %v14820_v12 }
  0x99   :  { %12074 = vmatprep.subr.mxu1 %v1027_v13  ;;  %12061 = vmatpush3.msra.mxu0 %v14820_v12 }
  0x9a   :  { %12075 = vmatpush3.msra.mxu1 %v1027_v13  ;;  %12062 = vmatprep.mubr.f32.mxu0 %v949_v53 }
  0x9b   :  { %12076 = vmatprep.subr.mxu1 %v1034_v17  ;;  %12090 = vmatprep.subr.mxu0 %v14749_v27 }
  0x9c   :  { %12063 = vmatmul.mubr.f32.vlgmr.msra.gmra.mxu0 %v959_v22  ;;  %12077 = vmatpush3.msra.mxu1 %v1034_v17 }
  0x9d   :  { %12091 = vmatpush3.msra.mxu0 %v14749_v27  ;;  %12078 = vmatprep.subr.mxu1 %v1041_v57  ;;  %v978_v27 = vsub.f32 %v14893_v26, %v977_v5 }
  0x9e   :  { %12092 = vmatprep.subr.mxu0 %v14759_v32  ;;  %12079 = vmatpush3.msra.mxu1 %v1041_v57 }
  0x9f   :  { %12093 = vmatpush3.msra.mxu0 %v14759_v32  ;;  %12080 = vmatprep.subr.mxu1 %v1048_v4  ;;  %v969_v32 = vand.u32 4294901760, %v968_v34  ;;  %v979_v35 = vand.u32 4294901760, %v978_v27 }
  0xa0   :  { %12094 = vmatprep.subr.mxu0 %v14778_v39  ;;  %12081 = vmatpush3.msra.mxu1 %v1048_v4 }
  0xa1   :  { %12095 = vmatpush3.msra.mxu0 %v14778_v39  ;;  %12082 = vmatprep.subr.mxu1 %v1055_v31 }
  0xa2   :  { %12096 = vmatprep.subr.mxu0 %v14792_v43  ;;  %12083 = vmatpush3.msra.mxu1 %v1055_v31 }
  0xa3   :  { %12084 = vmatprep.mubr.f32.mxu1 %v14771_v36  ;;  %12097 = vmatpush3.msra.mxu0 %v14792_v43 }
  0xa4   :  { %12085 = vmatmul.mubr.f32.vlgmr.msra.gmra.mxu1 %v14785_v41  ;;  %12098 = vmatprep.subr.mxu0 %v14809_v48 }
  0xa5   :  { %12112 = vmatprep.subr.mxu1 %v14734_v23  ;;  %12099 = vmatpush3.msra.mxu0 %v14809_v48 }
  0xa6   :  { %12113 = vmatpush3.msra.mxu1 %v14734_v23  ;;  %12100 = vmatprep.subr.mxu0 %v14826_v52 }
  0xa7   :  { %12114 = vmatprep.subr.mxu1 %v14741_v24  ;;  %12065 = vmatprep.mubr.f32.mxu0 %v969_v32 }
  0xa8   :  { %12101 = vmatpush3.msra.mxu0 %v14826_v52  ;;  %12115 = vmatpush3.msra.mxu1 %v14741_v24 }
  0xa9   :  { %12066 = vmatmul.mubr.f32.gmra.mxu0 %v979_v35  ;;  %12102 = vmatprep.subr.mxu0 %v14839_v59 }
  0xaa   :  { %12116 = vmatprep.subr.mxu1 %v14753_v30  ;;  %12103 = vmatpush3.msra.mxu0 %v14839_v59 }
  0xab   :  { %12117 = vmatpush3.msra.mxu1 %v14753_v30  ;;  %12104 = vmatprep.subr.mxu0 %v14853_v1 }
  0xac   :  { %12118 = vmatprep.subr.mxu1 %v14763_v33  ;;  %12105 = vmatpush3.msra.mxu0 %v14853_v1 }
  0xad   :  { %12106 = vmatprep.mubr.f32.mxu0 %v14799_v45  ;;  %12119 = vmatpush3.msra.mxu1 %v14763_v33 }
  0xae   :  { %12107 = vmatmul.mubr.f32.vlgmr.msra.gmra.mxu0 %v14816_v50  ;;  %12120 = vmatprep.subr.mxu1 %v14775_v38 }
  0xaf   :  { %12134 = vmatprep.subr.mxu0 %v14769_v6  ;;  %12121 = vmatpush3.msra.mxu1 %v14775_v38 }
  0xb0   :  { %12135 = vmatpush3.msra.mxu0 %v14769_v6  ;;  %12087 = vmatprep.mubr.f32.mxu1 %v14866_v8 }
  0xb1   :  { %12122 = vmatprep.subr.mxu1 %v14789_v42  ;;  %12136 = vmatprep.subr.mxu0 %v14783_v10 }
  0xb2   :  { %12088 = vmatmul.mubr.f32.gmra.mxu1 %v14878_v16  ;;  %12137 = vmatpush3.msra.mxu0 %v14783_v10 }
  0xb3   :  { %12123 = vmatpush3.msra.mxu1 %v14789_v42  ;;  %12109 = vmatprep.mubr.f32.mxu0 %v14886_v20  ;;  %v10703_v20 = vld [vmem:[%s20237_s5] ss:$0 sm:$0xff] }
  0xb4   :  { %12124 = vmatprep.subr.mxu1 %v14803_v46  ;;  %12138 = vmatprep.subr.mxu0 %v14806_v47 }
  0xb5   :  { %12110 = vmatmul.mubr.f32.gmra.mxu0 %v14893_v26  ;;  %12125 = vmatpush3.msra.mxu1 %v14803_v46 }
  0xb6   :  { %12139 = vmatpush3.msra.mxu0 %v14806_v47  ;;  %12126 = vmatprep.subr.mxu1 %v14820_v12 }
  0xb7   :  { %12140 = vmatprep.subr.mxu0 %v14823_v51  ;;  %12127 = vmatpush3.msra.mxu1 %v14820_v12 }
  0xb8   :  { %12128 = vmatprep.mubr.f32.mxu1 %v947_v56  ;;  %12141 = vmatpush3.msra.mxu0 %v14823_v51 }
  0xb9   :  { %12129 = vmatmul.mubr.f32.vlgmr.msra.gmra.mxu1 %v957_v62  ;;  %12142 = vmatprep.subr.mxu0 %v14836_v58 }
  0xba   :  { %12156 = vmatprep.subr.mxu1 %v14734_v23  ;;  %12143 = vmatpush3.msra.mxu0 %v14836_v58 }
  0xbb   :  { %12157 = vmatpush3.msra.mxu1 %v14734_v23  ;;  %12144 = vmatprep.subr.mxu0 %v14850_v0  ;;  %v10702_v23 = vld [vmem:[%s20235_s3] ss:$0 sm:$0xff] }
  0xbc   :  { %12158 = vmatprep.subr.mxu1 %v14741_v24  ;;  %12131 = vmatprep.mubr.f32.mxu1 %v967_v29 }
  0xbd   :  { %12145 = vmatpush3.msra.mxu0 %v14850_v0  ;;  %12159 = vmatpush3.msra.mxu1 %v14741_v24 }
  0xbe   :  { %12132 = vmatmul.mubr.f32.gmra.mxu1 %v977_v5  ;;  %12146 = vmatprep.subr.mxu0 %v14864_v7 }
  0xbf   :  { %12160 = vmatprep.subr.mxu1 %v14753_v30  ;;  %12147 = vmatpush3.msra.mxu0 %v14864_v7 }
  0xc0   :  { %12161 = vmatpush3.msra.mxu1 %v14753_v30  ;;  %12148 = vmatprep.subr.mxu0 %v14876_v15 }
  0xc1   :  { %12162 = vmatprep.subr.mxu1 %v14763_v33  ;;  %12149 = vmatpush3.msra.mxu0 %v14876_v15 }
  0xc2   :  { %12150 = vmatprep.mubr.f32.mxu0 %v14771_v36  ;;  %12163 = vmatpush3.msra.mxu1 %v14763_v33 }
  0xc3   :  { %12151 = vmatmul.mubr.f32.vlgmr.msra.gmra.mxu0 %v14785_v41  ;;  %12164 = vmatprep.subr.mxu1 %v14775_v38 }
  0xc4   :  { %12165 = vmatpush3.msra.mxu1 %v14775_v38  ;;  %12153 = vmatprep.mubr.f32.mxu0 %v14866_v8 }
  0xc5   :  { %12166 = vmatprep.subr.mxu1 %v14789_v42  ;;  %12172 = vmatprep.mubr.f32.mxu1 %v14771_v36 }
  0xc6   :  { %12167 = vmatpush3.msra.mxu1 %v14789_v42 }
  0xc7   :  { %12154 = vmatmul.mubr.f32.gmra.mxu0 %v14878_v16  ;;  %12168 = vmatprep.subr.mxu1 %v14803_v46 }
  0xc8   :  { %12169 = vmatpush3.msra.mxu1 %v14803_v46 }
  0xc9   :  { %12170 = vmatprep.subr.mxu1 %v14820_v12 }
  0xca   :  { %12171 = vmatpush3.msra.mxu1 %v14820_v12 }
  0xcb   :  { %12173 = vmatmul.mubr.f32.vlgmr.msra.gmra.mxu1 %v14785_v41 }
  0xcc   :  { %12175 = vmatprep.mubr.f32.mxu1 %v14866_v8 }
  0xcf   :  { %12176 = vmatmul.mubr.f32.gmra.mxu1 %v14878_v16 }
 0x120   :  { %v11932_v24 = vpop.f32.mrf.mxu0 }
 0x121   :  { %v265_v30 = vadd.f32 %v11932_v24, %v10702_v23 }
 0x122   :  { %v254_v36 = vpop.f32.mrf.mxu0 }
 0x123   :  { %v255_v55 = vadd.f32 %v10702_v23, %v254_v36 }
 0x128   :  { %v11954_v33 = vpop.f32.mrf.mxu1 }
 0x129   :  { %v402_v6 = vadd.f32 %v11954_v33, %v265_v30 }
 0x12a   :  { %v395_v41 = vpop.f32.mrf.mxu1 }
 0x12b   :  { %v396_v58 = vadd.f32 %v395_v41, %v255_v55 }
 0x12d   :  { %v11935_v38 = vpop.f32.mrf.mxu0 }
 0x12e   :  { %v285_v39 = vadd.f32 %v11935_v38, %v10702_v23 }
 0x12f   :  { %v14994_v10 = vpop.f32.mrf.mxu0 }
 0x130   :  { %20682 = vst [vmem:[#allocation17_spill] sm:$0xff] %v14994_v10 }
 0x132   :  { %v11976_v40 = vpop.f32.mrf.mxu0 }
 0x133   :  { %v509_v42 = vadd.f32 %v11976_v40, %v402_v6 }
 0x134   :  { %v501_v43 = vpop.f32.mrf.mxu0 }
 0x135   :  { %v502_v61 = vadd.f32 %v501_v43, %v396_v58 }
 0x136   :  { %v11957_v11 = vpop.f32.mrf.mxu1 }
 0x137   :  { %v414_v44 = vadd.f32 %v11957_v11, %v285_v39 }
 0x138   :  { %v14996_v45 = vpop.f32.mrf.mxu1 }
 0x139   :  { %20683 = vst [vmem:[#allocation18_spill] sm:$0xff] %v14996_v45  ;;  %v11979_v46 = vpop.f32.mrf.mxu0 }
 0x13a   :  { %v523_v47 = vadd.f32 %v11979_v46, %v414_v44 }
 0x13b   :  { %v14998_v52 = vpop.f32.mrf.mxu0 }
 0x13c   :  { %20684 = vst [vmem:[#allocation19_spill] sm:$0xff] %v14998_v52 }
 0x13d   :  { %v11998_v48 = vpop.f32.mrf.mxu1 }
 0x13e   :  { %v612_v49 = vadd.f32 %v11998_v48, %v509_v42 }
 0x13f   :  { %v603_v50 = vpop.f32.mrf.mxu1 }
 0x140   :  { %v604_v63 = vadd.f32 %v603_v50, %v502_v61 }
 0x142   :  { %v12001_v12 = vpop.f32.mrf.mxu1 }
 0x143   :  { %v628_v51 = vadd.f32 %v12001_v12, %v523_v47 }
 0x144   :  { %v15000_v62 = vpop.f32.mrf.mxu1 }
 0x145   :  { %20685 = vst [vmem:[#allocation20_spill] sm:$0xff] %v15000_v62 }
 0x147   :  { %v12020_v54 = vpop.f32.mrf.mxu0 }
 0x148   :  { %v729_v56 = vadd.f32 %v12020_v54, %v612_v49 }
 0x149   :  { %v722_v18 = vpop.f32.mrf.mxu0 }
 0x14a   :  { %v723_v0 = vadd.f32 %v722_v18, %v604_v63 }
 0x14c   :  { %v12023_v59 = vpop.f32.mrf.mxu0 }
 0x14d   :  { %v741_v60 = vadd.f32 %v12023_v59, %v628_v51 }
 0x14e   :  { %v15020_v16 = vpop.f32.mrf.mxu0 }
 0x14f   :  { %20688 = vst [vmem:[#allocation23_spill] sm:$0xff] %v15020_v16 }
 0x151   :  { %v12042_v21 = vpop.f32.mrf.mxu1 }
 0x152   :  { %v15002_v1 = vadd.f32 %v12042_v21, %v729_v56 }
 0x153   :  { %v819_v28 = vpop.f32.mrf.mxu1 }
 0x154   :  { %v820_v37 = vadd.f32 %v819_v28, %v723_v0 }
 0x156   :  { %v15004_v2 = vmul.f32 0.35355338, %v820_v37  ;;  %v12045_v3 = vpop.f32.mrf.mxu1 }
 0x157   :  { %v15006_v7 = vadd.f32 %v12045_v3, %v741_v60  ;;  %v15070_v60 = vmul.f32 0.35355338, %v15002_v1 }
 0x158   :  { %v1700_v8 = vsel %vm20384_vm1, %v15004_v2, 0  ;;  %v15025_v57 = vpop.f32.mrf.mxu1 }
 0x159   :  { %20686 = vst [vmem:[#allocation21_spill] sm:$0xff] %v15006_v7  ;;  %v15010_v9 = vand.u32 4294901760, %v1700_v8  ;;  %20689 = vst [vmem:[#allocation24_spill] sm:$0xff] %v15025_v57 }
 0x15b   :  { %20687 = vst [vmem:[#allocation22_spill] sm:$0xff] %v15010_v9  ;;  %12266 = vmatprep.mubr.f32.mxu1 %v15010_v9  ;;  %v15014_v13 = vsub.f32 %v1700_v8, %v15010_v9 }
 0x15c   :  { %v12064_v17 = vpop.f32.mrf.mxu0 }
 0x15d   :  { %v20250_v14 = vand.u32 4294901760, %v15014_v13  ;;  %v962_v36 = vadd.f32 %v12064_v17, %v10703_v20 }
 0x15e   :  { %v951_v19 = vpop.f32.mrf.mxu0 }
 0x15f   :  { %v1848_v15 = vsub.f32 %v15014_v13, %v20250_v14  ;;  %v952_v40 = vadd.f32 %v10703_v20, %v951_v19 }
 0x161   :  { %v1849_v53 = vand.u32 4294901760, %v1848_v15 }
 0x163   :  { %12210 = vmatprep.mubr.f32.mxu0 %v1849_v53 }
 0x164   :  { %v12086_v4 = vpop.f32.mrf.mxu1 }
 0x165   :  { %v1099_v42 = vadd.f32 %v12086_v4, %v962_v36 }
 0x166   :  { %v1092_v31 = vpop.f32.mrf.mxu1 }
 0x167   :  { %v1093_v44 = vadd.f32 %v1092_v31, %v952_v40 }
 0x169   :  { %v12067_v22 = vpop.f32.mrf.mxu0 }
 0x16a   :  { %v982_v25 = vadd.f32 %v12067_v22, %v10703_v20 }
 0x16b   :  { %v15027_v26 = vpop.f32.mrf.mxu0 }
 0x16c   :  { %20690 = vst [vmem:[#allocation25_spill] sm:$0xff] %v15027_v26 }
 0x16e   :  { %v12108_v29 = vpop.f32.mrf.mxu0 }
 0x16f   :  { %v1206_v43 = vadd.f32 %v12108_v29, %v1099_v42 }
 0x170   :  { %v1198_v5 = vpop.f32.mrf.mxu0 }
 0x171   :  { %v1199_v49 = vadd.f32 %v1198_v5, %v1093_v44 }
 0x172   :  { %v12089_v34 = vpop.f32.mrf.mxu1 }
 0x173   :  { %v1111_v27 = vadd.f32 %v12089_v34, %v982_v25 }
 0x174   :  { %v15029_v32 = vpop.f32.mrf.mxu1 }
 0x175   :  { %20691 = vst [vmem:[#allocation26_spill] sm:$0xff] %v15029_v32  ;;  %v12111_v35 = vpop.f32.mrf.mxu0 }
 0x176   :  { %v1220_v23 = vadd.f32 %v12111_v35, %v1111_v27 }
 0x177   :  { %v15031_v38 = vpop.f32.mrf.mxu0 }
 0x178   :  { %20692 = vst [vmem:[#allocation27_spill] sm:$0xff] %v15031_v38 }
 0x179   :  { %v12130_v24 = vpop.f32.mrf.mxu1 }
 0x17a   :  { %v1309_v46 = vadd.f32 %v12130_v24, %v1206_v43 }
 0x17b   :  { %v1300_v30 = vpop.f32.mrf.mxu1 }
 0x17c   :  { %v1301_v51 = vadd.f32 %v1300_v30, %v1199_v49 }
 0x17e   :  { %v12133_v33 = vpop.f32.mrf.mxu1 }
 0x17f   :  { %v1325_v6 = vadd.f32 %v12133_v33, %v1220_v23 }
 0x180   :  { %v15033_v48 = vpop.f32.mrf.mxu1 }
 0x181   :  { %20693 = vst [vmem:[#allocation28_spill] sm:$0xff] %v15033_v48 }
 0x183   :  { %v12152_v39 = vpop.f32.mrf.mxu0 }
 0x184   :  { %v1426_v50 = vadd.f32 %v12152_v39, %v1309_v46 }
 0x185   :  { %v1419_v41 = vpop.f32.mrf.mxu0 }
 0x186   :  { %v1420_v56 = vadd.f32 %v1419_v41, %v1301_v51 }
 0x187   :  { %v12155_v11 = vpop.f32.mrf.mxu0 }
 0x188   :  { %v1438_v47 = vadd.f32 %v12155_v11, %v1325_v6 }
 0x18b   :  { %v12174_v12 = vpop.f32.mrf.mxu1 }
 0x18c   :  { %v15035_v54 = vadd.f32 %v12174_v12, %v1426_v50 }
 0x18d   :  { %v1516_v55 = vpop.f32.mrf.mxu1 }
 0x18e   :  { %20694 = vst [vmem:[#allocation29_spill] sm:$0xff] %v15035_v54  ;;  %1693 = vrot.lane.b32.xlu1 %v15035_v54, %s14376_s10  ;;  %1697 = vrot.lane.b32.xlu0 %v15035_v54, %s14377_s28  ;;  %v15041_v58 = vadd.f32 %v1516_v55, %v1420_v56  ;;  %v1734_v16 = vsel %vm20384_vm1, %v15035_v54, 0 }
 0x18f   :  { %v12177_v18 = vpop.f32.mrf.mxu1 }
 0x190   :  { %20695 = vst [vmem:[#allocation30_spill] sm:$0xff] %v15041_v58  ;;  %v15043_v59 = vadd.f32 %v12177_v18, %v1438_v47 }
 0x192   :  { %20696 = vst [vmem:[#allocation31_spill] sm:$0xff] %v15043_v59  ;;  %1691 = vrot.lane.b32.xlu1 %v15041_v58, %s14376_s10  ;;  %1695 = vrot.lane.b32.xlu0 %v15041_v58, %s14377_s28  ;;  %v15289_v59 = vand.u32 4294901760, %v1734_v16 }
 0x194   :  { %20713 = vst [vmem:[#allocation48_spill] sm:$0xff] %v15289_v59 }
 0x196   :  { %1687 = vrot.lane.b32.xlu1 %v15041_v58, %s14378_s0  ;;  %1689 = vrot.lane.b32.xlu0 %v15035_v54, %s14378_s0 }
 0x19a   :  { %1683 = vrot.lane.b32.xlu1 %v15041_v58, %s14379_s18  ;;  %1685 = vrot.lane.b32.xlu0 %v15035_v54, %s14379_s18 }
 0x19e   :  { %1679 = vrot.lane.b32.xlu1 %v15041_v58, %s14380_s6  ;;  %1681 = vrot.lane.b32.xlu0 %v15035_v54, %s14380_s6 }
 0x1a2   :  { %1675 = vrot.lane.b32.xlu1 %v15041_v58, %s14381_s29  ;;  %1677 = vrot.lane.b32.xlu0 %v15035_v54, %s14381_s29 }
 0x1a6   :  { %1671 = vrot.lane.b32.xlu1 %v15041_v58, %s14382_s12  ;;  %1673 = vrot.lane.b32.xlu0 %v15035_v54, %s14382_s12  ;;  %v15311_v54 = vsub.f32 %v1734_v16, %v15289_v59 }
 0x1aa   :  { %1643 = vrot.lane.b32.xlu1 %v15070_v60, %s14382_s12  ;;  %1641 = vrot.lane.b32.xlu0 %v15004_v2, %s14382_s12 }
 0x1ae   :  { %1647 = vrot.lane.b32.xlu1 %v15070_v60, %s14381_s29  ;;  %1645 = vrot.lane.b32.xlu0 %v15004_v2, %s14381_s29 }
 0x1b2   :  { %1651 = vrot.lane.b32.xlu1 %v15070_v60, %s14380_s6  ;;  %1649 = vrot.lane.b32.xlu0 %v15004_v2, %s14380_s6 }
 0x1b6   :  { %1655 = vrot.lane.b32.xlu1 %v15070_v60, %s14379_s18  ;;  %1653 = vrot.lane.b32.xlu0 %v15004_v2, %s14379_s18 }
 0x1ba   :  { %1659 = vrot.lane.b32.xlu1 %v15070_v60, %s14378_s0  ;;  %1657 = vrot.lane.b32.xlu0 %v15004_v2, %s14378_s0 }
 0x1be   :  { %1663 = vrot.lane.b32.xlu1 %v15070_v60, %s14376_s10  ;;  %1661 = vrot.lane.b32.xlu0 %v15004_v2, %s14376_s10 }
 0x1c2   :  { %1667 = vrot.lane.b32.xlu1 %v15070_v60, %s14377_s28  ;;  %1665 = vrot.lane.b32.xlu0 %v15004_v2, %s14377_s28 }
 0x200   :  { %v1694_v61 = vpop.permute.xlu1 %1693  ;;  %v1698_v63 = vpop.permute.xlu0 %1697 }
 0x201   :  { %v1758_v21 = vsel %vm20384_vm1, %v1694_v61, 0  ;;  %v1762_v0 = vsel %vm20384_vm1, %v1698_v63, 0  ;;  %3240 = vrot.lane.b32.xlu1 %v1698_v63, %s14383_s30  ;;  %3236 = vrot.lane.b32.xlu0 %v1694_v61, %s14383_s30 }
 0x202   :  { %v15104_v1 = vand.u32 4294901760, %v1758_v21  ;;  %v15106_v28 = vand.u32 4294901760, %v1762_v0 }
 0x204   :  { %v15109_v37 = vsub.f32 %v1758_v21, %v15104_v1  ;;  %v15112_v2 = vsub.f32 %v1762_v0, %v15106_v28  ;;  %12178 = vmatprep.subr.mxu0 %v15106_v28  ;;  %v15115_v3 = vpop.permute.xlu1 %1691  ;;  %v1696_v8 = vpop.permute.xlu0 %1695 }
 0x205   :  { %v1756_v15 = vsel %vm20384_vm1, %v15115_v3, 0  ;;  %v1760_v53 = vsel %vm20384_vm1, %v1696_v8, 0  ;;  %12179 = vmatpush3.xpose.msra.mxu0 %v15106_v28 }
 0x206   :  { %v15121_v17 = vand.u32 4294901760, %v1756_v15  ;;  %v15123_v19 = vand.u32 4294901760, %v1760_v53  ;;  %v15126_v20 = vand.u32 4294901760, %v15112_v2  ;;  %v15135_v31 = vand.u32 4294901760, %v15109_v37 }
 0x208   :  { %20697 = vst [vmem:[#allocation32_spill] sm:$0xff] %v15126_v20  ;;  %v15129_v22 = vsub.f32 %v1760_v53, %v15123_v19  ;;  %v1688_v25 = vpop.permute.xlu1 %1687  ;;  %12180 = vmatprep.subr.mxu0 %v15123_v19  ;;  %v1690_v4 = vpop.permute.xlu0 %1689  ;;  %v2009_v29 = vsub.f32 %v15112_v2, %v15126_v20  ;;  %20698 = vst [vmem:[#allocation33_spill] sm:$0xff] %v15135_v31  ;;  %v15138_v5 = vsub.f32 %v1756_v15, %v15121_v17 }
 0x209   :  { %v1754_v34 = vsel %vm20384_vm1, %v1690_v4, 0  ;;  %12181 = vmatpush3.xpose.msra.mxu0 %v15123_v19  ;;  %3232 = vrot.lane.b32.xlu0 %v1690_v4, %s14383_s30  ;;  %v1752_v27 = vsel %vm20384_vm1, %v1688_v25, 0  ;;  %v2023_v36 = vsub.f32 %v15109_v37, %v15135_v31 }
 0x20a   :  { %v15144_v35 = vand.u32 4294901760, %v1754_v34  ;;  %12182 = vmatprep.subr.mxu0 %v15104_v1  ;;  %v2010_v23 = vand.u32 4294901760, %v2009_v29  ;;  %v15148_v24 = vand.u32 4294901760, %v15129_v22  ;;  %v15154_v39 = vand.u32 4294901760, %v1752_v27 }
 0x20b   :  { %v15162_v41 = vand.u32 4294901760, %v15138_v5  ;;  %v2024_v46 = vand.u32 4294901760, %v2023_v36 }
 0x20c   :  { %20699 = vst [vmem:[#allocation34_spill] sm:$0xff] %v15148_v24  ;;  %12234 = vmatprep.subr.mxu1 %v2010_v23  ;;  %v1684_v30 = vpop.permute.xlu1 %1683  ;;  %v1686_v33 = vpop.permute.xlu0 %1685  ;;  %v2016_v6 = vsub.f32 %v15129_v22, %v15148_v24  ;;  %v15157_v40 = vsub.f32 %v1754_v34, %v15144_v35  ;;  %v15170_v47 = vsub.f32 %v1752_v27, %v15154_v39 }
 0x20d   :  { %v1750_v42 = vsel %vm20384_vm1, %v1686_v33, 0  ;;  %12183 = vmatpush3.xpose.msra.mxu0 %v15104_v1  ;;  %12235 = vmatpush3.xpose.msra.mxu1 %v2010_v23  ;;  %20700 = vst [vmem:[#allocation35_spill] sm:$0xff] %v15162_v41  ;;  %v1748_v49 = vsel %vm20384_vm1, %v1684_v30, 0  ;;  %v2030_v50 = vsub.f32 %v15138_v5, %v15162_v41 }
 0x20e   :  { %3228 = vrot.lane.b32.xlu1 %v1686_v33, %s14383_s30  ;;  %3238 = vrot.lane.b32.xlu0 %v1696_v8, %s14383_s30  ;;  %v2017_v43 = vand.u32 4294901760, %v2016_v6  ;;  %v15167_v11 = vand.u32 4294901760, %v1750_v42  ;;  %v15177_v12 = vand.u32 4294901760, %v15157_v40  ;;  %v15182_v55 = vand.u32 4294901760, %v1748_v49 }
 0x20f   :  { %12184 = vmatprep.subr.mxu0 %v15121_v17  ;;  %v2031_v63 = vand.u32 4294901760, %v2030_v50  ;;  %v15192_v0 = vand.u32 4294901760, %v15170_v47 }
 0x210   :  { %12236 = vmatprep.subr.mxu1 %v2017_v43  ;;  %v1682_v44 = vpop.permute.xlu0 %1681  ;;  %20701 = vst [vmem:[#allocation36_spill] sm:$0xff] %v15177_v12  ;;  %v1680_v51 = vpop.permute.xlu1 %1679  ;;  %v15185_v56 = vsub.f32 %v1750_v42, %v15167_v11  ;;  %v2037_v21 = vsub.f32 %v15157_v40, %v15177_v12  ;;  %v15198_v8 = vsub.f32 %v1748_v49, %v15182_v55 }
 0x211   :  { %12185 = vmatpush3.xpose.msra.mxu0 %v15121_v17  ;;  %12237 = vmatpush3.xpose.msra.mxu1 %v2017_v43  ;;  %v1746_v61 = vsel %vm20384_vm1, %v1682_v44, 0  ;;  %20702 = vst [vmem:[#allocation37_spill] sm:$0xff] %v15192_v0  ;;  %v1744_v15 = vsel %vm20384_vm1, %v1680_v51, 0  ;;  %v2044_v34 = vsub.f32 %v15170_v47, %v15192_v0 }
 0x212   :  { %3224 = vrot.lane.b32.xlu1 %v1682_v44, %s14383_s30  ;;  %3230 = vrot.lane.b32.xlu0 %v1688_v25, %s14383_s30  ;;  %v15201_v53 = vand.u32 4294901760, %v1746_v61  ;;  %v15204_v4 = vand.u32 4294901760, %v15185_v56  ;;  %v2038_v29 = vand.u32 4294901760, %v2037_v21  ;;  %v15212_v27 = vand.u32 4294901760, %v1744_v15 }
 0x213   :  { %12186 = vmatprep.subr.mxu0 %v15144_v35  ;;  %12238 = vmatprep.subr.mxu1 %v2024_v46  ;;  %v15223_v6 = vand.u32 4294901760, %v15198_v8  ;;  %v2045_v36 = vand.u32 4294901760, %v2044_v34 }
 0x214   :  { %v1678_v18 = vpop.permute.xlu0 %1677  ;;  %v1676_v25 = vpop.permute.xlu1 %1675  ;;  %20703 = vst [vmem:[#allocation38_spill] sm:$0xff] %v15204_v4  ;;  %v2051_v33 = vsub.f32 %v15185_v56, %v15204_v4  ;;  %v15232_v43 = vsub.f32 %v1744_v15, %v15212_v27 }
 0x215   :  { %12187 = vmatpush3.xpose.msra.mxu0 %v15144_v35  ;;  %12239 = vmatpush3.xpose.msra.mxu1 %v2024_v46  ;;  %20705 = vst [vmem:[#allocation40_spill] sm:$0xff] %v15223_v6  ;;  %v1740_v44 = vsel %vm20384_vm1, %v1676_v25, 0  ;;  %v2058_v50 = vsub.f32 %v15198_v8, %v15223_v6 }
 0x216   :  { %3220 = vrot.lane.b32.xlu1 %v1678_v18, %s14383_s30  ;;  %3226 = vrot.lane.b32.xlu0 %v1684_v30, %s14383_s30  ;;  %v15218_v30 = vsub.f32 %v1746_v61, %v15201_v53  ;;  %v2052_v49 = vand.u32 4294901760, %v2051_v33  ;;  %v15244_v61 = vand.u32 4294901760, %v1740_v44 }
 0x217   :  { %12188 = vmatprep.subr.mxu0 %v15154_v39  ;;  %12240 = vmatprep.subr.mxu1 %v2031_v63  ;;  %v2059_v15 = vand.u32 4294901760, %v2058_v50 }
 0x218   :  { %v15214_v23 = vpop.permute.xlu0 %1673  ;;  %v15227_v42 = vpop.permute.xlu1 %1671  ;;  %v15259_v33 = vsub.f32 %v1740_v44, %v15244_v61 }
 0x219   :  { %12189 = vmatpush3.xpose.msra.mxu0 %v15154_v39  ;;  %12241 = vmatpush3.xpose.msra.mxu1 %v2031_v63  ;;  %20704 = vst [vmem:[#allocation39_spill] sm:$0xff] %v15214_v23  ;;  %20706 = vst [vmem:[#allocation41_spill] sm:$0xff] %v15227_v42  ;;  %v1738_v34 = vsel %vm20384_vm1, %v15214_v23, 0 }
 0x21a   :  { %3234 = vrot.lane.b32.xlu1 %v15115_v3, %s14383_s30  ;;  %3222 = vrot.lane.b32.xlu0 %v1680_v51, %s14383_s30  ;;  %v1742_v3 = vsel %vm20384_vm1, %v1678_v18, 0  ;;  %v15240_v51 = vand.u32 4294901760, %v15218_v30  ;;  %v15263_v50 = vand.u32 4294901760, %v1738_v34  ;;  %v15282_v45 = vand.u32 4294901760, %v15259_v33 }
 0x21b   :  { %12190 = vmatprep.subr.mxu0 %v15167_v11  ;;  %12242 = vmatprep.subr.mxu1 %v2038_v29  ;;  %v15235_v46 = vand.u32 4294901760, %v1742_v3 }
 0x21c   :  { %20707 = vst [vmem:[#allocation42_spill] sm:$0xff] %v15240_v51  ;;  %v1642_v18 = vpop.permute.xlu0 %1641  ;;  %v1644_v21 = vpop.permute.xlu1 %1643  ;;  %20709 = vst [vmem:[#allocation44_spill] sm:$0xff] %v15263_v50 }
 0x21d   :  { %12191 = vmatpush3.xpose.msra.mxu0 %v15167_v11  ;;  %12243 = vmatpush3.xpose.msra.mxu1 %v2038_v29  ;;  %v15247_v63 = vsub.f32 %v1742_v3, %v15235_v46  ;;  %v15252_v29 = vand.u32 4294901760, %v15232_v43  ;;  %v1736_v3 = vsel %vm20384_vm1, %v15227_v42, 0  ;;  %20712 = vst [vmem:[#allocation47_spill] sm:$0xff] %v15282_v45  ;;  %v1704_v48 = vsel %vm20384_vm1, %v1642_v18, 0 }
 0x21e   :  { %3218 = vrot.lane.b32.xlu0 %v1676_v25, %s14383_s30  ;;  %12192 = vmatprep.subr.mxu0 %v15182_v55  ;;  %v2065_v25 = vsub.f32 %v15218_v30, %v15240_v51  ;;  %v15272_v44 = vand.u32 4294901760, %v1736_v3 }
 0x21f   :  { %12244 = vmatprep.subr.mxu1 %v2045_v36  ;;  %20708 = vst [vmem:[#allocation43_spill] sm:$0xff] %v15252_v29  ;;  %v2072_v7 = vsub.f32 %v15232_v43, %v15252_v29  ;;  %v15268_v57 = vand.u32 4294901760, %v15247_v63 }
 0x220   :  { %v2066_v14 = vand.u32 4294901760, %v2065_v25  ;;  %20711 = vst [vmem:[#allocation46_spill] sm:$0xff] %v15272_v44  ;;  %v15277_v25 = vsub.f32 %v1738_v34, %v15263_v50  ;;  %v15287_v10 = vsub.f32 %v1736_v3, %v15272_v44  ;;  %v1702_v34 = vsel %vm20384_vm1, %v15070_v60, 0 }
 0x221   :  { %12193 = vmatpush3.xpose.msra.mxu0 %v15182_v55  ;;  %12245 = vmatpush3.xpose.msra.mxu1 %v2045_v36  ;;  %v1646_v36 = vpop.permute.xlu0 %1645  ;;  %20710 = vst [vmem:[#allocation45_spill] sm:$0xff] %v15268_v57  ;;  %v2073_v62 = vand.u32 4294901760, %v2072_v7  ;;  %v2079_v52 = vsub.f32 %v15247_v63, %v15268_v57  ;;  %v1732_v7 = vsel %vm20384_vm1, %v15041_v58, 0  ;;  %v15303_v3 = vand.u32 4294901760, %v1702_v34 }
 0x222   :  { %12194 = vmatprep.subr.mxu0 %v15201_v53  ;;  %12246 = vmatprep.subr.mxu1 %v2052_v49  ;;  %v15299_v26 = vand.u32 4294901760, %v15277_v25  ;;  %v1706_v60 = vsel %vm20384_vm1, %v1644_v21, 0  ;;  %v15306_v58 = vand.u32 4294901760, %v1704_v48  ;;  %v1708_v42 = vsel %vm20384_vm1, %v1646_v36, 0 }
 0x223   :  { %v2080_v32 = vand.u32 4294901760, %v2079_v52  ;;  %v15308_v52 = vand.u32 4294901760, %v1732_v7  ;;  %v15320_v21 = vand.u32 4294901760, %v1706_v60  ;;  %v15326_v36 = vsub.f32 %v1702_v34, %v15303_v3 }
 0x224   :  { %20714 = vst [vmem:[#allocation49_spill] sm:$0xff] %v15299_v26 }
 0x225   :  { %12195 = vmatpush3.xpose.msra.mxu0 %v15201_v53  ;;  %12247 = vmatpush3.xpose.msra.mxu1 %v2052_v49  ;;  %v1648_v49 = vpop.permute.xlu1 %1647  ;;  %20715 = vst [vmem:[#allocation50_spill] sm:$0xff] %v15308_v52  ;;  %20717 = vst [vmem:[#allocation52_spill] sm:$0xff] %v15326_v36 }
 0x226   :  { %12196 = vmatprep.subr.mxu0 %v15212_v27  ;;  %12248 = vmatprep.subr.mxu1 %v2059_v15  ;;  %v1710_v57 = vsel %vm20384_vm1, %v1648_v49, 0  ;;  %v15336_v49 = vand.u32 4294901760, %v15311_v54 }
 0x227   :  { %v15341_v9 = vand.u32 4294901760, %v1710_v57 }
 0x228   :  { %20719 = vst [vmem:[#allocation54_spill] sm:$0xff] %v15336_v49 }
 0x229   :  { %12197 = vmatpush3.xpose.msra.mxu0 %v15212_v27  ;;  %12249 = vmatpush3.xpose.msra.mxu1 %v2059_v15  ;;  %v1650_v15 = vpop.permute.xlu0 %1649  ;;  %v1652_v38 = vpop.permute.xlu1 %1651 }
 0x22a   :  { %12198 = vmatprep.subr.mxu0 %v15235_v46  ;;  %12250 = vmatprep.subr.mxu1 %v2066_v14  ;;  %v1712_v29 = vsel %vm20384_vm1, %v1650_v15, 0  ;;  %v15339_v15 = vsub.f32 %v1732_v7, %v15308_v52 }
 0x22b   :  { %v15343_v6 = vand.u32 4294901760, %v1712_v29 }
 0x22c   :  { %20720 = vst [vmem:[#allocation55_spill] sm:$0xff] %v15339_v15 }
 0x22d   :  { %12199 = vmatpush3.xpose.msra.mxu0 %v15235_v46  ;;  %12251 = vmatpush3.xpose.msra.mxu1 %v2066_v14  ;;  %v2086_v14 = vsub.f32 %v15259_v33, %v15282_v45  ;;  %v1654_v18 = vpop.permute.xlu0 %1653  ;;  %v15317_v45 = vand.u32 4294901760, %v15287_v10  ;;  %v1656_v16 = vpop.permute.xlu1 %1655 }
 0x22e   :  { %12200 = vmatprep.subr.mxu0 %v15244_v61  ;;  %12252 = vmatprep.subr.mxu1 %v2073_v62  ;;  %v1716_v4 = vsel %vm20384_vm1, %v1654_v18, 0  ;;  %v1718_v0 = vsel %vm20384_vm1, %v1656_v16, 0 }
 0x22f   :  { %v2087_v23 = vand.u32 4294901760, %v2086_v14  ;;  %20716 = vst [vmem:[#allocation51_spill] sm:$0xff] %v15317_v45  ;;  %v15329_v14 = vsub.f32 %v1704_v48, %v15306_v58  ;;  %v15347_v48 = vsub.f32 %v1706_v60, %v15320_v21  ;;  %v15360_v60 = vand.u32 4294901760, %v15339_v15 }
 0x230   :  { %v15371_v18 = vand.u32 4294901760, %v1716_v4 }
 0x231   :  { %12201 = vmatpush3.xpose.msra.mxu0 %v15244_v61  ;;  %12253 = vmatpush3.xpose.msra.mxu1 %v2073_v62  ;;  %v2093_v62 = vsub.f32 %v15277_v25, %v15299_v26  ;;  %20718 = vst [vmem:[#allocation53_spill] sm:$0xff] %v15329_v14  ;;  %v15331_v26 = vand.u32 4294901760, %v1708_v42  ;;  %v1658_v34 = vpop.permute.xlu0 %1657  ;;  %20721 = vst [vmem:[#allocation56_spill] sm:$0xff] %v15347_v48  ;;  %v1660_v12 = vpop.permute.xlu1 %1659 }
 0x232   :  { %12202 = vmatprep.subr.mxu0 %v15263_v50  ;;  %12254 = vmatprep.subr.mxu1 %v2080_v32  ;;  %20722 = vst [vmem:[#allocation57_spill] sm:$0xff] %v15360_v60  ;;  %v1720_v20 = vsel %vm20384_vm1, %v1658_v34, 0 }
 0x233   :  { %v2094_v51 = vand.u32 4294901760, %v2093_v62  ;;  %v1714_v62 = vsel %vm20384_vm1, %v1652_v38, 0  ;;  %v15353_v7 = vsub.f32 %v1708_v42, %v15331_v26  ;;  %v15363_v38 = vsub.f32 %v1710_v57, %v15341_v9 }
 0x234   :  { %v15365_v31 = vand.u32 4294901760, %v1714_v62  ;;  %v15368_v42 = vsub.f32 %v1712_v29, %v15343_v6  ;;  %v20723_v29 = vand.u32 4294901760, %v15329_v14  ;;  %v15392_v57 = vand.u32 4294901760, %v1718_v0 }
 0x235   :  { %12203 = vmatpush3.xpose.msra.mxu0 %v15263_v50  ;;  %12255 = vmatpush3.xpose.msra.mxu1 %v2080_v32  ;;  %v2100_v32 = vsub.f32 %v15287_v10, %v15317_v45  ;;  %v20294_v45 = vand.u32 4294901760, %v15326_v36  ;;  %v1664_v34 = vpop.permute.xlu1 %1663 }
 0x236   :  { %12204 = vmatprep.subr.mxu0 %v15272_v44  ;;  %12256 = vmatprep.subr.mxu1 %v2087_v23  ;;  %v1868_v24 = vsub.f32 %v15329_v14, %v20723_v29  ;;  %v15387_v50 = vsub.f32 %v1714_v62, %v15365_v31  ;;  %v15395_v29 = vsub.f32 %v1716_v4, %v15371_v18  ;;  %v20724_v62 = vand.u32 4294901760, %v15347_v48 }
 0x237   :  { %v2101_v41 = vand.u32 4294901760, %v2100_v32  ;;  %v1858_v32 = vsub.f32 %v15326_v36, %v20294_v45  ;;  %v20725_v45 = vand.u32 4294901760, %v15353_v7 }
 0x238   :  { %v1869_v16 = vand.u32 4294901760, %v1868_v24  ;;  %v1917_v24 = vand.u32 4294901760, %v15387_v50 }
 0x239   :  { %12205 = vmatpush3.xpose.msra.mxu0 %v15272_v44  ;;  %12257 = vmatpush3.xpose.msra.mxu1 %v2087_v23  ;;  %v2107_v23 = vsub.f32 %v15311_v54, %v15336_v49  ;;  %v1662_v49 = vpop.permute.xlu0 %1661  ;;  %v2114_v44 = vsub.f32 %v15339_v15, %v15360_v60  ;;  %v15402_v60 = vand.u32 4294901760, %v1720_v20  ;;  %v15416_v15 = vsub.f32 %v1718_v0, %v15392_v57  ;;  %v1668_v0 = vpop.permute.xlu1 %1667 }
 0x23a   :  { %12206 = vmatprep.subr.mxu0 %v15289_v59  ;;  %12258 = vmatprep.subr.mxu1 %v2094_v51  ;;  %v1724_v4 = vsel %vm20384_vm1, %v1662_v49, 0 }
 0x23b   :  { %v2115_v14 = vand.u32 4294901760, %v2114_v44  ;;  %v15423_v49 = vsub.f32 %v1720_v20, %v15402_v60  ;;  %v1918_v20 = vsub.f32 %v15387_v50, %v1917_v24 }
 0x23d   :  { %12207 = vmatpush3.xpose.msra.mxu0 %v15289_v59  ;;  %12259 = vmatpush3.xpose.msra.mxu1 %v2094_v51  ;;  %v2108_v59 = vand.u32 4294901760, %v2107_v23  ;;  %v1859_v23 = vand.u32 4294901760, %v1858_v32  ;;  %v1878_v51 = vsub.f32 %v15347_v48, %v20724_v62  ;;  %v1666_v36 = vpop.permute.xlu0 %1665  ;;  %v20726_v32 = vand.u32 4294901760, %v15363_v38 }
 0x23e   :  { %12208 = vmatprep.subr.mxu0 %v15308_v52  ;;  %12260 = vmatprep.subr.mxu1 %v2101_v41 }
 0x23f   :  { %v1898_v62 = vsub.f32 %v15363_v38, %v20726_v32  ;;  %v1879_v44 = vand.u32 4294901760, %v1878_v51 }
 0x241   :  { %12209 = vmatpush3.xpose.msra.mxu0 %v15308_v52  ;;  %12261 = vmatpush3.xpose.msra.mxu1 %v2101_v41  ;;  %v1722_v41 = vsel %vm20384_vm1, %v1660_v12, 0  ;;  %v1888_v52 = vsub.f32 %v15353_v7, %v20725_v45  ;;  %v20727_v12 = vand.u32 4294901760, %v15368_v42 }
 0x242   :  { %12262 = vmatprep.subr.mxu1 %v2108_v59  ;;  %12290 = vmatprep.subr.mxu0 %v15112_v2  ;;  %v15418_v45 = vand.u32 4294901760, %v1722_v41 }
 0x243   :  { %v1908_v48 = vsub.f32 %v15368_v42, %v20727_v12  ;;  %v1889_v32 = vand.u32 4294901760, %v1888_v52  ;;  %v1728_v12 = vsel %vm20384_vm1, %v1666_v36, 0  ;;  %v20728_v52 = vand.u32 4294901760, %v15395_v29 }
 0x244   :  { %12211 = vmatmul.mubr.f32.vlgmr.msra.gmra.mxu0 %v1859_v23  ;;  %v15426_v23 = vand.u32 4294901760, %v1724_v4 }
 0x245   :  { %12213 = vmatprep.mubr.f32.mxu0 %v1869_v16  ;;  %12263 = vmatpush3.xpose.msra.mxu1 %v2108_v59  ;;  %v1726_v16 = vsel %vm20384_vm1, %v1664_v34, 0  ;;  %v1909_v51 = vand.u32 4294901760, %v1908_v48  ;;  %v15434_v59 = vsub.f32 %v1722_v41, %v15418_v45  ;;  %v1928_v36 = vsub.f32 %v15395_v29, %v20728_v52 }
 0x246   :  { %12291 = vmatpush3.xpose.msra.mxu0 %v15112_v2  ;;  %12264 = vmatprep.subr.mxu1 %v2115_v14  ;;  %v1899_v2 = vand.u32 4294901760, %v1898_v62  ;;  %v15436_v34 = vand.u32 4294901760, %v1726_v16  ;;  %v15445_v48 = vsub.f32 %v1724_v4, %v15426_v23  ;;  %v1730_v62 = vsel %vm20384_vm1, %v1668_v0, 0 }
 0x247   :  { %12292 = vmatprep.subr.mxu0 %v15129_v22  ;;  %v20307_v41 = vand.u32 4294901760, %v15423_v49  ;;  %v15457_v4 = vand.u32 4294901760, %v1730_v62 }
 0x248   :  { %12214 = vmatmul.mubr.f32.gmra.mxu0 %v1879_v44  ;;  %v15448_v44 = vand.u32 4294901760, %v1728_v12 }
 0x249   :  { %12216 = vmatprep.mubr.f32.mxu0 %v1889_v32  ;;  %12265 = vmatpush3.xpose.msra.mxu1 %v2115_v14  ;;  %v1937_v14 = vand.u32 4294901760, %v15416_v15  ;;  %v15455_v32 = vsub.f32 %v1726_v16, %v15436_v34  ;;  %v1929_v16 = vand.u32 4294901760, %v1928_v36 }
 0x24a   :  { %12293 = vmatpush3.xpose.msra.mxu0 %v15129_v22  ;;  %12346 = vmatprep.subr.mxu1 %v15106_v28  ;;  %v1919_v22 = vand.u32 4294901760, %v1918_v20  ;;  %v1967_v20 = vand.u32 4294901760, %v15445_v48 }
 0x24b   :  { %12294 = vmatprep.subr.mxu0 %v15109_v37  ;;  %v1938_v0 = vsub.f32 %v15416_v15, %v1937_v14 }
 0x24c   :  { %12217 = vmatmul.mubr.f32.gmra.mxu0 %v1899_v2  ;;  %12267 = vmatmul.mubr.f32.vlgmr.msra.gmra.mxu1 %v15303_v3  ;;  %v1957_v2 = vand.u32 4294901760, %v15434_v59 }
 0x24d   :  { %12219 = vmatprep.mubr.f32.mxu0 %v1909_v51  ;;  %12269 = vmatprep.mubr.f32.mxu1 %v15306_v58  ;;  %v15466_v51 = vsub.f32 %v1728_v12, %v15448_v44  ;;  %v15477_v12 = vsub.f32 %v1730_v62, %v15457_v4  ;;  %v1939_v52 = vand.u32 4294901760, %v1938_v0  ;;  %v1968_v62 = vsub.f32 %v15445_v48, %v1967_v20 }
 0x24e   :  { %12295 = vmatpush3.xpose.msra.mxu0 %v15109_v37  ;;  %12347 = vmatpush3.xpose.msra.mxu1 %v15106_v28  ;;  %v1948_v37 = vsub.f32 %v15423_v49, %v20307_v41  ;;  %v1958_v36 = vsub.f32 %v15434_v59, %v1957_v2  ;;  %v1977_v41 = vand.u32 4294901760, %v15455_v32 }
 0x24f   :  { %12296 = vmatprep.subr.mxu0 %v15138_v5  ;;  %12348 = vmatprep.subr.mxu1 %v15123_v19 }
 0x250   :  { %12220 = vmatmul.mubr.f32.gmra.mxu0 %v1919_v22  ;;  %12270 = vmatmul.mubr.f32.gmra.mxu1 %v15320_v21  ;;  %v1949_v22 = vand.u32 4294901760, %v1948_v37  ;;  %v1959_v0 = vand.u32 4294901760, %v1958_v36  ;;  %v1997_v37 = vand.u32 4294901760, %v15477_v12 }
 0x251   :  { %12222 = vmatprep.mubr.f32.mxu0 %v1929_v16  ;;  %12272 = vmatprep.mubr.f32.mxu1 %v15331_v26  ;;  %v1978_v16 = vsub.f32 %v15455_v32, %v1977_v41 }
 0x252   :  { %12297 = vmatpush3.xpose.msra.mxu0 %v15138_v5  ;;  %12349 = vmatpush3.xpose.msra.mxu1 %v15123_v19  ;;  %v1987_v5 = vand.u32 4294901760, %v15466_v51  ;;  %v1998_v36 = vsub.f32 %v15477_v12, %v1997_v37 }
 0x253   :  { %12298 = vmatprep.subr.mxu0 %v15157_v40  ;;  %12350 = vmatprep.subr.mxu1 %v15104_v1 }
 0x254   :  { %12223 = vmatmul.mubr.f32.gmra.mxu0 %v1939_v52  ;;  %12273 = vmatmul.mubr.f32.gmra.mxu1 %v15341_v9  ;;  %v1969_v52 = vand.u32 4294901760, %v1968_v62 }
 0x255   :  { %12225 = vmatprep.mubr.f32.mxu0 %v1949_v22  ;;  %12275 = vmatprep.mubr.f32.mxu1 %v15343_v6  ;;  %v1988_v22 = vsub.f32 %v15466_v51, %v1987_v5 }
 0x256   :  { %12299 = vmatpush3.xpose.msra.mxu0 %v15157_v40  ;;  %12351 = vmatpush3.xpose.msra.mxu1 %v15104_v1  ;;  %v1979_v40 = vand.u32 4294901760, %v1978_v16  ;;  %v20740_v16 = vld [vmem:[#allocation33_spill] sm:$0xff] }
 0x257   :  { %12300 = vmatprep.subr.mxu0 %v15170_v47  ;;  %12352 = vmatprep.subr.mxu1 %v15121_v17  ;;  %v1989_v62 = vand.u32 4294901760, %v1988_v22 }
 0x258   :  { %12226 = vmatmul.mubr.f32.gmra.mxu0 %v1959_v0  ;;  %12276 = vmatmul.mubr.f32.gmra.mxu1 %v15365_v31  ;;  %v20739_v0 = vld [vmem:[#allocation56_spill] sm:$0xff] }
 0x259   :  { %12228 = vmatprep.mubr.f32.mxu0 %v1969_v52  ;;  %12278 = vmatprep.mubr.f32.mxu1 %v15371_v18 }
 0x25a   :  { %12301 = vmatpush3.xpose.msra.mxu0 %v15170_v47  ;;  %12353 = vmatpush3.xpose.msra.mxu1 %v15121_v17  ;;  %v1999_v47 = vand.u32 4294901760, %v1998_v36  ;;  %v20744_v36 = vand.u32 4294901760, %v20739_v0 }
 0x25b   :  { %12302 = vmatprep.subr.mxu0 %v15185_v56  ;;  %12354 = vmatprep.subr.mxu1 %v15144_v35 }
 0x25c   :  { %12229 = vmatmul.mubr.f32.gmra.mxu0 %v1979_v40  ;;  %12279 = vmatmul.mubr.f32.gmra.mxu1 %v15392_v57  ;;  %v20743_v40 = vld [vmem:[#allocation35_spill] sm:$0xff] }
 0x25d   :  { %12231 = vmatprep.mubr.f32.mxu0 %v1989_v62  ;;  %12281 = vmatprep.mubr.f32.mxu1 %v15402_v60  ;;  %v20745_v62 = vand.u32 4294901760, %v15353_v7 }
 0x25e   :  { %12303 = vmatpush3.xpose.msra.mxu0 %v15185_v56  ;;  %12355 = vmatpush3.xpose.msra.mxu1 %v15144_v35  ;;  %v20729_v56 = vand.u32 4294901760, %v15014_v13 }
 0x25f   :  { %12304 = vmatprep.subr.mxu0 %v15198_v8  ;;  %12356 = vmatprep.subr.mxu1 %v15154_v39 }
 0x260   :  { %12232 = vmatmul.mubr.f32.gmra.mxu0 %v1999_v47  ;;  %12282 = vmatmul.mubr.f32.gmra.mxu1 %v15418_v45  ;;  %v20746_v47 = vld [vmem:[#allocation36_spill] sm:$0xff] }
 0x261   :  { %12284 = vmatprep.mubr.f32.mxu1 %v15426_v23  ;;  %12322 = vmatprep.mubr.f32.mxu0 %v15014_v13  ;;  %v20730_v13 = vld [vmem:[#allocation44_spill] sm:$0xff] }
 0x262   :  { %12305 = vmatpush3.xpose.msra.mxu0 %v15198_v8  ;;  %12357 = vmatpush3.xpose.msra.mxu1 %v15154_v39  ;;  %v20731_v8 = vld [vmem:[#allocation55_spill] sm:$0xff] }
 0x263   :  { %12306 = vmatprep.subr.mxu0 %v15218_v30  ;;  %12358 = vmatprep.subr.mxu1 %v15167_v11 }
 0x264   :  { %12285 = vmatmul.mubr.f32.gmra.mxu1 %v15436_v34 }
 0x265   :  { %12287 = vmatprep.mubr.f32.mxu1 %v15448_v44 }
 0x266   :  { %12307 = vmatpush3.xpose.msra.mxu0 %v15218_v30  ;;  %12359 = vmatpush3.xpose.msra.mxu1 %v15167_v11  ;;  %v20732_v30 = vld [vmem:[#allocation46_spill] sm:$0xff] }
 0x267   :  { %12308 = vmatprep.subr.mxu0 %v15232_v43  ;;  %12360 = vmatprep.subr.mxu1 %v15182_v55 }
 0x268   :  { %12288 = vmatmul.mubr.f32.gmra.mxu1 %v15457_v4 }
 0x269   :  { %12378 = vmatprep.mubr.f32.mxu1 %v20729_v56  ;;  %v20748_v56 = vand.u32 4294901760, %v15368_v42 }
 0x26a   :  { %12309 = vmatpush3.xpose.msra.mxu0 %v15232_v43  ;;  %12361 = vmatpush3.xpose.msra.mxu1 %v15182_v55  ;;  %v20733_v43 = vld [vmem:[#allocation48_spill] sm:$0xff] }
 0x26b   :  { %12310 = vmatprep.subr.mxu0 %v15247_v63  ;;  %12362 = vmatprep.subr.mxu1 %v15201_v53 }
 0x26e   :  { %12311 = vmatpush3.xpose.msra.mxu0 %v15247_v63  ;;  %12363 = vmatpush3.xpose.msra.mxu1 %v15201_v53  ;;  %v20735_v63 = vld [vmem:[#allocation52_spill] sm:$0xff] }
 0x26f   :  { %12312 = vmatprep.subr.mxu0 %v15259_v33  ;;  %12364 = vmatprep.subr.mxu1 %v15212_v27  ;;  %v20741_v52 = vand.u32 4294901760, %v20735_v63 }
 0x272   :  { %12313 = vmatpush3.xpose.msra.mxu0 %v15259_v33  ;;  %12365 = vmatpush3.xpose.msra.mxu1 %v15212_v27  ;;  %v20736_v33 = vld [vmem:[#allocation53_spill] sm:$0xff] }
 0x273   :  { %12314 = vmatprep.subr.mxu0 %v15277_v25  ;;  %12366 = vmatprep.subr.mxu1 %v15235_v46  ;;  %v20742_v22 = vand.u32 4294901760, %v20736_v33 }
 0x276   :  { %12315 = vmatpush3.xpose.msra.mxu0 %v15277_v25  ;;  %12367 = vmatpush3.xpose.msra.mxu1 %v15235_v46  ;;  %v20738_v25 = vld [vmem:[#allocation34_spill] sm:$0xff] }
 0x277   :  { %12316 = vmatprep.subr.mxu0 %v15287_v10  ;;  %12368 = vmatprep.subr.mxu1 %v15244_v61 }
 0x27a   :  { %12317 = vmatpush3.xpose.msra.mxu0 %v15287_v10  ;;  %12369 = vmatpush3.xpose.msra.mxu1 %v15244_v61  ;;  %v20734_v10 = vld [vmem:[#allocation32_spill] sm:$0xff] }
 0x27b   :  { %12318 = vmatprep.subr.mxu0 %v15311_v54  ;;  %12370 = vmatprep.subr.mxu1 %v20730_v13 }
 0x27e   :  { %12319 = vmatpush3.xpose.msra.mxu0 %v15311_v54  ;;  %12371 = vmatpush3.xpose.msra.mxu1 %v20730_v13  ;;  %v20737_v54 = vld [vmem:[#allocation50_spill] sm:$0xff] }
 0x27f   :  { %12320 = vmatprep.subr.mxu0 %v20731_v8  ;;  %12372 = vmatprep.subr.mxu1 %v20732_v30 }
 0x282   :  { %12321 = vmatpush3.xpose.msra.mxu0 %v20731_v8  ;;  %12373 = vmatpush3.xpose.msra.mxu1 %v20732_v30 }
 0x283   :  { %12374 = vmatprep.subr.mxu1 %v20733_v43  ;;  %12402 = vmatprep.subr.mxu0 %v20734_v10 }
 0x285   :  { %12323 = vmatmul.mubr.f32.vlgmr.msra.gmra.mxu0 %v20735_v63 }
 0x286   :  { %12325 = vmatprep.mubr.f32.mxu0 %v20736_v33  ;;  %12375 = vmatpush3.xpose.msra.mxu1 %v20733_v43 }
 0x287   :  { %12403 = vmatpush3.xpose.msra.mxu0 %v20734_v10  ;;  %12376 = vmatprep.subr.mxu1 %v20737_v54 }
 0x288   :  { %12404 = vmatprep.subr.mxu0 %v20738_v25 }
 0x289   :  { %12326 = vmatmul.mubr.f32.gmra.mxu0 %v20739_v0 }
 0x28a   :  { %12328 = vmatprep.mubr.f32.mxu0 %v15353_v7  ;;  %12377 = vmatpush3.xpose.msra.mxu1 %v20737_v54  ;;  %v20749_v7 = vld [vmem:[#allocation37_spill] sm:$0xff] }
 0x28b   :  { %12405 = vmatpush3.xpose.msra.mxu0 %v20738_v25  ;;  %12458 = vmatprep.subr.mxu1 %v15106_v28 }
 0x28c   :  { %12406 = vmatprep.subr.mxu0 %v20740_v16 }
 0x28d   :  { %12329 = vmatmul.mubr.f32.gmra.mxu0 %v15363_v38  ;;  %12379 = vmatmul.mubr.f32.vlgmr.msra.gmra.mxu1 %v20741_v52 }
 0x28e   :  { %12331 = vmatprep.mubr.f32.mxu0 %v15368_v42  ;;  %12381 = vmatprep.mubr.f32.mxu1 %v20742_v22  ;;  %v3241_v42 = vpop.permute.xlu1 %3240 }
 0x28f   :  { %12407 = vmatpush3.xpose.msra.mxu0 %v20740_v16  ;;  %12459 = vmatpush3.xpose.msra.mxu1 %v15106_v28  ;;  %v20747_v28 = vand.u32 4294901760, %v15363_v38  ;;  %v20751_v38 = vld [vmem:[#allocation38_spill] sm:$0xff] }
 0x290   :  { %12408 = vmatprep.subr.mxu0 %v20743_v40  ;;  %12460 = vmatprep.subr.mxu1 %v15123_v19 }
 0x291   :  { %12332 = vmatmul.mubr.f32.gmra.mxu0 %v15387_v50  ;;  %12382 = vmatmul.mubr.f32.gmra.mxu1 %v20744_v36  ;;  %v20753_v50 = vld [vmem:[#allocation40_spill] sm:$0xff] }
 0x292   :  { %12334 = vmatprep.mubr.f32.mxu0 %v15395_v29  ;;  %12384 = vmatprep.mubr.f32.mxu1 %v20745_v62 }
 0x293   :  { %12409 = vmatpush3.xpose.msra.mxu0 %v20743_v40  ;;  %12461 = vmatpush3.xpose.msra.mxu1 %v15123_v19  ;;  %v20750_v19 = vand.u32 4294901760, %v15395_v29  ;;  %v15654_v29 = vpop.permute.xlu1 %3228 }
 0x294   :  { %12410 = vmatprep.subr.mxu0 %v20746_v47  ;;  %12462 = vmatprep.subr.mxu1 %v15104_v1  ;;  %v15739_v22 = vand.u32 4294901760, %v15654_v29 }
 0x295   :  { %12335 = vmatmul.mubr.f32.gmra.mxu0 %v15416_v15  ;;  %12385 = vmatmul.mubr.f32.gmra.mxu1 %v20747_v28  ;;  %v20755_v15 = vld [vmem:[#allocation42_spill] sm:$0xff] }
 0x296   :  { %12337 = vmatprep.mubr.f32.mxu0 %v15423_v49  ;;  %12387 = vmatprep.mubr.f32.mxu1 %v20748_v56  ;;  %20778 = vst [vmem:[#allocation40_spill] sm:$0xff] %v15739_v22 }
 0x297   :  { %12411 = vmatpush3.xpose.msra.mxu0 %v20746_v47  ;;  %12463 = vmatpush3.xpose.msra.mxu1 %v15104_v1  ;;  %v20752_v1 = vand.u32 4294901760, %v15423_v49  ;;  %v20760_v49 = vld [vmem:[#allocation51_spill] sm:$0xff] }
 0x298   :  { %12412 = vmatprep.subr.mxu0 %v20749_v7  ;;  %12464 = vmatprep.subr.mxu1 %v15121_v17 }
 0x299   :  { %12338 = vmatmul.mubr.f32.gmra.mxu0 %v15434_v59  ;;  %12388 = vmatmul.mubr.f32.gmra.mxu1 %v1917_v24  ;;  %v20759_v24 = vld [vmem:[#allocation49_spill] sm:$0xff]  ;;  %v15662_v59 = vpop.permute.xlu1 %3224 }
 0x29a   :  { %12340 = vmatprep.mubr.f32.mxu0 %v15445_v48  ;;  %12390 = vmatprep.mubr.f32.mxu1 %v20750_v19 }
 0x29b   :  { %12413 = vmatpush3.xpose.msra.mxu0 %v20749_v7  ;;  %12465 = vmatpush3.xpose.msra.mxu1 %v15121_v17  ;;  %v20754_v17 = vld [vmem:[#allocation22_spill] sm:$0xff]  ;;  %v15761_v7 = vsub.f32 %v15654_v29, %v15739_v22 }
 0x29c   :  { %12414 = vmatprep.subr.mxu0 %v20751_v38  ;;  %12466 = vmatprep.subr.mxu1 %v15144_v35 }
 0x29d   :  { %12341 = vmatmul.mubr.f32.gmra.mxu0 %v15455_v32  ;;  %12391 = vmatmul.mubr.f32.gmra.mxu1 %v1937_v14  ;;  %v15666_v14 = vand.u32 4294901760, %v3241_v42  ;;  %v20764_v32 = vld [vmem:[#allocation57_spill] sm:$0xff] }
 0x29e   :  { %12343 = vmatprep.mubr.f32.mxu0 %v15466_v51  ;;  %12393 = vmatprep.mubr.f32.mxu1 %v20752_v1 }
 0x29f   :  { %12415 = vmatpush3.xpose.msra.mxu0 %v20751_v38  ;;  %12467 = vmatpush3.xpose.msra.mxu1 %v15144_v35  ;;  %v20756_v35 = vld [vmem:[#allocation43_spill] sm:$0xff]  ;;  %20761 = vst [vmem:[#allocation44_spill] sm:$0xff] %v15666_v14  ;;  %v15770_v38 = vand.u32 4294901760, %v15662_v59 }
 0x2a0   :  { %12416 = vmatprep.subr.mxu0 %v20753_v50  ;;  %12468 = vmatprep.subr.mxu1 %v15154_v39 }
 0x2a1   :  { %12344 = vmatmul.mubr.f32.gmra.mxu0 %v15477_v12  ;;  %12394 = vmatmul.mubr.f32.gmra.mxu1 %v1957_v2  ;;  %20784 = vst [vmem:[#allocation49_spill] sm:$0xff] %v15770_v38 }
 0x2a2   :  { %12396 = vmatprep.mubr.f32.mxu1 %v1967_v20  ;;  %12434 = vmatprep.mubr.f32.mxu0 %v20754_v17 }
 0x2a3   :  { %12417 = vmatpush3.xpose.msra.mxu0 %v20753_v50  ;;  %12469 = vmatpush3.xpose.msra.mxu1 %v15154_v39  ;;  %v20757_v39 = vld [vmem:[#allocation45_spill] sm:$0xff] }
 0x2a4   :  { %12418 = vmatprep.subr.mxu0 %v20755_v15  ;;  %12470 = vmatprep.subr.mxu1 %v15167_v11  ;;  %20782 = vst [vmem:[#allocation45_spill] sm:$0xff] %v15761_v7 }
 0x2a5   :  { %12397 = vmatmul.mubr.f32.gmra.mxu1 %v1977_v41  ;;  %v15672_v41 = vpop.permute.xlu1 %3220 }
 0x2a6   :  { %12399 = vmatprep.mubr.f32.mxu1 %v1987_v5 }
 0x2a7   :  { %12419 = vmatpush3.xpose.msra.mxu0 %v20755_v15  ;;  %12471 = vmatpush3.xpose.msra.mxu1 %v15167_v11  ;;  %v20758_v11 = vld [vmem:[#allocation47_spill] sm:$0xff]  ;;  %v15784_v15 = vand.u32 4294901760, %v15761_v7 }
 0x2a8   :  { %12420 = vmatprep.subr.mxu0 %v20756_v35  ;;  %12472 = vmatprep.subr.mxu1 %v15182_v55 }
 0x2a9   :  { %12400 = vmatmul.mubr.f32.gmra.mxu1 %v1997_v37  ;;  %v3235_v20 = vpop.permute.xlu1 %3234  ;;  %20787 = vst [vmem:[#allocation57_spill] sm:$0xff] %v15784_v15 }
 0x2aa   :  { %12490 = vmatprep.mubr.f32.mxu1 %v20754_v17  ;;  %v15696_v37 = vand.u32 4294901760, %v3235_v20 }
 0x2ab   :  { %12421 = vmatpush3.xpose.msra.mxu0 %v20756_v35  ;;  %12473 = vmatpush3.xpose.msra.mxu1 %v15182_v55  ;;  %v3237_v55 = vpop.permute.xlu0 %3236 }
 0x2ac   :  { %12422 = vmatprep.subr.mxu0 %v20757_v39  ;;  %12474 = vmatprep.subr.mxu1 %v15201_v53  ;;  %v15688_v51 = vand.u32 4294901760, %v3237_v55  ;;  %20769 = vst [vmem:[#allocation53_spill] sm:$0xff] %v15696_v37 }
 0x2ae   :  { %20767 = vst [vmem:[#allocation32_spill] sm:$0xff] %v15688_v51  ;;  %v15703_v8 = vsub.f32 %v3237_v55, %v15688_v51 }
 0x2af   :  { %12423 = vmatpush3.xpose.msra.mxu0 %v20757_v39  ;;  %12475 = vmatpush3.xpose.msra.mxu1 %v15201_v53  ;;  %v3233_v53 = vpop.permute.xlu0 %3232 }
 0x2b0   :  { %12424 = vmatprep.subr.mxu0 %v20758_v11  ;;  %12476 = vmatprep.subr.mxu1 %v15212_v27  ;;  %20770 = vst [vmem:[#allocation50_spill] sm:$0xff] %v15703_v8  ;;  %v15711_v10 = vand.u32 4294901760, %v3233_v53  ;;  %v15722_v33 = vand.u32 4294901760, %v15703_v8 }
 0x2b2   :  { %20772 = vst [vmem:[#allocation56_spill] sm:$0xff] %v15711_v10  ;;  %20774 = vst [vmem:[#allocation35_spill] sm:$0xff] %v15722_v33  ;;  %v15730_v52 = vsub.f32 %v3233_v53, %v15711_v10  ;;  %v3517_v40 = vsub.f32 %v15703_v8, %v15722_v33  ;;  %v3545_v53 = vsub.f32 %v15761_v7, %v15784_v15 }
 0x2b3   :  { %12425 = vmatpush3.xpose.msra.mxu0 %v20758_v11  ;;  %12477 = vmatpush3.xpose.msra.mxu1 %v15212_v27  ;;  %v20762_v27 = vld [vmem:[#allocation54_spill] sm:$0xff]  ;;  %v3239_v48 = vpop.permute.xlu0 %3238 }
 0x2b4   :  { %12426 = vmatprep.subr.mxu0 %v20759_v24  ;;  %12478 = vmatprep.subr.mxu1 %v15235_v46  ;;  %v15681_v2 = vand.u32 4294901760, %v3239_v48  ;;  %20776 = vst [vmem:[#allocation37_spill] sm:$0xff] %v15730_v52  ;;  %v15752_v62 = vand.u32 4294901760, %v15730_v52 }
 0x2b6   :  { %20765 = vst [vmem:[#allocation46_spill] sm:$0xff] %v15681_v2  ;;  %v15693_v12 = vsub.f32 %v3239_v48, %v15681_v2  ;;  %20780 = vst [vmem:[#allocation42_spill] sm:$0xff] %v15752_v62  ;;  %v3531_v1 = vsub.f32 %v15730_v52, %v15752_v62 }
 0x2b7   :  { %12427 = vmatpush3.xpose.msra.mxu0 %v20759_v24  ;;  %12479 = vmatpush3.xpose.msra.mxu1 %v15235_v46  ;;  %v15675_v46 = vsub.f32 %v3241_v42, %v15666_v14  ;;  %v3231_v5 = vpop.permute.xlu0 %3230  ;;  %v15791_v42 = vsub.f32 %v15662_v59, %v15770_v38 }
 0x2b8   :  { %12428 = vmatprep.subr.mxu0 %v20760_v49  ;;  %12480 = vmatprep.subr.mxu1 %v15244_v61  ;;  %20768 = vst [vmem:[#allocation52_spill] sm:$0xff] %v15693_v12  ;;  %v15724_v25 = vand.u32 4294901760, %v3231_v5  ;;  %v3532_v11 = vand.u32 4294901760, %v3531_v1 }
 0x2b9   :  { %20763 = vst [vmem:[#allocation55_spill] sm:$0xff] %v15675_v46  ;;  %20788 = vst [vmem:[#allocation58_spill] sm:$0xff] %v15791_v42 }
 0x2ba   :  { %20775 = vst [vmem:[#allocation36_spill] sm:$0xff] %v15724_v25  ;;  %v15746_v36 = vsub.f32 %v3231_v5, %v15724_v25 }
 0x2bb   :  { %12429 = vmatpush3.xpose.msra.mxu0 %v20760_v49  ;;  %12481 = vmatpush3.xpose.msra.mxu1 %v15244_v61  ;;  %v15686_v61 = vand.u32 4294901760, %v15675_v46  ;;  %v3227_v0 = vpop.permute.xlu0 %3226  ;;  %v15818_v49 = vand.u32 4294901760, %v15791_v42 }
 0x2bc   :  { %12430 = vmatprep.subr.mxu0 %v20762_v27  ;;  %12482 = vmatprep.subr.mxu1 %v20730_v13  ;;  %20779 = vst [vmem:[#allocation22_spill] sm:$0xff] %v15746_v36  ;;  %v15754_v47 = vand.u32 4294901760, %v3227_v0  ;;  %v15767_v19 = vand.u32 4294901760, %v15746_v36 }
 0x2bd   :  { %20766 = vst [vmem:[#allocation48_spill] sm:$0xff] %v15686_v61  ;;  %20794 = vst [vmem:[#allocation64_spill] sm:$0xff] %v15818_v49 }
 0x2be   :  { %20781 = vst [vmem:[#allocation43_spill] sm:$0xff] %v15754_v47  ;;  %20783 = vst [vmem:[#allocation47_spill] sm:$0xff] %v15767_v19  ;;  %v15776_v50 = vsub.f32 %v3227_v0, %v15754_v47  ;;  %v3538_v39 = vsub.f32 %v15746_v36, %v15767_v19 }
 0x2bf   :  { %12431 = vmatpush3.xpose.msra.mxu0 %v20762_v27  ;;  %12483 = vmatpush3.xpose.msra.mxu1 %v20730_v13  ;;  %v3503_v13 = vsub.f32 %v15675_v46, %v15686_v61  ;;  %v3223_v28 = vpop.permute.xlu0 %3222 }
 0x2c0   :  { %12432 = vmatprep.subr.mxu0 %v20764_v32  ;;  %12484 = vmatprep.subr.mxu1 %v20732_v30  ;;  %20785 = vst [vmem:[#allocation51_spill] sm:$0xff] %v15776_v50  ;;  %v15780_v17 = vand.u32 4294901760, %v3223_v28  ;;  %v15800_v29 = vand.u32 4294901760, %v15776_v50  ;;  %v3539_v59 = vand.u32 4294901760, %v3538_v39 }
 0x2c1   :  { %v3504_v63 = vand.u32 4294901760, %v3503_v13 }
 0x2c2   :  { %20786 = vst [vmem:[#allocation54_spill] sm:$0xff] %v15780_v17  ;;  %20790 = vst [vmem:[#allocation60_spill] sm:$0xff] %v15800_v29  ;;  %v15803_v55 = vsub.f32 %v3223_v28, %v15780_v17  ;;  %v3552_v27 = vsub.f32 %v15776_v50, %v15800_v29 }
 0x2c3   :  { %12433 = vmatpush3.xpose.msra.mxu0 %v20764_v32  ;;  %12485 = vmatpush3.xpose.msra.mxu1 %v20732_v30  ;;  %v15709_v30 = vand.u32 4294901760, %v15693_v12  ;;  %v3219_v35 = vpop.permute.xlu0 %3218  ;;  %v3559_v32 = vsub.f32 %v15791_v42, %v15818_v49 }
 0x2c4   :  { %12486 = vmatprep.subr.mxu1 %v20733_v43  ;;  %12514 = vmatprep.subr.mxu0 %v15666_v14  ;;  %20791 = vst [vmem:[#allocation61_spill] sm:$0xff] %v15803_v55  ;;  %v15805_v24 = vand.u32 4294901760, %v3219_v35  ;;  %v3553_v5 = vand.u32 4294901760, %v3552_v27 }
 0x2c5   :  { %20771 = vst [vmem:[#allocation34_spill] sm:$0xff] %v15709_v30  ;;  %v3510_v16 = vsub.f32 %v15693_v12, %v15709_v30 }
 0x2c6   :  { %12435 = vmatmul.mubr.f32.vlgmr.msra.gmra.mxu0 %v15303_v3  ;;  %20792 = vst [vmem:[#allocation62_spill] sm:$0xff] %v15805_v24  ;;  %v15824_v48 = vsub.f32 %v3219_v35, %v15805_v24 }
 0x2c7   :  { %12437 = vmatprep.mubr.f32.mxu0 %v15306_v58  ;;  %12487 = vmatpush3.xpose.msra.mxu1 %v20733_v43  ;;  %v15715_v43 = vsub.f32 %v3235_v20, %v15696_v37 }
 0x2c8   :  { %12515 = vmatpush3.msra.mxu0 %v15666_v14  ;;  %12488 = vmatprep.subr.mxu1 %v20737_v54  ;;  %20795 = vst [vmem:[#allocation65_spill] sm:$0xff] %v15824_v48  ;;  %v15844_v13 = vand.u32 4294901760, %v15824_v48 }
 0x2c9   :  { %12516 = vmatprep.subr.mxu0 %v15681_v2  ;;  %20773 = vst [vmem:[#allocation33_spill] sm:$0xff] %v15715_v43 }
 0x2ca   :  { %12517 = vmatpush3.msra.mxu0 %v15681_v2  ;;  %20798 = vst [vmem:[#allocation68_spill] sm:$0xff] %v15844_v13 }
 0x2cb   :  { %12438 = vmatmul.mubr.f32.gmra.mxu0 %v15320_v21  ;;  %12518 = vmatprep.subr.mxu0 %v15688_v51 }
 0x2cc   :  { %12440 = vmatprep.mubr.f32.mxu0 %v15331_v26  ;;  %12489 = vmatpush3.xpose.msra.mxu1 %v20737_v54  ;;  %v15736_v54 = vand.u32 4294901760, %v15715_v43 }
 0x2cd   :  { %12519 = vmatpush3.msra.mxu0 %v15688_v51  ;;  %12570 = vmatprep.subr.mxu1 %v3504_v63  ;;  %v1538_v51 = vlaneseq }
 0x2ce   :  { %12520 = vmatprep.subr.mxu0 %v15696_v37  ;;  %20777 = vst [vmem:[#allocation38_spill] sm:$0xff] %v15736_v54  ;;  %v3524_v56 = vsub.f32 %v15715_v43, %v15736_v54 }
 0x2cf   :  { %12521 = vmatpush3.msra.mxu0 %v15696_v37  ;;  %12491 = vmatmul.mubr.f32.vlgmr.msra.gmra.mxu1 %v15303_v3  ;;  %v3511_v3 = vand.u32 4294901760, %v3510_v16  ;;  %v3580_v16 = vsub.f32 %v15824_v48, %v15844_v13  ;;  %v15966_v36 = vshrl.u32 %v1538_v51, 7  ;;  %v1556_v8 = vand.u32 127, %v1538_v51 }
 0x2d0   :  { %12441 = vmatmul.mubr.f32.gmra.mxu0 %v15341_v9  ;;  %12522 = vmatprep.subr.mxu0 %v15711_v10 }
 0x2d1   :  { %12443 = vmatprep.mubr.f32.mxu0 %v15343_v6  ;;  %12493 = vmatprep.mubr.f32.mxu1 %v15306_v58  ;;  %v3518_v58 = vand.u32 4294901760, %v3517_v40  ;;  %v1540_v43 = vadd.s32 8, %v15966_v36 }
 0x2d2   :  { %12523 = vmatpush3.msra.mxu0 %v15711_v10  ;;  %12571 = vmatpush3.msra.mxu1 %v3504_v63  ;;  %v3560_v63 = vand.u32 4294901760, %v3559_v32 }
 0x2d3   :  { %12524 = vmatprep.subr.mxu0 %v15724_v25  ;;  %12572 = vmatprep.subr.mxu1 %v3511_v3 }
 0x2d4   :  { %12525 = vmatpush3.msra.mxu0 %v15724_v25  ;;  %12573 = vmatpush3.msra.mxu1 %v3511_v3  ;;  %v3581_v3 = vand.u32 4294901760, %v3580_v16 }
 0x2d5   :  { %12444 = vmatmul.mubr.f32.gmra.mxu0 %v15365_v31  ;;  %12494 = vmatmul.mubr.f32.gmra.mxu1 %v15320_v21  ;;  %v3525_v21 = vand.u32 4294901760, %v3524_v56  ;;  %v15870_v56 = vpop.f32.mrf.mxu1 }
 0x2d6   :  { %12526 = vmatprep.subr.mxu0 %v15739_v22  ;;  %12574 = vmatprep.subr.mxu1 %v3518_v58  ;;  %20800 = vst [vmem:[#allocation70_spill] sm:$0xff] %v15870_v56 }
 0x2d7   :  { %12446 = vmatprep.mubr.f32.mxu0 %v15371_v18  ;;  %12496 = vmatprep.mubr.f32.mxu1 %v15331_v26  ;;  %v15794_v26 = vand.u32 4294901760, %v15672_v41 }
 0x2d8   :  { %12527 = vmatpush3.msra.mxu0 %v15739_v22  ;;  %12575 = vmatpush3.msra.mxu1 %v3518_v58 }
 0x2d9   :  { %12528 = vmatprep.subr.mxu0 %v15754_v47  ;;  %12576 = vmatprep.subr.mxu1 %v3525_v21  ;;  %20789 = vst [vmem:[#allocation59_spill] sm:$0xff] %v15794_v26 }
 0x2da   :  { %12529 = vmatpush3.msra.mxu0 %v15754_v47  ;;  %12577 = vmatpush3.msra.mxu1 %v3525_v21 }
 0x2db   :  { %12447 = vmatmul.mubr.f32.gmra.mxu0 %v15392_v57  ;;  %12497 = vmatmul.mubr.f32.gmra.mxu1 %v15341_v9  ;;  %v15814_v9 = vsub.f32 %v15672_v41, %v15794_v26  ;;  %v15828_v41 = vand.u32 4294901760, %v15803_v55 }
 0x2dc   :  { %12530 = vmatprep.subr.mxu0 %v15770_v38  ;;  %12578 = vmatprep.subr.mxu1 %v3532_v11 }
 0x2dd   :  { %12449 = vmatprep.mubr.f32.mxu0 %v15402_v60  ;;  %12499 = vmatprep.mubr.f32.mxu1 %v15343_v6  ;;  %20793 = vst [vmem:[#allocation63_spill] sm:$0xff] %v15814_v9  ;;  %v3546_v6 = vand.u32 4294901760, %v3545_v53  ;;  %20796 = vst [vmem:[#allocation66_spill] sm:$0xff] %v15828_v41  ;;  %v15836_v20 = vand.u32 4294901760, %v15814_v9 }
 0x2de   :  { %12531 = vmatpush3.msra.mxu0 %v15770_v38  ;;  %12579 = vmatpush3.msra.mxu1 %v3532_v11 }
 0x2df   :  { %12532 = vmatprep.subr.mxu0 %v15780_v17  ;;  %12580 = vmatprep.subr.mxu1 %v3539_v59  ;;  %20797 = vst [vmem:[#allocation67_spill] sm:$0xff] %v15836_v20 }
 0x2e0   :  { %12533 = vmatpush3.msra.mxu0 %v15780_v17  ;;  %12581 = vmatpush3.msra.mxu1 %v3539_v59 }
 0x2e1   :  { %12450 = vmatmul.mubr.f32.gmra.mxu0 %v15418_v45  ;;  %12500 = vmatmul.mubr.f32.gmra.mxu1 %v15365_v31  ;;  %v3566_v31 = vsub.f32 %v15803_v55, %v15828_v41 }
 0x2e2   :  { %12534 = vmatprep.subr.mxu0 %v15794_v26  ;;  %12582 = vmatprep.subr.mxu1 %v3546_v6 }
 0x2e3   :  { %12452 = vmatprep.mubr.f32.mxu0 %v15426_v23  ;;  %12502 = vmatprep.mubr.f32.mxu1 %v15371_v18  ;;  %v3573_v18 = vsub.f32 %v15814_v9, %v15836_v20  ;;  %v3567_v0 = vand.u32 4294901760, %v3566_v31 }
 0x2e4   :  { %12535 = vmatpush3.msra.mxu0 %v15794_v26  ;;  %12583 = vmatpush3.msra.mxu1 %v3546_v6 }
 0x2e5   :  { %12536 = vmatprep.subr.mxu0 %v15805_v24  ;;  %12584 = vmatprep.subr.mxu1 %v3553_v5  ;;  %v3574_v40 = vand.u32 4294901760, %v3573_v18 }
 0x2e6   :  { %12537 = vmatpush3.msra.mxu0 %v15805_v24  ;;  %12585 = vmatpush3.msra.mxu1 %v3553_v5 }
 0x2e7   :  { %12453 = vmatmul.mubr.f32.gmra.mxu0 %v15436_v34  ;;  %12503 = vmatmul.mubr.f32.gmra.mxu1 %v15392_v57 }
 0x2e8   :  { %12586 = vmatprep.subr.mxu1 %v3560_v63  ;;  %12455 = vmatprep.mubr.f32.mxu0 %v15448_v44 }
 0x2e9   :  { %12505 = vmatprep.mubr.f32.mxu1 %v15402_v60  ;;  %12587 = vmatpush3.msra.mxu1 %v3560_v63  ;;  %v15862_v60 = vpop.f32.mrf.mxu0 }
 0x2ea   :  { %12588 = vmatprep.subr.mxu1 %v3567_v0  ;;  %20799 = vst [vmem:[#allocation69_spill] sm:$0xff] %v15862_v60  ;;  %v1558_v60 = vshra.s32 %v1540_v43, 4 }
 0x2eb   :  { %12589 = vmatpush3.msra.mxu1 %v3567_v0  ;;  %12456 = vmatmul.mubr.f32.gmra.mxu0 %v15457_v4 }
 0x2ec   :  { %12506 = vmatmul.mubr.f32.gmra.mxu1 %v15418_v45  ;;  %12590 = vmatprep.subr.mxu1 %v3574_v40 }
 0x2ed   :  { %12508 = vmatprep.mubr.f32.mxu1 %v15426_v23  ;;  %12591 = vmatpush3.msra.mxu1 %v3574_v40 }
 0x2ee   :  { %12592 = vmatprep.subr.mxu1 %v3581_v3 }
 0x2ef   :  { %12593 = vmatpush3.msra.mxu1 %v3581_v3 }
 0x2f0   :  { %12509 = vmatmul.mubr.f32.gmra.mxu1 %v15436_v34 }
 0x2f1   :  { %12511 = vmatprep.mubr.f32.mxu1 %v15448_v44 }
 0x2f4   :  { %12512 = vmatmul.mubr.f32.gmra.mxu1 %v15457_v4 }
 0x304   :  { %v15864_v57 = vpop.f32.mrf.mxu0 }
 0x306   :  { %v15866_v28 = vpop.f32.mrf.mxu0 }
 0x308   :  { %v15868_v45 = vpop.f32.mrf.mxu0 }
 0x30a   :  { %v15872_v23 = vpop.f32.mrf.mxu0 }
 0x30c   :  { %v15874_v58 = vpop.f32.mrf.mxu0  ;;  %v15876_v1 = vpop.f32.mrf.mxu1 }
 0x30e   :  { %v15878_v34 = vpop.f32.mrf.mxu0  ;;  %v15880_v44 = vpop.f32.mrf.mxu1 }
 0x30f   :  { %v2153_v51 = vadd.f32 %v15880_v44, %v15866_v28 }
 0x310   :  { %v15882_v4 = vpop.f32.mrf.mxu0  ;;  %v15884_v21 = vpop.f32.mrf.mxu1 }
 0x312   :  { %v15886_v35 = vpop.f32.mrf.mxu0  ;;  %v15888_v39 = vpop.f32.mrf.mxu1 }
 0x314   :  { %v12224_v11 = vpop.f32.mrf.mxu0  ;;  %v15890_v53 = vpop.f32.mrf.mxu1 }
 0x316   :  { %v15892_v59 = vpop.f32.mrf.mxu0  ;;  %v15894_v27 = vpop.f32.mrf.mxu1 }
 0x318   :  { %v12227_v6 = vpop.f32.mrf.mxu0  ;;  %v15896_v32 = vpop.f32.mrf.mxu1 }
 0x31a   :  { %v15898_v5 = vpop.f32.mrf.mxu1  ;;  %v15900_v31 = vpop.f32.mrf.mxu0 }
 0x31c   :  { %v12280_v63 = vpop.f32.mrf.mxu1  ;;  %v12230_v16 = vpop.f32.mrf.mxu0 }
 0x31d   :  { %v15902_v18 = vadd.f32 %v12280_v63, %v12224_v11 }
 0x31e   :  { %v15904_v0 = vpop.f32.mrf.mxu1  ;;  %v15910_v20 = vpop.f32.mrf.mxu0 }
 0x320   :  { %v12283_v40 = vpop.f32.mrf.mxu1  ;;  %v12233_v15 = vpop.f32.mrf.mxu0 }
 0x321   :  { %v15906_v3 = vadd.f32 %v12283_v40, %v12227_v6 }
 0x322   :  { %v15908_v13 = vpop.f32.mrf.mxu1  ;;  %v15918_v11 = vpop.f32.mrf.mxu0 }
 0x323   :  { %20801 = vst [vmem:[#allocation71_spill] sm:$0xff] %v15906_v3 }
 0x324   :  { %v12286_v41 = vpop.f32.mrf.mxu1 }
 0x325   :  { %v15912_v49 = vadd.f32 %v12286_v41, %v12230_v16 }
 0x326   :  { %v15914_v29 = vpop.f32.mrf.mxu1 }
 0x327   :  { %20802 = vst [vmem:[#allocation72_spill] sm:$0xff] %v15912_v49 }
 0x328   :  { %v12289_v19 = vpop.f32.mrf.mxu1 }
 0x329   :  { %v15916_v62 = vadd.f32 %v12289_v19, %v12233_v15 }
 0x32a   :  { %v15920_v33 = vpop.f32.mrf.mxu1 }
 0x32b   :  { %20803 = vst [vmem:[#allocation73_spill] sm:$0xff] %v15916_v62  ;;  %v15977_v62 = vshra.s32 %v1556_v8, 4 }
 0x32d   :  { %vm15991_vm2 = vcmp.eq.s32.totalorder %v1558_v60, %v15977_v62  ;;  %v1541_v60 = vadd.s32 16, %v15966_v36 }
 0x345   :  { %v12324_v63 = vpop.f32.mrf.mxu0 }
 0x347   :  { %v2346_v54 = vpop.f32.mrf.mxu0 }
 0x349   :  { %v15922_v6 = vpop.f32.mrf.mxu0 }
 0x34b   :  { %v15924_v30 = vpop.f32.mrf.mxu0 }
 0x34d   :  { %v12380_v40 = vpop.f32.mrf.mxu1  ;;  %v15926_v41 = vpop.f32.mrf.mxu0 }
 0x34f   :  { %v2540_v61 = vpop.f32.mrf.mxu1  ;;  %v15930_v24 = vpop.f32.mrf.mxu0 }
 0x351   :  { %v15928_v16 = vpop.f32.mrf.mxu1  ;;  %v15934_v15 = vpop.f32.mrf.mxu0 }
 0x353   :  { %v15932_v19 = vpop.f32.mrf.mxu1  ;;  %v15938_v17 = vpop.f32.mrf.mxu0 }
 0x355   :  { %v15936_v26 = vpop.f32.mrf.mxu1  ;;  %v15942_v47 = vpop.f32.mrf.mxu0 }
 0x357   :  { %v15940_v38 = vpop.f32.mrf.mxu1  ;;  %v15946_v22 = vpop.f32.mrf.mxu0 }
 0x359   :  { %v15944_v48 = vpop.f32.mrf.mxu1  ;;  %v15950_v25 = vpop.f32.mrf.mxu0 }
 0x35a   :  { %20804 = vst [vmem:[#allocation74_spill] sm:$0xff] %v15950_v25 }
 0x35b   :  { %v15948_v9 = vpop.f32.mrf.mxu1  ;;  %v15954_v10 = vpop.f32.mrf.mxu0 }
 0x35c   :  { %20805 = vst [vmem:[#allocation75_spill] sm:$0xff] %v15954_v10 }
 0x35d   :  { %v15952_v55 = vpop.f32.mrf.mxu1  ;;  %v15958_v37 = vpop.f32.mrf.mxu0 }
 0x35e   :  { %20806 = vst [vmem:[#allocation76_spill] sm:$0xff] %v15958_v37  ;;  %v15981_v37 = vand.u32 15, %v1556_v8  ;;  %v2347_v8 = vadd.f32 %v2346_v54, %v2153_v51  ;;  %v2165_v54 = vadd.f32 %v15888_v39, %v15872_v23  ;;  %v1593_v39 = vand.u32 15, %v1541_v60 }
 0x35f   :  { %v15956_v42 = vpop.f32.mrf.mxu1  ;;  %v15962_v7 = vpop.f32.mrf.mxu0 }
 0x360   :  { %20808 = vst [vmem:[#allocation78_spill] sm:$0xff] %v15962_v7  ;;  %v2159_v7 = vadd.f32 %v15876_v1, %v15864_v57  ;;  %v20815_v57 = vmov 0  ;;  %v20818_v1 = vmov 0  ;;  %v2541_v25 = vadd.f32 %v2540_v61, %v2347_v8 }
 0x361   :  { %v15960_v50 = vpop.f32.mrf.mxu1  ;;  %v15968_v14 = vpop.f32.mrf.mxu0  ;;  %v20816_v57 = vsel %vm15991_vm2, 4294967295, %v20815_v57  ;;  %v2177_v8 = vadd.f32 %v15894_v27, %v15878_v34  ;;  %vm16076_vm12 = vcmp.le.s32.totalorder %v15981_v37, %v1593_v39  ;;  %v20839_v39 = vmov 0 }
 0x362   :  { %20807 = vst [vmem:[#allocation77_spill] sm:$0xff] %v15960_v50  ;;  %20810 = vst [vmem:[#allocation80_spill] sm:$0xff] %v15968_v14  ;;  %v1592_v14 = vand.u32 15, %v1540_v43  ;;  %v1591_v50 = vand.u32 15, %v15966_v36 }
 0x363   :  { %v15964_v2 = vpop.f32.mrf.mxu1  ;;  %v15973_v12 = vpop.f32.mrf.mxu0  ;;  %20817 = vst [vmem:[#allocation85_spill] sm:$0xff] %v20816_v57 }
 0x364   :  { %20809 = vst [vmem:[#allocation79_spill] sm:$0xff] %v15964_v2  ;;  %20812 = vst [vmem:[#allocation82_spill] sm:$0xff] %v15973_v12  ;;  %v2354_v12 = vadd.f32 %v12324_v63, %v2159_v7  ;;  %vm15996_vm3 = vcmp.le.s32.totalorder %v15981_v37, %v1592_v14  ;;  %v2171_v7 = vadd.f32 %v15884_v21, %v15868_v45  ;;  %v20824_v14 = vmov 0 }
 0x365   :  { %v15970_v52 = vpop.f32.mrf.mxu1  ;;  %v20819_v1 = vsel %vm15996_vm3, 4294967295, %v20818_v1  ;;  %vm16011_vm5 = vcmp.le.s32.totalorder %v15981_v37, %v1591_v50  ;;  %vm20383_vm6 = vmand %vm15991_vm2, %vm15996_vm3 }
 0x366   :  { %20811 = vst [vmem:[#allocation81_spill] sm:$0xff] %v15970_v52  ;;  %v1542_v52 = vadd.s32 24, %v15966_v36  ;;  %v2549_v43 = vadd.f32 %v12380_v40, %v2354_v12  ;;  %20820 = vst [vmem:[#allocation86_spill] sm:$0xff] %v20819_v1  ;;  %v20821_v12 = vmov 0  ;;  %v20825_v14 = vsel %vm16011_vm5, 4294967295, %v20824_v14 }
 0x367   :  { %v15975_v46 = vpop.f32.mrf.mxu1  ;;  %20826 = vst [vmem:[#allocation88_spill] sm:$0xff] %v20825_v14  ;;  %v2368_v61 = vadd.f32 %v15922_v6, %v2171_v7  ;;  %v20827_v40 = vmov 0  ;;  %v2189_v7 = vadd.f32 %v15898_v5, %v15886_v35 }
 0x368   :  { %20813 = vst [vmem:[#allocation83_spill] sm:$0xff] %v15975_v46  ;;  %v1557_v46 = vshra.s32 %v15966_v36, 4  ;;  %v1594_v63 = vand.u32 15, %v1542_v52 }
 0x369   :  { %v15984_v49 = vpop.f32.mrf.mxu1 }
 0x36a   :  { %20814 = vst [vmem:[#allocation84_spill] sm:$0xff] %v15984_v49  ;;  %v1560_v49 = vshra.s32 %v1542_v52, 4  ;;  %vm16006_vm4 = vcmp.eq.s32.totalorder %v1557_v46, %v15977_v62  ;;  %v2183_v52 = vadd.f32 %v15890_v53, %v15874_v58  ;;  %v1544_v46 = vadd.s32 40, %v15966_v36 }
 0x36b   :  { %v16002_v28 = vpop.f32.mrf.mxu1  ;;  %v20822_v12 = vsel %vm16006_vm4, 4294967295, %v20821_v12  ;;  %vm20382_vm8 = vmand %vm16006_vm4, %vm16011_vm5  ;;  %vm16035_vm9 = vcmp.le.s32.totalorder %v15981_v37, %v1594_v63  ;;  %v20830_v58 = vmov 0  ;;  %v2565_v53 = vadd.f32 %v15928_v16, %v2368_v61 }
 0x36c   :  { %20823 = vst [vmem:[#allocation87_spill] sm:$0xff] %v20822_v12  ;;  %vm16026_vm7 = vcmp.eq.s32.totalorder %v1560_v49, %v15977_v62  ;;  %v20831_v58 = vsel %vm16035_vm9, 4294967295, %v20830_v58  ;;  %v2361_v49 = vadd.f32 %v15924_v30, %v2165_v54  ;;  %v1562_v30 = vshra.s32 %v1544_v46, 4 }
 0x36d   :  { %v20828_v40 = vsel %vm16026_vm7, 4294967295, %v20827_v40  ;;  %20832 = vst [vmem:[#allocation90_spill] sm:$0xff] %v20831_v58  ;;  %v1546_v16 = vadd.s32 56, %v15966_v36  ;;  %vm20381_vm10 = vmand %vm16026_vm7, %vm16035_vm9  ;;  %v1596_v5 = vand.u32 15, %v1544_v46  ;;  %v2375_v46 = vadd.f32 %v15930_v24, %v2177_v8 }
 0x36e   :  { %20829 = vst [vmem:[#allocation89_spill] sm:$0xff] %v20828_v40  ;;  %v2557_v63 = vadd.f32 %v15932_v19, %v2361_v49  ;;  %v2382_v19 = vadd.f32 %v15926_v41, %v2183_v52  ;;  %vm16087_vm13 = vcmp.eq.s32.totalorder %v1562_v30, %v15977_v62  ;;  %v1548_v52 = vadd.s32 72, %v15966_v36 }
 0x36f   :  { %v20840_v39 = vsel %vm16087_vm13, 4294967295, %v20839_v39  ;;  %v1564_v49 = vshra.s32 %v1546_v16, 4  ;;  %vm16110_vm15 = vcmp.le.s32.totalorder %v15981_v37, %v1596_v5  ;;  %v1598_v24 = vand.u32 15, %v1546_v16 }
 0x370   :  { %20841 = vst [vmem:[#allocation93_spill] sm:$0xff] %v20840_v39  ;;  %v2581_v41 = vadd.f32 %v15936_v26, %v2382_v19  ;;  %v20842_v26 = vmov 0  ;;  %v1547_v16 = vadd.s32 64, %v15966_v36 }
 0x371   :  { %v20843_v26 = vsel %vm16110_vm15, 4294967295, %v20842_v26  ;;  %vm16150_vm9 = vcmp.le.s32.totalorder %v15981_v37, %v1598_v24 }
 0x372   :  { %20844 = vst [vmem:[#allocation94_spill] sm:$0xff] %v20843_v26 }
 0x386   :  { %v12436_v56 = vpop.f32.mrf.mxu0 }
 0x387   :  { %v2786_v3 = vadd.f32 %v12436_v56, %v2549_v43  ;;  %v2195_v43 = vadd.f32 %v15896_v32, %v15882_v4  ;;  %v20836_v32 = vmov 0 }
 0x388   :  { %v2779_v2 = vpop.f32.mrf.mxu0  ;;  %v20837_v32 = vsel %vm16076_vm12, 4294967295, %v20836_v32 }
 0x389   :  { %v2780_v50 = vadd.f32 %v2779_v2, %v2541_v25  ;;  %v1543_v2 = vadd.s32 32, %v15966_v36  ;;  %v1559_v25 = vshra.s32 %v1541_v60, 4  ;;  %20838 = vst [vmem:[#allocation92_spill] sm:$0xff] %v20837_v32 }
 0x38b   :  { %v12439_v10 = vpop.f32.mrf.mxu0  ;;  %v1561_v35 = vshra.s32 %v1543_v2, 4  ;;  %vm16071_vm11 = vcmp.eq.s32.totalorder %v1559_v25, %v15977_v62  ;;  %v1595_v61 = vand.u32 15, %v1543_v2  ;;  %v1545_v25 = vadd.s32 48, %v15966_v36 }
 0x38c   :  { %v2798_v60 = vadd.f32 %v12439_v10, %v2565_v53  ;;  %v20833_v10 = vmov 0  ;;  %vm20386_vm14 = vmand %vm16071_vm11, %vm16076_vm12  ;;  %v2573_v2 = vadd.f32 %v15940_v38, %v2375_v46  ;;  %v20851_v38 = vmov 0 }
 0x38d   :  { %v2791_v44 = vpop.f32.mrf.mxu0  ;;  %v20834_v10 = vsel %vm16071_vm11, 4294967295, %v20833_v10  ;;  %vm16117_vm0 = vcmp.eq.s32.totalorder %v1561_v35, %v15977_v62  ;;  %v1563_v30 = vshra.s32 %v1545_v25, 4  ;;  %v20860_v46 = vmov 0  ;;  %vm20863_vm12 = vmand %vm16087_vm13, %vm16110_vm15 }
 0x38e   :  { %20835 = vst [vmem:[#allocation91_spill] sm:$0xff] %v20834_v10  ;;  %v2792_v54 = vadd.f32 %v2791_v44, %v2557_v63  ;;  %v1597_v63 = vand.u32 15, %v1545_v25  ;;  %v20990_v10 = vld [vmem:[#allocation48_spill] sm:$0xff] }
 0x38f   :  { %v12492_v45 = vpop.f32.mrf.mxu1 }
 0x390   :  { %v12442_v56 = vpop.f32.mrf.mxu0  ;;  %v2963_v21 = vadd.f32 %v12492_v45, %v2786_v3 }
 0x391   :  { %v2956_v23 = vpop.f32.mrf.mxu1  ;;  %v2810_v53 = vadd.f32 %v12442_v56, %v2581_v41  ;;  %v2396_v56 = vadd.f32 %v15934_v15, %v2195_v43  ;;  %v20854_v15 = vmov 0  ;;  %v1600_v43 = vand.u32 15, %v1548_v52 }
 0x392   :  { %v2803_v3 = vpop.f32.mrf.mxu0  ;;  %v2957_v6 = vadd.f32 %v2956_v23, %v2780_v50  ;;  %v16047_v51 = vsel %vm20383_vm6, %v2963_v21, -1e+30  ;;  %v16083_v50 = vadd.f32 %v15904_v0, %v15892_v59  ;;  %v16102_v0 = vadd.f32 %v15908_v13, %v15900_v31 }
 0x393   :  { %3068 = vmax.xlane.f32.xlu1 %v16047_v51  ;;  %v20845_v13 = vmov 0  ;;  %v20848_v31 = vmov 0  ;;  %v20855_v15 = vsel %vm16150_vm9, 4294967295, %v20854_v15  ;;  %vm16167_vm6 = vcmp.le.s32.totalorder %v15981_v37, %v1597_v63 }
 0x394   :  { %v16063_v34 = vsel %vm20382_vm8, %v2957_v6, -1e+30  ;;  %v20846_v13 = vsel %vm16117_vm0, 4294967295, %v20845_v13  ;;  %vm16128_vm8 = vcmp.eq.s32.totalorder %v1564_v49, %v15977_v62  ;;  %20856 = vst [vmem:[#allocation98_spill] sm:$0xff] %v20855_v15  ;;  %v20857_v49 = vmov 0 }
 0x395   :  { %v12495_v27 = vpop.f32.mrf.mxu1  ;;  %v12445_v4 = vpop.f32.mrf.mxu0  ;;  %3066 = vmax.xlane.f32.xlu0 %v16063_v34  ;;  %20847 = vst [vmem:[#allocation95_spill] sm:$0xff] %v20846_v13  ;;  %v20852_v38 = vsel %vm16128_vm8, 4294967295, %v20851_v38  ;;  %v20861_v46 = vsel %vm16167_vm6, 4294967295, %v20860_v46  ;;  %v1565_v41 = vshra.s32 %v1547_v16, 4  ;;  %v1552_v63 = vadd.s32 104, %v15966_v36  ;;  %vm20870_vm15 = vmand %vm16128_vm8, %vm16150_vm9 }
 0x396   :  { %v2975_v45 = vadd.f32 %v12495_v27, %v2798_v60  ;;  %20853 = vst [vmem:[#allocation97_spill] sm:$0xff] %v20852_v38  ;;  %v2804_v60 = vadd.f32 %v2803_v3, %v2573_v2  ;;  %v1566_v3 = vshra.s32 %v1548_v52, 4  ;;  %20862 = vst [vmem:[#allocation100_spill] sm:$0xff] %v20861_v46  ;;  %v20867_v52 = vmov 0  ;;  %v20959_v46 = vld [vmem:[#allocation55_spill] sm:$0xff] }
 0x397   :  { %v2815_v21 = vpop.f32.mrf.mxu0  ;;  %v2968_v23 = vpop.f32.mrf.mxu1  ;;  %vm16226_vm13 = vcmp.eq.s32.totalorder %v1565_v41, %v15977_v62  ;;  %v20882_v41 = vld [vmem:[#allocation74_spill] sm:$0xff] }
 0x398   :  { %v2969_v44 = vadd.f32 %v2968_v23, %v2792_v54  ;;  %v16098_v59 = vsel %vm20381_vm10, %v2975_v45, -1e+30  ;;  %vm16122_vm10 = vcmp.le.s32.totalorder %v15981_v37, %v1595_v61  ;;  %v1550_v54 = vadd.s32 88, %v15966_v36 }
 0x399   :  { %3072 = vmax.xlane.f32.xlu0 %v16098_v59  ;;  %v20849_v31 = vsel %vm16122_vm10, 4294967295, %v20848_v31  ;;  %vm20388_vm1 = vmand %vm16117_vm0, %vm16122_vm10  ;;  %v16157_v45 = vadd.f32 %v15914_v29, %v15910_v20  ;;  %v2389_v61 = vadd.f32 %v15938_v17, %v2189_v7  ;;  %v2597_v23 = vadd.f32 %v15944_v48, %v2396_v56 }
 0x39a   :  { %20850 = vst [vmem:[#allocation96_spill] sm:$0xff] %v20849_v31  ;;  %v16138_v35 = vsel %vm20386_vm14, %v2969_v44, -1e+30  ;;  %vm16162_vm14 = vcmp.eq.s32.totalorder %v1563_v30, %v15977_v62  ;;  %v1549_v44 = vadd.s32 80, %v15966_v36  ;;  %vm16194_vm10 = vcmp.eq.s32.totalorder %v1566_v3, %v15977_v62  ;;  %v20985_v31 = vld [vmem:[#allocation59_spill] sm:$0xff] }
 0x39b   :  { %v12448_v6 = vpop.f32.mrf.mxu0  ;;  %v12498_v8 = vpop.f32.mrf.mxu1  ;;  %v20858_v49 = vsel %vm16162_vm14, 4294967295, %v20857_v49  ;;  %v2589_v29 = vadd.f32 %v15948_v9, %v2389_v61  ;;  %v2822_v20 = vadd.f32 %v12445_v4, %v2597_v23  ;;  %v1599_v9 = vand.u32 15, %v1547_v16 }
 0x39c   :  { %v2987_v27 = vadd.f32 %v12498_v8, %v2810_v53  ;;  %20859 = vst [vmem:[#allocation99_spill] sm:$0xff] %v20858_v49  ;;  %v20864_v4 = vmov 0  ;;  %v1568_v2 = vshra.s32 %v1550_v54, 4  ;;  %v2410_v53 = vadd.f32 %v15942_v47, %v15902_v18 }
 0x39d   :  { %v2827_v5 = vpop.f32.mrf.mxu0  ;;  %v2980_v19 = vpop.f32.mrf.mxu1  ;;  %3070 = vmax.xlane.f32.xlu0 %v16138_v35  ;;  %v20865_v4 = vsel %vm16194_vm10, 4294967295, %v20864_v4  ;;  %v2816_v8 = vadd.f32 %v2815_v21, %v2589_v29  ;;  %v16208_v16 = vadd.f32 %v15920_v33, %v15918_v11  ;;  %v1602_v3 = vand.u32 15, %v1550_v54 }
 0x39e   :  { %v2981_v25 = vadd.f32 %v2980_v19, %v2804_v60  ;;  %v16185_v48 = vsel %vm20863_vm12, %v2987_v27, -1e+30  ;;  %20866 = vst [vmem:[#allocation101_spill] sm:$0xff] %v20865_v4  ;;  %vm16199_vm12 = vcmp.le.s32.totalorder %v15981_v37, %v1600_v43  ;;  %v1567_v27 = vshra.s32 %v1549_v44, 4 }
 0x39f   :  { %v20868_v52 = vsel %vm16199_vm12, 4294967295, %v20867_v52  ;;  %v1551_v19 = vadd.s32 96, %v15966_v36  ;;  %v2403_v47 = vadd.f32 %v15946_v22, %v16083_v50  ;;  %v2613_v18 = vadd.f32 %v15952_v55, %v2410_v53  ;;  %vm20894_vm8 = vmand %vm16194_vm10, %vm16199_vm12 }
 0x3a0   :  { %v16178_v17 = vsel %vm20388_vm1, %v2981_v25, -1e+30  ;;  %20869 = vst [vmem:[#allocation102_spill] sm:$0xff] %v20868_v52  ;;  %v20871_v11 = vmov 0  ;;  %vm16231_vm1 = vcmp.le.s32.totalorder %v15981_v37, %v1599_v9  ;;  %v20874_v43 = vmov 0  ;;  %v20881_v25 = vld [vmem:[#allocation71_spill] sm:$0xff] }
 0x3a1   :  { %v12451_v7 = vpop.f32.mrf.mxu0  ;;  %v12501_v24 = vpop.f32.mrf.mxu1  ;;  %3074 = vmax.xlane.f32.xlu1 %v16178_v17  ;;  %3076 = vmax.xlane.f32.xlu0 %v16185_v48  ;;  %v20872_v11 = vsel %vm16226_vm13, 4294967295, %v20871_v11  ;;  %v20875_v43 = vsel %vm16231_vm1, 4294967295, %v20874_v43  ;;  %v1601_v22 = vand.u32 15, %v1549_v44  ;;  %vm16237_vm0 = vcmp.eq.s32.totalorder %v1568_v2, %v15977_v62 }
 0x3a2   :  { %v2999_v30 = vadd.f32 %v12501_v24, %v2822_v20  ;;  %20873 = vst [vmem:[#allocation103_spill] sm:$0xff] %v20872_v11  ;;  %20876 = vst [vmem:[#allocation104_spill] sm:$0xff] %v20875_v43  ;;  %v20877_v55 = vmov 0  ;;  %v2605_v50 = vadd.f32 %v15956_v42, %v2403_v47  ;;  %v2834_v54 = vadd.f32 %v12448_v6, %v2613_v18 }
 0x3a3   :  { %v2839_v56 = vpop.f32.mrf.mxu0  ;;  %v2992_v60 = vpop.f32.mrf.mxu1  ;;  %v20878_v55 = vsel %vm16237_vm0, 4294967295, %v20877_v55  ;;  %v1570_v23 = vshra.s32 %v1552_v63, 4  ;;  %v2424_v29 = vadd.f32 %v20882_v41, %v20881_v25  ;;  %vm16253_vm9 = vcmp.eq.s32.totalorder %v1567_v27, %v15977_v62  ;;  %v20890_v27 = vld [vmem:[#allocation77_spill] sm:$0xff]  ;;  %v20899_v25 = vld [vmem:[#allocation76_spill] sm:$0xff] }
 0x3a4   :  { %v2993_v21 = vadd.f32 %v2992_v60, %v2816_v8  ;;  %v16223_v33 = vsel %vm20870_vm15, %v2999_v30, -1e+30  ;;  %20879 = vst [vmem:[#allocation105_spill] sm:$0xff] %v20878_v55  ;;  %vm20880_vm15 = vmand %vm16162_vm14, %vm16167_vm6  ;;  %v20883_v24 = vmov 0  ;;  %v20886_v42 = vmov 0  ;;  %v20889_v30 = vld [vmem:[#allocation75_spill] sm:$0xff] }
 0x3a5   :  { %3080 = vmax.xlane.f32.xlu0 %v16223_v33  ;;  %v20884_v24 = vsel %vm16253_vm9, 4294967295, %v20883_v24  ;;  %v1604_v6 = vand.u32 15, %v1552_v63  ;;  %v2828_v9 = vadd.f32 %v2827_v5, %v2605_v50  ;;  %v1569_v53 = vshra.s32 %v1551_v19, 4 }
 0x3a6   :  { %v16247_v61 = vsel %vm20880_vm15, %v2993_v21, -1e+30  ;;  %20885 = vst [vmem:[#allocation71_spill] sm:$0xff] %v20884_v24  ;;  %vm16262_vm15 = vcmp.le.s32.totalorder %v15981_v37, %v1602_v3  ;;  %v1554_v8 = vadd.s32 120, %v15966_v36  ;;  %v2417_v60 = vadd.f32 %v20889_v30, %v16102_v0  ;;  %v20908_v30 = vld [vmem:[#allocation78_spill] sm:$0xff] }
 0x3a7   :  { %v12454_v44 = vpop.f32.mrf.mxu0  ;;  %v12504_v20 = vpop.f32.mrf.mxu1  ;;  %3078 = vmax.xlane.f32.xlu1 %v16247_v61  ;;  %v20887_v42 = vsel %vm16262_vm15, 4294967295, %v20886_v42  ;;  %v2629_v47 = vadd.f32 %v20890_v27, %v2424_v29  ;;  %vm16275_vm14 = vcmp.le.s32.totalorder %v15981_v37, %v1601_v22  ;;  %v20891_v3 = vmov 0  ;;  %v20909_v27 = vld [vmem:[#allocation81_spill] sm:$0xff] }
 0x3a8   :  { %20888 = vst [vmem:[#allocation74_spill] sm:$0xff] %v20887_v42  ;;  %v3011_v2 = vadd.f32 %v12504_v20, %v2834_v54  ;;  %v20892_v3 = vsel %vm16275_vm14, 4294967295, %v20891_v3  ;;  %v1603_v5 = vand.u32 15, %v1551_v19  ;;  %vm16287_vm11 = vcmp.eq.s32.totalorder %v1570_v23, %v15977_v62  ;;  %v20898_v54 = vld [vmem:[#allocation72_spill] sm:$0xff]  ;;  %v20900_v19 = vld [vmem:[#allocation79_spill] sm:$0xff] }
 0x3a9   :  { %v3004_v18 = vpop.f32.mrf.mxu1  ;;  %20893 = vst [vmem:[#allocation75_spill] sm:$0xff] %v20892_v3  ;;  %v2851_v63 = vpop.f32.mrf.mxu0  ;;  %v20895_v50 = vmov 0  ;;  %v1553_v22 = vadd.s32 112, %v15966_v36  ;;  %v2438_v41 = vadd.f32 %v20899_v25, %v20898_v54  ;;  %v2621_v29 = vadd.f32 %v20900_v19, %v2417_v60  ;;  %v20911_v54 = vld [vmem:[#allocation80_spill] sm:$0xff] }
 0x3aa   :  { %v3005_v21 = vadd.f32 %v3004_v18, %v2828_v9  ;;  %v16284_v0 = vsel %vm20894_vm8, %v3011_v2, -1e+30  ;;  %v20896_v50 = vsel %vm16287_vm11, 4294967295, %v20895_v50  ;;  %v2846_v20 = vadd.f32 %v12451_v7, %v2629_v47  ;;  %vm20904_vm8 = vmand %vm16226_vm13, %vm16231_vm1 }
 0x3ab   :  { %20897 = vst [vmem:[#allocation77_spill] sm:$0xff] %v20896_v50  ;;  %3084 = vmax.xlane.f32.xlu0 %v16284_v0  ;;  %vm16297_vm6 = vcmp.le.s32.totalorder %v15981_v37, %v1604_v6  ;;  %v20901_v9 = vmov 0  ;;  %vm16309_vm12 = vcmp.eq.s32.totalorder %v1569_v53, %v15977_v62  ;;  %v20905_v23 = vmov 0  ;;  %v20910_v53 = vld [vmem:[#allocation73_spill] sm:$0xff]  ;;  %v12457_v19 = vpop.f32.mrf.mxu0  ;;  %vm20916_vm1 = vmand %vm16237_vm0, %vm16262_vm15 }
 0x3ac   :  { %v20902_v9 = vsel %vm16297_vm6, 4294967295, %v20901_v9  ;;  %v12507_v2 = vpop.f32.mrf.mxu1  ;;  %v16306_v36 = vsel %vm20904_vm8, %v3005_v21, -1e+30  ;;  %v20906_v23 = vsel %vm16309_vm12, 4294967295, %v20905_v23  ;;  %v1572_v7 = vshra.s32 %v1554_v8, 4 }
 0x3ad   :  { %20903 = vst [vmem:[#allocation72_spill] sm:$0xff] %v20902_v9  ;;  %20907 = vst [vmem:[#allocation76_spill] sm:$0xff] %v20906_v23  ;;  %v1606_v6 = vand.u32 15, %v1554_v8  ;;  %v2431_v60 = vadd.f32 %v20908_v30, %v16157_v45  ;;  %v2645_v47 = vadd.f32 %v20909_v27, %v2438_v41  ;;  %v2840_v18 = vadd.f32 %v2839_v56, %v2621_v29  ;;  %v20915_v41 = vld [vmem:[#allocation83_spill] sm:$0xff]  ;;  %v20917_v27 = vld [vmem:[#allocation82_spill] sm:$0xff] }
 0x3ae   :  { %v3023_v21 = vadd.f32 %v12507_v2, %v2846_v20  ;;  %3082 = vmax.xlane.f32.xlu1 %v16306_v36  ;;  %v2452_v25 = vadd.f32 %v20911_v54, %v20910_v53  ;;  %v3016_v43 = vpop.f32.mrf.mxu1  ;;  %vm16328_vm10 = vcmp.le.s32.totalorder %v15981_v37, %v1603_v5  ;;  %v20912_v8 = vmov 0 }
 0x3af   :  { %v20913_v8 = vsel %vm16328_vm10, 4294967295, %v20912_v8  ;;  %v1571_v45 = vshra.s32 %v1553_v22, 4  ;;  %v1605_v56 = vand.u32 15, %v1553_v22  ;;  %v2637_v29 = vadd.f32 %v20915_v41, %v2431_v60  ;;  %v20924_v22 = vld [vmem:[#allocation84_spill] sm:$0xff] }
 0x3b0   :  { %20914 = vst [vmem:[#allocation79_spill] sm:$0xff] %v20913_v8  ;;  %v2858_v20 = vadd.f32 %v12454_v44, %v2645_v47  ;;  %v3017_v2 = vadd.f32 %v3016_v43, %v2840_v18  ;;  %v16338_v30 = vsel %vm20916_vm1, %v3023_v21, -1e+30  ;;  %v2445_v53 = vadd.f32 %v20917_v27, %v16208_v16  ;;  %v12510_v5 = vpop.f32.mrf.mxu1  ;;  %vm20925_vm1 = vmand %vm16253_vm9, %vm16275_vm14  ;;  %v20934_v27 = vld [vmem:[#allocation39_spill] sm:$0xff] }
 0x3b1   :  { %3088 = vmax.xlane.f32.xlu0 %v16338_v30  ;;  %vm16348_vm13 = vcmp.eq.s32.totalorder %v1572_v7, %v15977_v62  ;;  %v20918_v43 = vmov 0  ;;  %vm16353_vm15 = vcmp.le.s32.totalorder %v15981_v37, %v1606_v6  ;;  %v20921_v44 = vmov 0  ;;  %v2863_v7 = vpop.f32.mrf.mxu0  ;;  %vm20933_vm14 = vmand %vm16309_vm12, %vm16328_vm10 }
 0x3b2   :  { %v20919_v43 = vsel %vm16348_vm13, 4294967295, %v20918_v43  ;;  %v20922_v44 = vsel %vm16353_vm15, 4294967295, %v20921_v44  ;;  %v2661_v16 = vadd.f32 %v20924_v22, %v2452_v25  ;;  %v2852_v60 = vadd.f32 %v2851_v63, %v2637_v29  ;;  %v3028_v21 = vpop.f32.mrf.mxu1  ;;  %vm20482_vm8 = vmand %vm16348_vm13, %vm16353_vm15 }
 0x3b3   :  { %20920 = vst [vmem:[#allocation78_spill] sm:$0xff] %v20919_v43  ;;  %20923 = vst [vmem:[#allocation81_spill] sm:$0xff] %v20922_v44  ;;  %v3035_v47 = vadd.f32 %v12510_v5, %v2858_v20  ;;  %v16363_v18 = vsel %vm20925_vm1, %v3017_v2, -1e+30  ;;  %vm16371_vm0 = vcmp.eq.s32.totalorder %v1571_v45, %v15977_v62  ;;  %v20926_v63 = vmov 0 }
 0x3b4   :  { %3086 = vmax.xlane.f32.xlu1 %v16363_v18  ;;  %v20927_v63 = vsel %vm16371_vm0, 4294967295, %v20926_v63  ;;  %vm16376_vm7 = vcmp.le.s32.totalorder %v15981_v37, %v1605_v56  ;;  %v20929_v6 = vmov 0  ;;  %v2653_v54 = vadd.f32 %v16002_v28, %v2445_v53  ;;  %vm20932_vm1 = vmand %vm16287_vm11, %vm16297_vm6  ;;  %v12513_v62 = vpop.f32.mrf.mxu1  ;;  %v20935_v53 = vld [vmem:[#allocation41_spill] sm:$0xff] }
 0x3b5   :  { %20928 = vst [vmem:[#allocation73_spill] sm:$0xff] %v20927_v63  ;;  %v20930_v6 = vsel %vm16376_vm7, 4294967295, %v20929_v6  ;;  %v2870_v25 = vadd.f32 %v12457_v19, %v2661_v16  ;;  %v3029_v41 = vadd.f32 %v3028_v21, %v2852_v60  ;;  %v16386_v29 = vsel %vm20932_vm1, %v3035_v47, -1e+30  ;;  %vm20481_vm1 = vmand %vm16371_vm0, %vm16376_vm7 }
 0x3b6   :  { %20931 = vst [vmem:[#allocation80_spill] sm:$0xff] %v20930_v6  ;;  %3092 = vmax.xlane.f32.xlu0 %v16386_v29  ;;  %v2864_v37 = vadd.f32 %v2863_v7, %v2653_v54  ;;  %v3040_v19 = vpop.f32.mrf.mxu1 }
 0x3b7   :  { %v3047_v45 = vadd.f32 %v12513_v62, %v2870_v25  ;;  %v16398_v28 = vsel %vm20933_vm14, %v3029_v41, -1e+30  ;;  %vm21021_vm14 = vcmask 64512  }
 0x3b8   :  { %3090 = vmax.xlane.f32.xlu1 %v16398_v28  ;;  %v3041_v56 = vadd.f32 %v3040_v19, %v2864_v37 }
 0x3b9   :  { %v16410_v20 = vsel %vm20482_vm8, %v3047_v45, -1e+30 }
 0x3ba   :  { %3096 = vmax.xlane.f32.xlu0 %v16410_v20  ;;  %v16418_v2 = vsel %vm20481_vm1, %v3041_v56, -1e+30  ;;  %vm21039_vm1 = vmmov %vm21021_vm14 }
 0x3bb   :  { %vm21045_vm8 = vmmov %vm21039_vm1 }
 0x3bc   :  { %3094 = vmax.xlane.f32.xlu1 %v16418_v2 }
 0x3cd   :  { %3216 = vrot.lane.b32.xlu1 %v20934_v27, %s14383_s30 }
 0x3d0   :  { %3214 = vrot.lane.b32.xlu0 %v20935_v53, %s14383_s30 }
 0x41c   :  { %v3069_v5 = vpop.xlane.xlu1 %3068 }
 0x41d   :  { %v3099_v22 = vsub.f32 %v16047_v51, %v3069_v5 }
 0x41e   :  { %v3067_v16 = vpop.xlane.xlu0 %3066 }
 0x41f   :  { %v3116_v60 = vmul.f32 1.442695, %v3099_v22  ;;  %v3098_v47 = vsub.f32 %v16063_v34, %v3067_v16 }
 0x421   :  { %14072 = vpow2.f32 %v3116_v60  ;;  %v3114_v7 = vmul.f32 1.442695, %v3098_v47 }
 0x422   :  { %v3073_v21 = vpop.xlane.xlu0 %3072 }
 0x423   :  { %14074 = vpow2.f32 %v3114_v7  ;;  %v3101_v54 = vsub.f32 %v16098_v59, %v3073_v21 }
 0x425   :  { %v3120_v25 = vmul.f32 1.442695, %v3101_v54 }
 0x426   :  { %v3071_v41 = vpop.xlane.xlu0 %3070 }
 0x427   :  { %14076 = vpow2.f32 %v3120_v25  ;;  %v3100_v62 = vsub.f32 %v16138_v35, %v3071_v41 }
 0x429   :  { %v3118_v37 = vmul.f32 1.442695, %v3100_v62 }
 0x42a   :  { %v16429_v45 = vpop.xlane.xlu1 %3074  ;;  %v3077_v19 = vpop.xlane.xlu0 %3076 }
 0x42b   :  { %14078 = vpow2.f32 %v3118_v37  ;;  %v3103_v51 = vsub.f32 %v16185_v48, %v3077_v19 }
 0x42d   :  { %v3124_v56 = vmul.f32 1.442695, %v3103_v51 }
 0x42e   :  { %v16432_v34 = vpop.eup %14072  ;;  %v3081_v27 = vpop.xlane.xlu0 %3080 }
 0x42f   :  { %v3105_v53 = vsub.f32 %v16223_v33, %v3081_v27  ;;  %3148 = vadd.xlane.f32.xlu1 %v16432_v34  ;;  %14080 = vpow2.f32 %v3124_v56  ;;  %v20936_v56 = vld [vmem:[#allocation29_spill] sm:$0xff] }
 0x430   :  { %v16436_v59 = vpop.eup %14074  ;;  %v3079_v5 = vpop.xlane.xlu1 %3078 }
 0x431   :  { %v3128_v35 = vmul.f32 1.442695, %v3105_v53  ;;  %3146 = vadd.xlane.f32.xlu0 %v16436_v59  ;;  %v3104_v44 = vsub.f32 %v16247_v61, %v3079_v5 }
 0x433   :  { %14082 = vpow2.f32 %v3128_v35  ;;  %v3126_v43 = vmul.f32 1.442695, %v3104_v44 }
 0x434   :  { %v16439_v22 = vpop.eup %14076  ;;  %v3085_v16 = vpop.xlane.xlu0 %3084 }
 0x435   :  { %v3107_v48 = vsub.f32 %v16284_v0, %v3085_v16  ;;  %3152 = vadd.xlane.f32.xlu0 %v16439_v22 }
 0x437   :  { %v3083_v60 = vpop.xlane.xlu1 %3082  ;;  %v3132_v47 = vmul.f32 1.442695, %v3107_v48 }
 0x438   :  { %v16443_v33 = vpop.eup %14078 }
 0x439   :  { %14084 = vpow2.f32 %v3132_v47  ;;  %3150 = vadd.xlane.f32.xlu0 %v16443_v33 }
 0x43a   :  { %v3089_v7 = vpop.xlane.xlu0 %3088 }
 0x43b   :  { %v3109_v21 = vsub.f32 %v16338_v30, %v3089_v7 }
 0x43c   :  { %v16447_v41 = vpop.eup %14080 }
 0x43d   :  { %v3087_v54 = vpop.xlane.xlu1 %3086  ;;  %v3136_v25 = vmul.f32 1.442695, %v3109_v21  ;;  %3156 = vadd.xlane.f32.xlu0 %v16447_v41 }
 0x43e   :  { %v3108_v8 = vsub.f32 %v16363_v18, %v3087_v54 }
 0x43f   :  { %v3093_v62 = vpop.xlane.xlu0 %3092  ;;  %14086 = vpow2.f32 %v3136_v25 }
 0x440   :  { %v3111_v0 = vsub.f32 %v16386_v29, %v3093_v62  ;;  %v16451_v19 = vpop.eup %14082  ;;  %3212 = vrot.lane.b32.xlu1 %v20936_v56, %s14383_s30 }
 0x441   :  { %v3091_v37 = vpop.xlane.xlu1 %3090  ;;  %3160 = vadd.xlane.f32.xlu0 %v16451_v19 }
 0x442   :  { %v3140_v51 = vmul.f32 1.442695, %v3111_v0  ;;  %v3110_v23 = vsub.f32 %v16398_v28, %v3091_v37  ;;  %v20939_v37 = vld [vmem:[#allocation26_spill] sm:$0xff] }
 0x443   :  { %v3097_v27 = vpop.xlane.xlu0 %3096 }
 0x444   :  { %14088 = vpow2.f32 %v3140_v51  ;;  %v3102_v51 = vsub.f32 %v16178_v17, %v16429_v45  ;;  %v3106_v17 = vsub.f32 %v16306_v36, %v3083_v60  ;;  %v20937_v36 = vld [vmem:[#allocation30_spill] sm:$0xff]  ;;  %v3113_v18 = vsub.f32 %v16410_v20, %v3097_v27  ;;  %v20938_v60 = vld [vmem:[#allocation25_spill] sm:$0xff] }
 0x445   :  { %v3095_v30 = vpop.xlane.xlu1 %3094 }
 0x446   :  { %v16456_v35 = vpop.eup %14084  ;;  %v3122_v63 = vmul.f32 1.442695, %v3102_v51  ;;  %v3130_v45 = vmul.f32 1.442695, %v3106_v17  ;;  %v3112_v61 = vsub.f32 %v16418_v2, %v3095_v30  ;;  %v14232_v2 = vld [vmem:[%s20237_s5] ss:$0 sm:$0xff] }
 0x447   :  { %v3215_v53 = vpop.permute.xlu0 %3214  ;;  %3164 = vadd.xlane.f32.xlu0 %v16456_v35  ;;  %v972_v54 = vadd.f32 %v14232_v2, %v20938_v60  ;;  %v20940_v30 = vld [vmem:[#allocation27_spill] sm:$0xff]  ;;  %v20947_v2 = vld [vmem:[#allocation18_spill] sm:$0xff] }
 0x448   :  { %v16458_v16 = vand.u32 4294901760, %v3215_v53  ;;  %14090 = vpow2.f32 %v3122_v63  ;;  %v3142_v44 = vmul.f32 1.442695, %v3112_v61  ;;  %v20944_v61 = vld [vmem:[#allocation70_spill] sm:$0xff] }
 0x449   :  { %v3217_v29 = vpop.permute.xlu1 %3216  ;;  %14092 = vpow2.f32 %v3126_v43  ;;  %v1105_v20 = vadd.f32 %v20939_v37, %v972_v54  ;;  %v20948_v54 = vld [vmem:[#allocation19_spill] sm:$0xff] }
 0x44a   :  { %v16461_v48 = vand.u32 4294901760, %v3217_v29  ;;  %v16464_v47 = vsub.f32 %v3215_v53, %v16458_v16  ;;  %14094 = vpow2.f32 %v3130_v45  ;;  %v20942_v45 = vld [vmem:[#allocation69_spill] sm:$0xff] }
 0x44b   :  { %v1213_v51 = vadd.f32 %v20940_v30, %v1105_v20  ;;  %v20949_v20 = vld [vmem:[#allocation20_spill] sm:$0xff] }
 0x44c   :  { %v16467_v7 = vsub.f32 %v3217_v29, %v16461_v48  ;;  %12538 = vmatprep.subr.mxu0 %v16461_v48  ;;  %v16471_v21 = vand.u32 4294901760, %v16464_v47  ;;  %v16473_v25 = vpop.eup %14086 }
 0x44d   :  { %12539 = vmatpush3.msra.mxu0 %v16461_v48  ;;  %3168 = vadd.xlane.f32.xlu0 %v16473_v25 }
 0x44e   :  { %12540 = vmatprep.subr.mxu0 %v16458_v16  ;;  %v16479_v62 = vand.u32 4294901760, %v16467_v7  ;;  %v3594_v0 = vsub.f32 %v16464_v47, %v16471_v21 }
 0x44f   :  { %12541 = vmatpush3.msra.mxu0 %v16458_v16 }
 0x450   :  { %v3587_v56 = vsub.f32 %v16467_v7, %v16479_v62  ;;  %v3595_v6 = vand.u32 4294901760, %v3594_v0  ;;  %v3138_v0 = vmul.f32 1.442695, %v3110_v23 }
 0x451   :  { %v16488_v53 = vpop.eup %14088 }
 0x452   :  { %v3588_v29 = vand.u32 4294901760, %v3587_v56  ;;  %3172 = vadd.xlane.f32.xlu0 %v16488_v53  ;;  %v3134_v56 = vmul.f32 1.442695, %v3108_v8 }
 0x454   :  { %12594 = vmatprep.subr.mxu1 %v3588_v29  ;;  %14096 = vpow2.f32 %v3134_v56 }
 0x455   :  { %12595 = vmatpush3.msra.mxu1 %v3588_v29  ;;  %v16496_v5 = vpop.eup %14090  ;;  %14098 = vpow2.f32 %v3138_v0  ;;  %v20941_v29 = vld [vmem:[#allocation28_spill] sm:$0xff]  ;;  %v20943_v0 = vld [vmem:[#allocation31_spill] sm:$0xff] }
 0x456   :  { %12596 = vmatprep.subr.mxu1 %v3595_v6  ;;  %v16501_v43 = vpop.eup %14092  ;;  %14100 = vpow2.f32 %v3142_v44  ;;  %v1317_v17 = vadd.f32 %v20941_v29, %v1213_v51  ;;  %v20950_v51 = vld [vmem:[#allocation23_spill] sm:$0xff] }
 0x457   :  { %12597 = vmatpush3.msra.mxu1 %v3595_v6  ;;  %v16504_v8 = vpop.eup %14094  ;;  %v3144_v6 = vmul.f32 1.442695, %v3113_v18  ;;  %v20946_v18 = vld [vmem:[#allocation17_spill] sm:$0xff] }
 0x458   :  { %v1432_v56 = vadd.f32 %v20942_v45, %v1317_v17  ;;  %v20951_v17 = vld [vmem:[#allocation24_spill] sm:$0xff] }
 0x459   :  { %14102 = vpow2.f32 %v3144_v6 }
 0x45a   :  { %v16531_v44 = vadd.f32 %v20944_v61, %v1432_v56  ;;  %v20953_v61 = vld [vmem:[#allocation21_spill] sm:$0xff] }
 0x45c   :  { %20945 = vst [vmem:[#allocation83_spill] sm:$0xff] %v16531_v44 }
 0x461   :  { %v16507_v23 = vpop.eup %14096 }
 0x462   :  { %v16511_v63 = vpop.eup %14098 }
 0x463   :  { %v16514_v28 = vpop.eup %14100 }
 0x464   :  { %3154 = vadd.xlane.f32.xlu1 %v16496_v5 }
 0x466   :  { %v16522_v27 = vpop.eup %14102 }
 0x468   :  { %3210 = vrot.lane.b32.xlu0 %v20937_v36, %s14383_s30  ;;  %3158 = vadd.xlane.f32.xlu1 %v16501_v43  ;;  %v14233_v36 = vld [vmem:[%s20235_s3] ss:$0 sm:$0xff]  ;;  %s14384_s3 = smov 16  }
 0x469   :  { %v275_v6 = vadd.f32 %v14233_v36, %v20946_v18  ;;  %v16573_v36 = vmul.f32 0.35355338, %v20953_v61 }
 0x46b   :  { %v408_v60 = vadd.f32 %v20947_v2, %v275_v6  ;;  %20954 = vst [vmem:[#allocation84_spill] sm:$0xff] %v16573_v36 }
 0x46c   :  { %3162 = vadd.xlane.f32.xlu1 %v16504_v8 }
 0x46d   :  { %v516_v37 = vadd.f32 %v20948_v54, %v408_v60 }
 0x46f   :  { %v620_v30 = vadd.f32 %v20949_v20, %v516_v37 }
 0x470   :  { %3166 = vadd.xlane.f32.xlu1 %v16507_v23 }
 0x471   :  { %v735_v29 = vadd.f32 %v20950_v51, %v620_v30 }
 0x473   :  { %v832_v45 = vadd.f32 %v20951_v17, %v735_v29 }
 0x474   :  { %3170 = vadd.xlane.f32.xlu1 %v16511_v63 }
 0x475   :  { %v16564_v56 = vmul.f32 0.35355338, %v832_v45 }
 0x477   :  { %20952 = vst [vmem:[#allocation82_spill] sm:$0xff] %v16564_v56 }
 0x478   :  { %3174 = vadd.xlane.f32.xlu1 %v16514_v28 }
 0x487   :  { %3176 = vadd.xlane.f32.xlu0 %v16522_v27 }
 0x489   :  { %4750 = vrot.lane.b32.xlu1 %v20943_v0, %s14377_s28 }
 0x48d   :  { %4748 = vrot.lane.b32.xlu1 %v16531_v44, %s14377_s28 }
 0x491   :  { %4744 = vrot.lane.b32.xlu1 %v16531_v44, %s14376_s10 }
 0x495   :  { %4742 = vrot.lane.b32.xlu1 %v20943_v0, %s14378_s0 }
 0x499   :  { %4740 = vrot.lane.b32.xlu1 %v16531_v44, %s14378_s0 }
 0x49d   :  { %4746 = vrot.lane.b32.xlu0 %v20943_v0, %s14376_s10  ;;  %4738 = vrot.lane.b32.xlu1 %v20943_v0, %s14379_s18 }
 0x4a1   :  { %4734 = vrot.lane.b32.xlu0 %v20943_v0, %s14380_s6  ;;  %4736 = vrot.lane.b32.xlu1 %v16531_v44, %s14379_s18 }
 0x4a5   :  { %4730 = vrot.lane.b32.xlu0 %v20943_v0, %s14381_s29  ;;  %4732 = vrot.lane.b32.xlu1 %v16531_v44, %s14380_s6 }
 0x4a9   :  { %4726 = vrot.lane.b32.xlu0 %v20943_v0, %s14382_s12  ;;  %4728 = vrot.lane.b32.xlu1 %v16531_v44, %s14381_s29 }
 0x4ad   :  { %4694 = vrot.lane.b32.xlu0 %v16564_v56, %s14382_s12  ;;  %4724 = vrot.lane.b32.xlu1 %v16531_v44, %s14382_s12 }
 0x4b1   :  { %4698 = vrot.lane.b32.xlu0 %v16564_v56, %s14381_s29  ;;  %4696 = vrot.lane.b32.xlu1 %v16573_v36, %s14382_s12 }
 0x4b5   :  { %4702 = vrot.lane.b32.xlu0 %v16564_v56, %s14380_s6  ;;  %4700 = vrot.lane.b32.xlu1 %v16573_v36, %s14381_s29 }
 0x4b8   :  { %v3149_v18 = vpop.xlane.xlu1 %3148 }
 0x4b9   :  { %4706 = vrot.lane.b32.xlu0 %v16564_v56, %s14379_s18  ;;  %4704 = vrot.lane.b32.xlu1 %v16573_v36, %s14380_s6 }
 0x4ba   :  { %v3147_v6 = vpop.xlane.xlu0 %3146 }
 0x4bb   :  { %14104 = vrcp.f32 %v3147_v6 }
 0x4bc   :  { %14106 = vrcp.f32 %v3149_v18  ;;  %v3213_v2 = vpop.permute.xlu1 %3212 }
 0x4bd   :  { %4710 = vrot.lane.b32.xlu0 %v16564_v56, %s14378_s0  ;;  %v16589_v60 = vand.u32 4294901760, %v3213_v2  ;;  %4708 = vrot.lane.b32.xlu1 %v16573_v36, %s14379_s18 }
 0x4be   :  { %v3153_v54 = vpop.xlane.xlu0 %3152 }
 0x4bf   :  { %v16596_v37 = vsub.f32 %v3213_v2, %v16589_v60  ;;  %12542 = vmatprep.subr.mxu0 %v16589_v60  ;;  %14108 = vrcp.f32 %v3153_v54 }
 0x4c0   :  { %12543 = vmatpush3.msra.mxu0 %v16589_v60 }
 0x4c1   :  { %4714 = vrot.lane.b32.xlu0 %v16564_v56, %s14376_s10  ;;  %4712 = vrot.lane.b32.xlu1 %v16573_v36, %s14378_s0  ;;  %v16603_v20 = vand.u32 4294901760, %v16596_v37 }
 0x4c2   :  { %v3151_v30 = vpop.xlane.xlu0 %3150 }
 0x4c3   :  { %14110 = vrcp.f32 %v3151_v30  ;;  %v3601_v51 = vsub.f32 %v16596_v37, %v16603_v20 }
 0x4c5   :  { %4718 = vrot.lane.b32.xlu0 %v16564_v56, %s14377_s28  ;;  %4716 = vrot.lane.b32.xlu1 %v16573_v36, %s14376_s10  ;;  %v3602_v29 = vand.u32 4294901760, %v3601_v51 }
 0x4c6   :  { %v3157_v17 = vpop.xlane.xlu0 %3156 }
 0x4c7   :  { %12598 = vmatprep.subr.mxu1 %v3602_v29  ;;  %14112 = vrcp.f32 %v3157_v17  ;;  %v20966_v17 = vld [vmem:[#allocation46_spill] sm:$0xff] }
 0x4c8   :  { %v14105_v45 = vpop.eup %14104  ;;  %12599 = vmatpush3.msra.mxu1 %v3602_v29 }
 0x4c9   :  { %v14107_v61 = vpop.eup %14106  ;;  %4720 = vrot.lane.b32.xlu1 %v16573_v36, %s14377_s28  ;;  %v16614_v18 = vmul.f32 %v14105_v45, %v16436_v59 }
 0x4ca   :  { %v3161_v6 = vpop.xlane.xlu0 %3160  ;;  %v16620_v54 = vmul.f32 %v14107_v61, %v16432_v34 }
 0x4cb   :  { %20955 = vst [vmem:[#allocation39_spill] sm:$0xff] %v16614_v18  ;;  %v16617_v2 = vand.u32 4294901760, %v16614_v18  ;;  %14114 = vrcp.f32 %v3161_v6 }
 0x4cc   :  { %20956 = vst [vmem:[#allocation41_spill] sm:$0xff] %v16620_v54  ;;  %v14109_v30 = vpop.eup %14108  ;;  %v16629_v59 = vand.u32 4294901760, %v16620_v54 }
 0x4cd   :  { %12602 = vmatprep.mubr.f32.mxu1 %v16617_v2  ;;  %v16625_v51 = vsub.f32 %v16614_v18, %v16617_v2  ;;  %v16632_v50 = vmul.f32 %v14109_v30, %v16439_v22 }
 0x4ce   :  { %v16645_v24 = vsub.f32 %v16620_v54, %v16629_v59 }
 0x4cf   :  { %v20419_v29 = vand.u32 4294901760, %v16625_v51  ;;  %20957 = vst [vmem:[#allocation29_spill] sm:$0xff] %v16632_v50  ;;  %v16648_v42 = vand.u32 4294901760, %v16632_v50 }
 0x4d0   :  { %v14111_v9 = vpop.eup %14110  ;;  %v3165_v45 = vpop.xlane.xlu0 %3164 }
 0x4d1   :  { %v3342_v34 = vsub.f32 %v16625_v51, %v20419_v29  ;;  %v16638_v61 = vmul.f32 %v14111_v9, %v16443_v33  ;;  %v20427_v9 = vand.u32 4294901760, %v16645_v24  ;;  %v16657_v33 = vsub.f32 %v16632_v50, %v16648_v42 }
 0x4d2   :  { %14116 = vrcp.f32 %v3165_v45  ;;  %v20969_v45 = vld [vmem:[#allocation51_spill] sm:$0xff] }
 0x4d3   :  { %20958 = vst [vmem:[#allocation30_spill] sm:$0xff] %v16638_v61  ;;  %v3343_v3 = vand.u32 4294901760, %v3342_v34  ;;  %v16641_v18 = vand.u32 4294901760, %v16638_v61  ;;  %v3352_v54 = vsub.f32 %v16645_v24, %v20427_v9  ;;  %v20431_v55 = vand.u32 4294901760, %v16657_v33 }
 0x4d5   :  { %12546 = vmatprep.mubr.f32.mxu0 %v3343_v3  ;;  %v16652_v30 = vsub.f32 %v16638_v61, %v16641_v18  ;;  %v3353_v50 = vand.u32 4294901760, %v3352_v54  ;;  %v3372_v4 = vsub.f32 %v16657_v33, %v20431_v55  ;;  %v20962_v55 = vld [vmem:[#allocation33_spill] sm:$0xff] }
 0x4d6   :  { %v3169_v22 = vpop.xlane.xlu0 %3168 }
 0x4d7   :  { %v20429_v29 = vand.u32 4294901760, %v16652_v30  ;;  %v3373_v49 = vand.u32 4294901760, %v3372_v4  ;;  %v20964_v4 = vld [vmem:[#allocation44_spill] sm:$0xff] }
 0x4d9   :  { %v3362_v61 = vsub.f32 %v16652_v30, %v20429_v29 }
 0x4db   :  { %v3173_v34 = vpop.xlane.xlu0 %3172  ;;  %v3363_v9 = vand.u32 4294901760, %v3362_v61  ;;  %v20961_v61 = vld [vmem:[#allocation50_spill] sm:$0xff] }
 0x4df   :  { %v3211_v3 = vpop.permute.xlu0 %3210 }
 0x4e0   :  { %v16667_v11 = vand.u32 4294901760, %v3211_v3 }
 0x4e2   :  { %v16670_v52 = vsub.f32 %v3211_v3, %v16667_v11  ;;  %12544 = vmatprep.subr.mxu0 %v16667_v11  ;;  %v20960_v3 = vld [vmem:[#allocation52_spill] sm:$0xff] }
 0x4e3   :  { %12545 = vmatpush3.msra.mxu0 %v16667_v11 }
 0x4e4   :  { %12547 = vmatmul.mubr.f32.vlgmr.msra.gmra.mxu0 %v3353_v50  ;;  %12626 = vmatprep.subr.mxu0 %v20959_v46  ;;  %v16679_v29 = vand.u32 4294901760, %v16670_v52 }
 0x4e5   :  { %12549 = vmatprep.mubr.f32.mxu0 %v3363_v9  ;;  %12627 = vmatpush3.msra.mxu0 %v20959_v46  ;;  %v20963_v46 = vld [vmem:[#allocation37_spill] sm:$0xff]  ;;  %v20968_v9 = vld [vmem:[#allocation32_spill] sm:$0xff] }
 0x4e6   :  { %12628 = vmatprep.subr.mxu0 %v20960_v3  ;;  %v3608_v54 = vsub.f32 %v16670_v52, %v16679_v29 }
 0x4e7   :  { %12629 = vmatpush3.msra.mxu0 %v20960_v3 }
 0x4e8   :  { %12550 = vmatmul.mubr.f32.gmra.mxu0 %v3373_v49  ;;  %12630 = vmatprep.subr.mxu0 %v20961_v61  ;;  %v3609_v50 = vand.u32 4294901760, %v3608_v54  ;;  %v20965_v49 = vld [vmem:[#allocation22_spill] sm:$0xff]  ;;  %v14113_v54 = vpop.eup %14112 }
 0x4e9   :  { %12631 = vmatpush3.msra.mxu0 %v20961_v61  ;;  %v20970_v61 = vld [vmem:[#allocation53_spill] sm:$0xff] }
 0x4ea   :  { %12600 = vmatprep.subr.mxu1 %v3609_v50  ;;  %12632 = vmatprep.subr.mxu0 %v20962_v55 }
 0x4eb   :  { %12601 = vmatpush3.msra.mxu1 %v3609_v50  ;;  %12633 = vmatpush3.msra.mxu0 %v20962_v55  ;;  %v20967_v55 = vld [vmem:[#allocation45_spill] sm:$0xff]  ;;  %v20971_v50 = vld [vmem:[#allocation58_spill] sm:$0xff] }
 0x4ec   :  { %12603 = vmatmul.mubr.f32.vlgmr.msra.gmra.mxu1 %v16629_v59  ;;  %12634 = vmatprep.subr.mxu0 %v20963_v46 }
 0x4ed   :  { %12682 = vmatprep.subr.mxu1 %v20964_v4  ;;  %12605 = vmatprep.mubr.f32.mxu1 %v16641_v18  ;;  %v3155_v6 = vpop.xlane.xlu1 %3154 }
 0x4ee   :  { %12635 = vmatpush3.msra.mxu0 %v20963_v46  ;;  %12683 = vmatpush3.msra.mxu1 %v20964_v4  ;;  %14118 = vrcp.f32 %v3155_v6  ;;  %v20972_v46 = vld [vmem:[#allocation56_spill] sm:$0xff]  ;;  %v16715_v6 = vmul.f32 %v14113_v54, %v16447_v41 }
 0x4ef   :  { %12636 = vmatprep.subr.mxu0 %v20965_v49  ;;  %12684 = vmatprep.subr.mxu1 %v20966_v17  ;;  %14120 = vrcp.f32 %v3169_v22  ;;  %v20973_v22 = vld [vmem:[#allocation61_spill] sm:$0xff] }
 0x4f0   :  { %12637 = vmatpush3.msra.mxu0 %v20965_v49  ;;  %12685 = vmatpush3.msra.mxu1 %v20966_v17  ;;  %20974 = vst [vmem:[#allocation25_spill] sm:$0xff] %v16715_v6  ;;  %v16726_v54 = vand.u32 4294901760, %v16715_v6 }
 0x4f1   :  { %12606 = vmatmul.mubr.f32.gmra.mxu1 %v16648_v42  ;;  %12638 = vmatprep.subr.mxu0 %v20967_v55  ;;  %v3159_v3 = vpop.xlane.xlu1 %3158 }
 0x4f2   :  { %12686 = vmatprep.subr.mxu1 %v20968_v9  ;;  %12639 = vmatpush3.msra.mxu0 %v20967_v55  ;;  %14122 = vrcp.f32 %v3159_v3  ;;  %v14115_v55 = vpop.eup %14114  ;;  %v20976_v3 = vld [vmem:[#allocation63_spill] sm:$0xff] }
 0x4f3   :  { %12687 = vmatpush3.msra.mxu1 %v20968_v9  ;;  %12640 = vmatprep.subr.mxu0 %v20969_v45  ;;  %14124 = vrcp.f32 %v3173_v34  ;;  %v20978_v34 = vld [vmem:[#allocation65_spill] sm:$0xff]  ;;  %v16729_v15 = vmul.f32 %v14115_v55, %v16451_v19 }
 0x4f4   :  { %12688 = vmatprep.subr.mxu1 %v20970_v61  ;;  %12641 = vmatpush3.msra.mxu0 %v20969_v45  ;;  %v20975_v45 = vld [vmem:[#allocation36_spill] sm:$0xff] }
 0x4f5   :  { %12689 = vmatpush3.msra.mxu1 %v20970_v61  ;;  %12642 = vmatprep.subr.mxu0 %v20971_v50  ;;  %v3163_v49 = vpop.xlane.xlu1 %3162  ;;  %20979 = vst [vmem:[#allocation26_spill] sm:$0xff] %v16729_v15  ;;  %v16743_v55 = vand.u32 4294901760, %v16729_v15 }
 0x4f6   :  { %12690 = vmatprep.subr.mxu1 %v20972_v46  ;;  %12643 = vmatpush3.msra.mxu0 %v20971_v50  ;;  %14126 = vrcp.f32 %v3163_v49  ;;  %v20977_v50 = vld [vmem:[#allocation40_spill] sm:$0xff]  ;;  %v20980_v49 = vld [vmem:[#allocation43_spill] sm:$0xff] }
 0x4f7   :  { %12691 = vmatpush3.msra.mxu1 %v20972_v46  ;;  %12644 = vmatprep.subr.mxu0 %v20973_v22 }
 0x4f8   :  { %12692 = vmatprep.subr.mxu1 %v20975_v45  ;;  %12645 = vmatpush3.msra.mxu0 %v20973_v22  ;;  %v14117_v22 = vpop.eup %14116 }
 0x4f9   :  { %12693 = vmatpush3.msra.mxu1 %v20975_v45  ;;  %12646 = vmatprep.subr.mxu0 %v20976_v3  ;;  %v3167_v41 = vpop.xlane.xlu1 %3166 }
 0x4fa   :  { %12694 = vmatprep.subr.mxu1 %v20977_v50  ;;  %12647 = vmatpush3.msra.mxu0 %v20976_v3  ;;  %14128 = vrcp.f32 %v3167_v41  ;;  %v20981_v3 = vld [vmem:[#allocation49_spill] sm:$0xff]  ;;  %v16750_v41 = vmul.f32 %v14117_v22, %v16456_v35 }
 0x4fb   :  { %12695 = vmatpush3.msra.mxu1 %v20977_v50  ;;  %12648 = vmatprep.subr.mxu0 %v20978_v34  ;;  %v14119_v38 = vpop.eup %14118 }
 0x4fc   :  { %12696 = vmatprep.subr.mxu1 %v20980_v49  ;;  %12649 = vmatpush3.msra.mxu0 %v20978_v34  ;;  %v16738_v26 = vmul.f32 %v14119_v38, %v16496_v5  ;;  %v16747_v34 = vsub.f32 %v16715_v6, %v16726_v54  ;;  %20983 = vst [vmem:[#allocation28_spill] sm:$0xff] %v16750_v41  ;;  %v14121_v39 = vpop.eup %14120  ;;  %v16772_v6 = vand.u32 4294901760, %v16750_v41 }
 0x4fd   :  { %12697 = vmatpush3.msra.mxu1 %v20980_v49  ;;  %12650 = vmatprep.subr.mxu0 %v16467_v7  ;;  %v3171_v19 = vpop.xlane.xlu1 %3170 }
 0x4fe   :  { %12698 = vmatprep.subr.mxu1 %v20981_v3  ;;  %12651 = vmatpush3.msra.mxu0 %v16467_v7  ;;  %20982 = vst [vmem:[#allocation27_spill] sm:$0xff] %v16738_v26  ;;  %v20984_v7 = vld [vmem:[#allocation54_spill] sm:$0xff]  ;;  %14130 = vrcp.f32 %v3171_v19  ;;  %v16755_v38 = vand.u32 4294901760, %v16738_v26  ;;  %20987 = vst [vmem:[#allocation70_spill] sm:$0xff] %v16772_v6 }
 0x4ff   :  { %12699 = vmatpush3.msra.mxu1 %v20981_v3  ;;  %12652 = vmatprep.subr.mxu0 %v16464_v47  ;;  %v14123_v5 = vpop.eup %14122 }
 0x500   :  { %12700 = vmatprep.subr.mxu1 %v20984_v7  ;;  %12653 = vmatpush3.msra.mxu0 %v16464_v47  ;;  %v16762_v35 = vmul.f32 %v14123_v5, %v16501_v43  ;;  %v16766_v22 = vsub.f32 %v16738_v26, %v16755_v38  ;;  %v16779_v43 = vmul.f32 %v14121_v39, %v16473_v25  ;;  %v14125_v5 = vpop.eup %14124  ;;  %v20989_v26 = vld [vmem:[#allocation62_spill] sm:$0xff] }
 0x501   :  { %12701 = vmatpush3.msra.mxu1 %v20984_v7  ;;  %12654 = vmatprep.subr.mxu0 %v16596_v37  ;;  %v3175_v47 = vpop.xlane.xlu1 %3174 }
 0x502   :  { %12702 = vmatprep.subr.mxu1 %v20985_v31  ;;  %12655 = vmatpush3.msra.mxu0 %v16596_v37  ;;  %20986 = vst [vmem:[#allocation69_spill] sm:$0xff] %v16762_v35  ;;  %v16776_v37 = vsub.f32 %v16729_v15, %v16743_v55  ;;  %20988 = vst [vmem:[#allocation17_spill] sm:$0xff] %v16779_v43  ;;  %14132 = vrcp.f32 %v3175_v47  ;;  %v16784_v13 = vand.u32 4294901760, %v16762_v35  ;;  %v20446_v19 = vand.u32 4294901760, %v16766_v22 }
 0x503   :  { %12703 = vmatpush3.msra.mxu1 %v20985_v31  ;;  %12656 = vmatprep.subr.mxu0 %v16670_v52  ;;  %v14127_v32 = vpop.eup %14126  ;;  %v20992_v15 = vand.u32 4294901760, %v16747_v34  ;;  %v16809_v14 = vand.u32 4294901760, %v16779_v43 }
 0x504   :  { %12704 = vmatprep.subr.mxu1 %v20989_v26  ;;  %12657 = vmatpush3.msra.mxu0 %v16670_v52  ;;  %v3382_v39 = vsub.f32 %v16766_v22, %v20446_v19  ;;  %v16795_v52 = vmul.f32 %v14127_v32, %v16504_v8  ;;  %v16799_v25 = vsub.f32 %v16762_v35, %v16784_v13  ;;  %v20996_v1 = vand.u32 4294901760, %v16776_v37 }
 0x505   :  { %12705 = vmatpush3.msra.mxu1 %v20989_v26  ;;  %12738 = vmatprep.subr.mxu0 %v20990_v10  ;;  %v16802_v47 = vpop.permute.xlu1 %4750  ;;  %v3392_v58 = vsub.f32 %v16747_v34, %v20992_v15  ;;  %20993 = vst [vmem:[#allocation19_spill] sm:$0xff] %v16809_v14  ;;  %v16813_v32 = vsub.f32 %v16750_v41, %v16772_v6 }
 0x506   :  { %12706 = vmatprep.subr.mxu1 %v16461_v48  ;;  %12608 = vmatprep.mubr.f32.mxu1 %v16755_v38  ;;  %20991 = vst [vmem:[#allocation18_spill] sm:$0xff] %v16795_v52  ;;  %v3383_v8 = vand.u32 4294901760, %v3382_v39  ;;  %v16818_v19 = vand.u32 4294901760, %v16795_v52  ;;  %v20453_v35 = vand.u32 4294901760, %v16799_v25  ;;  %v16822_v15 = vmul.f32 %v14125_v5, %v16488_v53 }
 0x507   :  { %12707 = vmatpush3.msra.mxu1 %v16461_v48  ;;  %v14129_v40 = vpop.eup %14128  ;;  %6292 = vrot.lane.b32.xlu1 %v16802_v47, %s14383_s30  ;;  %v3393_v5 = vand.u32 4294901760, %v3392_v58  ;;  %v3412_v57 = vsub.f32 %v16776_v37, %v20996_v1 }
 0x508   :  { %12609 = vmatmul.mubr.f32.gmra.mxu1 %v16726_v54  ;;  %12708 = vmatprep.subr.mxu1 %v16458_v16  ;;  %20994 = vst [vmem:[#allocation20_spill] sm:$0xff] %v16822_v15  ;;  %v3402_v39 = vsub.f32 %v16799_v25, %v20453_v35  ;;  %v16833_v41 = vmul.f32 %v14129_v40, %v16507_v23  ;;  %v16857_v35 = vand.u32 4294901760, %v16822_v15 }
 0x509   :  { %12709 = vmatpush3.msra.mxu1 %v16458_v16  ;;  %12611 = vmatprep.mubr.f32.mxu1 %v16784_v13  ;;  %v16837_v53 = vsub.f32 %v16795_v52, %v16818_v19  ;;  %v16840_v12 = vpop.permute.xlu1 %4748  ;;  %v16848_v40 = vsub.f32 %v16779_v43, %v16809_v14  ;;  %v3413_v52 = vand.u32 4294901760, %v3412_v57 }
 0x50a   :  { %12710 = vmatprep.subr.mxu1 %v16589_v60  ;;  %20995 = vst [vmem:[#allocation23_spill] sm:$0xff] %v16833_v41  ;;  %12552 = vmatprep.mubr.f32.mxu0 %v3383_v8  ;;  %v3403_v23 = vand.u32 4294901760, %v3402_v39  ;;  %v16853_v8 = vand.u32 4294901760, %v16833_v41  ;;  %v16887_v57 = vsub.f32 %v16822_v15, %v16857_v35 }
 0x50b   :  { %12711 = vmatpush3.msra.mxu1 %v16589_v60  ;;  %v20459_v58 = vand.u32 4294901760, %v16837_v53  ;;  %v14131_v1 = vpop.eup %14130  ;;  %12553 = vmatmul.mubr.f32.gmra.mxu0 %v3393_v5  ;;  %v20999_v5 = vand.u32 4294901760, %v16813_v32 }
 0x50c   :  { %12612 = vmatmul.mubr.f32.gmra.mxu1 %v16743_v55  ;;  %12712 = vmatprep.subr.mxu1 %v16667_v11  ;;  %20997 = vst [vmem:[#allocation24_spill] sm:$0xff] %v16853_v8  ;;  %v16866_v36 = vmul.f32 %v14131_v1, %v16511_v63  ;;  %v16870_v43 = vsub.f32 %v16833_v41, %v16853_v8 }
 0x50d   :  { %12713 = vmatpush3.msra.mxu1 %v16667_v11  ;;  %12614 = vmatprep.mubr.f32.mxu1 %v16818_v19  ;;  %v3422_v39 = vsub.f32 %v16837_v53, %v20459_v58  ;;  %v16874_v44 = vpop.permute.xlu1 %4744  ;;  %v3432_v0 = vsub.f32 %v16813_v32, %v20999_v5 }
 0x50e   :  { %12794 = vmatprep.subr.mxu1 %v20964_v4  ;;  %20998 = vst [vmem:[#allocation21_spill] sm:$0xff] %v16866_v36  ;;  %6290 = vrot.lane.b32.xlu0 %v16840_v12, %s14383_s30  ;;  %v16882_v41 = vand.u32 4294901760, %v16866_v36  ;;  %v20467_v56 = vand.u32 4294901760, %v16870_v43 }
 0x50f   :  { %12555 = vmatprep.mubr.f32.mxu0 %v3403_v23  ;;  %v3423_v1 = vand.u32 4294901760, %v3422_v39  ;;  %v14133_v23 = vpop.eup %14132 }
 0x510   :  { %12615 = vmatmul.mubr.f32.gmra.mxu1 %v16772_v6  ;;  %v3177_v63 = vpop.xlane.xlu0 %3176  ;;  %21000 = vst [vmem:[#allocation55_spill] sm:$0xff] %v16882_v41  ;;  %12556 = vmatmul.mubr.f32.gmra.mxu0 %v3413_v52  ;;  %v3442_v5 = vsub.f32 %v16870_v43, %v20467_v56  ;;  %v16894_v39 = vmul.f32 %v14133_v23, %v16514_v28  ;;  %v3433_v6 = vand.u32 4294901760, %v3432_v0 }
 0x511   :  { %14134 = vrcp.f32 %v3177_v63  ;;  %12617 = vmatprep.mubr.f32.mxu1 %v16853_v8  ;;  %v16898_v58 = vsub.f32 %v16866_v36, %v16882_v41  ;;  %12558 = vmatprep.mubr.f32.mxu0 %v3423_v1  ;;  %v16900_v15 = vpop.permute.xlu1 %4742  ;;  %v21002_v63 = vand.u32 4294901760, %v16848_v40 }
 0x512   :  { %21001 = vst [vmem:[#allocation52_spill] sm:$0xff] %v16894_v39  ;;  %6284 = vrot.lane.b32.xlu0 %v16900_v15, %s14383_s30  ;;  %v3443_v28 = vand.u32 4294901760, %v3442_v5  ;;  %v16911_v23 = vand.u32 4294901760, %v16894_v39 }
 0x513   :  { %v3452_v8 = vsub.f32 %v16848_v40, %v21002_v63  ;;  %v20473_v1 = vand.u32 4294901760, %v16898_v58 }
 0x514   :  { %12618 = vmatmul.mubr.f32.gmra.mxu1 %v16809_v14  ;;  %v16906_v52 = vpop.permute.xlu0 %4746  ;;  %21003 = vst [vmem:[#allocation50_spill] sm:$0xff] %v16911_v23  ;;  %12559 = vmatmul.mubr.f32.gmra.mxu0 %v3433_v6  ;;  %v16923_v5 = vsub.f32 %v16894_v39, %v16911_v23 }
 0x515   :  { %12620 = vmatprep.mubr.f32.mxu1 %v16882_v41  ;;  %6288 = vrot.lane.b32.xlu1 %v16906_v52, %s14383_s30  ;;  %v3462_v63 = vsub.f32 %v16898_v58, %v20473_v1  ;;  %v16925_v56 = vpop.permute.xlu1 %4740  ;;  %v3453_v0 = vand.u32 4294901760, %v3452_v8  ;;  %v21004_v41 = vand.u32 4294901760, %v16887_v57 }
 0x516   :  { %12561 = vmatprep.mubr.f32.mxu0 %v3443_v28  ;;  %v20475_v6 = vand.u32 4294901760, %v16923_v5 }
 0x517   :  { %v3463_v36 = vand.u32 4294901760, %v3462_v63  ;;  %v3472_v14 = vsub.f32 %v16887_v57, %v21004_v41 }
 0x518   :  { %12621 = vmatmul.mubr.f32.gmra.mxu1 %v16857_v35  ;;  %12562 = vmatmul.mubr.f32.gmra.mxu0 %v3453_v0  ;;  %v3482_v28 = vsub.f32 %v16923_v5, %v20475_v6  ;;  %v16942_v63 = vpop.permute.xlu0 %4734 }
 0x519   :  { %12623 = vmatprep.mubr.f32.mxu1 %v16911_v23  ;;  %6286 = vrot.lane.b32.xlu1 %v16874_v44, %s14383_s30  ;;  %v16938_v1 = vpop.permute.xlu1 %4738  ;;  %v3473_v8 = vand.u32 4294901760, %v3472_v14 }
 0x51a   :  { %12564 = vmatprep.mubr.f32.mxu0 %v3463_v36  ;;  %6280 = vrot.lane.b32.xlu0 %v16938_v1, %s14383_s30  ;;  %v3483_v41 = vand.u32 4294901760, %v3482_v28 }
 0x51c   :  { %12565 = vmatmul.mubr.f32.gmra.mxu0 %v3473_v8  ;;  %v16958_v36 = vpop.permute.xlu0 %4730 }
 0x51d   :  { %6282 = vrot.lane.b32.xlu1 %v16925_v56, %s14383_s30  ;;  %12567 = vmatprep.mubr.f32.mxu0 %v3483_v41  ;;  %v16946_v0 = vpop.permute.xlu1 %4736  ;;  %v21008_v41 = vand.u32 4294901760, %v16645_v24 }
 0x51e   :  { %v14135_v39 = vpop.eup %14134  ;;  %6276 = vrot.lane.b32.xlu0 %v16942_v63, %s14383_s30 }
 0x51f   :  { %v16949_v6 = vmul.f32 %v14135_v39, %v16522_v27  ;;  %v21007_v27 = vand.u32 4294901760, %v16625_v51 }
 0x521   :  { %21005 = vst [vmem:[#allocation33_spill] sm:$0xff] %v16949_v6  ;;  %v16954_v14 = vand.u32 4294901760, %v16949_v6  ;;  %6278 = vrot.lane.b32.xlu1 %v16946_v0, %s14383_s30  ;;  %v16961_v28 = vpop.permute.xlu1 %4732 }
 0x522   :  { %6272 = vrot.lane.b32.xlu0 %v16958_v36, %s14383_s30 }
 0x523   :  { %21006 = vst [vmem:[#allocation37_spill] sm:$0xff] %v16954_v14  ;;  %12624 = vmatmul.mubr.f32.gmra.mxu1 %v16954_v14  ;;  %v16965_v8 = vsub.f32 %v16949_v6, %v16954_v14 }
 0x524   :  { %12714 = vmatprep.mubr.f32.mxu1 %v21007_v27  ;;  %v21009_v27 = vand.u32 4294901760, %v16652_v30 }
 0x525   :  { %6274 = vrot.lane.b32.xlu1 %v16961_v28, %s14383_s30  ;;  %v3491_v39 = vand.u32 4294901760, %v16965_v8  ;;  %v16976_v23 = vpop.permute.xlu1 %4728 }
 0x527   :  { %12715 = vmatmul.mubr.f32.vlgmr.msra.gmra.mxu1 %v21008_v41  ;;  %v3492_v6 = vsub.f32 %v16965_v8, %v3491_v39  ;;  %v21010_v41 = vand.u32 4294901760, %v16657_v33 }
 0x528   :  { %12795 = vmatpush3.msra.mxu1 %v20964_v4  ;;  %12717 = vmatprep.mubr.f32.mxu1 %v21009_v27  ;;  %v21011_v4 = vand.u32 4294901760, %v16766_v22  ;;  %v21031_v27 = vand.u32 4294901760, %v16923_v5 }
 0x529   :  { %12796 = vmatprep.subr.mxu1 %v20966_v17  ;;  %v3493_v14 = vand.u32 4294901760, %v3492_v6  ;;  %6270 = vrot.lane.b32.xlu1 %v16976_v23, %s14383_s30 }
 0x52a   :  { %12797 = vmatpush3.msra.mxu1 %v20966_v17  ;;  %v21012_v17 = vand.u32 4294901760, %v16747_v34 }
 0x52b   :  { %12798 = vmatprep.subr.mxu1 %v20968_v9  ;;  %12568 = vmatmul.mubr.f32.gmra.mxu0 %v3493_v14 }
 0x52c   :  { %12718 = vmatmul.mubr.f32.gmra.mxu1 %v21010_v41  ;;  %12658 = vmatprep.mubr.f32.mxu0 %v16625_v51  ;;  %v21013_v51 = vand.u32 4294901760, %v16799_v25  ;;  %v21032_v41 = vld [vmem:[#allocation66_spill] sm:$0xff] }
 0x52d   :  { %12799 = vmatpush3.msra.mxu1 %v20968_v9  ;;  %12720 = vmatprep.mubr.f32.mxu1 %v21011_v4  ;;  %v21014_v9 = vld [vmem:[#allocation34_spill] sm:$0xff] }
 0x52e   :  { %12800 = vmatprep.subr.mxu1 %v20970_v61 }
 0x52f   :  { %12801 = vmatpush3.msra.mxu1 %v20970_v61  ;;  %12659 = vmatmul.mubr.f32.vlgmr.msra.gmra.mxu0 %v16645_v24  ;;  %v21015_v24 = vld [vmem:[#allocation35_spill] sm:$0xff]  ;;  %v21018_v61 = vld [vmem:[#allocation38_spill] sm:$0xff] }
 0x530   :  { %12802 = vmatprep.subr.mxu1 %v20972_v46  ;;  %12721 = vmatmul.mubr.f32.gmra.mxu1 %v21012_v17 }
 0x531   :  { %12739 = vmatpush3.msra.mxu0 %v20990_v10  ;;  %12803 = vmatpush3.msra.mxu1 %v20972_v46  ;;  %v21016_v10 = vand.u32 4294901760, %v16776_v37  ;;  %v21020_v46 = vand.u32 4294901760, %v16813_v32 }
 0x532   :  { %12661 = vmatprep.mubr.f32.mxu0 %v16652_v30  ;;  %12723 = vmatprep.mubr.f32.mxu1 %v21013_v51  ;;  %v21017_v30 = vand.u32 4294901760, %v16837_v53  ;;  %v21035_v51 = vld [vmem:[#allocation68_spill] sm:$0xff] }
 0x533   :  { %12740 = vmatprep.subr.mxu0 %v21014_v9  ;;  %12804 = vmatprep.subr.mxu1 %v20975_v45 }
 0x534   :  { %12741 = vmatpush3.msra.mxu0 %v21014_v9  ;;  %12805 = vmatpush3.msra.mxu1 %v20975_v45  ;;  %v4814_v45 = vsel %vm21021_vm14, %v16802_v47, 0 }
 0x535   :  { %12742 = vmatprep.subr.mxu0 %v21015_v24  ;;  %12806 = vmatprep.subr.mxu1 %v20977_v50 }
 0x536   :  { %12662 = vmatmul.mubr.f32.gmra.mxu0 %v16657_v33  ;;  %12724 = vmatmul.mubr.f32.gmra.mxu1 %v21016_v10  ;;  %v21019_v33 = vld [vmem:[#allocation42_spill] sm:$0xff] }
 0x537   :  { %12743 = vmatpush3.msra.mxu0 %v21015_v24  ;;  %12807 = vmatpush3.msra.mxu1 %v20977_v50  ;;  %v21022_v50 = vand.u32 4294901760, %v16870_v43 }
 0x538   :  { %12664 = vmatprep.mubr.f32.mxu0 %v16766_v22  ;;  %12726 = vmatprep.mubr.f32.mxu1 %v21017_v30  ;;  %v21024_v22 = vld [vmem:[#allocation57_spill] sm:$0xff] }
 0x539   :  { %12744 = vmatprep.subr.mxu0 %v21018_v61  ;;  %12808 = vmatprep.subr.mxu1 %v20980_v49 }
 0x53a   :  { %12745 = vmatpush3.msra.mxu0 %v21018_v61  ;;  %12809 = vmatpush3.msra.mxu1 %v20980_v49  ;;  %v21023_v49 = vld [vmem:[#allocation47_spill] sm:$0xff] }
 0x53b   :  { %12746 = vmatprep.subr.mxu0 %v21019_v33  ;;  %12810 = vmatprep.subr.mxu1 %v20981_v3 }
 0x53c   :  { %12665 = vmatmul.mubr.f32.gmra.mxu0 %v16747_v34  ;;  %12727 = vmatmul.mubr.f32.gmra.mxu1 %v21020_v46  ;;  %v17040_v34 = vand.u32 4294901760, %v4814_v45 }
 0x53d   :  { %12747 = vmatpush3.msra.mxu0 %v21019_v33  ;;  %12811 = vmatpush3.msra.mxu1 %v20981_v3  ;;  %v4812_v3 = vsel %vm21021_vm14, %v16840_v12, 0  ;;  %v21027_v12 = vld [vmem:[#allocation60_spill] sm:$0xff] }
 0x53e   :  { %12667 = vmatprep.mubr.f32.mxu0 %v16799_v25  ;;  %12729 = vmatprep.mubr.f32.mxu1 %v21022_v50  ;;  %v21025_v25 = vand.u32 4294901760, %v16848_v40  ;;  %v17055_v47 = vsub.f32 %v4814_v45, %v17040_v34  ;;  %v17057_v6 = vand.u32 4294901760, %v4812_v3 }
 0x53f   :  { %12748 = vmatprep.subr.mxu0 %v21023_v49  ;;  %12812 = vmatprep.subr.mxu1 %v20984_v7 }
 0x540   :  { %12749 = vmatpush3.msra.mxu0 %v21023_v49  ;;  %12813 = vmatpush3.msra.mxu1 %v20984_v7  ;;  %v21026_v7 = vand.u32 4294901760, %v16898_v58  ;;  %v17071_v14 = vsub.f32 %v4812_v3, %v17057_v6  ;;  %v4796_v49 = vsel %vm21039_vm1, %v16961_v28, 0  ;;  %v21043_v3 = vld [vmem:[#allocation70_spill] sm:$0xff] }
 0x541   :  { %12750 = vmatprep.subr.mxu0 %v21024_v22  ;;  %12814 = vmatprep.subr.mxu1 %v20985_v31 }
 0x542   :  { %12668 = vmatmul.mubr.f32.gmra.mxu0 %v16776_v37  ;;  %12730 = vmatmul.mubr.f32.gmra.mxu1 %v21025_v25  ;;  %v21028_v37 = vld [vmem:[#allocation64_spill] sm:$0xff]  ;;  %v17094_v4 = vand.u32 4294901760, %v17071_v14  ;;  %v21044_v25 = vld [vmem:[#allocation82_spill] sm:$0xff] }
 0x543   :  { %12751 = vmatpush3.msra.mxu0 %v21024_v22  ;;  %12815 = vmatpush3.msra.mxu1 %v20985_v31  ;;  %v4810_v31 = vsel %vm21021_vm14, %v16906_v52, 0  ;;  %v4752_v28 = vsel %vm21045_vm8, %v21044_v25, 0  ;;  %vm21051_vm8 = vmmov %vm21039_vm1  ;;  %v21061_v25 = vld [vmem:[#allocation31_spill] sm:$0xff] }
 0x544   :  { %12670 = vmatprep.mubr.f32.mxu0 %v16837_v53  ;;  %12732 = vmatprep.mubr.f32.mxu1 %v21026_v7  ;;  %v21029_v53 = vand.u32 4294901760, %v16887_v57  ;;  %v17078_v52 = vand.u32 4294901760, %v4810_v31  ;;  %21034 = vst [vmem:[#allocation22_spill] sm:$0xff] %v17094_v4  ;;  %v17212_v7 = vand.u32 4294901760, %v4796_v49 }
 0x545   :  { %12752 = vmatprep.subr.mxu0 %v21027_v12  ;;  %12816 = vmatprep.subr.mxu1 %v20989_v26 }
 0x546   :  { %12753 = vmatpush3.msra.mxu0 %v21027_v12  ;;  %12817 = vmatpush3.msra.mxu1 %v20989_v26  ;;  %v17076_v26 = vand.u32 4294901760, %v17055_v47 }
 0x547   :  { %12754 = vmatprep.subr.mxu0 %v21028_v37  ;;  %12818 = vmatprep.subr.mxu1 %v16461_v48 }
 0x548   :  { %12671 = vmatmul.mubr.f32.gmra.mxu0 %v16813_v32  ;;  %12733 = vmatmul.mubr.f32.gmra.mxu1 %v21029_v53  ;;  %21030 = vst [vmem:[#allocation44_spill] sm:$0xff] %v17076_v26  ;;  %v4808_v32 = vsel %vm21021_vm14, %v16874_v44, 0  ;;  %v17099_v44 = vsub.f32 %v4810_v31, %v17078_v52  ;;  %v21049_v53 = vld [vmem:[#allocation19_spill] sm:$0xff] }
 0x549   :  { %12755 = vmatpush3.msra.mxu0 %v21028_v37  ;;  %12819 = vmatpush3.msra.mxu1 %v16461_v48  ;;  %v21033_v48 = vld [vmem:[#allocation67_spill] sm:$0xff]  ;;  %v17096_v17 = vand.u32 4294901760, %v4808_v32 }
 0x54a   :  { %12673 = vmatprep.mubr.f32.mxu0 %v16870_v43  ;;  %12735 = vmatprep.mubr.f32.mxu1 %v21031_v27  ;;  %v5061_v43 = vsub.f32 %v17055_v47, %v17076_v26 }
 0x54b   :  { %12756 = vmatprep.subr.mxu0 %v21032_v41  ;;  %12820 = vmatprep.subr.mxu1 %v16458_v16 }
 0x54c   :  { %12757 = vmatpush3.msra.mxu0 %v21032_v41  ;;  %12821 = vmatpush3.msra.mxu1 %v16458_v16  ;;  %v4806_v16 = vsel %vm21021_vm14, %v16900_v15, 0  ;;  %v5062_v9 = vand.u32 4294901760, %v5061_v43  ;;  %v17240_v43 = vpop.permute.xlu0 %4726 }
 0x54d   :  { %12758 = vmatprep.subr.mxu0 %v21033_v48  ;;  %12822 = vmatprep.subr.mxu1 %v16589_v60  ;;  %v17122_v15 = vand.u32 4294901760, %v4806_v16  ;;  %21052 = vst [vmem:[#allocation36_spill] sm:$0xff] %v17240_v43 }
 0x54e   :  { %12674 = vmatmul.mubr.f32.gmra.mxu0 %v16848_v40  ;;  %12736 = vmatmul.mubr.f32.gmra.mxu1 %v3491_v39  ;;  %v5068_v40 = vsub.f32 %v17071_v14, %v17094_v4  ;;  %v17115_v39 = vsub.f32 %v4808_v32, %v17096_v17  ;;  %v17233_v32 = vsub.f32 %v4796_v49, %v17212_v7 }
 0x54f   :  { %12759 = vmatpush3.msra.mxu0 %v21033_v48  ;;  %12823 = vmatpush3.msra.mxu1 %v16589_v60  ;;  %v17120_v60 = vand.u32 4294901760, %v17099_v44 }
 0x550   :  { %12676 = vmatprep.mubr.f32.mxu0 %v16898_v58  ;;  %12760 = vmatprep.subr.mxu0 %v21035_v51  ;;  %v4804_v58 = vsel %vm21021_vm14, %v16925_v56, 0  ;;  %v5069_v24 = vand.u32 4294901760, %v5068_v40  ;;  %v17135_v10 = vand.u32 4294901760, %v17115_v39  ;;  %v17138_v56 = vsub.f32 %v4806_v16, %v17122_v15 }
 0x551   :  { %12824 = vmatprep.subr.mxu1 %v16667_v11  ;;  %12826 = vmatprep.mubr.f32.mxu1 %v16617_v2  ;;  %21036 = vst [vmem:[#allocation46_spill] sm:$0xff] %v17120_v60 }
 0x552   :  { %12761 = vmatpush3.msra.mxu0 %v21035_v51  ;;  %12825 = vmatpush3.msra.mxu1 %v16667_v11  ;;  %v5075_v11 = vsub.f32 %v17099_v44, %v17120_v60  ;;  %21037 = vst [vmem:[#allocation45_spill] sm:$0xff] %v17135_v10  ;;  %v5082_v30 = vsub.f32 %v17115_v39, %v17135_v10 }
 0x553   :  { %12762 = vmatprep.subr.mxu0 %v16479_v62  ;;  %12906 = vmatprep.subr.mxu1 %v5062_v9 }
 0x554   :  { %12677 = vmatmul.mubr.f32.gmra.mxu0 %v16887_v57  ;;  %12827 = vmatmul.mubr.f32.vlgmr.msra.gmra.mxu1 %v16629_v59  ;;  %v17140_v57 = vand.u32 4294901760, %v4804_v58 }
 0x555   :  { %12763 = vmatpush3.msra.mxu0 %v16479_v62  ;;  %12907 = vmatpush3.xpose.msra.mxu1 %v5062_v9  ;;  %v4802_v62 = vsel %vm21021_vm14, %v16938_v1, 0  ;;  %v4798_v1 = vsel %vm21039_vm1, %v16942_v63, 0 }
 0x556   :  { %12679 = vmatprep.mubr.f32.mxu0 %v16923_v5  ;;  %12764 = vmatprep.subr.mxu0 %v16471_v21  ;;  %v5076_v5 = vand.u32 4294901760, %v5075_v11  ;;  %v17153_v61 = vsub.f32 %v4804_v58, %v17140_v57  ;;  %v17155_v33 = vand.u32 4294901760, %v4802_v62  ;;  %v17261_v58 = vand.u32 4294901760, %v17233_v32  ;;  %v21056_v11 = vld [vmem:[#allocation50_spill] sm:$0xff] }
 0x557   :  { %12829 = vmatprep.mubr.f32.mxu1 %v16641_v18  ;;  %12908 = vmatprep.subr.mxu1 %v5069_v24 }
 0x558   :  { %12765 = vmatpush3.msra.mxu0 %v16471_v21  ;;  %12830 = vmatmul.mubr.f32.gmra.mxu1 %v16648_v42  ;;  %v17160_v21 = vand.u32 4294901760, %v17138_v56  ;;  %21054 = vst [vmem:[#allocation63_spill] sm:$0xff] %v17261_v58 }
 0x559   :  { %12766 = vmatprep.subr.mxu0 %v16603_v20  ;;  %12680 = vmatmul.mubr.f32.gmra.mxu0 %v16965_v8  ;;  %v17172_v8 = vsub.f32 %v4802_v62, %v17155_v33 }
 0x55a   :  { %12767 = vmatpush3.msra.mxu0 %v16603_v20  ;;  %12909 = vmatpush3.xpose.msra.mxu1 %v5069_v24  ;;  %21038 = vst [vmem:[#allocation32_spill] sm:$0xff] %v17160_v21  ;;  %v4800_v20 = vsel %vm21021_vm14, %v16946_v0, 0  ;;  %v17180_v0 = vand.u32 4294901760, %v17153_v61  ;;  %vm21042_vm14 = vmmov %vm21039_vm1  ;;  %v17263_v24 = vpop.permute.xlu1 %4724 }
 0x55b   :  { %12768 = vmatprep.subr.mxu0 %v16679_v29  ;;  %12770 = vmatprep.mubr.f32.mxu0 %v16617_v2  ;;  %v5083_v2 = vand.u32 4294901760, %v5082_v30  ;;  %v17174_v46 = vand.u32 4294901760, %v4800_v20  ;;  %v17196_v50 = vand.u32 4294901760, %v17172_v8  ;;  %v4794_v22 = vsel %vm21042_vm14, %v16958_v36, 0  ;;  %21055 = vst [vmem:[#allocation40_spill] sm:$0xff] %v17263_v24  ;;  %vm21058_vm14 = vmmov %vm21039_vm1 }
 0x55c   :  { %12832 = vmatprep.mubr.f32.mxu1 %v16755_v38  ;;  %12910 = vmatprep.subr.mxu1 %v5076_v5  ;;  %21040 = vst [vmem:[#allocation51_spill] sm:$0xff] %v17180_v0  ;;  %v17223_v36 = vand.u32 4294901760, %v4752_v28  ;;  %v17225_v37 = vand.u32 4294901760, %v4794_v22 }
 0x55d   :  { %12769 = vmatpush3.msra.mxu0 %v16679_v29  ;;  %12833 = vmatmul.mubr.f32.gmra.mxu1 %v16726_v54  ;;  %v5089_v29 = vsub.f32 %v17138_v56, %v17160_v21  ;;  %v17190_v63 = vsub.f32 %v4800_v20, %v17174_v46  ;;  %21041 = vst [vmem:[#allocation53_spill] sm:$0xff] %v17196_v50  ;;  %v21057_v20 = vld [vmem:[#allocation37_spill] sm:$0xff] }
 0x55e   :  { %12850 = vmatprep.subr.mxu0 %v17040_v34  ;;  %12771 = vmatmul.mubr.f32.vlgmr.msra.gmra.mxu0 %v16629_v59  ;;  %v17185_v59 = vand.u32 4294901760, %v4798_v1  ;;  %v5103_v12 = vsub.f32 %v17172_v8, %v17196_v50  ;;  %21048 = vst [vmem:[#allocation56_spill] sm:$0xff] %v17223_v36  ;;  %v17246_v16 = vsub.f32 %v4752_v28, %v17223_v36 }
 0x55f   :  { %12851 = vmatpush3.xpose.msra.mxu0 %v17040_v34  ;;  %12911 = vmatpush3.xpose.msra.mxu1 %v5076_v5  ;;  %v5090_v45 = vand.u32 4294901760, %v5089_v29  ;;  %v17218_v31 = vand.u32 4294901760, %v17190_v63  ;;  %v5124_v29 = vsub.f32 %v17233_v32, %v17261_v58 }
 0x560   :  { %12773 = vmatprep.mubr.f32.mxu0 %v16641_v18  ;;  %12835 = vmatprep.mubr.f32.mxu1 %v16784_v13  ;;  %v5096_v18 = vsub.f32 %v17153_v61, %v17180_v0  ;;  %v5104_v41 = vand.u32 4294901760, %v5103_v12  ;;  %v20483_v62 = vand.u32 4294901760, %v17246_v16 }
 0x561   :  { %12852 = vmatprep.subr.mxu0 %v17057_v6  ;;  %12912 = vmatprep.subr.mxu1 %v5083_v2  ;;  %21046 = vst [vmem:[#allocation58_spill] sm:$0xff] %v17218_v31  ;;  %v5110_v48 = vsub.f32 %v17190_v63, %v17218_v31 }
 0x562   :  { %12774 = vmatmul.mubr.f32.gmra.mxu0 %v16648_v42  ;;  %12836 = vmatmul.mubr.f32.gmra.mxu1 %v16743_v55  ;;  %v17204_v42 = vsub.f32 %v4798_v1, %v17185_v59  ;;  %v4788_v1 = vsel %vm21058_vm14, %v17263_v24, 0  ;;  %vm21069_vm14 = vmmov %vm21039_vm1 }
 0x563   :  { %12853 = vmatpush3.xpose.msra.mxu0 %v17057_v6  ;;  %12913 = vmatpush3.xpose.msra.mxu1 %v5083_v2  ;;  %v5111_v9 = vand.u32 4294901760, %v5110_v48  ;;  %v4695_v48 = vpop.permute.xlu0 %4694 }
 0x564   :  { %12776 = vmatprep.mubr.f32.mxu0 %v16755_v38  ;;  %12838 = vmatprep.mubr.f32.mxu1 %v16818_v19  ;;  %v5097_v38 = vand.u32 4294901760, %v5096_v18  ;;  %v17230_v27 = vand.u32 4294901760, %v17204_v42  ;;  %v4900_v18 = vsub.f32 %v17246_v16, %v20483_v62 }
 0x565   :  { %12854 = vmatprep.subr.mxu0 %v17078_v52  ;;  %12914 = vmatprep.subr.mxu1 %v5090_v45 }
 0x566   :  { %12777 = vmatmul.mubr.f32.gmra.mxu0 %v16726_v54  ;;  %12839 = vmatmul.mubr.f32.gmra.mxu1 %v21043_v3  ;;  %v21047_v54 = vld [vmem:[#allocation24_spill] sm:$0xff]  ;;  %21050 = vst [vmem:[#allocation61_spill] sm:$0xff] %v17230_v27  ;;  %v5117_v40 = vsub.f32 %v17204_v42, %v17230_v27 }
 0x567   :  { %12855 = vmatpush3.xpose.msra.mxu0 %v17078_v52  ;;  %12915 = vmatpush3.xpose.msra.mxu1 %v5090_v45 }
 0x568   :  { %12779 = vmatprep.mubr.f32.mxu0 %v16784_v13  ;;  %12841 = vmatprep.mubr.f32.mxu1 %v21047_v54  ;;  %v4792_v13 = vsel %vm21051_vm8, %v16976_v23, 0  ;;  %v17249_v23 = vsub.f32 %v4794_v22, %v17225_v37  ;;  %v5118_v2 = vand.u32 4294901760, %v5117_v40  ;;  %v17293_v22 = vand.u32 4294901760, %v4788_v1  ;;  %vm21062_vm8 = vmmov %vm21039_vm1 }
 0x569   :  { %12856 = vmatprep.subr.mxu0 %v17096_v17  ;;  %12916 = vmatprep.subr.mxu1 %v5097_v38  ;;  %v17251_v51 = vand.u32 4294901760, %v4792_v13  ;;  %v4786_v28 = vsel %vm21062_vm8, %v21061_v25, 0  ;;  %vm21070_vm8 = vmmov %vm21039_vm1 }
 0x56a   :  { %12780 = vmatmul.mubr.f32.gmra.mxu0 %v16743_v55  ;;  %12842 = vmatmul.mubr.f32.gmra.mxu1 %v21049_v53  ;;  %v21053_v55 = vld [vmem:[#allocation55_spill] sm:$0xff]  ;;  %v17282_v45 = vand.u32 4294901760, %v17249_v23  ;;  %v4756_v25 = vsel %vm21070_vm8, %v4695_v48, 0  ;;  %vm21074_vm8 = vmmov %vm21039_vm1 }
 0x56b   :  { %12857 = vmatpush3.xpose.msra.mxu0 %v17096_v17  ;;  %12917 = vmatpush3.xpose.msra.mxu1 %v5097_v38  ;;  %v17272_v30 = vsub.f32 %v4792_v13, %v17251_v51  ;;  %v5125_v38 = vand.u32 4294901760, %v5124_v29 }
 0x56c   :  { %12782 = vmatprep.mubr.f32.mxu0 %v16818_v19  ;;  %12844 = vmatprep.mubr.f32.mxu1 %v21053_v55  ;;  %v4790_v19 = vsel %vm21039_vm1, %v17240_v43, 0  ;;  %21059 = vst [vmem:[#allocation65_spill] sm:$0xff] %v17282_v45  ;;  %v5131_v12 = vsub.f32 %v17249_v23, %v17282_v45 }
 0x56d   :  { %12858 = vmatprep.subr.mxu0 %v17122_v15  ;;  %12918 = vmatprep.subr.mxu1 %v5104_v41  ;;  %v17269_v5 = vand.u32 4294901760, %v4790_v19 }
 0x56e   :  { %12783 = vmatmul.mubr.f32.gmra.mxu0 %v21043_v3  ;;  %12845 = vmatmul.mubr.f32.gmra.mxu1 %v16857_v35  ;;  %v17297_v3 = vand.u32 4294901760, %v17272_v30 }
 0x56f   :  { %12859 = vmatpush3.xpose.msra.mxu0 %v17122_v15  ;;  %12919 = vmatpush3.xpose.msra.mxu1 %v5104_v41  ;;  %v17291_v49 = vsub.f32 %v4790_v19, %v17269_v5  ;;  %v21064_v19 = vld [vmem:[#allocation83_spill] sm:$0xff] }
 0x570   :  { %12785 = vmatprep.mubr.f32.mxu0 %v21047_v54  ;;  %12847 = vmatprep.mubr.f32.mxu1 %v21056_v11  ;;  %21060 = vst [vmem:[#allocation43_spill] sm:$0xff] %v17297_v3  ;;  %v17306_v54 = vand.u32 4294901760, %v4786_v28  ;;  %v5138_v13 = vsub.f32 %v17272_v30, %v17297_v3 }
 0x571   :  { %12860 = vmatprep.subr.mxu0 %v17140_v57  ;;  %12920 = vmatprep.subr.mxu1 %v5111_v9  ;;  %v17315_v41 = vand.u32 4294901760, %v17291_v49 }
 0x572   :  { %12786 = vmatmul.mubr.f32.gmra.mxu0 %v21049_v53  ;;  %12848 = vmatmul.mubr.f32.gmra.mxu1 %v21057_v20  ;;  %v4901_v53 = vand.u32 4294901760, %v4900_v18  ;;  %v17322_v40 = vsub.f32 %v4786_v28, %v17306_v54  ;;  %v4699_v18 = vpop.permute.xlu0 %4698 }
 0x573   :  { %12861 = vmatpush3.xpose.msra.mxu0 %v17140_v57  ;;  %12921 = vmatpush3.xpose.msra.mxu1 %v5111_v9  ;;  %21063 = vst [vmem:[#allocation49_spill] sm:$0xff] %v17315_v41  ;;  %v4784_v9 = vsel %vm21039_vm1, %v21064_v19, 0 }
 0x574   :  { %12788 = vmatprep.mubr.f32.mxu0 %v21053_v55  ;;  %12862 = vmatprep.subr.mxu0 %v17155_v33  ;;  %v5132_v55 = vand.u32 4294901760, %v5131_v12  ;;  %v17329_v29 = vand.u32 4294901760, %v4784_v9  ;;  %v17336_v12 = vand.u32 4294901760, %v17322_v40 }
 0x575   :  { %12922 = vmatprep.subr.mxu1 %v5118_v2  ;;  %12938 = vmatprep.mubr.f32.mxu1 %v17223_v36 }
 0x576   :  { %12789 = vmatmul.mubr.f32.gmra.mxu0 %v16857_v35  ;;  %v17309_v35 = vsub.f32 %v4788_v1, %v17293_v22  ;;  %v5145_v1 = vsub.f32 %v17291_v49, %v17315_v41  ;;  %21066 = vst [vmem:[#allocation59_spill] sm:$0xff] %v17336_v12  ;;  %v4703_v19 = vpop.permute.xlu0 %4702 }
 0x577   :  { %12863 = vmatpush3.xpose.msra.mxu0 %v17155_v33  ;;  %12923 = vmatpush3.xpose.msra.mxu1 %v5118_v2 }
 0x578   :  { %12791 = vmatprep.mubr.f32.mxu0 %v21056_v11  ;;  %12864 = vmatprep.subr.mxu0 %v17174_v46  ;;  %v4697_v11 = vpop.permute.xlu1 %4696  ;;  %v17327_v2 = vand.u32 4294901760, %v17309_v35 }
 0x579   :  { %12924 = vmatprep.subr.mxu1 %v5125_v38 }
 0x57a   :  { %12792 = vmatmul.mubr.f32.gmra.mxu0 %v21057_v20  ;;  %v5139_v20 = vand.u32 4294901760, %v5138_v13  ;;  %21065 = vst [vmem:[#allocation54_spill] sm:$0xff] %v17327_v2  ;;  %v5152_v28 = vsub.f32 %v17309_v35, %v17327_v2  ;;  %v4707_v2 = vpop.permute.xlu0 %4706 }
 0x57b   :  { %12865 = vmatpush3.xpose.msra.mxu0 %v17174_v46  ;;  %12925 = vmatpush3.xpose.msra.mxu1 %v5125_v38  ;;  %v5146_v38 = vand.u32 4294901760, %v5145_v1  ;;  %v5159_v1 = vsub.f32 %v17322_v40, %v17336_v12 }
 0x57c   :  { %12866 = vmatprep.subr.mxu0 %v17185_v59  ;;  %12882 = vmatprep.mubr.f32.mxu0 %v4901_v53  ;;  %v17339_v53 = vsub.f32 %v4784_v9, %v17329_v29  ;;  %v4701_v13 = vpop.permute.xlu1 %4700  ;;  %v21068_v9 = vld [vmem:[#allocation84_spill] sm:$0xff] }
 0x57d   :  { %12926 = vmatprep.subr.mxu1 %v5132_v55 }
 0x57e   :  { %v17346_v62 = vand.u32 4294901760, %v17339_v53 }
 0x57f   :  { %12867 = vmatpush3.xpose.msra.mxu0 %v17185_v59  ;;  %12927 = vmatpush3.xpose.msra.mxu1 %v5132_v55  ;;  %v5153_v55 = vand.u32 4294901760, %v5152_v28  ;;  %v5160_v28 = vand.u32 4294901760, %v5159_v1 }
 0x580   :  { %12868 = vmatprep.subr.mxu0 %v17212_v7  ;;  %12928 = vmatprep.subr.mxu1 %v5139_v20  ;;  %21067 = vst [vmem:[#allocation62_spill] sm:$0xff] %v17346_v62  ;;  %v4705_v43 = vpop.permute.xlu1 %4704  ;;  %v5166_v24 = vsub.f32 %v17339_v53, %v17346_v62 }
 0x582   :  { %v5167_v41 = vand.u32 4294901760, %v5166_v24  ;;  %v4762_v24 = vsel %vm21039_vm1, %v4701_v13, 0 }
 0x583   :  { %12869 = vmatpush3.xpose.msra.mxu0 %v17212_v7  ;;  %12929 = vmatpush3.xpose.msra.mxu1 %v5139_v20  ;;  %v4754_v20 = vsel %vm21069_vm14, %v21068_v9, 0  ;;  %v4758_v9 = vsel %vm21039_vm1, %v4697_v11, 0  ;;  %vm21073_vm14 = vmmov %vm21039_vm1  ;;  %v17385_v27 = vand.u32 4294901760, %v4762_v24 }
 0x584   :  { %12870 = vmatprep.subr.mxu0 %v17225_v37  ;;  %12930 = vmatprep.subr.mxu1 %v5146_v38  ;;  %v17356_v12 = vand.u32 4294901760, %v4754_v20  ;;  %v4760_v48 = vsel %vm21073_vm14, %v4699_v18, 0  ;;  %v17368_v62 = vand.u32 4294901760, %v4758_v9  ;;  %v4709_v3 = vpop.permute.xlu1 %4708  ;;  %vm21078_vm14 = vmmov %vm21039_vm1 }
 0x585   :  { %v17374_v11 = vand.u32 4294901760, %v4760_v48  ;;  %21079 = vst [vmem:[#allocation47_spill] sm:$0xff] %v17385_v27  ;;  %v4770_v50 = vsel %vm21039_vm1, %v4709_v3, 0 }
 0x586   :  { %21071 = vst [vmem:[#allocation48_spill] sm:$0xff] %v17356_v12  ;;  %v17365_v1 = vsub.f32 %v4754_v20, %v17356_v12  ;;  %21075 = vst [vmem:[#allocation35_spill] sm:$0xff] %v17368_v62  ;;  %v4768_v20 = vsel %vm21078_vm14, %v4707_v2, 0  ;;  %v17383_v58 = vsub.f32 %v4758_v9, %v17368_v62  ;;  %v17434_v21 = vand.u32 4294901760, %v4770_v50 }
 0x587   :  { %12871 = vmatpush3.xpose.msra.mxu0 %v17225_v37  ;;  %12931 = vmatpush3.xpose.msra.mxu1 %v5146_v38  ;;  %v17359_v38 = vand.u32 4294901760, %v4756_v25  ;;  %21076 = vst [vmem:[#allocation38_spill] sm:$0xff] %v17374_v11  ;;  %v17391_v13 = vsub.f32 %v4760_v48, %v17374_v11  ;;  %v17398_v9 = vand.u32 4294901760, %v4768_v20  ;;  %v17406_v48 = vsub.f32 %v4762_v24, %v17385_v27  ;;  %vm21084_vm14 = vmmov %vm21039_vm1 }
 0x588   :  { %12872 = vmatprep.subr.mxu0 %v17251_v51  ;;  %12932 = vmatprep.subr.mxu1 %v5153_v55  ;;  %v4713_v31 = vpop.permute.xlu1 %4712 }
 0x589   :  { %21072 = vst [vmem:[#allocation34_spill] sm:$0xff] %v17359_v38  ;;  %v17372_v45 = vsub.f32 %v4756_v25, %v17359_v38  ;;  %21081 = vst [vmem:[#allocation57_spill] sm:$0xff] %v17398_v9  ;;  %v17422_v0 = vsub.f32 %v4768_v20, %v17398_v9  ;;  %v21087_v10 = vand.u32 4294901760, %v17391_v13  ;;  %v21089_v26 = vand.u32 4294901760, %v17406_v48 }
 0x58b   :  { %12873 = vmatpush3.xpose.msra.mxu0 %v17251_v51  ;;  %12933 = vmatpush3.xpose.msra.mxu1 %v5153_v55  ;;  %v4764_v55 = vsel %vm21074_vm8, %v4703_v19, 0  ;;  %vm21080_vm8 = vmmov %vm21039_vm1 }
 0x58c   :  { %12874 = vmatprep.subr.mxu0 %v17269_v5  ;;  %12934 = vmatprep.subr.mxu1 %v5160_v28  ;;  %v17377_v18 = vand.u32 4294901760, %v4764_v55  ;;  %v4766_v25 = vsel %vm21080_vm8, %v4705_v43, 0  ;;  %vm21086_vm8 = vmmov %vm21039_vm1 }
 0x58d   :  { %v17400_v19 = vand.u32 4294901760, %v4766_v25 }
 0x58e   :  { %21077 = vst [vmem:[#allocation42_spill] sm:$0xff] %v17377_v18  ;;  %v17396_v2 = vsub.f32 %v4764_v55, %v17377_v18  ;;  %v21082_v55 = vand.u32 4294901760, %v17365_v1 }
 0x58f   :  { %12875 = vmatpush3.xpose.msra.mxu0 %v17269_v5  ;;  %12935 = vmatpush3.xpose.msra.mxu1 %v5160_v28  ;;  %v4711_v28 = vpop.permute.xlu0 %4710 }
 0x590   :  { %12876 = vmatprep.subr.mxu0 %v17293_v22  ;;  %12936 = vmatprep.subr.mxu1 %v5167_v41  ;;  %v4772_v36 = vsel %vm21084_vm14, %v4711_v28, 0  ;;  %vm21091_vm14 = vmmov %vm21039_vm1 }
 0x593   :  { %12877 = vmatpush3.xpose.msra.mxu0 %v17293_v22  ;;  %12937 = vmatpush3.xpose.msra.mxu1 %v5167_v41  ;;  %v4910_v41 = vsub.f32 %v17365_v1, %v21082_v55  ;;  %v17425_v55 = vsub.f32 %v4766_v25, %v17400_v19  ;;  %v17438_v25 = vand.u32 4294901760, %v4772_v36 }
 0x594   :  { %12878 = vmatprep.subr.mxu0 %v17306_v54  ;;  %13018 = vmatprep.subr.mxu1 %v17040_v34 }
 0x595   :  { %v4911_v20 = vand.u32 4294901760, %v4910_v41  ;;  %v17464_v60 = vsub.f32 %v4772_v36, %v17438_v25 }
 0x596   :  { %12939 = vmatmul.mubr.f32.vlgmr.msra.gmra.mxu1 %v17356_v12  ;;  %v4715_v12 = vpop.permute.xlu0 %4714 }
 0x597   :  { %12879 = vmatpush3.xpose.msra.mxu0 %v17306_v54  ;;  %12941 = vmatprep.mubr.f32.mxu1 %v17359_v38  ;;  %v21083_v38 = vand.u32 4294901760, %v17372_v45  ;;  %v4776_v28 = vsel %vm21039_vm1, %v4715_v12, 0  ;;  %v17457_v12 = vsub.f32 %v4770_v50, %v17434_v21 }
 0x598   :  { %13019 = vmatpush3.xpose.msra.mxu1 %v17040_v34  ;;  %12880 = vmatprep.subr.mxu0 %v17329_v29 }
 0x599   :  { %13020 = vmatprep.subr.mxu1 %v17057_v6  ;;  %v4920_v43 = vsub.f32 %v17372_v45, %v21083_v38  ;;  %v21085_v38 = vand.u32 4294901760, %v17383_v58 }
 0x59a   :  { %12942 = vmatmul.mubr.f32.gmra.mxu1 %v17368_v62  ;;  %v4717_v62 = vpop.permute.xlu1 %4716  ;;  %v4719_v4 = vpop.permute.xlu0 %4718 }
 0x59b   :  { %12881 = vmatpush3.xpose.msra.mxu0 %v17329_v29  ;;  %12944 = vmatprep.mubr.f32.mxu1 %v17374_v11  ;;  %v4930_v24 = vsub.f32 %v17383_v58, %v21085_v38  ;;  %v4774_v11 = vsel %vm21086_vm8, %v4713_v31, 0  ;;  %v4921_v3 = vand.u32 4294901760, %v4920_v43  ;;  %v4940_v38 = vsub.f32 %v17391_v13, %v21087_v10  ;;  %vm21092_vm8 = vmmov %vm21039_vm1 }
 0x59c   :  { %13021 = vmatpush3.xpose.msra.mxu1 %v17057_v6  ;;  %12962 = vmatprep.subr.mxu0 %v17055_v47  ;;  %v21088_v31 = vand.u32 4294901760, %v17396_v2  ;;  %v4950_v10 = vsub.f32 %v17406_v48, %v21089_v26  ;;  %v4778_v43 = vsel %vm21091_vm14, %v4717_v62, 0  ;;  %v4780_v50 = vsel %vm21092_vm8, %v4719_v4, 0  ;;  %vm21241_vm14 = vmand %vm15991_vm2, %vm15996_vm3 }
 0x59d   :  { %13022 = vmatprep.subr.mxu1 %v17078_v52  ;;  %v4941_v26 = vand.u32 4294901760, %v4940_v38  ;;  %v21094_v62 = vand.u32 4294901760, %v17422_v0  ;;  %v20534_v38 = vand.u32 4294901760, %v17457_v12  ;;  %vm21244_vm8 = vmand %vm16006_vm4, %vm16011_vm5 }
 0x59e   :  { %12883 = vmatmul.mubr.f32.vlgmr.msra.gmra.mxu0 %v4911_v20  ;;  %12945 = vmatmul.mubr.f32.gmra.mxu1 %v17385_v27  ;;  %v4960_v41 = vsub.f32 %v17396_v2, %v21088_v31  ;;  %v17459_v20 = vand.u32 4294901760, %v4774_v11  ;;  %v17466_v31 = vand.u32 4294901760, %v4776_v28 }
 0x59f   :  { %12885 = vmatprep.mubr.f32.mxu0 %v4921_v3  ;;  %12947 = vmatprep.mubr.f32.mxu1 %v17377_v18  ;;  %v4931_v3 = vand.u32 4294901760, %v4930_v24  ;;  %v4721_v18 = vpop.permute.xlu1 %4720  ;;  %v4980_v27 = vsub.f32 %v17422_v0, %v21094_v62 }
 0x5a0   :  { %12963 = vmatpush3.xpose.msra.mxu0 %v17055_v47  ;;  %13023 = vmatpush3.xpose.msra.mxu1 %v17078_v52  ;;  %21090 = vst [vmem:[#allocation60_spill] sm:$0xff] %v17466_v31  ;;  %v21093_v47 = vand.u32 4294901760, %v17425_v55  ;;  %v4961_v24 = vand.u32 4294901760, %v4960_v41  ;;  %v17482_v4 = vsub.f32 %v4774_v11, %v17459_v20  ;;  %v17491_v41 = vand.u32 4294901760, %v4780_v50 }
 0x5a1   :  { %12964 = vmatprep.subr.mxu0 %v17071_v14  ;;  %13024 = vmatprep.subr.mxu1 %v17096_v17  ;;  %v20535_v11 = vand.u32 4294901760, %v17464_v60 }
 0x5a2   :  { %12886 = vmatmul.mubr.f32.gmra.mxu0 %v4931_v3  ;;  %12948 = vmatmul.mubr.f32.gmra.mxu1 %v17400_v19  ;;  %v4970_v36 = vsub.f32 %v17425_v55, %v21093_v47  ;;  %v17484_v3 = vand.u32 4294901760, %v4778_v43  ;;  %v4951_v47 = vand.u32 4294901760, %v4950_v10  ;;  %v20536_v10 = vand.u32 4294901760, %v17482_v4 }
 0x5a3   :  { %12888 = vmatprep.mubr.f32.mxu0 %v4941_v26  ;;  %12950 = vmatprep.mubr.f32.mxu1 %v17398_v9  ;;  %v17489_v26 = vsub.f32 %v4776_v28, %v17466_v31  ;;  %v4782_v9 = vsel %vm21039_vm1, %v4721_v18, 0  ;;  %v4990_v28 = vsub.f32 %v17457_v12, %v20534_v38 }
 0x5a4   :  { %12965 = vmatpush3.xpose.msra.mxu0 %v17071_v14  ;;  %13025 = vmatpush3.xpose.msra.mxu1 %v17096_v17  ;;  %v4971_v14 = vand.u32 4294901760, %v4970_v36  ;;  %v17504_v18 = vsub.f32 %v4778_v43, %v17484_v3  ;;  %v17506_v62 = vand.u32 4294901760, %v4782_v9  ;;  %v4981_v36 = vand.u32 4294901760, %v4980_v27  ;;  %v12548_v38 = vpop.f32.mrf.mxu0 }
 0x5a5   :  { %12966 = vmatprep.subr.mxu0 %v17099_v44  ;;  %13026 = vmatprep.subr.mxu1 %v17122_v15  ;;  %v20539_v43 = vand.u32 4294901760, %v17489_v26 }
 0x5a6   :  { %12889 = vmatmul.mubr.f32.gmra.mxu0 %v4951_v47  ;;  %12951 = vmatmul.mubr.f32.gmra.mxu1 %v17434_v21  ;;  %v5000_v47 = vsub.f32 %v17464_v60, %v20535_v11  ;;  %v17526_v27 = vsub.f32 %v4782_v9, %v17506_v62  ;;  %v4991_v11 = vand.u32 4294901760, %v4990_v28  ;;  %v21097_v28 = vand.u32 4294901760, %v17504_v18 }
 0x5a7   :  { %12891 = vmatprep.mubr.f32.mxu0 %v4961_v24  ;;  %12953 = vmatprep.mubr.f32.mxu1 %v17438_v25  ;;  %v17511_v24 = vsub.f32 %v4780_v50, %v17491_v41 }
 0x5a8   :  { %12967 = vmatpush3.xpose.msra.mxu0 %v17099_v44  ;;  %13027 = vmatpush3.xpose.msra.mxu1 %v17122_v15  ;;  %v5010_v44 = vsub.f32 %v17482_v4, %v20536_v10  ;;  %v5020_v10 = vsub.f32 %v17489_v26, %v20539_v43  ;;  %v5049_v43 = vand.u32 4294901760, %v17526_v27 }
 0x5a9   :  { %12968 = vmatprep.subr.mxu0 %v17115_v39  ;;  %13028 = vmatprep.subr.mxu1 %v17140_v57  ;;  %v5039_v9 = vand.u32 4294901760, %v17511_v24 }
 0x5aa   :  { %12892 = vmatmul.mubr.f32.gmra.mxu0 %v4971_v14  ;;  %12954 = vmatmul.mubr.f32.gmra.mxu1 %v17459_v20 }
 0x5ab   :  { %12894 = vmatprep.mubr.f32.mxu0 %v4981_v36  ;;  %12956 = vmatprep.mubr.f32.mxu1 %v17466_v31  ;;  %v5001_v36 = vand.u32 4294901760, %v5000_v47  ;;  %v17535_v31 = vpop.f32.mrf.mxu0  ;;  %v5030_v47 = vsub.f32 %v17504_v18, %v21097_v28 }
 0x5ac   :  { %12969 = vmatpush3.xpose.msra.mxu0 %v17115_v39  ;;  %13029 = vmatpush3.xpose.msra.mxu1 %v17140_v57  ;;  %v12604_v14 = vpop.f32.mrf.mxu1  ;;  %21095 = vst [vmem:[#allocation64_spill] sm:$0xff] %v17535_v31 }
 0x5ad   :  { %12970 = vmatprep.subr.mxu0 %v17138_v56  ;;  %13030 = vmatprep.subr.mxu1 %v17155_v33  ;;  %v17538_v50 = vadd.f32 %v12604_v14, %v12548_v38  ;;  %v5011_v38 = vand.u32 4294901760, %v5010_v44  ;;  %v5040_v14 = vsub.f32 %v17511_v24, %v5039_v9  ;;  %v5050_v44 = vsub.f32 %v17526_v27, %v5049_v43 }
 0x5ae   :  { %12895 = vmatmul.mubr.f32.gmra.mxu0 %v4991_v11  ;;  %12957 = vmatmul.mubr.f32.gmra.mxu1 %v17484_v3  ;;  %v17541_v39 = vpop.f32.mrf.mxu1  ;;  %v5021_v11 = vand.u32 4294901760, %v5020_v10  ;;  %v5031_v10 = vand.u32 4294901760, %v5030_v47 }
 0x5af   :  { %21096 = vst [vmem:[#allocation66_spill] sm:$0xff] %v17541_v39  ;;  %12897 = vmatprep.mubr.f32.mxu0 %v5001_v36  ;;  %12959 = vmatprep.mubr.f32.mxu1 %v17491_v41  ;;  %v12551_v36 = vpop.f32.mrf.mxu0 }
 0x5b0   :  { %12971 = vmatpush3.xpose.msra.mxu0 %v17138_v56  ;;  %13031 = vmatpush3.xpose.msra.mxu1 %v17155_v33  ;;  %v21098_v56 = vand.u32 4294901760, %v17246_v16 }
 0x5b1   :  { %12972 = vmatprep.subr.mxu0 %v17153_v61  ;;  %13032 = vmatprep.subr.mxu1 %v17174_v46  ;;  %v12607_v39 = vpop.f32.mrf.mxu1 }
 0x5b2   :  { %12898 = vmatmul.mubr.f32.gmra.mxu0 %v5011_v38  ;;  %12960 = vmatmul.mubr.f32.gmra.mxu1 %v17506_v62  ;;  %v17556_v28 = vadd.f32 %v12607_v39, %v12551_v36  ;;  %v5041_v38 = vand.u32 4294901760, %v5040_v14  ;;  %v5051_v39 = vand.u32 4294901760, %v5050_v44 }
 0x5b3   :  { %12900 = vmatprep.mubr.f32.mxu0 %v5021_v11  ;;  %13050 = vmatprep.mubr.f32.mxu1 %v21098_v56 }
 0x5b4   :  { %12973 = vmatpush3.xpose.msra.mxu0 %v17153_v61  ;;  %13033 = vmatpush3.xpose.msra.mxu1 %v17174_v46  ;;  %v17584_v61 = vpop.f32.mrf.mxu1 }
 0x5b5   :  { %12974 = vmatprep.subr.mxu0 %v17172_v8  ;;  %13034 = vmatprep.subr.mxu1 %v17185_v59  ;;  %21099 = vst [vmem:[#allocation67_spill] sm:$0xff] %v17584_v61 }
 0x5b6   :  { %12901 = vmatmul.mubr.f32.gmra.mxu0 %v5031_v10 }
 0x5b7   :  { %12903 = vmatprep.mubr.f32.mxu0 %v5041_v38  ;;  %v21106_v38 = vand.u32 4294901760, %v17365_v1 }
 0x5b8   :  { %12975 = vmatpush3.xpose.msra.mxu0 %v17172_v8  ;;  %13035 = vmatpush3.xpose.msra.mxu1 %v17185_v59 }
 0x5b9   :  { %12976 = vmatprep.subr.mxu0 %v17190_v63  ;;  %13036 = vmatprep.subr.mxu1 %v17212_v7 }
 0x5ba   :  { %12904 = vmatmul.mubr.f32.gmra.mxu0 %v5051_v39 }
 0x5bb   :  { %12994 = vmatprep.mubr.f32.mxu0 %v17246_v16 }
 0x5bc   :  { %12977 = vmatpush3.xpose.msra.mxu0 %v17190_v63  ;;  %13037 = vmatpush3.xpose.msra.mxu1 %v17212_v7 }
 0x5bd   :  { %12978 = vmatprep.subr.mxu0 %v17204_v42  ;;  %13038 = vmatprep.subr.mxu1 %v17225_v37 }
 0x5c0   :  { %12979 = vmatpush3.xpose.msra.mxu0 %v17204_v42  ;;  %13039 = vmatpush3.xpose.msra.mxu1 %v17225_v37  ;;  %v17592_v42 = vpop.f32.mrf.mxu0 }
 0x5c1   :  { %12980 = vmatprep.subr.mxu0 %v17233_v32  ;;  %13040 = vmatprep.subr.mxu1 %v17251_v51  ;;  %21101 = vst [vmem:[#allocation70_spill] sm:$0xff] %v17592_v42 }
 0x5c4   :  { %12981 = vmatpush3.xpose.msra.mxu0 %v17233_v32  ;;  %13041 = vmatpush3.xpose.msra.mxu1 %v17251_v51 }
 0x5c5   :  { %12982 = vmatprep.subr.mxu0 %v17249_v23  ;;  %13042 = vmatprep.subr.mxu1 %v17269_v5 }
 0x5c8   :  { %12983 = vmatpush3.xpose.msra.mxu0 %v17249_v23  ;;  %13043 = vmatpush3.xpose.msra.mxu1 %v17269_v5  ;;  %v12610_v8 = vpop.f32.mrf.mxu1 }
 0x5c9   :  { %12984 = vmatprep.subr.mxu0 %v17272_v30  ;;  %13044 = vmatprep.subr.mxu1 %v17293_v22 }
 0x5ca   :  { %v17590_v63 = vpop.f32.mrf.mxu1 }
 0x5cb   :  { %21100 = vst [vmem:[#allocation68_spill] sm:$0xff] %v17590_v63  ;;  %v12554_v23 = vpop.f32.mrf.mxu0 }
 0x5cc   :  { %12985 = vmatpush3.xpose.msra.mxu0 %v17272_v30  ;;  %13045 = vmatpush3.xpose.msra.mxu1 %v17293_v22  ;;  %v12613_v32 = vpop.f32.mrf.mxu1  ;;  %v17600_v47 = vadd.f32 %v12610_v8, %v12554_v23  ;;  %v21107_v8 = vand.u32 4294901760, %v17372_v45 }
 0x5cd   :  { %12986 = vmatprep.subr.mxu0 %v17291_v49  ;;  %13046 = vmatprep.subr.mxu1 %v17306_v54  ;;  %v17604_v14 = vpop.f32.mrf.mxu0 }
 0x5ce   :  { %v17598_v16 = vpop.f32.mrf.mxu1  ;;  %21103 = vst [vmem:[#allocation24_spill] sm:$0xff] %v17604_v14 }
 0x5cf   :  { %21102 = vst [vmem:[#allocation82_spill] sm:$0xff] %v17598_v16 }
 0x5d0   :  { %12987 = vmatpush3.xpose.msra.mxu0 %v17291_v49  ;;  %13047 = vmatpush3.xpose.msra.mxu1 %v17306_v54  ;;  %v12616_v11 = vpop.f32.mrf.mxu1  ;;  %v12557_v36 = vpop.f32.mrf.mxu0 }
 0x5d1   :  { %12988 = vmatprep.subr.mxu0 %v17309_v35  ;;  %13048 = vmatprep.subr.mxu1 %v17329_v29  ;;  %v17610_v56 = vadd.f32 %v12613_v32, %v12557_v36  ;;  %v21110_v36 = vand.u32 4294901760, %v17383_v58 }
 0x5d2   :  { %v17608_v30 = vpop.f32.mrf.mxu1  ;;  %v17614_v44 = vpop.f32.mrf.mxu0 }
 0x5d3   :  { %21104 = vst [vmem:[#allocation19_spill] sm:$0xff] %v17608_v30  ;;  %21105 = vst [vmem:[#allocation55_spill] sm:$0xff] %v17614_v44 }
 0x5d4   :  { %12989 = vmatpush3.xpose.msra.mxu0 %v17309_v35  ;;  %13049 = vmatpush3.xpose.msra.mxu1 %v17329_v29  ;;  %v12619_v49 = vpop.f32.mrf.mxu1  ;;  %v12560_v10 = vpop.f32.mrf.mxu0 }
 0x5d5   :  { %12990 = vmatprep.subr.mxu0 %v17322_v40  ;;  %13130 = vmatprep.subr.mxu1 %v17040_v34  ;;  %v17620_v39 = vadd.f32 %v12616_v11, %v12560_v10 }
 0x5d6   :  { %v17625_v35 = vpop.f32.mrf.mxu0  ;;  %v17629_v32 = vpop.f32.mrf.mxu1 }
 0x5d7   :  { %13051 = vmatmul.mubr.f32.vlgmr.msra.gmra.mxu1 %v21106_v38  ;;  %21108 = vst [vmem:[#allocation50_spill] sm:$0xff] %v17625_v35  ;;  %21109 = vst [vmem:[#allocation37_spill] sm:$0xff] %v17629_v32 }
 0x5d8   :  { %12991 = vmatpush3.xpose.msra.mxu0 %v17322_v40  ;;  %13053 = vmatprep.mubr.f32.mxu1 %v21107_v8  ;;  %v12563_v23 = vpop.f32.mrf.mxu0  ;;  %v21111_v40 = vand.u32 4294901760, %v17391_v13  ;;  %v12622_v38 = vpop.f32.mrf.mxu1 }
 0x5d9   :  { %13131 = vmatpush3.xpose.msra.mxu1 %v17040_v34  ;;  %12992 = vmatprep.subr.mxu0 %v17339_v53  ;;  %v17634_v11 = vadd.f32 %v12619_v49, %v12563_v23  ;;  %v21113_v34 = vld [vmem:[#allocation44_spill] sm:$0xff]  ;;  %v21114_v49 = vand.u32 4294901760, %v17406_v48 }
 0x5da   :  { %13132 = vmatprep.subr.mxu1 %v17057_v6  ;;  %v17639_v10 = vpop.f32.mrf.mxu0 }
 0x5db   :  { %13054 = vmatmul.mubr.f32.gmra.mxu1 %v21110_v36  ;;  %21112 = vst [vmem:[#allocation84_spill] sm:$0xff] %v17639_v10  ;;  %v21117_v36 = vld [vmem:[#allocation22_spill] sm:$0xff] }
 0x5dc   :  { %12993 = vmatpush3.xpose.msra.mxu0 %v17339_v53  ;;  %13056 = vmatprep.mubr.f32.mxu1 %v21111_v40  ;;  %v12566_v8 = vpop.f32.mrf.mxu0  ;;  %v21115_v53 = vand.u32 4294901760, %v17396_v2 }
 0x5dd   :  { %13133 = vmatpush3.xpose.msra.mxu1 %v17057_v6  ;;  %13074 = vmatprep.subr.mxu0 %v21113_v34  ;;  %v17647_v23 = vadd.f32 %v12622_v38, %v12566_v8  ;;  %v17654_v6 = vpop.f32.mrf.mxu1 }
 0x5de   :  { %13134 = vmatprep.subr.mxu1 %v17078_v52  ;;  %21116 = vst [vmem:[#allocation44_spill] sm:$0xff] %v17654_v6 }
 0x5df   :  { %12995 = vmatmul.mubr.f32.vlgmr.msra.gmra.mxu0 %v17365_v1  ;;  %13057 = vmatmul.mubr.f32.gmra.mxu1 %v21114_v49  ;;  %v21118_v1 = vand.u32 4294901760, %v17425_v55  ;;  %v21126_v49 = vld [vmem:[#allocation45_spill] sm:$0xff] }
 0x5e0   :  { %12997 = vmatprep.mubr.f32.mxu0 %v17372_v45  ;;  %13059 = vmatprep.mubr.f32.mxu1 %v21115_v53  ;;  %v21119_v45 = vand.u32 4294901760, %v17422_v0  ;;  %v21128_v53 = vand.u32 4294901760, %v17489_v26 }
 0x5e1   :  { %13075 = vmatpush3.xpose.msra.mxu0 %v21113_v34  ;;  %13135 = vmatpush3.xpose.msra.mxu1 %v17078_v52  ;;  %v21121_v34 = vld [vmem:[#allocation46_spill] sm:$0xff] }
 0x5e2   :  { %13076 = vmatprep.subr.mxu0 %v21117_v36  ;;  %13136 = vmatprep.subr.mxu1 %v17096_v17 }
 0x5e3   :  { %12998 = vmatmul.mubr.f32.gmra.mxu0 %v17383_v58  ;;  %13060 = vmatmul.mubr.f32.gmra.mxu1 %v21118_v1  ;;  %v12625_v40 = vpop.f32.mrf.mxu1  ;;  %v21122_v58 = vand.u32 4294901760, %v17457_v12 }
 0x5e4   :  { %13000 = vmatprep.mubr.f32.mxu0 %v17391_v13  ;;  %13062 = vmatprep.mubr.f32.mxu1 %v21119_v45  ;;  %v21123_v13 = vand.u32 4294901760, %v17464_v60  ;;  %v21130_v45 = vld [vmem:[#allocation32_spill] sm:$0xff] }
 0x5e5   :  { %13077 = vmatpush3.xpose.msra.mxu0 %v21117_v36  ;;  %13137 = vmatpush3.xpose.msra.mxu1 %v17096_v17  ;;  %v17666_v52 = vpop.f32.mrf.mxu1  ;;  %v17678_v17 = vpop.f32.mrf.mxu0 }
 0x5e6   :  { %21120 = vst [vmem:[#allocation22_spill] sm:$0xff] %v17666_v52  ;;  %13078 = vmatprep.subr.mxu0 %v21121_v34  ;;  %13138 = vmatprep.subr.mxu1 %v17122_v15  ;;  %21124 = vst [vmem:[#allocation46_spill] sm:$0xff] %v17678_v17  ;;  %v21178_v17 = vld [vmem:[#allocation34_spill] sm:$0xff] }
 0x5e7   :  { %13001 = vmatmul.mubr.f32.gmra.mxu0 %v17406_v48  ;;  %13063 = vmatmul.mubr.f32.gmra.mxu1 %v21122_v58  ;;  %v12716_v38 = vpop.f32.mrf.mxu1  ;;  %v21127_v48 = vand.u32 4294901760, %v17482_v4  ;;  %v21133_v58 = vld [vmem:[#allocation51_spill] sm:$0xff] }
 0x5e8   :  { %13003 = vmatprep.mubr.f32.mxu0 %v17396_v2  ;;  %13065 = vmatprep.mubr.f32.mxu1 %v21123_v13 }
 0x5e9   :  { %13079 = vmatpush3.xpose.msra.mxu0 %v21121_v34  ;;  %13139 = vmatpush3.xpose.msra.mxu1 %v17122_v15  ;;  %v17680_v8 = vpop.f32.mrf.mxu1 }
 0x5ea   :  { %21125 = vst [vmem:[#allocation106_spill] sm:$0xff] %v17680_v8  ;;  %13080 = vmatprep.subr.mxu0 %v21126_v49  ;;  %13140 = vmatprep.subr.mxu1 %v17140_v57 }
 0x5eb   :  { %13004 = vmatmul.mubr.f32.gmra.mxu0 %v17425_v55  ;;  %13066 = vmatmul.mubr.f32.gmra.mxu1 %v21127_v48  ;;  %v12569_v2 = vpop.f32.mrf.mxu0  ;;  %v21141_v48 = vld [vmem:[#allocation61_spill] sm:$0xff] }
 0x5ec   :  { %13006 = vmatprep.mubr.f32.mxu0 %v17422_v0  ;;  %13068 = vmatprep.mubr.f32.mxu1 %v21128_v53  ;;  %v17690_v15 = vadd.f32 %v12625_v40, %v12569_v2  ;;  %v12719_v36 = vpop.f32.mrf.mxu1  ;;  %v21132_v0 = vand.u32 4294901760, %v17504_v18  ;;  %v6293_v53 = vpop.permute.xlu1 %6292 }
 0x5ed   :  { %13081 = vmatpush3.xpose.msra.mxu0 %v21126_v49  ;;  %13141 = vmatpush3.xpose.msra.mxu1 %v17140_v57  ;;  %v17694_v1 = vpop.f32.mrf.mxu0 }
 0x5ee   :  { %21129 = vst [vmem:[#allocation45_spill] sm:$0xff] %v17694_v1  ;;  %13082 = vmatprep.subr.mxu0 %v21130_v45  ;;  %13142 = vmatprep.subr.mxu1 %v17155_v33  ;;  %v17698_v55 = vpop.f32.mrf.mxu1 }
 0x5ef   :  { %21131 = vst [vmem:[#allocation32_spill] sm:$0xff] %v17698_v55  ;;  %13007 = vmatmul.mubr.f32.gmra.mxu0 %v17457_v12  ;;  %13069 = vmatmul.mubr.f32.gmra.mxu1 %v21132_v0  ;;  %v12660_v40 = vpop.f32.mrf.mxu0 }
 0x5f0   :  { %13009 = vmatprep.mubr.f32.mxu0 %v17464_v60  ;;  %13071 = vmatprep.mubr.f32.mxu1 %v5039_v9  ;;  %v3848_v57 = vadd.f32 %v12660_v40, %v17538_v50  ;;  %v12722_v34 = vpop.f32.mrf.mxu1  ;;  %v21136_v60 = vld [vmem:[#allocation56_spill] sm:$0xff]  ;;  %v17757_v40 = vand.u32 4294901760, %v6293_v53 }
 0x5f1   :  { %13083 = vmatpush3.xpose.msra.mxu0 %v21130_v45  ;;  %13143 = vmatpush3.xpose.msra.mxu1 %v17155_v33  ;;  %v17711_v12 = vpop.f32.mrf.mxu0  ;;  %v21137_v33 = vld [vmem:[#allocation53_spill] sm:$0xff]  ;;  %v6289_v45 = vpop.permute.xlu1 %6288 }
 0x5f2   :  { %13084 = vmatprep.subr.mxu0 %v21133_v58  ;;  %13144 = vmatprep.subr.mxu1 %v17174_v46  ;;  %21134 = vst [vmem:[#allocation51_spill] sm:$0xff] %v17711_v12  ;;  %v17713_v13 = vpop.f32.mrf.mxu1  ;;  %v17715_v49 = vadd.f32 %v12716_v38, %v3848_v57  ;;  %v21140_v38 = vld [vmem:[#allocation58_spill] sm:$0xff] }
 0x5f3   :  { %21135 = vst [vmem:[#allocation107_spill] sm:$0xff] %v17713_v13  ;;  %13010 = vmatmul.mubr.f32.gmra.mxu0 %v17482_v4  ;;  %13072 = vmatmul.mubr.f32.gmra.mxu1 %v5049_v43 }
 0x5f4   :  { %13012 = vmatprep.mubr.f32.mxu0 %v17489_v26  ;;  %13162 = vmatprep.mubr.f32.mxu1 %v21136_v60 }
 0x5f5   :  { %13085 = vmatpush3.xpose.msra.mxu0 %v21133_v58  ;;  %13145 = vmatpush3.xpose.msra.mxu1 %v17174_v46 }
 0x5f6   :  { %13086 = vmatprep.subr.mxu0 %v21137_v33  ;;  %13146 = vmatprep.subr.mxu1 %v17185_v59  ;;  %v12663_v50 = vpop.f32.mrf.mxu0  ;;  %v12725_v9 = vpop.f32.mrf.mxu1 }
 0x5f7   :  { %13013 = vmatmul.mubr.f32.gmra.mxu0 %v17504_v18  ;;  %v3862_v4 = vadd.f32 %v12663_v50, %v17556_v28 }
 0x5f8   :  { %13015 = vmatprep.mubr.f32.mxu0 %v17511_v24  ;;  %v17729_v43 = vpop.f32.mrf.mxu0  ;;  %v17731_v26 = vpop.f32.mrf.mxu1 }
 0x5f9   :  { %21138 = vst [vmem:[#allocation56_spill] sm:$0xff] %v17729_v43  ;;  %21139 = vst [vmem:[#allocation53_spill] sm:$0xff] %v17731_v26  ;;  %13087 = vmatpush3.xpose.msra.mxu0 %v21137_v33  ;;  %13147 = vmatpush3.xpose.msra.mxu1 %v17185_v59  ;;  %v17735_v46 = vadd.f32 %v12719_v36, %v3862_v4  ;;  %v21144_v36 = vld [vmem:[#allocation63_spill] sm:$0xff]  ;;  %v17770_v33 = vsub.f32 %v6293_v53, %v17757_v40 }
 0x5fa   :  { %13088 = vmatprep.subr.mxu0 %v21140_v38  ;;  %13148 = vmatprep.subr.mxu1 %v17212_v7  ;;  %21145 = vst [vmem:[#allocation63_spill] sm:$0xff] %v17757_v40 }
 0x5fb   :  { %13016 = vmatmul.mubr.f32.gmra.mxu0 %v17526_v27 }
 0x5fc   :  { %13106 = vmatprep.mubr.f32.mxu0 %v21136_v60  ;;  %v12666_v18 = vpop.f32.mrf.mxu0  ;;  %v12728_v24 = vpop.f32.mrf.mxu1  ;;  %v21148_v60 = vld [vmem:[#allocation65_spill] sm:$0xff] }
 0x5fd   :  { %13089 = vmatpush3.xpose.msra.mxu0 %v21140_v38  ;;  %13149 = vmatpush3.xpose.msra.mxu1 %v17212_v7  ;;  %v3876_v28 = vadd.f32 %v12666_v18, %v17600_v47  ;;  %21149 = vst [vmem:[#allocation65_spill] sm:$0xff] %v17770_v33  ;;  %v6287_v38 = vpop.permute.xlu1 %6286 }
 0x5fe   :  { %13090 = vmatprep.subr.mxu0 %v21141_v48  ;;  %13150 = vmatprep.subr.mxu1 %v17225_v37  ;;  %v17746_v59 = vpop.f32.mrf.mxu0  ;;  %v17748_v2 = vpop.f32.mrf.mxu1 }
 0x5ff   :  { %21142 = vst [vmem:[#allocation58_spill] sm:$0xff] %v17746_v59  ;;  %21143 = vst [vmem:[#allocation61_spill] sm:$0xff] %v17748_v2  ;;  %v17750_v27 = vadd.f32 %v12722_v34, %v3876_v28  ;;  %v6291_v34 = vpop.permute.xlu0 %6290 }
 0x600   :  { %v17772_v4 = vand.u32 4294901760, %v6291_v34 }
 0x601   :  { %13091 = vmatpush3.xpose.msra.mxu0 %v21141_v48  ;;  %13151 = vmatpush3.xpose.msra.mxu1 %v17225_v37  ;;  %v17783_v48 = vand.u32 4294901760, %v6289_v45 }
 0x602   :  { %13092 = vmatprep.subr.mxu0 %v21144_v36  ;;  %13152 = vmatprep.subr.mxu1 %v17251_v51  ;;  %v12669_v7 = vpop.f32.mrf.mxu0  ;;  %v12731_v47 = vpop.f32.mrf.mxu1  ;;  %21150 = vst [vmem:[#allocation110_spill] sm:$0xff] %v17772_v4 }
 0x603   :  { %v3890_v0 = vadd.f32 %v12669_v7, %v17610_v56  ;;  %21154 = vst [vmem:[#allocation112_spill] sm:$0xff] %v17783_v48  ;;  %v17791_v7 = vsub.f32 %v6291_v34, %v17772_v4 }
 0x604   :  { %v17759_v57 = vpop.f32.mrf.mxu0  ;;  %v17761_v58 = vpop.f32.mrf.mxu1 }
 0x605   :  { %21146 = vst [vmem:[#allocation108_spill] sm:$0xff] %v17759_v57  ;;  %21147 = vst [vmem:[#allocation109_spill] sm:$0xff] %v17761_v58  ;;  %13093 = vmatpush3.xpose.msra.mxu0 %v21144_v36  ;;  %13153 = vmatpush3.xpose.msra.mxu1 %v17251_v51  ;;  %v17765_v37 = vadd.f32 %v12725_v9, %v3890_v0  ;;  %v21151_v9 = vld [vmem:[#allocation43_spill] sm:$0xff]  ;;  %v17788_v36 = vand.u32 4294901760, %v17770_v33  ;;  %v21158_v0 = vld [vmem:[#allocation49_spill] sm:$0xff]  ;;  %v17814_v31 = vand.u32 4294901760, %v17791_v7 }
 0x606   :  { %13094 = vmatprep.subr.mxu0 %v21148_v60  ;;  %13154 = vmatprep.subr.mxu1 %v17269_v5  ;;  %21156 = vst [vmem:[#allocation114_spill] sm:$0xff] %v17791_v7  ;;  %v21170_v58 = vld [vmem:[#allocation59_spill] sm:$0xff] }
 0x607   :  { %21155 = vst [vmem:[#allocation113_spill] sm:$0xff] %v17788_v36  ;;  %21163 = vst [vmem:[#allocation119_spill] sm:$0xff] %v17814_v31  ;;  %v6562_v52 = vsub.f32 %v17791_v7, %v17814_v31 }
 0x608   :  { %v12672_v56 = vpop.f32.mrf.mxu0  ;;  %v12734_v50 = vpop.f32.mrf.mxu1 }
 0x609   :  { %13095 = vmatpush3.xpose.msra.mxu0 %v21148_v60  ;;  %13155 = vmatpush3.xpose.msra.mxu1 %v17269_v5  ;;  %v3904_v51 = vadd.f32 %v12672_v56, %v17620_v39  ;;  %v6285_v5 = vpop.permute.xlu0 %6284  ;;  %v17795_v39 = vand.u32 4294901760, %v6287_v38  ;;  %v17800_v56 = vsub.f32 %v6289_v45, %v17783_v48 }
 0x60a   :  { %13096 = vmatprep.subr.mxu0 %v21151_v9  ;;  %13156 = vmatprep.subr.mxu1 %v17293_v22  ;;  %v17779_v18 = vpop.f32.mrf.mxu0  ;;  %v17781_v28 = vpop.f32.mrf.mxu1  ;;  %v17803_v8 = vand.u32 4294901760, %v6285_v5 }
 0x60b   :  { %21152 = vst [vmem:[#allocation43_spill] sm:$0xff] %v17779_v18  ;;  %21153 = vst [vmem:[#allocation111_spill] sm:$0xff] %v17781_v28  ;;  %v17785_v53 = vadd.f32 %v12728_v24, %v3904_v51  ;;  %v6283_v51 = vpop.permute.xlu1 %6282 }
 0x60c   :  { %21157 = vst [vmem:[#allocation115_spill] sm:$0xff] %v17795_v39  ;;  %21159 = vst [vmem:[#allocation49_spill] sm:$0xff] %v17800_v56 }
 0x60d   :  { %13097 = vmatpush3.xpose.msra.mxu0 %v21151_v9  ;;  %13157 = vmatpush3.xpose.msra.mxu1 %v17293_v22  ;;  %21160 = vst [vmem:[#allocation116_spill] sm:$0xff] %v17803_v8  ;;  %v6555_v9 = vsub.f32 %v17770_v33, %v17788_v36  ;;  %v17823_v36 = vand.u32 4294901760, %v6283_v51  ;;  %v6281_v33 = vpop.permute.xlu0 %6280 }
 0x60e   :  { %13098 = vmatprep.subr.mxu0 %v21158_v0  ;;  %13158 = vmatprep.subr.mxu1 %v17306_v54  ;;  %v12675_v60 = vpop.f32.mrf.mxu0  ;;  %v12737_v24 = vpop.f32.mrf.mxu1  ;;  %v17836_v1 = vand.u32 4294901760, %v6281_v33 }
 0x60f   :  { %v3918_v34 = vadd.f32 %v12675_v60, %v17634_v11  ;;  %v17819_v11 = vsub.f32 %v6287_v38, %v17795_v39  ;;  %v21165_v60 = vld [vmem:[#allocation54_spill] sm:$0xff] }
 0x610   :  { %v17807_v22 = vpop.f32.mrf.mxu0  ;;  %v17809_v12 = vpop.f32.mrf.mxu1  ;;  %21166 = vst [vmem:[#allocation54_spill] sm:$0xff] %v17823_v36  ;;  %21169 = vst [vmem:[#allocation123_spill] sm:$0xff] %v17836_v1 }
 0x611   :  { %21161 = vst [vmem:[#allocation117_spill] sm:$0xff] %v17807_v22  ;;  %21162 = vst [vmem:[#allocation118_spill] sm:$0xff] %v17809_v12  ;;  %13099 = vmatpush3.xpose.msra.mxu0 %v21158_v0  ;;  %13159 = vmatpush3.xpose.msra.mxu1 %v17306_v54  ;;  %v17816_v45 = vadd.f32 %v12731_v47, %v3918_v34  ;;  %v17826_v12 = vand.u32 4294901760, %v17800_v56  ;;  %v17829_v54 = vsub.f32 %v6285_v5, %v17803_v8  ;;  %v6279_v34 = vpop.permute.xlu1 %6278 }
 0x612   :  { %21164 = vst [vmem:[#allocation120_spill] sm:$0xff] %v17819_v11  ;;  %13100 = vmatprep.subr.mxu0 %v21165_v60  ;;  %13160 = vmatprep.subr.mxu1 %v17329_v29  ;;  %v6556_v0 = vand.u32 4294901760, %v6555_v9  ;;  %v17844_v6 = vand.u32 4294901760, %v17819_v11 }
 0x613   :  { %21167 = vst [vmem:[#allocation121_spill] sm:$0xff] %v17826_v12  ;;  %21168 = vst [vmem:[#allocation122_spill] sm:$0xff] %v17829_v54  ;;  %v17857_v7 = vand.u32 4294901760, %v17829_v54 }
 0x614   :  { %v12678_v28 = vpop.f32.mrf.mxu0  ;;  %v12828_v47 = vpop.f32.mrf.mxu1  ;;  %21173 = vst [vmem:[#allocation125_spill] sm:$0xff] %v17844_v6 }
 0x615   :  { %13101 = vmatpush3.xpose.msra.mxu0 %v21165_v60  ;;  %13161 = vmatpush3.xpose.msra.mxu1 %v17329_v29  ;;  %v3932_v38 = vadd.f32 %v12678_v28, %v17647_v23  ;;  %v17847_v60 = vsub.f32 %v6283_v51, %v17823_v36  ;;  %v6569_v29 = vsub.f32 %v17800_v56, %v17826_v12  ;;  %v21175_v28 = vld [vmem:[#allocation48_spill] sm:$0xff]  ;;  %v6563_v51 = vand.u32 4294901760, %v6562_v52  ;;  %v6275_v32 = vpop.permute.xlu1 %6274 }
 0x616   :  { %13102 = vmatprep.subr.mxu0 %v21170_v58  ;;  %13242 = vmatprep.subr.mxu1 %v6556_v0  ;;  %v17839_v5 = vpop.f32.mrf.mxu0  ;;  %v17841_v9 = vpop.f32.mrf.mxu1  ;;  %21176 = vst [vmem:[#allocation48_spill] sm:$0xff] %v17857_v7  ;;  %v17864_v12 = vsub.f32 %v6281_v33, %v17836_v1  ;;  %v6576_v56 = vsub.f32 %v17819_v11, %v17844_v6  ;;  %v21186_v6 = vld [vmem:[#allocation35_spill] sm:$0xff]  ;;  %v21187_v11 = vld [vmem:[#allocation38_spill] sm:$0xff] }
 0x617   :  { %21171 = vst [vmem:[#allocation59_spill] sm:$0xff] %v17839_v5  ;;  %21172 = vst [vmem:[#allocation124_spill] sm:$0xff] %v17841_v9  ;;  %v17851_v23 = vadd.f32 %v12734_v50, %v3932_v38  ;;  %v6277_v5 = vpop.permute.xlu0 %6276  ;;  %v17859_v9 = vand.u32 4294901760, %v6279_v34  ;;  %v21180_v50 = vld [vmem:[#allocation62_spill] sm:$0xff]  ;;  %v17875_v52 = vand.u32 4294901760, %v17847_v60 }
 0x618   :  { %21174 = vst [vmem:[#allocation126_spill] sm:$0xff] %v17847_v60  ;;  %13163 = vmatmul.mubr.f32.vlgmr.msra.gmra.mxu1 %v21175_v28  ;;  %v17854_v31 = vpop.f32.mrf.mxu1  ;;  %21179 = vst [vmem:[#allocation34_spill] sm:$0xff] %v17864_v12  ;;  %v17877_v33 = vand.u32 4294901760, %v6277_v5 }
 0x619   :  { %21177 = vst [vmem:[#allocation127_spill] sm:$0xff] %v17859_v9  ;;  %13103 = vmatpush3.xpose.msra.mxu0 %v21170_v58  ;;  %13165 = vmatprep.mubr.f32.mxu1 %v21178_v17  ;;  %v12681_v2 = vpop.f32.mrf.mxu0  ;;  %v6570_v58 = vand.u32 4294901760, %v6569_v29  ;;  %21183 = vst [vmem:[#allocation129_spill] sm:$0xff] %v17875_v52  ;;  %v6271_v18 = vpop.permute.xlu1 %6270 }
 0x61a   :  { %13243 = vmatpush3.msra.mxu1 %v6556_v0  ;;  %13104 = vmatprep.subr.mxu0 %v21180_v50  ;;  %v3946_v38 = vadd.f32 %v12681_v2, %v17690_v15  ;;  %v17870_v22 = vpop.f32.mrf.mxu1  ;;  %21184 = vst [vmem:[#allocation130_spill] sm:$0xff] %v17877_v33  ;;  %v6583_v0 = vsub.f32 %v17829_v54, %v17857_v7  ;;  %v17892_v7 = vand.u32 4294901760, %v6275_v32 }
 0x61b   :  { %21181 = vst [vmem:[#allocation62_spill] sm:$0xff] %v17870_v22  ;;  %13244 = vmatprep.subr.mxu1 %v6563_v51  ;;  %v17872_v10 = vpop.f32.mrf.mxu0  ;;  %v17884_v2 = vsub.f32 %v6279_v34, %v17859_v9  ;;  %v6273_v26 = vpop.permute.xlu0 %6272  ;;  %v6590_v34 = vsub.f32 %v17847_v60, %v17875_v52  ;;  %v21196_v52 = vld [vmem:[#allocation47_spill] sm:$0xff] }
 0x61c   :  { %21182 = vst [vmem:[#allocation128_spill] sm:$0xff] %v17872_v10  ;;  %13245 = vmatpush3.msra.mxu1 %v6563_v51  ;;  %v17881_v15 = vadd.f32 %v12737_v24, %v3946_v38  ;;  %v6577_v10 = vand.u32 4294901760, %v6576_v56  ;;  %v17890_v51 = vand.u32 4294901760, %v17864_v12  ;;  %21189 = vst [vmem:[#allocation38_spill] sm:$0xff] %v17892_v7  ;;  %v6584_v56 = vand.u32 4294901760, %v6583_v0 }
 0x61d   :  { %21185 = vst [vmem:[#allocation131_spill] sm:$0xff] %v17884_v2  ;;  %13166 = vmatmul.mubr.f32.gmra.mxu1 %v21186_v6  ;;  %13246 = vmatprep.subr.mxu1 %v6570_v58  ;;  %v12834_v29 = vpop.f32.mrf.mxu1 }
 0x61e   :  { %13105 = vmatpush3.xpose.msra.mxu0 %v21180_v50  ;;  %13168 = vmatprep.mubr.f32.mxu1 %v21187_v11  ;;  %v12772_v22 = vpop.f32.mrf.mxu0  ;;  %21188 = vst [vmem:[#allocation35_spill] sm:$0xff] %v17890_v51  ;;  %v17901_v50 = vsub.f32 %v6277_v5, %v17877_v33  ;;  %v6597_v5 = vsub.f32 %v17864_v12, %v17890_v51  ;;  %v17930_v12 = vand.u32 4294901760, %v6271_v18 }
 0x61f   :  { %13247 = vmatpush3.msra.mxu1 %v6570_v58  ;;  %13186 = vmatprep.subr.mxu0 %v17757_v40  ;;  %v4280_v24 = vadd.f32 %v12772_v22, %v17715_v49  ;;  %v17898_v38 = vpop.f32.mrf.mxu1  ;;  %v17909_v49 = vand.u32 4294901760, %v17884_v2  ;;  %v17911_v22 = vand.u32 4294901760, %v6273_v26 }
 0x620   :  { %21190 = vst [vmem:[#allocation132_spill] sm:$0xff] %v17898_v38  ;;  %21191 = vst [vmem:[#allocation133_spill] sm:$0xff] %v17901_v50  ;;  %13248 = vmatprep.subr.mxu1 %v6577_v10  ;;  %v17903_v54 = vpop.f32.mrf.mxu0  ;;  %v17928_v51 = vand.u32 4294901760, %v17901_v50 }
 0x621   :  { %21192 = vst [vmem:[#allocation134_spill] sm:$0xff] %v17903_v54  ;;  %13249 = vmatpush3.msra.mxu1 %v6577_v10  ;;  %13107 = vmatmul.mubr.f32.vlgmr.msra.gmra.mxu0 %v21175_v28  ;;  %v17906_v58 = vadd.f32 %v12828_v47, %v4280_v24  ;;  %21194 = vst [vmem:[#allocation136_spill] sm:$0xff] %v17909_v49  ;;  %v17917_v54 = vsub.f32 %v6275_v32, %v17892_v7  ;;  %v21198_v10 = vld [vmem:[#allocation42_spill] sm:$0xff]  ;;  %v6591_v47 = vand.u32 4294901760, %v6590_v34 }
 0x622   :  { %21195 = vst [vmem:[#allocation137_spill] sm:$0xff] %v17911_v22  ;;  %13169 = vmatmul.mubr.f32.gmra.mxu1 %v21196_v52  ;;  %13250 = vmatprep.subr.mxu1 %v6584_v56  ;;  %v12775_v0 = vpop.f32.mrf.mxu0  ;;  %v12837_v60 = vpop.f32.mrf.mxu1  ;;  %21201 = vst [vmem:[#allocation139_spill] sm:$0xff] %v17928_v51  ;;  %v6598_v34 = vand.u32 4294901760, %v6597_v5 }
 0x623   :  { %21193 = vst [vmem:[#allocation135_spill] sm:$0xff] %v17906_v58  ;;  %21197 = vst [vmem:[#allocation47_spill] sm:$0xff] %v17917_v54  ;;  %13109 = vmatprep.mubr.f32.mxu0 %v21178_v17  ;;  %13171 = vmatprep.mubr.f32.mxu1 %v21198_v10  ;;  %v4292_v28 = vadd.f32 %v12775_v0, %v17735_v46  ;;  %v6604_v17 = vsub.f32 %v17884_v2, %v17909_v49 }
 0x624   :  { %13187 = vmatpush3.msra.mxu0 %v17757_v40  ;;  %13251 = vmatpush3.msra.mxu1 %v6584_v56  ;;  %v17923_v24 = vpop.f32.mrf.mxu0  ;;  %v17925_v58 = vpop.f32.mrf.mxu1  ;;  %21202 = vst [vmem:[#allocation140_spill] sm:$0xff] %v17930_v12  ;;  %v17939_v46 = vsub.f32 %v6273_v26, %v17911_v22  ;;  %v6611_v26 = vsub.f32 %v17901_v50, %v17928_v51 }
 0x625   :  { %21199 = vst [vmem:[#allocation42_spill] sm:$0xff] %v17923_v24  ;;  %21200 = vst [vmem:[#allocation138_spill] sm:$0xff] %v17925_v58  ;;  %13188 = vmatprep.subr.mxu0 %v17772_v4  ;;  %13252 = vmatprep.subr.mxu1 %v6591_v47  ;;  %v17934_v32 = vadd.f32 %v17854_v31, %v4292_v28  ;;  %v17946_v31 = vand.u32 4294901760, %v17917_v54 }
 0x626   :  { %21204 = vst [vmem:[#allocation142_spill] sm:$0xff] %v17939_v46  ;;  %13189 = vmatpush3.msra.mxu0 %v17772_v4  ;;  %13253 = vmatpush3.msra.mxu1 %v6591_v47  ;;  %v12778_v56 = vpop.f32.mrf.mxu0  ;;  %v12840_v0 = vpop.f32.mrf.mxu1  ;;  %v17956_v47 = vsub.f32 %v6271_v18, %v17930_v12  ;;  %v17964_v49 = vand.u32 4294901760, %v17939_v46 }
 0x627   :  { %21203 = vst [vmem:[#allocation141_spill] sm:$0xff] %v17934_v32  ;;  %13110 = vmatmul.mubr.f32.gmra.mxu0 %v21186_v6  ;;  %13172 = vmatmul.mubr.f32.gmra.mxu1 %v17400_v19  ;;  %v4304_v40 = vadd.f32 %v12778_v56, %v17750_v27  ;;  %21205 = vst [vmem:[#allocation143_spill] sm:$0xff] %v17946_v31  ;;  %v21209_v6 = vld [vmem:[#allocation57_spill] sm:$0xff]  ;;  %v6605_v27 = vand.u32 4294901760, %v6604_v17  ;;  %v6618_v18 = vsub.f32 %v17917_v54, %v17946_v31 }
 0x628   :  { %13190 = vmatprep.subr.mxu0 %v17783_v48  ;;  %13254 = vmatprep.subr.mxu1 %v6598_v34  ;;  %v17951_v28 = vpop.f32.mrf.mxu0  ;;  %v17953_v5 = vpop.f32.mrf.mxu1  ;;  %21208 = vst [vmem:[#allocation146_spill] sm:$0xff] %v17956_v47  ;;  %21211 = vst [vmem:[#allocation147_spill] sm:$0xff] %v17964_v49  ;;  %v17978_v50 = vand.u32 4294901760, %v17956_v47 }
 0x629   :  { %21206 = vst [vmem:[#allocation144_spill] sm:$0xff] %v17951_v28  ;;  %21207 = vst [vmem:[#allocation145_spill] sm:$0xff] %v17953_v5  ;;  %13112 = vmatprep.mubr.f32.mxu0 %v21187_v11  ;;  %13174 = vmatprep.mubr.f32.mxu1 %v21209_v6  ;;  %v17960_v56 = vadd.f32 %v12834_v29, %v4304_v40  ;;  %v6612_v40 = vand.u32 4294901760, %v6611_v26  ;;  %v6619_v26 = vand.u32 4294901760, %v6618_v18 }
 0x62a   :  { %13191 = vmatpush3.msra.mxu0 %v17783_v48  ;;  %13255 = vmatpush3.msra.mxu1 %v6598_v34  ;;  %v12781_v51 = vpop.f32.mrf.mxu0  ;;  %v12843_v29 = vpop.f32.mrf.mxu1  ;;  %21214 = vst [vmem:[#allocation150_spill] sm:$0xff] %v17978_v50 }
 0x62b   :  { %21210 = vst [vmem:[#allocation57_spill] sm:$0xff] %v17960_v56  ;;  %13192 = vmatprep.subr.mxu0 %v17795_v39  ;;  %13256 = vmatprep.subr.mxu1 %v6605_v27  ;;  %v4316_v11 = vadd.f32 %v12781_v51, %v17765_v37  ;;  %v6625_v37 = vsub.f32 %v17939_v46, %v17964_v49 }
 0x62c   :  { %13193 = vmatpush3.msra.mxu0 %v17795_v39  ;;  %13257 = vmatpush3.msra.mxu1 %v6605_v27  ;;  %v17971_v17 = vpop.f32.mrf.mxu0 }
 0x62d   :  { %21212 = vst [vmem:[#allocation148_spill] sm:$0xff] %v17971_v17  ;;  %13113 = vmatmul.mubr.f32.gmra.mxu0 %v21196_v52  ;;  %13175 = vmatmul.mubr.f32.gmra.mxu1 %v17434_v21  ;;  %v17975_v34 = vadd.f32 %v12837_v60, %v4316_v11  ;;  %v17987_v60 = vpop.f32.mrf.mxu1  ;;  %v6632_v11 = vsub.f32 %v17956_v47, %v17978_v50 }
 0x62e   :  { %13194 = vmatprep.subr.mxu0 %v17803_v8  ;;  %13258 = vmatprep.subr.mxu1 %v6612_v40  ;;  %v12784_v51 = vpop.f32.mrf.mxu0  ;;  %21215 = vst [vmem:[#allocation151_spill] sm:$0xff] %v17987_v60 }
 0x62f   :  { %21213 = vst [vmem:[#allocation149_spill] sm:$0xff] %v17975_v34  ;;  %13115 = vmatprep.mubr.f32.mxu0 %v21198_v10  ;;  %13177 = vmatprep.mubr.f32.mxu1 %v17438_v25  ;;  %v4328_v52 = vadd.f32 %v12784_v51, %v17785_v53  ;;  %v6626_v10 = vand.u32 4294901760, %v6625_v37 }
 0x630   :  { %13195 = vmatpush3.msra.mxu0 %v17803_v8  ;;  %13259 = vmatpush3.msra.mxu1 %v6612_v40  ;;  %v17989_v27 = vpop.f32.mrf.mxu0  ;;  %v12846_v40 = vpop.f32.mrf.mxu1 }
 0x631   :  { %21216 = vst [vmem:[#allocation152_spill] sm:$0xff] %v17989_v27  ;;  %13196 = vmatprep.subr.mxu0 %v17823_v36  ;;  %13260 = vmatprep.subr.mxu1 %v6619_v26  ;;  %v17994_v49 = vadd.f32 %v12840_v0, %v4328_v52  ;;  %v21219_v0 = vld [vmem:[#allocation60_spill] sm:$0xff]  ;;  %v6633_v52 = vand.u32 4294901760, %v6632_v11 }
 0x632   :  { %13197 = vmatpush3.msra.mxu0 %v17823_v36  ;;  %13261 = vmatpush3.msra.mxu1 %v6619_v26  ;;  %v12787_v53 = vpop.f32.mrf.mxu0  ;;  %v18011_v37 = vpop.f32.mrf.mxu1 }
 0x633   :  { %21217 = vst [vmem:[#allocation153_spill] sm:$0xff] %v17994_v49  ;;  %13116 = vmatmul.mubr.f32.gmra.mxu0 %v17400_v19  ;;  %13178 = vmatmul.mubr.f32.gmra.mxu1 %v17459_v20  ;;  %v4340_v18 = vadd.f32 %v12787_v53, %v17816_v45  ;;  %21221 = vst [vmem:[#allocation155_spill] sm:$0xff] %v18011_v37 }
 0x634   :  { %13198 = vmatprep.subr.mxu0 %v17836_v1  ;;  %13262 = vmatprep.subr.mxu1 %v6626_v10  ;;  %v18001_v51 = vpop.f32.mrf.mxu0 }
 0x635   :  { %21218 = vst [vmem:[#allocation154_spill] sm:$0xff] %v18001_v51  ;;  %13118 = vmatprep.mubr.f32.mxu0 %v21209_v6  ;;  %13180 = vmatprep.mubr.f32.mxu1 %v21219_v0  ;;  %v18005_v26 = vadd.f32 %v12843_v29, %v4340_v18 }
 0x636   :  { %13199 = vmatpush3.msra.mxu0 %v17836_v1  ;;  %13263 = vmatpush3.msra.mxu1 %v6626_v10  ;;  %v12790_v19 = vpop.f32.mrf.mxu0  ;;  %v12849_v10 = vpop.f32.mrf.mxu1 }
 0x637   :  { %21220 = vst [vmem:[#allocation60_spill] sm:$0xff] %v18005_v26  ;;  %13200 = vmatprep.subr.mxu0 %v17859_v9  ;;  %13264 = vmatprep.subr.mxu1 %v6633_v52  ;;  %v4352_v45 = vadd.f32 %v12790_v19, %v17851_v23 }
 0x638   :  { %13201 = vmatpush3.msra.mxu0 %v17859_v9  ;;  %13265 = vmatpush3.msra.mxu1 %v6633_v52  ;;  %v18013_v6 = vpop.f32.mrf.mxu0 }
 0x639   :  { %21222 = vst [vmem:[#allocation156_spill] sm:$0xff] %v18013_v6  ;;  %13119 = vmatmul.mubr.f32.gmra.mxu0 %v17434_v21  ;;  %13181 = vmatmul.mubr.f32.gmra.mxu1 %v17484_v3  ;;  %v18017_v29 = vadd.f32 %v12846_v40, %v4352_v45 }
 0x63a   :  { %13202 = vmatprep.subr.mxu0 %v17877_v33  ;;  %13121 = vmatprep.mubr.f32.mxu0 %v17438_v25  ;;  %v12793_v11 = vpop.f32.mrf.mxu0  ;;  %v18038_v25 = vpop.f32.mrf.mxu1 }
 0x63b   :  { %21223 = vst [vmem:[#allocation157_spill] sm:$0xff] %v18017_v29  ;;  %13183 = vmatprep.mubr.f32.mxu1 %v17491_v41  ;;  %13203 = vmatpush3.msra.mxu0 %v17877_v33  ;;  %v4364_v23 = vadd.f32 %v12793_v11, %v17881_v15  ;;  %21225 = vst [vmem:[#allocation159_spill] sm:$0xff] %v18038_v25 }
 0x63c   :  { %13204 = vmatprep.subr.mxu0 %v17892_v7  ;;  %v18046_v18 = vpop.f32.mrf.mxu0 }
 0x63d   :  { %13205 = vmatpush3.msra.mxu0 %v17892_v7  ;;  %13184 = vmatmul.mubr.f32.gmra.mxu1 %v17506_v62  ;;  %v18027_v21 = vadd.f32 %v12849_v10, %v4364_v23  ;;  %21226 = vst [vmem:[#allocation160_spill] sm:$0xff] %v18046_v18 }
 0x63e   :  { %13122 = vmatmul.mubr.f32.gmra.mxu0 %v17459_v20  ;;  %13206 = vmatprep.subr.mxu0 %v17911_v22 }
 0x63f   :  { %21224 = vst [vmem:[#allocation158_spill] sm:$0xff] %v18027_v21  ;;  %13124 = vmatprep.mubr.f32.mxu0 %v21219_v0  ;;  %13207 = vmatpush3.msra.mxu0 %v17911_v22 }
 0x640   :  { %13208 = vmatprep.subr.mxu0 %v17930_v12 }
 0x641   :  { %13209 = vmatpush3.msra.mxu0 %v17930_v12 }
 0x642   :  { %13125 = vmatmul.mubr.f32.gmra.mxu0 %v17484_v3 }
 0x643   :  { %13127 = vmatprep.mubr.f32.mxu0 %v17491_v41 }
 0x646   :  { %13128 = vmatmul.mubr.f32.gmra.mxu0 %v17506_v62 }
 0x656   :  { %v18040_v15 = vpop.f32.mrf.mxu1 }
 0x658   :  { %v18042_v20 = vpop.f32.mrf.mxu1 }
 0x65a   :  { %v18044_v53 = vpop.f32.mrf.mxu1 }
 0x65c   :  { %v18048_v40 = vpop.f32.mrf.mxu1 }
 0x65e   :  { %v18050_v0 = vpop.f32.mrf.mxu0  ;;  %v18052_v52 = vpop.f32.mrf.mxu1 }
 0x65f   :  { %v5211_v28 = vadd.f32 %v18040_v15, %v18050_v0 }
 0x660   :  { %v18054_v3 = vpop.f32.mrf.mxu0  ;;  %v18056_v41 = vpop.f32.mrf.mxu1 }
 0x661   :  { %v5205_v63 = vadd.f32 %v18042_v20, %v18054_v3 }
 0x662   :  { %v18058_v62 = vpop.f32.mrf.mxu0  ;;  %v18060_v19 = vpop.f32.mrf.mxu1 }
 0x664   :  { %v18062_v45 = vpop.f32.mrf.mxu0  ;;  %v18064_v11 = vpop.f32.mrf.mxu1 }
 0x665   :  { %v5217_v15 = vadd.f32 %v18048_v40, %v18062_v45 }
 0x666   :  { %v18066_v23 = vpop.f32.mrf.mxu0  ;;  %v12952_v10 = vpop.f32.mrf.mxu1 }
 0x668   :  { %v18068_v50 = vpop.f32.mrf.mxu0  ;;  %v18070_v31 = vpop.f32.mrf.mxu1 }
 0x66a   :  { %v18072_v12 = vpop.f32.mrf.mxu0  ;;  %v12955_v22 = vpop.f32.mrf.mxu1 }
 0x66b   :  { %v5247_v45 = vadd.f32 %v18060_v19, %v18072_v12 }
 0x66c   :  { %v18074_v7 = vpop.f32.mrf.mxu0  ;;  %v18076_v33 = vpop.f32.mrf.mxu1 }
 0x66e   :  { %v12896_v9 = vpop.f32.mrf.mxu0  ;;  %v12958_v46 = vpop.f32.mrf.mxu1 }
 0x66f   :  { %v18078_v47 = vadd.f32 %v12952_v10, %v12896_v9 }
 0x670   :  { %v18080_v1 = vpop.f32.mrf.mxu0  ;;  %v18086_v39 = vpop.f32.mrf.mxu1 }
 0x672   :  { %v12899_v36 = vpop.f32.mrf.mxu0  ;;  %v12961_v25 = vpop.f32.mrf.mxu1 }
 0x673   :  { %v18082_v54 = vadd.f32 %v12955_v22, %v12899_v36 }
 0x674   :  { %v18084_v8 = vpop.f32.mrf.mxu0  ;;  %v18094_v9 = vpop.f32.mrf.mxu1 }
 0x675   :  { %21228 = vst [vmem:[#allocation162_spill] sm:$0xff] %v18094_v9 }
 0x676   :  { %v12902_v2 = vpop.f32.mrf.mxu0 }
 0x677   :  { %v18088_v48 = vadd.f32 %v12958_v46, %v12902_v2 }
 0x678   :  { %v18090_v4 = vpop.f32.mrf.mxu0 }
 0x67a   :  { %v12905_v18 = vpop.f32.mrf.mxu0 }
 0x67b   :  { %v18092_v37 = vadd.f32 %v12961_v25, %v12905_v18 }
 0x67c   :  { %v18096_v60 = vpop.f32.mrf.mxu0 }
 0x67d   :  { %21227 = vst [vmem:[#allocation161_spill] sm:$0xff] %v18092_v37  ;;  %21229 = vst [vmem:[#allocation163_spill] sm:$0xff] %v18096_v60 }
 0x697   :  { %v13052_v10 = vpop.f32.mrf.mxu1 }
 0x699   :  { %v5592_v6 = vpop.f32.mrf.mxu1 }
 0x69b   :  { %v13055_v36 = vpop.f32.mrf.mxu1 }
 0x69d   :  { %v5608_v51 = vpop.f32.mrf.mxu1 }
 0x69f   :  { %v12996_v22 = vpop.f32.mrf.mxu0  ;;  %v18098_v27 = vpop.f32.mrf.mxu1 }
 0x6a0   :  { %v5406_v14 = vadd.f32 %v12996_v22, %v5211_v28 }
 0x6a1   :  { %v5398_v5 = vpop.f32.mrf.mxu0  ;;  %v18100_v46 = vpop.f32.mrf.mxu1 }
 0x6a2   :  { %v5601_v9 = vadd.f32 %v13052_v10, %v5406_v14 }
 0x6a3   :  { %v12999_v2 = vpop.f32.mrf.mxu0  ;;  %v18102_v17 = vpop.f32.mrf.mxu1 }
 0x6a5   :  { %v5412_v58 = vpop.f32.mrf.mxu0  ;;  %v18104_v18 = vpop.f32.mrf.mxu1 }
 0x6a6   :  { %v5413_v20 = vadd.f32 %v5412_v58, %v5217_v15 }
 0x6a7   :  { %v13002_v25 = vpop.f32.mrf.mxu0  ;;  %v18106_v30 = vpop.f32.mrf.mxu1 }
 0x6a9   :  { %v5426_v24 = vpop.f32.mrf.mxu0  ;;  %v18110_v55 = vpop.f32.mrf.mxu1 }
 0x6ab   :  { %v18108_v35 = vpop.f32.mrf.mxu0  ;;  %v18114_v16 = vpop.f32.mrf.mxu1 }
 0x6ac   :  { %21230 = vst [vmem:[#allocation164_spill] sm:$0xff] %v18114_v16 }
 0x6ad   :  { %v18112_v57 = vpop.f32.mrf.mxu0  ;;  %v18118_v43 = vpop.f32.mrf.mxu1 }
 0x6ae   :  { %21231 = vst [vmem:[#allocation165_spill] sm:$0xff] %v18118_v43 }
 0x6af   :  { %v18116_v44 = vpop.f32.mrf.mxu0  ;;  %v18122_v42 = vpop.f32.mrf.mxu1 }
 0x6b0   :  { %21232 = vst [vmem:[#allocation166_spill] sm:$0xff] %v18122_v42  ;;  %v5399_v42 = vadd.f32 %v5398_v5, %v5205_v63  ;;  %v5235_v5 = vadd.f32 %v18052_v52, %v18066_v23 }
 0x6b1   :  { %v18120_v61 = vpop.f32.mrf.mxu0  ;;  %v18126_v29 = vpop.f32.mrf.mxu1 }
 0x6b2   :  { %21233 = vst [vmem:[#allocation167_spill] sm:$0xff] %v18126_v29 }
 0x6b3   :  { %v18124_v21 = vpop.f32.mrf.mxu0  ;;  %v18130_v49 = vpop.f32.mrf.mxu1 }
 0x6b4   :  { %21234 = vst [vmem:[#allocation168_spill] sm:$0xff] %v18130_v49 }
 0x6b5   :  { %v18128_v26 = vpop.f32.mrf.mxu0  ;;  %v18134_v56 = vpop.f32.mrf.mxu1 }
 0x6b6   :  { %21235 = vst [vmem:[#allocation169_spill] sm:$0xff] %v18134_v56  ;;  %v5223_v56 = vadd.f32 %v18044_v53, %v18058_v62  ;;  %v21257_v53 = vld [vmem:[#allocation96_spill] sm:$0xff] }
 0x6b7   :  { %v18132_v34 = vpop.f32.mrf.mxu0 }
 0x6b8   :  { %v5420_v0 = vadd.f32 %v12999_v2, %v5223_v56 }
 0x6b9   :  { %v18136_v38 = vpop.f32.mrf.mxu0 }
 0x6ba   :  { %21236 = vst [vmem:[#allocation170_spill] sm:$0xff] %v18136_v38  ;;  %v5593_v38 = vadd.f32 %v5592_v6, %v5399_v42  ;;  %v5229_v42 = vadd.f32 %v18056_v41, %v18068_v50 }
 0x6bb   :  { %v18140_v59 = vpop.f32.mrf.mxu0 }
 0x6bc   :  { %21237 = vst [vmem:[#allocation171_spill] sm:$0xff] %v18140_v59  ;;  %v5427_v52 = vadd.f32 %v5426_v24, %v5229_v42  ;;  %v5241_v24 = vadd.f32 %v18064_v11, %v18074_v7 }
 0x6bd   :  { %v18144_v49 = vpop.f32.mrf.mxu0 }
 0x6be   :  { %21238 = vst [vmem:[#allocation172_spill] sm:$0xff] %v18144_v49  ;;  %v5617_v49 = vadd.f32 %v13055_v36, %v5420_v0  ;;  %v5441_v19 = vadd.f32 %v18112_v57, %v5241_v24  ;;  %v21250_v0 = vld [vmem:[#allocation91_spill] sm:$0xff] }
 0x6bf   :  { %vm21251_vm5 = vnez %v21250_v0 }
 0x6d8   :  { %v13164_v32 = vpop.f32.mrf.mxu1 }
 0x6da   :  { %v6008_v13 = vpop.f32.mrf.mxu1 }
 0x6dd   :  { %v13167_v29 = vpop.f32.mrf.mxu1 }
 0x6df   :  { %v6020_v37 = vpop.f32.mrf.mxu1 }
 0x6e1   :  { %v13108_v60 = vpop.f32.mrf.mxu0 }
 0x6e2   :  { %v5838_v43 = vadd.f32 %v13108_v60, %v5601_v9  ;;  %v13170_v59 = vpop.f32.mrf.mxu1  ;;  %v21247_v9 = vld [vmem:[#allocation90_spill] sm:$0xff] }
 0x6e3   :  { %v5831_v16 = vpop.f32.mrf.mxu0  ;;  %vm21248_vm3 = vnez %v21247_v9 }
 0x6e4   :  { %v6015_v28 = vadd.f32 %v13164_v32, %v5838_v43  ;;  %v5832_v3 = vadd.f32 %v5831_v16, %v5593_v38  ;;  %v6032_v63 = vpop.f32.mrf.mxu1  ;;  %v5434_v16 = vadd.f32 %v13002_v25, %v5235_v5  ;;  %v5609_v38 = vadd.f32 %v5608_v51, %v5413_v20  ;;  %v21245_v51 = vld [vmem:[#allocation89_spill] sm:$0xff]  ;;  %v21252_v20 = vld [vmem:[#allocation92_spill] sm:$0xff] }
 0x6e5   :  { %vm21246_vm2 = vnez %v21245_v51  ;;  %vm21253_vm1 = vnez %v21252_v20  ;;  %v5641_v5 = vadd.f32 %v18104_v18, %v5441_v19  ;;  %v21276_v51 = vld [vmem:[#allocation170_spill] sm:$0xff]  ;;  %v21290_v20 = vld [vmem:[#allocation161_spill] sm:$0xff] }
 0x6e6   :  { %v6009_v22 = vadd.f32 %v6008_v13, %v5832_v3  ;;  %v18157_v40 = vsel %vm21241_vm14, %v6015_v28, -1e+30  ;;  %vm21249_vm4 = vmand %vm21246_vm2, %vm21248_vm3  ;;  %vm21258_vm2 = vnez %v21257_v53  ;;  %v5265_v13 = vadd.f32 %v18076_v33, %v18084_v8 }
 0x6e7   :  { %v13111_v56 = vpop.f32.mrf.mxu0  ;;  %v13173_v58 = vpop.f32.mrf.mxu1  ;;  %6120 = vmax.xlane.f32.xlu1 %v18157_v40  ;;  %vm21254_vm14 = vmand %vm21251_vm5, %vm21253_vm1 }
 0x6e8   :  { %v5850_v43 = vadd.f32 %v13111_v56, %v5617_v49  ;;  %v18167_v60 = vsel %vm21244_vm8, %v6009_v22, -1e+30  ;;  %v5633_v49 = vadd.f32 %v18098_v27, %v5434_v16  ;;  %v21255_v22 = vld [vmem:[#allocation95_spill] sm:$0xff] }
 0x6e9   :  { %v5843_v6 = vpop.f32.mrf.mxu0  ;;  %6118 = vmax.xlane.f32.xlu0 %v18167_v60  ;;  %v6044_v50 = vpop.f32.mrf.mxu1  ;;  %vm21256_vm8 = vnez %v21255_v22  ;;  %v21293_v22 = vld [vmem:[#allocation167_spill] sm:$0xff] }
 0x6ea   :  { %v6027_v62 = vadd.f32 %v13167_v29, %v5850_v43  ;;  %v5844_v41 = vadd.f32 %v5843_v6, %v5609_v38  ;;  %v5448_v29 = vadd.f32 %v18108_v35, %v5247_v45  ;;  %vm21259_vm3 = vmand %vm21256_vm8, %vm21258_vm2  ;;  %v21265_v43 = vld [vmem:[#allocation97_spill] sm:$0xff]  ;;  %v21267_v38 = vld [vmem:[#allocation98_spill] sm:$0xff]  ;;  %v5476_v6 = vadd.f32 %v18124_v21, %v18082_v54 }
 0x6eb   :  { %vm21268_vm8 = vnez %v21267_v38  ;;  %v5469_v45 = vadd.f32 %v18128_v26, %v5265_v13  ;;  %v5277_v54 = vadd.f32 %v18086_v39, %v18090_v4  ;;  %v21279_v26 = vld [vmem:[#allocation102_spill] sm:$0xff]  ;;  %v21282_v39 = vld [vmem:[#allocation165_spill] sm:$0xff]  ;;  %v21300_v38 = vld [vmem:[#allocation168_spill] sm:$0xff] }
 0x6ec   :  { %v6021_v23 = vadd.f32 %v6020_v37, %v5844_v41  ;;  %v18178_v10 = vsel %vm21249_vm4, %v6027_v62, -1e+30  ;;  %v5625_v37 = vadd.f32 %v18100_v46, %v5427_v52  ;;  %v5649_v11 = vadd.f32 %v18102_v17, %v5448_v29  ;;  %v21262_v17 = vld [vmem:[#allocation94_spill] sm:$0xff]  ;;  %v21270_v62 = vld [vmem:[#allocation99_spill] sm:$0xff] }
 0x6ed   :  { %v13114_v36 = vpop.f32.mrf.mxu0  ;;  %6124 = vmax.xlane.f32.xlu0 %v18178_v10  ;;  %v13176_v12 = vpop.f32.mrf.mxu1  ;;  %v5253_v46 = vadd.f32 %v18070_v31, %v18080_v1  ;;  %vm21263_vm5 = vnez %v21262_v17  ;;  %v5483_v9 = vadd.f32 %v21276_v51, %v5277_v54 }
 0x6ee   :  { %v5862_v2 = vadd.f32 %v13114_v36, %v5633_v49  ;;  %v18191_v28 = vsel %vm21254_vm14, %v6021_v23, -1e+30  ;;  %vm21266_vm14 = vnez %v21265_v43  ;;  %v21275_v23 = vld [vmem:[#allocation164_spill] sm:$0xff] }
 0x6ef   :  { %v5855_v27 = vpop.f32.mrf.mxu0  ;;  %v6056_v35 = vpop.f32.mrf.mxu1  ;;  %vm21269_vm2 = vmand %vm21266_vm14, %vm21268_vm8  ;;  %v5681_v49 = vadd.f32 %v21275_v23, %v5476_v6  ;;  %vm21280_vm14 = vnez %v21279_v26  ;;  %v5689_v53 = vadd.f32 %v21293_v22, %v5483_v9  ;;  %v21320_v9 = vld [vmem:[#allocation31_spill] sm:$0xff] }
 0x6f0   :  { %v6039_v25 = vadd.f32 %v13170_v59, %v5862_v2  ;;  %v5856_v15 = vadd.f32 %v5855_v27, %v5625_v37  ;;  %v5462_v59 = vadd.f32 %v18116_v44, %v18078_v47  ;;  %v5455_v44 = vadd.f32 %v18120_v61, %v5253_v46  ;;  %v21277_v2 = vld [vmem:[#allocation101_spill] sm:$0xff] }
 0x6f1   :  { %6122 = vmax.xlane.f32.xlu0 %v18191_v28 }
 0x6f2   :  { %v6033_v7 = vadd.f32 %v6032_v63, %v5856_v15  ;;  %v21260_v63 = vld [vmem:[#allocation93_spill] sm:$0xff]  ;;  %v5665_v16 = vadd.f32 %v18106_v30, %v5462_v59  ;;  %v5657_v30 = vadd.f32 %v18110_v55, %v5455_v44  ;;  %v5490_v55 = vadd.f32 %v18132_v34, %v18088_v48  ;;  %v21283_v48 = vld [vmem:[#allocation163_spill] sm:$0xff]  ;;  %v21284_v34 = vld [vmem:[#allocation162_spill] sm:$0xff] }
 0x6f3   :  { %v13117_v57 = vpop.f32.mrf.mxu0  ;;  %vm21261_vm4 = vnez %v21260_v63  ;;  %v13179_v18 = vpop.f32.mrf.mxu1  ;;  %v5289_v27 = vadd.f32 %v21284_v34, %v21283_v48  ;;  %v21287_v15 = vld [vmem:[#allocation104_spill] sm:$0xff]  ;;  %v21292_v59 = vld [vmem:[#allocation166_spill] sm:$0xff] }
 0x6f4   :  { %v5874_v3 = vadd.f32 %v13117_v57, %v5649_v11  ;;  %v18205_v14 = vsel %vm21259_vm3, %v6033_v7, -1e+30  ;;  %vm21264_vm1 = vmand %vm21261_vm4, %vm21263_vm5  ;;  %vm21271_vm3 = vnez %v21270_v62  ;;  %v21291_v7 = vld [vmem:[#allocation171_spill] sm:$0xff]  ;;  %v5697_v57 = vadd.f32 %v21292_v59, %v5490_v55  ;;  %v21294_v63 = vld [vmem:[#allocation172_spill] sm:$0xff] }
 0x6f5   :  { %v18212_v1 = vsel %vm21264_vm1, %v6039_v25, -1e+30  ;;  %v5867_v31 = vpop.f32.mrf.mxu0  ;;  %6126 = vmax.xlane.f32.xlu1 %v18205_v14  ;;  %vm21278_vm1 = vnez %v21277_v2  ;;  %v21285_v25 = vld [vmem:[#allocation103_spill] sm:$0xff]  ;;  %v5497_v17 = vadd.f32 %v21294_v63, %v5289_v27  ;;  %v21318_v34 = vld [vmem:[#allocation40_spill] sm:$0xff] }
 0x6f6   :  { %6128 = vmax.xlane.f32.xlu0 %v18212_v1  ;;  %v6051_v47 = vadd.f32 %v13173_v58, %v5874_v3  ;;  %v5868_v42 = vadd.f32 %v5867_v31, %v5641_v5  ;;  %v6068_v58 = vpop.f32.mrf.mxu1  ;;  %vm21281_vm8 = vmand %vm21278_vm1, %vm21280_vm14  ;;  %v21319_v27 = vld [vmem:[#allocation36_spill] sm:$0xff] }
 0x6f8   :  { %v6045_v56 = vadd.f32 %v6044_v50, %v5868_v42  ;;  %v18223_v32 = vsel %vm21269_vm2, %v6051_v47, -1e+30  ;;  %v21272_v50 = vld [vmem:[#allocation100_spill] sm:$0xff]  ;;  %vm21286_vm2 = vnez %v21285_v25  ;;  %v21295_v47 = vld [vmem:[#allocation105_spill] sm:$0xff]  ;;  %v21297_v42 = vld [vmem:[#allocation74_spill] sm:$0xff] }
 0x6f9   :  { %v13120_v61 = vpop.f32.mrf.mxu0  ;;  %vm21273_vm4 = vnez %v21272_v50  ;;  %v13182_v36 = vpop.f32.mrf.mxu1  ;;  %vm21298_vm1 = vnez %v21297_v42 }
 0x6fa   :  { %6132 = vmax.xlane.f32.xlu0 %v18223_v32  ;;  %v5886_v52 = vadd.f32 %v13120_v61, %v5665_v16  ;;  %vm21274_vm5 = vmand %vm21271_vm3, %vm21273_vm4  ;;  %vm21288_vm3 = vnez %v21287_v15  ;;  %v21302_v61 = vld [vmem:[#allocation75_spill] sm:$0xff] }
 0x6fb   :  { %v18236_v41 = vsel %vm21274_vm5, %v6045_v56, -1e+30  ;;  %v5879_v8 = vpop.f32.mrf.mxu0  ;;  %vm21289_vm4 = vmand %vm21286_vm2, %vm21288_vm3  ;;  %v6080_v3 = vpop.f32.mrf.mxu1  ;;  %vm21296_vm5 = vnez %v21295_v47 }
 0x6fc   :  { %6130 = vmax.xlane.f32.xlu1 %v18236_v41  ;;  %v6063_v33 = vadd.f32 %v13176_v12, %v5886_v52  ;;  %v5880_v21 = vadd.f32 %v5879_v8, %v5657_v30  ;;  %v5673_v12 = vadd.f32 %v21282_v39, %v5469_v45  ;;  %vm21299_vm14 = vmand %vm21296_vm5, %vm21298_vm1  ;;  %v21305_v45 = vld [vmem:[#allocation169_spill] sm:$0xff]  ;;  %vm4617_vm5 = vcmask 457728  }
 0x6fd   :  { %v13185_v52 = vpop.f32.mrf.mxu1  ;;  %v5705_v8 = vadd.f32 %v21305_v45, %v5497_v17  ;;  %vm21308_vm3 = vmand %vm16287_vm11, %vm16297_vm6  ;;  %vm21467_vm1 = vcmask 523264  }
 0x6fe   :  { %v6057_v24 = vadd.f32 %v6056_v35, %v5880_v21  ;;  %v13123_v29 = vpop.f32.mrf.mxu0  ;;  %v18251_v37 = vsel %vm21281_vm8, %v6063_v33, -1e+30  ;;  %v5504_v35 = vadd.f32 %v21291_v7, %v21290_v20  ;;  %vm21303_vm8 = vnez %v21302_v61  ;;  %vm21314_vm6 = vmand %vm16348_vm13, %vm16353_vm15 }
 0x6ff   :  { %v5898_v4 = vadd.f32 %v13123_v29, %v5681_v49  ;;  %6136 = vmax.xlane.f32.xlu0 %v18251_v37  ;;  %vm21304_vm2 = vmand %vm16253_vm9, %vm21303_vm8  ;;  %vm4608_vm13 = vcmask 261120   ;;  %vm4611_vm15 = vcmask 326656  }
 0x700   :  { %v5891_v19 = vpop.f32.mrf.mxu0  ;;  %v18262_v0 = vsel %vm21289_vm4, %v6057_v24, -1e+30  ;;  %v5713_v13 = vadd.f32 %v21300_v38, %v5504_v35  ;;  %vm21311_vm9 = vmand %vm16309_vm12, %vm16328_vm10  ;;  %v6092_v24 = vpop.f32.mrf.mxu1  ;;  %vm4605_vm10 = vcmask 195584   ;;  %vm4614_vm4 = vcmask 392192  }
 0x701   :  { %v6075_v11 = vadd.f32 %v13179_v18, %v5898_v4  ;;  %v5892_v46 = vadd.f32 %v5891_v19, %v5673_v12  ;;  %6134 = vmax.xlane.f32.xlu1 %v18262_v0  ;;  %vm21317_vm11 = vmand %vm16371_vm0, %vm16376_vm7  ;;  %vm21459_vm0 = vcmask 64512   ;;  %vm4602_vm7 = vcmask 130048  }
 0x702   :  { %v13126_v5 = vpop.f32.mrf.mxu0  ;;  %vm21465_vm12 = vmmov %vm21459_vm0 }
 0x703   :  { %v6069_v31 = vadd.f32 %v6068_v58, %v5892_v46  ;;  %v5910_v44 = vadd.f32 %v13126_v5, %v5697_v57  ;;  %v18275_v56 = vsel %vm21299_vm14, %v6075_v11, -1e+30  ;;  %vm21469_vm14 = vmmov %vm21467_vm1 }
 0x704   :  { %v5903_v18 = vpop.f32.mrf.mxu0  ;;  %6140 = vmax.xlane.f32.xlu0 %v18275_v56  ;;  %vm21496_vm8 = vmmov %vm21459_vm0 }
 0x705   :  { %v6087_v16 = vadd.f32 %v13182_v36, %v5910_v44  ;;  %v5904_v43 = vadd.f32 %v5903_v18, %v5689_v53  ;;  %v6112_v58 = vsel %vm21304_vm2, %v6069_v31, -1e+30  ;;  %vm21497_vm2 = vmmov %vm21459_vm0 }
 0x706   :  { %v13129_v30 = vpop.f32.mrf.mxu0  ;;  %6138 = vmax.xlane.f32.xlu1 %v6112_v58 }
 0x707   :  { %v6081_v62 = vadd.f32 %v6080_v3, %v5904_v43  ;;  %v5922_v50 = vadd.f32 %v13129_v30, %v5713_v13  ;;  %v18290_v21 = vsel %vm21308_vm3, %v6087_v16, -1e+30  ;;  %vm21498_vm3 = vmmov %vm21467_vm1 }
 0x708   :  { %v5915_v55 = vpop.f32.mrf.mxu0  ;;  %6144 = vmax.xlane.f32.xlu0 %v18290_v21 }
 0x709   :  { %v6099_v23 = vadd.f32 %v13185_v52, %v5922_v50  ;;  %v5916_v49 = vadd.f32 %v5915_v55, %v5705_v8  ;;  %v6114_v36 = vsel %vm21311_vm9, %v6081_v62, -1e+30  ;;  %vm21499_vm9 = vmmov %vm21467_vm1 }
 0x70a   :  { %6142 = vmax.xlane.f32.xlu1 %v6114_v36 }
 0x70b   :  { %v6093_v29 = vadd.f32 %v6092_v24, %v5916_v49  ;;  %v18303_v4 = vsel %vm21314_vm6, %v6099_v23, -1e+30  ;;  %vm21522_vm6 = vmmov %vm21467_vm1 }
 0x70c   :  { %6148 = vmax.xlane.f32.xlu0 %v18303_v4 }
 0x70d   :  { %v6116_v48 = vsel %vm21317_vm11, %v6093_v29, -1e+30  ;;  %vm21523_vm11 = vmmov %vm21467_vm1 }
 0x70e   :  { %6146 = vmax.xlane.f32.xlu1 %v6116_v48 }
 0x71f   :  { %6266 = vrot.lane.b32.xlu1 %v21318_v34, %s14383_s30 }
 0x722   :  { %6268 = vrot.lane.b32.xlu0 %v21319_v27, %s14383_s30 }
 0x770   :  { %v6121_v19 = vpop.xlane.xlu1 %6120 }
 0x771   :  { %v6151_v25 = vsub.f32 %v18157_v40, %v6121_v19 }
 0x772   :  { %v6119_v15 = vpop.xlane.xlu0 %6118 }
 0x773   :  { %v6168_v20 = vmul.f32 1.442695, %v6151_v25  ;;  %v6150_v7 = vsub.f32 %v18167_v60, %v6119_v15 }
 0x775   :  { %14136 = vpow2.f32 %v6168_v20  ;;  %v6166_v35 = vmul.f32 1.442695, %v6150_v7 }
 0x776   :  { %v18317_v11 = vpop.xlane.xlu0 %6124 }
 0x777   :  { %14138 = vpow2.f32 %v6166_v35  ;;  %v6153_v34 = vsub.f32 %v18178_v10, %v18317_v11  ;;  %v21321_v10 = vld [vmem:[#allocation24_spill] sm:$0xff] }
 0x778   :  { %v21322_v11 = vld [vmem:[#allocation68_spill] sm:$0xff] }
 0x779   :  { %v6172_v19 = vmul.f32 1.442695, %v6153_v34 }
 0x77a   :  { %v6123_v46 = vpop.xlane.xlu0 %6122 }
 0x77b   :  { %v6152_v59 = vsub.f32 %v18191_v28, %v6123_v46  ;;  %v3671_v46 = vadd.f32 %v21322_v11, %v21321_v10  ;;  %v21345_v11 = vld [vmem:[#allocation43_spill] sm:$0xff] }
 0x77d   :  { %v6170_v57 = vmul.f32 1.442695, %v6152_v59  ;;  %v21323_v59 = vld [vmem:[#allocation58_spill] sm:$0xff] }
 0x77e   :  { %v6127_v3 = vpop.xlane.xlu1 %6126 }
 0x77f   :  { %v18320_v5 = vpop.xlane.xlu0 %6128  ;;  %14140 = vpow2.f32 %v6170_v57  ;;  %v6154_v22 = vsub.f32 %v18205_v14, %v6127_v3  ;;  %v3869_v57 = vadd.f32 %v21323_v59, %v3671_v46  ;;  %v21346_v59 = vld [vmem:[#allocation53_spill] sm:$0xff] }
 0x780   :  { %v6155_v25 = vsub.f32 %v18212_v1, %v18320_v5  ;;  %v21324_v5 = vld [vmem:[#allocation107_spill] sm:$0xff] }
 0x781   :  { %v6174_v40 = vmul.f32 1.442695, %v6154_v22  ;;  %v4067_v22 = vadd.f32 %v21324_v5, %v3869_v57 }
 0x782   :  { %v18323_v53 = vpop.eup %14136  ;;  %v6176_v15 = vmul.f32 1.442695, %v6155_v25 }
 0x783   :  { %v18325_v63 = vpop.xlane.xlu0 %6132  ;;  %14142 = vpow2.f32 %v6174_v40  ;;  %6200 = vadd.xlane.f32.xlu0 %v18323_v53 }
 0x784   :  { %v18329_v31 = vpop.eup %14138  ;;  %v6157_v20 = vsub.f32 %v18223_v32, %v18325_v63  ;;  %v21325_v63 = vld [vmem:[#allocation83_spill] sm:$0xff] }
 0x785   :  { %v6131_v60 = vpop.xlane.xlu1 %6130 }
 0x786   :  { %v6156_v17 = vsub.f32 %v18236_v41, %v6131_v60  ;;  %v6180_v7 = vmul.f32 1.442695, %v6157_v20  ;;  %v21326_v60 = vld [vmem:[#allocation144_spill] sm:$0xff]  ;;  %v21343_v20 = vld [vmem:[#allocation19_spill] sm:$0xff] }
 0x787   :  { %6198 = vadd.xlane.f32.xlu0 %v18329_v31 }
 0x788   :  { %v6178_v28 = vmul.f32 1.442695, %v6156_v17  ;;  %v18332_v44 = vpop.xlane.xlu0 %6136  ;;  %v4298_v17 = vadd.f32 %v21326_v60, %v4067_v22  ;;  %v21349_v22 = vld [vmem:[#allocation62_spill] sm:$0xff]  ;;  %v21351_v60 = vld [vmem:[#allocation117_spill] sm:$0xff] }
 0x789   :  { %v6159_v35 = vsub.f32 %v18251_v37, %v18332_v44  ;;  %v21327_v44 = vld [vmem:[#allocation141_spill] sm:$0xff] }
 0x78a   :  { %14144 = vpow2.f32 %v6178_v28  ;;  %v6135_v14 = vpop.xlane.xlu1 %6134 }
 0x78b   :  { %v6158_v47 = vsub.f32 %v18262_v0, %v6135_v14  ;;  %v6184_v3 = vmul.f32 1.442695, %v6159_v35  ;;  %v21344_v35 = vld [vmem:[#allocation42_spill] sm:$0xff] }
 0x78c   :  { %v18335_v42 = vpop.eup %14140 }
 0x78d   :  { %v6182_v18 = vmul.f32 1.442695, %v6158_v47  ;;  %v18337_v16 = vpop.xlane.xlu0 %6140  ;;  %6202 = vadd.xlane.f32.xlu1 %v18335_v42 }
 0x78e   :  { %v6161_v1 = vsub.f32 %v18275_v56, %v18337_v16 }
 0x78f   :  { %14146 = vpow2.f32 %v6182_v18  ;;  %v6139_v41 = vpop.xlane.xlu1 %6138 }
 0x790   :  { %v18340_v43 = vpop.eup %14142  ;;  %v6160_v38 = vsub.f32 %v6112_v58, %v6139_v41  ;;  %v6188_v40 = vmul.f32 1.442695, %v6161_v1  ;;  %v21348_v1 = vld [vmem:[#allocation37_spill] sm:$0xff] }
 0x791   :  { %v18342_v13 = vpop.xlane.xlu0 %6144  ;;  %6206 = vadd.xlane.f32.xlu1 %v18340_v43 }
 0x792   :  { %v6186_v6 = vmul.f32 1.442695, %v6160_v38  ;;  %v6163_v32 = vsub.f32 %v18290_v21, %v18342_v13  ;;  %v21328_v21 = vld [vmem:[#allocation132_spill] sm:$0xff]  ;;  %v21330_v38 = vld [vmem:[#allocation149_spill] sm:$0xff] }
 0x793   :  { %v6143_v61 = vpop.xlane.xlu1 %6142  ;;  %v4475_v47 = vadd.f32 %v21328_v21, %v4298_v17  ;;  %v21354_v21 = vld [vmem:[#allocation44_spill] sm:$0xff] }
 0x794   :  { %14148 = vpow2.f32 %v6186_v6  ;;  %v6162_v0 = vsub.f32 %v6114_v36, %v6143_v61  ;;  %v6192_v28 = vmul.f32 1.442695, %v6163_v32  ;;  %v21331_v6 = vld [vmem:[#allocation153_spill] sm:$0xff]  ;;  %v21350_v32 = vld [vmem:[#allocation148_spill] sm:$0xff] }
 0x795   :  { %v18345_v52 = vpop.xlane.xlu0 %6148 }
 0x796   :  { %v6190_v62 = vmul.f32 1.442695, %v6162_v0  ;;  %v6165_v56 = vsub.f32 %v18303_v4, %v18345_v52  ;;  %v21329_v4 = vld [vmem:[#allocation57_spill] sm:$0xff]  ;;  %v21332_v0 = vld [vmem:[#allocation60_spill] sm:$0xff] }
 0x797   :  { %v18347_v30 = vpop.eup %14144  ;;  %v6147_v50 = vpop.xlane.xlu1 %6146 }
 0x798   :  { %6210 = vadd.xlane.f32.xlu1 %v18347_v30  ;;  %14150 = vpow2.f32 %v6190_v62  ;;  %v6164_v45 = vsub.f32 %v6116_v48, %v6147_v50  ;;  %v6196_v18 = vmul.f32 1.442695, %v6165_v56  ;;  %v21333_v62 = vld [vmem:[#allocation157_spill] sm:$0xff]  ;;  %v21334_v50 = vld [vmem:[#allocation158_spill] sm:$0xff] }
 0x799   :  { %v6269_v8 = vpop.permute.xlu0 %6268 }
 0x79a   :  { %v6194_v58 = vmul.f32 1.442695, %v6164_v45  ;;  %v18350_v54 = vand.u32 4294901760, %v6269_v8  ;;  %v21335_v45 = vld [vmem:[#allocation70_spill] sm:$0xff] }
 0x79b   :  { %v6267_v33 = vpop.permute.xlu1 %6266 }
 0x79c   :  { %v18352_v55 = vpop.eup %14146  ;;  %14152 = vpow2.f32 %v6194_v58  ;;  %v18354_v23 = vand.u32 4294901760, %v6267_v33  ;;  %v18357_v49 = vsub.f32 %v6269_v8, %v18350_v54  ;;  %13210 = vmatprep.subr.mxu0 %v18350_v54  ;;  %v21336_v8 = vld [vmem:[#allocation67_spill] sm:$0xff] }
 0x79d   :  { %6214 = vadd.xlane.f32.xlu1 %v18352_v55  ;;  %13211 = vmatpush3.msra.mxu0 %v18350_v54  ;;  %14154 = vpow2.f32 %v6172_v19  ;;  %v3659_v58 = vadd.f32 %v21336_v8, %v21335_v45  ;;  %v21341_v19 = vld [vmem:[#allocation32_spill] sm:$0xff]  ;;  %v21359_v8 = vld [vmem:[#allocation45_spill] sm:$0xff] }
 0x79e   :  { %v18363_v51 = vsub.f32 %v6267_v33, %v18354_v23  ;;  %13212 = vmatprep.subr.mxu0 %v18354_v23  ;;  %6264 = vrot.lane.b32.xlu0 %v21320_v9, %s14383_s30  ;;  %v18369_v36 = vand.u32 4294901760, %v18357_v49  ;;  %14156 = vpow2.f32 %v6176_v15  ;;  %v21337_v33 = vld [vmem:[#allocation56_spill] sm:$0xff]  ;;  %v21342_v15 = vld [vmem:[#allocation50_spill] sm:$0xff] }
 0x79f   :  { %13213 = vmatpush3.msra.mxu0 %v18354_v23  ;;  %14158 = vpow2.f32 %v6180_v7  ;;  %v3855_v9 = vadd.f32 %v21337_v33, %v3659_v58  ;;  %v3695_v7 = vadd.f32 %v21343_v20, %v21342_v15  ;;  %v21360_v58 = vld [vmem:[#allocation22_spill] sm:$0xff]  ;;  %v21365_v15 = vld [vmem:[#allocation151_spill] sm:$0xff] }
 0x7a0   :  { %v6639_v24 = vsub.f32 %v18357_v49, %v18369_v36  ;;  %v18375_v29 = vand.u32 4294901760, %v18363_v51  ;;  %14160 = vpow2.f32 %v6184_v3  ;;  %v21347_v3 = vld [vmem:[#allocation84_spill] sm:$0xff]  ;;  %v3731_v33 = vadd.f32 %v21360_v58, %v21359_v8 }
 0x7a1   :  { %v18377_v2 = vpop.eup %14148  ;;  %14162 = vpow2.f32 %v6188_v40  ;;  %v4051_v25 = vadd.f32 %v21341_v19, %v3855_v9  ;;  %v3897_v46 = vadd.f32 %v21345_v11, %v3695_v7  ;;  %v3707_v5 = vadd.f32 %v21348_v1, %v21347_v3  ;;  %v21361_v9 = vld [vmem:[#allocation145_spill] sm:$0xff]  ;;  %v21364_v19 = vld [vmem:[#allocation111_spill] sm:$0xff]  ;;  %v21366_v7 = vld [vmem:[#allocation156_spill] sm:$0xff] }
 0x7a2   :  { %6218 = vadd.xlane.f32.xlu1 %v18377_v2  ;;  %v6640_v26 = vand.u32 4294901760, %v6639_v24  ;;  %v6646_v39 = vsub.f32 %v18363_v51, %v18375_v29  ;;  %14164 = vpow2.f32 %v6192_v28  ;;  %v21338_v24 = vld [vmem:[#allocation55_spill] sm:$0xff]  ;;  %v21352_v28 = vld [vmem:[#allocation61_spill] sm:$0xff] }
 0x7a3   :  { %14166 = vpow2.f32 %v6196_v18  ;;  %v4286_v10 = vadd.f32 %v21344_v35, %v4051_v25  ;;  %v3911_v17 = vadd.f32 %v21351_v60, %v3707_v5  ;;  %v4099_v56 = vadd.f32 %v21352_v28, %v3897_v46  ;;  %v21355_v18 = vld [vmem:[#allocation138_spill] sm:$0xff]  ;;  %v21368_v46 = vld [vmem:[#allocation155_spill] sm:$0xff] }
 0x7a4   :  { %13266 = vmatprep.subr.mxu1 %v6640_v26  ;;  %v6647_v12 = vand.u32 4294901760, %v6646_v39  ;;  %v21370_v1 = vld [vmem:[#allocation159_spill] sm:$0xff] }
 0x7a5   :  { %v18382_v48 = vpop.eup %14150  ;;  %13267 = vmatpush3.msra.mxu1 %v6640_v26  ;;  %v21339_v26 = vld [vmem:[#allocation82_spill] sm:$0xff]  ;;  %v4463_v40 = vadd.f32 %v21349_v22, %v4286_v10 }
 0x7a6   :  { %6222 = vadd.xlane.f32.xlu1 %v18382_v48  ;;  %13268 = vmatprep.subr.mxu1 %v6647_v12  ;;  %v3683_v39 = vadd.f32 %v21339_v26, %v21338_v24  ;;  %v21362_v26 = vld [vmem:[#allocation154_spill] sm:$0xff] }
 0x7a7   :  { %13269 = vmatpush3.msra.mxu1 %v6647_v12  ;;  %v21340_v12 = vld [vmem:[#allocation108_spill] sm:$0xff]  ;;  %v21367_v10 = vld [vmem:[#allocation118_spill] sm:$0xff] }
 0x7a8   :  { %v3883_v34 = vadd.f32 %v21340_v12, %v3683_v39  ;;  %v21363_v12 = vld [vmem:[#allocation128_spill] sm:$0xff] }
 0x7a9   :  { %v18387_v27 = vpop.eup %14152 }
 0x7aa   :  { %6226 = vadd.xlane.f32.xlu1 %v18387_v27  ;;  %v18406_v37 = vpop.eup %14154  ;;  %v4083_v57 = vadd.f32 %v21346_v59, %v3883_v34  ;;  %v3939_v34 = vadd.f32 %v21363_v12, %v3731_v33 }
 0x7ab   :  { %v18414_v14 = vpop.eup %14156 }
 0x7ac   :  { %v18419_v16 = vpop.eup %14158  ;;  %v4147_v11 = vadd.f32 %v21367_v10, %v3939_v34 }
 0x7ad   :  { %v18424_v41 = vpop.eup %14160 }
 0x7ae   :  { %v18429_v13 = vpop.eup %14162 }
 0x7af   :  { %v18434_v61 = vpop.eup %14164 }
 0x7b0   :  { %v18439_v52 = vpop.eup %14166 }
 0x7bb   :  { %6262 = vrot.lane.b32.xlu1 %v21325_v63, %s14383_s30  ;;  %v4310_v63 = vadd.f32 %v21350_v32, %v4083_v57  ;;  %v21369_v57 = vld [vmem:[#allocation160_spill] sm:$0xff] }
 0x7bc   :  { %v4358_v3 = vadd.f32 %v21369_v57, %v4147_v11  ;;  %v21375_v57 = vld [vmem:[#allocation114_spill] sm:$0xff] }
 0x7bd   :  { %6204 = vadd.xlane.f32.xlu0 %v18406_v37 }
 0x7be   :  { %v4535_v5 = vadd.f32 %v21370_v1, %v4358_v3  ;;  %v21376_v1 = vld [vmem:[#allocation49_spill] sm:$0xff] }
 0x7bf   :  { %4548 = vrot.lane.b32.xlu1 %v21327_v44, %s14371_s15  ;;  %v21353_v44 = vld [vmem:[#allocation46_spill] sm:$0xff] }
 0x7c1   :  { %6208 = vadd.xlane.f32.xlu0 %v18414_v14 }
 0x7c3   :  { %4554 = vrot.lane.b32.xlu1 %v4475_v47, %s14384_s3  ;;  %v3719_v47 = vadd.f32 %v21354_v21, %v21353_v44 }
 0x7c5   :  { %6212 = vadd.xlane.f32.xlu0 %v18419_v16 }
 0x7c7   :  { %4556 = vrot.lane.b32.xlu1 %v21329_v4, %s14384_s3  ;;  %v4487_v4 = vadd.f32 %v21355_v18, %v4310_v63 }
 0x7c9   :  { %6216 = vadd.xlane.f32.xlu0 %v18424_v41 }
 0x7cb   :  { %4564 = vrot.lane.b32.xlu1 %v21330_v38, %s14385_s21  ;;  %v21356_v38 = vld [vmem:[#allocation152_spill] sm:$0xff] }
 0x7cd   :  { %6220 = vadd.xlane.f32.xlu0 %v18429_v13 }
 0x7cf   :  { %4572 = vrot.lane.b32.xlu1 %v21331_v6, %s14386_s22  ;;  %v4322_v6 = vadd.f32 %v21356_v38, %v4099_v56 }
 0x7d1   :  { %6224 = vadd.xlane.f32.xlu0 %v18434_v61  ;;  %v4499_v24 = vadd.f32 %v21361_v9, %v4322_v6 }
 0x7d3   :  { %4580 = vrot.lane.b32.xlu1 %v21332_v0, %s14387_s23  ;;  %v21357_v0 = vld [vmem:[#allocation59_spill] sm:$0xff] }
 0x7d5   :  { %6228 = vadd.xlane.f32.xlu0 %v18439_v52 }
 0x7d7   :  { %4588 = vrot.lane.b32.xlu1 %v21333_v62, %s14388_s24  ;;  %v3925_v62 = vadd.f32 %v21357_v0, %v3719_v47 }
 0x7d9   :  { %v4131_v25 = vadd.f32 %v21364_v19, %v3925_v62 }
 0x7db   :  { %4596 = vrot.lane.b32.xlu1 %v21334_v50, %s14389_s25  ;;  %v21358_v50 = vld [vmem:[#allocation109_spill] sm:$0xff]  ;;  %v4346_v35 = vadd.f32 %v21366_v7, %v4131_v25 }
 0x7dc   :  { %v4115_v45 = vadd.f32 %v21358_v50, %v3911_v17 }
 0x7dd   :  { %v4523_v59 = vadd.f32 %v21368_v46, %v4346_v35  ;;  %v21374_v46 = vld [vmem:[#allocation65_spill] sm:$0xff] }
 0x7de   :  { %v4334_v39 = vadd.f32 %v21362_v26, %v4115_v45 }
 0x7e0   :  { %v4511_v20 = vadd.f32 %v21365_v15, %v4334_v39 }
 0x7eb   :  { %4546 = vrot.lane.b32.xlu0 %v4463_v40, %s14371_s15 }
 0x7ef   :  { %4562 = vrot.lane.b32.xlu0 %v4487_v4, %s14385_s21 }
 0x7f3   :  { %4570 = vrot.lane.b32.xlu0 %v4499_v24, %s14386_s22 }
 0x7f7   :  { %4578 = vrot.lane.b32.xlu0 %v4511_v20, %s14387_s23 }
 0x7fb   :  { %4586 = vrot.lane.b32.xlu0 %v4523_v59, %s14388_s24 }
 0x7ff   :  { %4594 = vrot.lane.b32.xlu0 %v4535_v5, %s14389_s25 }
 0x80c   :  { %v6201_v22 = vpop.xlane.xlu0 %6200 }
 0x810   :  { %v6199_v40 = vpop.xlane.xlu0 %6198 }
 0x811   :  { %14168 = vrcp.f32 %v6199_v40  ;;  %v21378_v40 = vld [vmem:[#allocation122_spill] sm:$0xff] }
 0x812   :  { %14170 = vrcp.f32 %v6201_v22  ;;  %v21377_v22 = vld [vmem:[#allocation120_spill] sm:$0xff] }
 0x814   :  { %v6265_v32 = vpop.permute.xlu0 %6264 }
 0x815   :  { %v18488_v63 = vand.u32 4294901760, %v6265_v32 }
 0x816   :  { %v6203_v60 = vpop.xlane.xlu1 %6202 }
 0x817   :  { %v18491_v17 = vsub.f32 %v6265_v32, %v18488_v63  ;;  %14172 = vrcp.f32 %v6203_v60  ;;  %13214 = vmatprep.subr.mxu0 %v18488_v63  ;;  %v21379_v32 = vld [vmem:[#allocation63_spill] sm:$0xff] }
 0x818   :  { %13215 = vmatpush3.msra.mxu0 %v18488_v63 }
 0x819   :  { %v18496_v28 = vand.u32 4294901760, %v18491_v17 }
 0x81a   :  { %v6207_v56 = vpop.xlane.xlu1 %6206 }
 0x81b   :  { %v6653_v44 = vsub.f32 %v18491_v17, %v18496_v28  ;;  %14174 = vrcp.f32 %v6207_v56  ;;  %v21380_v56 = vld [vmem:[#allocation126_spill] sm:$0xff] }
 0x81d   :  { %v6654_v21 = vand.u32 4294901760, %v6653_v44  ;;  %v21381_v44 = vld [vmem:[#allocation110_spill] sm:$0xff] }
 0x81e   :  { %v14169_v47 = vpop.eup %14168 }
 0x81f   :  { %13270 = vmatprep.subr.mxu1 %v6654_v21  ;;  %v18501_v18 = vmul.f32 %v14169_v47, %v18329_v31  ;;  %v14171_v6 = vpop.eup %14170  ;;  %v21383_v47 = vld [vmem:[#allocation112_spill] sm:$0xff] }
 0x820   :  { %13271 = vmatpush3.msra.mxu1 %v6654_v21  ;;  %v18513_v45 = vmul.f32 %v14171_v6, %v18323_v53  ;;  %v21382_v21 = vld [vmem:[#allocation34_spill] sm:$0xff] }
 0x821   :  { %21371 = vst [vmem:[#allocation85_spill] sm:$0xff] %v18501_v18  ;;  %v6211_v4 = vpop.xlane.xlu1 %6210  ;;  %v18504_v38 = vand.u32 4294901760, %v18501_v18 }
 0x822   :  { %21372 = vst [vmem:[#allocation86_spill] sm:$0xff] %v18513_v45  ;;  %v18522_v9 = vand.u32 4294901760, %v18513_v45  ;;  %14176 = vrcp.f32 %v6211_v4 }
 0x823   :  { %13274 = vmatprep.mubr.f32.mxu1 %v18504_v38  ;;  %v18509_v0 = vsub.f32 %v18501_v18, %v18504_v38 }
 0x824   :  { %v14173_v62 = vpop.eup %14172  ;;  %v18529_v53 = vsub.f32 %v18513_v45, %v18522_v9 }
 0x825   :  { %v20614_v50 = vand.u32 4294901760, %v18509_v0  ;;  %v18519_v58 = vmul.f32 %v14173_v62, %v18335_v42 }
 0x826   :  { %v6215_v31 = vpop.xlane.xlu1 %6214  ;;  %v20613_v42 = vand.u32 4294901760, %v18529_v53 }
 0x827   :  { %v6394_v8 = vsub.f32 %v18509_v0, %v20614_v50  ;;  %21373 = vst [vmem:[#allocation87_spill] sm:$0xff] %v18519_v58  ;;  %v18525_v26 = vand.u32 4294901760, %v18519_v58  ;;  %14178 = vrcp.f32 %v6215_v31  ;;  %v21384_v31 = vld [vmem:[#allocation131_spill] sm:$0xff] }
 0x828   :  { %v6404_v25 = vsub.f32 %v18529_v53, %v20613_v42  ;;  %v14175_v4 = vpop.eup %14174 }
 0x829   :  { %v6395_v33 = vand.u32 4294901760, %v6394_v8  ;;  %v18533_v12 = vsub.f32 %v18519_v58, %v18525_v26  ;;  %v21385_v8 = vld [vmem:[#allocation115_spill] sm:$0xff] }
 0x82a   :  { %v6405_v10 = vand.u32 4294901760, %v6404_v25 }
 0x82b   :  { %v6219_v24 = vpop.xlane.xlu1 %6218  ;;  %13218 = vmatprep.mubr.f32.mxu0 %v6395_v33  ;;  %v20612_v19 = vand.u32 4294901760, %v18533_v12  ;;  %v21386_v33 = vld [vmem:[#allocation133_spill] sm:$0xff] }
 0x82d   :  { %v6414_v20 = vsub.f32 %v18533_v12, %v20612_v19 }
 0x82f   :  { %v6223_v39 = vpop.xlane.xlu1 %6222  ;;  %v6415_v11 = vand.u32 4294901760, %v6414_v20  ;;  %v14177_v62 = vpop.eup %14176 }
 0x830   :  { %v18591_v20 = vmul.f32 %v14177_v62, %v18347_v30 }
 0x832   :  { %21389 = vst [vmem:[#allocation89_spill] sm:$0xff] %v18591_v20 }
 0x833   :  { %v18536_v34 = vpop.xlane.xlu1 %6226 }
 0x837   :  { %v6263_v15 = vpop.permute.xlu1 %6262 }
 0x838   :  { %v18545_v7 = vand.u32 4294901760, %v6263_v15 }
 0x83a   :  { %v18548_v35 = vsub.f32 %v6263_v15, %v18545_v7  ;;  %13216 = vmatprep.subr.mxu0 %v18545_v7  ;;  %v18588_v15 = vmul.f32 %v14175_v4, %v18340_v43 }
 0x83b   :  { %13217 = vmatpush3.msra.mxu0 %v18545_v7 }
 0x83c   :  { %13219 = vmatmul.mubr.f32.vlgmr.msra.gmra.mxu0 %v6405_v10  ;;  %13298 = vmatprep.subr.mxu0 %v21374_v46  ;;  %v18554_v59 = vand.u32 4294901760, %v18548_v35  ;;  %21388 = vst [vmem:[#allocation88_spill] sm:$0xff] %v18588_v15  ;;  %v21391_v10 = vld [vmem:[#allocation54_spill] sm:$0xff]  ;;  %v18603_v30 = vand.u32 4294901760, %v18588_v15 }
 0x83d   :  { %13221 = vmatprep.mubr.f32.mxu0 %v6415_v11  ;;  %13299 = vmatpush3.msra.mxu0 %v21374_v46  ;;  %v14179_v11 = vpop.eup %14178  ;;  %v21392_v46 = vld [vmem:[#allocation142_spill] sm:$0xff] }
 0x83e   :  { %13300 = vmatprep.subr.mxu0 %v21375_v57  ;;  %v6660_v3 = vsub.f32 %v18548_v35, %v18554_v59  ;;  %v18624_v4 = vsub.f32 %v18588_v15, %v18603_v30 }
 0x83f   :  { %13301 = vmatpush3.msra.mxu0 %v21375_v57  ;;  %v21393_v57 = vld [vmem:[#allocation123_spill] sm:$0xff] }
 0x840   :  { %13302 = vmatprep.subr.mxu0 %v21376_v1  ;;  %v6661_v5 = vand.u32 4294901760, %v6660_v3  ;;  %v18606_v3 = vand.u32 4294901760, %v18591_v20 }
 0x841   :  { %13303 = vmatpush3.msra.mxu0 %v21376_v1  ;;  %v21395_v1 = vld [vmem:[#allocation127_spill] sm:$0xff] }
 0x842   :  { %13272 = vmatprep.subr.mxu1 %v6661_v5  ;;  %13304 = vmatprep.subr.mxu0 %v21377_v22 }
 0x843   :  { %13273 = vmatpush3.msra.mxu1 %v6661_v5  ;;  %13305 = vmatpush3.msra.mxu0 %v21377_v22  ;;  %v18613_v22 = vmul.f32 %v14179_v11, %v18352_v55  ;;  %v18628_v55 = vsub.f32 %v18591_v20, %v18606_v3 }
 0x844   :  { %13275 = vmatmul.mubr.f32.vlgmr.msra.gmra.mxu1 %v18522_v9  ;;  %13306 = vmatprep.subr.mxu0 %v21378_v40 }
 0x845   :  { %13354 = vmatprep.subr.mxu1 %v21379_v32  ;;  %13277 = vmatprep.mubr.f32.mxu1 %v18525_v26  ;;  %21396 = vst [vmem:[#allocation90_spill] sm:$0xff] %v18613_v22  ;;  %v18638_v62 = vand.u32 4294901760, %v18613_v22 }
 0x846   :  { %13307 = vmatpush3.msra.mxu0 %v21378_v40  ;;  %13355 = vmatpush3.msra.mxu1 %v21379_v32  ;;  %v6205_v60 = vpop.xlane.xlu0 %6204 }
 0x847   :  { %13308 = vmatprep.subr.mxu0 %v21380_v56  ;;  %13356 = vmatprep.subr.mxu1 %v21381_v44  ;;  %14180 = vrcp.f32 %v6205_v60  ;;  %v21397_v60 = vld [vmem:[#allocation130_spill] sm:$0xff] }
 0x848   :  { %14182 = vrcp.f32 %v6219_v24  ;;  %13309 = vmatpush3.msra.mxu0 %v21380_v56  ;;  %13357 = vmatpush3.msra.mxu1 %v21381_v44  ;;  %v21387_v24 = vld [vmem:[#allocation116_spill] sm:$0xff] }
 0x849   :  { %13310 = vmatprep.subr.mxu0 %v21382_v21  ;;  %13358 = vmatprep.subr.mxu1 %v21383_v47 }
 0x84a   :  { %13311 = vmatpush3.msra.mxu0 %v21382_v21  ;;  %13359 = vmatpush3.msra.mxu1 %v21383_v47  ;;  %v6209_v6 = vpop.xlane.xlu0 %6208 }
 0x84b   :  { %13312 = vmatprep.subr.mxu0 %v21384_v31  ;;  %13360 = vmatprep.subr.mxu1 %v21385_v8  ;;  %14184 = vrcp.f32 %v6209_v6  ;;  %v21399_v6 = vld [vmem:[#allocation38_spill] sm:$0xff] }
 0x84c   :  { %14186 = vrcp.f32 %v6223_v39  ;;  %13313 = vmatpush3.msra.mxu0 %v21384_v31  ;;  %13361 = vmatpush3.msra.mxu1 %v21385_v8  ;;  %v21390_v39 = vld [vmem:[#allocation47_spill] sm:$0xff] }
 0x84d   :  { %13314 = vmatprep.subr.mxu0 %v21386_v33  ;;  %13362 = vmatprep.subr.mxu1 %v21387_v24 }
 0x84e   :  { %13315 = vmatpush3.msra.mxu0 %v21386_v33  ;;  %13363 = vmatpush3.msra.mxu1 %v21387_v24  ;;  %v6213_v25 = vpop.xlane.xlu0 %6212 }
 0x84f   :  { %13316 = vmatprep.subr.mxu0 %v21390_v39  ;;  %13364 = vmatprep.subr.mxu1 %v21391_v10  ;;  %14188 = vrcp.f32 %v6213_v25  ;;  %v21401_v25 = vld [vmem:[#allocation137_spill] sm:$0xff] }
 0x850   :  { %14190 = vrcp.f32 %v18536_v34  ;;  %13317 = vmatpush3.msra.mxu0 %v21390_v39  ;;  %13365 = vmatpush3.msra.mxu1 %v21391_v10  ;;  %v21394_v34 = vld [vmem:[#allocation146_spill] sm:$0xff] }
 0x851   :  { %13318 = vmatprep.subr.mxu0 %v21392_v46  ;;  %13366 = vmatprep.subr.mxu1 %v21393_v57 }
 0x852   :  { %13319 = vmatpush3.msra.mxu0 %v21392_v46  ;;  %13367 = vmatpush3.msra.mxu1 %v21393_v57  ;;  %v6217_v43 = vpop.xlane.xlu0 %6216  ;;  %v20619_v46 = vand.u32 4294901760, %v18628_v55 }
 0x853   :  { %13320 = vmatprep.subr.mxu0 %v21394_v34  ;;  %13368 = vmatprep.subr.mxu1 %v21395_v1  ;;  %14192 = vrcp.f32 %v6217_v43  ;;  %v21403_v43 = vld [vmem:[#allocation140_spill] sm:$0xff] }
 0x854   :  { %v14181_v5 = vpop.eup %14180  ;;  %13321 = vmatpush3.msra.mxu0 %v21394_v34  ;;  %13369 = vmatpush3.msra.mxu1 %v21395_v1  ;;  %v6454_v50 = vsub.f32 %v18628_v55, %v20619_v46 }
 0x855   :  { %v14183_v40 = vpop.eup %14182  ;;  %13322 = vmatprep.subr.mxu0 %v18357_v49  ;;  %13370 = vmatprep.subr.mxu1 %v21397_v60  ;;  %v18618_v56 = vmul.f32 %v14181_v5, %v18406_v37 }
 0x856   :  { %13323 = vmatpush3.msra.mxu0 %v18357_v49  ;;  %13371 = vmatpush3.msra.mxu1 %v21397_v60  ;;  %v6221_v21 = vpop.xlane.xlu0 %6220  ;;  %v18641_v31 = vmul.f32 %v14183_v40, %v18377_v2  ;;  %v20617_v2 = vand.u32 4294901760, %v18624_v4  ;;  %v18669_v40 = vsub.f32 %v18613_v22, %v18638_v62 }
 0x857   :  { %21398 = vst [vmem:[#allocation91_spill] sm:$0xff] %v18618_v56  ;;  %13324 = vmatprep.subr.mxu0 %v18363_v51  ;;  %13372 = vmatprep.subr.mxu1 %v21399_v6  ;;  %14194 = vrcp.f32 %v6221_v21  ;;  %v18633_v37 = vand.u32 4294901760, %v18618_v56 }
 0x858   :  { %v14185_v49 = vpop.eup %14184  ;;  %13325 = vmatpush3.msra.mxu0 %v18363_v51  ;;  %13373 = vmatpush3.msra.mxu1 %v21399_v6  ;;  %21400 = vst [vmem:[#allocation92_spill] sm:$0xff] %v18641_v31 }
 0x859   :  { %v14187_v33 = vpop.eup %14186  ;;  %13326 = vmatprep.subr.mxu0 %v18491_v17  ;;  %13374 = vmatprep.subr.mxu1 %v21401_v25  ;;  %v18646_v39 = vmul.f32 %v14185_v49, %v18414_v14  ;;  %v18650_v11 = vsub.f32 %v18618_v56, %v18633_v37 }
 0x85a   :  { %13327 = vmatpush3.msra.mxu0 %v18491_v17  ;;  %13375 = vmatpush3.msra.mxu1 %v21401_v25  ;;  %v6225_v51 = vpop.xlane.xlu0 %6224  ;;  %v18665_v17 = vand.u32 4294901760, %v18641_v31  ;;  %v18672_v21 = vmul.f32 %v14187_v33, %v18382_v48  ;;  %v6434_v33 = vsub.f32 %v18624_v4, %v20617_v2 }
 0x85b   :  { %21402 = vst [vmem:[#allocation95_spill] sm:$0xff] %v18646_v39  ;;  %13328 = vmatprep.subr.mxu0 %v18548_v35  ;;  %13376 = vmatprep.subr.mxu1 %v21403_v43  ;;  %14196 = vrcp.f32 %v6225_v51  ;;  %v18659_v14 = vand.u32 4294901760, %v18646_v39  ;;  %v20615_v34 = vand.u32 4294901760, %v18650_v11  ;;  %v21405_v51 = vld [vmem:[#allocation113_spill] sm:$0xff] }
 0x85c   :  { %v14189_v5 = vpop.eup %14188  ;;  %13329 = vmatpush3.msra.mxu0 %v18548_v35  ;;  %13377 = vmatpush3.msra.mxu1 %v21403_v43  ;;  %21404 = vst [vmem:[#allocation96_spill] sm:$0xff] %v18672_v21  ;;  %v18702_v18 = vand.u32 4294901760, %v18672_v21  ;;  %v18706_v46 = vsub.f32 %v18641_v31, %v18665_v17 }
 0x85d   :  { %v14191_v49 = vpop.eup %14190  ;;  %13378 = vmatprep.subr.mxu1 %v18350_v54  ;;  %13410 = vmatprep.subr.mxu0 %v21405_v51  ;;  %v6424_v35 = vsub.f32 %v18650_v11, %v20615_v34  ;;  %v18680_v19 = vmul.f32 %v14189_v5, %v18419_v16  ;;  %v18684_v42 = vsub.f32 %v18646_v39, %v18659_v14 }
 0x85e   :  { %13278 = vmatmul.mubr.f32.gmra.mxu1 %v18633_v37  ;;  %v6229_v48 = vpop.xlane.xlu0 %6228 }
 0x85f   :  { %21406 = vst [vmem:[#allocation93_spill] sm:$0xff] %v18680_v19  ;;  %13379 = vmatpush3.msra.mxu1 %v18350_v54  ;;  %13280 = vmatprep.mubr.f32.mxu1 %v18603_v30  ;;  %14198 = vrcp.f32 %v6229_v48  ;;  %v6425_v16 = vand.u32 4294901760, %v6424_v35  ;;  %v18696_v5 = vand.u32 4294901760, %v18680_v19  ;;  %v20621_v34 = vand.u32 4294901760, %v18684_v42 }
 0x860   :  { %v14193_v45 = vpop.eup %14192  ;;  %13380 = vmatprep.subr.mxu1 %v18354_v23  ;;  %v18709_v48 = vmul.f32 %v14191_v49, %v18387_v27  ;;  %v6435_v27 = vand.u32 4294901760, %v6434_v33 }
 0x861   :  { %13381 = vmatpush3.msra.mxu1 %v18354_v23  ;;  %13222 = vmatmul.mubr.f32.gmra.mxu0 %v6425_v16  ;;  %v6444_v35 = vsub.f32 %v18684_v42, %v20621_v34  ;;  %v18716_v22 = vmul.f32 %v14193_v45, %v18424_v41  ;;  %v18720_v2 = vsub.f32 %v18680_v19, %v18696_v5  ;;  %v21409_v34 = vand.u32 4294901760, %v18669_v40 }
 0x862   :  { %21407 = vst [vmem:[#allocation94_spill] sm:$0xff] %v18709_v48  ;;  %13382 = vmatprep.subr.mxu1 %v18488_v63  ;;  %13281 = vmatmul.mubr.f32.gmra.mxu1 %v18659_v14  ;;  %v18736_v19 = vand.u32 4294901760, %v18709_v48  ;;  %v6455_v41 = vand.u32 4294901760, %v6454_v50 }
 0x863   :  { %21408 = vst [vmem:[#allocation97_spill] sm:$0xff] %v18716_v22  ;;  %13383 = vmatpush3.msra.mxu1 %v18488_v63  ;;  %13283 = vmatprep.mubr.f32.mxu1 %v18606_v3  ;;  %v6445_v49 = vand.u32 4294901760, %v6444_v35  ;;  %v18727_v16 = vand.u32 4294901760, %v18716_v22  ;;  %v6474_v31 = vsub.f32 %v18669_v40, %v21409_v34  ;;  %v18740_v35 = vsub.f32 %v18672_v21, %v18702_v18 }
 0x864   :  { %v14195_v45 = vpop.eup %14194  ;;  %13384 = vmatprep.subr.mxu1 %v18545_v7  ;;  %13224 = vmatprep.mubr.f32.mxu0 %v6435_v27  ;;  %v21410_v20 = vand.u32 4294901760, %v18720_v2  ;;  %v18766_v15 = vsub.f32 %v18709_v48, %v18736_v19 }
 0x865   :  { %13385 = vmatpush3.msra.mxu1 %v18545_v7  ;;  %13225 = vmatmul.mubr.f32.gmra.mxu0 %v6445_v49  ;;  %v18747_v39 = vmul.f32 %v14195_v45, %v18429_v13  ;;  %v18751_v34 = vsub.f32 %v18716_v22, %v18727_v16  ;;  %v6475_v13 = vand.u32 4294901760, %v6474_v31  ;;  %v21412_v45 = vand.u32 4294901760, %v18706_v46 }
 0x866   :  { %v6464_v27 = vsub.f32 %v18720_v2, %v21410_v20  ;;  %13466 = vmatprep.subr.mxu1 %v21379_v32  ;;  %13284 = vmatmul.mubr.f32.gmra.mxu1 %v18696_v5 }
 0x867   :  { %21411 = vst [vmem:[#allocation98_spill] sm:$0xff] %v18747_v39  ;;  %13286 = vmatprep.mubr.f32.mxu1 %v18638_v62  ;;  %13227 = vmatprep.mubr.f32.mxu0 %v6455_v41  ;;  %v18757_v50 = vand.u32 4294901760, %v18747_v39  ;;  %v20630_v20 = vand.u32 4294901760, %v18751_v34  ;;  %v6494_v21 = vsub.f32 %v18706_v46, %v21412_v45 }
 0x868   :  { %v6465_v49 = vand.u32 4294901760, %v6464_v27  ;;  %v14197_v33 = vpop.eup %14196 }
 0x869   :  { %v6484_v41 = vsub.f32 %v18751_v34, %v20630_v20  ;;  %v18772_v27 = vmul.f32 %v14197_v33, %v18434_v61  ;;  %v18776_v31 = vsub.f32 %v18747_v39, %v18757_v50  ;;  %v6495_v20 = vand.u32 4294901760, %v6494_v21 }
 0x86a   :  { %13228 = vmatmul.mubr.f32.gmra.mxu0 %v6465_v49  ;;  %13287 = vmatmul.mubr.f32.gmra.mxu1 %v18727_v16  ;;  %v21414_v61 = vand.u32 4294901760, %v18740_v35 }
 0x86b   :  { %21413 = vst [vmem:[#allocation99_spill] sm:$0xff] %v18772_v27  ;;  %13230 = vmatprep.mubr.f32.mxu0 %v6475_v13  ;;  %13289 = vmatprep.mubr.f32.mxu1 %v18665_v17  ;;  %v6485_v45 = vand.u32 4294901760, %v6484_v41  ;;  %v18781_v22 = vand.u32 4294901760, %v18772_v27  ;;  %v20633_v49 = vand.u32 4294901760, %v18776_v31 }
 0x86c   :  { %v14199_v48 = vpop.eup %14198  ;;  %v6514_v33 = vsub.f32 %v18740_v35, %v21414_v61 }
 0x86d   :  { %v6504_v13 = vsub.f32 %v18776_v31, %v20633_v49  ;;  %v18792_v41 = vmul.f32 %v14199_v48, %v18439_v52  ;;  %v18796_v56 = vsub.f32 %v18772_v27, %v18781_v22  ;;  %v21416_v49 = vand.u32 4294901760, %v18766_v15 }
 0x86e   :  { %13231 = vmatmul.mubr.f32.gmra.mxu0 %v6485_v45  ;;  %13290 = vmatmul.mubr.f32.gmra.mxu1 %v18757_v50  ;;  %v6515_v39 = vand.u32 4294901760, %v6514_v33 }
 0x86f   :  { %21415 = vst [vmem:[#allocation100_spill] sm:$0xff] %v18792_v41  ;;  %13233 = vmatprep.mubr.f32.mxu0 %v6495_v20  ;;  %13292 = vmatprep.mubr.f32.mxu1 %v18702_v18  ;;  %v6505_v21 = vand.u32 4294901760, %v6504_v13  ;;  %v18801_v61 = vand.u32 4294901760, %v18792_v41  ;;  %v20635_v45 = vand.u32 4294901760, %v18796_v56  ;;  %v6534_v52 = vsub.f32 %v18766_v15, %v21416_v49 }
 0x871   :  { %v6524_v48 = vsub.f32 %v18796_v56, %v20635_v45  ;;  %v18812_v20 = vsub.f32 %v18792_v41, %v18801_v61  ;;  %v6535_v27 = vand.u32 4294901760, %v6534_v52  ;;  %v21419_v52 = vand.u32 4294901760, %v18533_v12 }
 0x872   :  { %13234 = vmatmul.mubr.f32.gmra.mxu0 %v6505_v21  ;;  %13293 = vmatmul.mubr.f32.gmra.mxu1 %v18781_v22  ;;  %v21417_v21 = vand.u32 4294901760, %v18509_v0 }
 0x873   :  { %13236 = vmatprep.mubr.f32.mxu0 %v6515_v39  ;;  %13295 = vmatprep.mubr.f32.mxu1 %v18736_v19  ;;  %v6525_v13 = vand.u32 4294901760, %v6524_v48  ;;  %v6543_v33 = vand.u32 4294901760, %v18812_v20  ;;  %v21418_v39 = vand.u32 4294901760, %v18529_v53  ;;  %v21435_v48 = vand.u32 4294901760, %v18740_v35 }
 0x875   :  { %v6544_v49 = vsub.f32 %v18812_v20, %v6543_v33 }
 0x876   :  { %13237 = vmatmul.mubr.f32.gmra.mxu0 %v6525_v13  ;;  %13296 = vmatmul.mubr.f32.gmra.mxu1 %v18801_v61  ;;  %v21436_v13 = vld [vmem:[#allocation136_spill] sm:$0xff] }
 0x877   :  { %13239 = vmatprep.mubr.f32.mxu0 %v6535_v27  ;;  %13386 = vmatprep.mubr.f32.mxu1 %v21417_v21  ;;  %v6545_v45 = vand.u32 4294901760, %v6544_v49  ;;  %v21420_v27 = vand.u32 4294901760, %v18650_v11  ;;  %v21437_v49 = vld [vmem:[#allocation139_spill] sm:$0xff]  ;;  %v21439_v21 = vand.u32 4294901760, %v18796_v56 }
 0x87a   :  { %13240 = vmatmul.mubr.f32.gmra.mxu0 %v6545_v45  ;;  %13387 = vmatmul.mubr.f32.vlgmr.msra.gmra.mxu1 %v21418_v39  ;;  %v18882_v45 = vpop.permute.xlu0 %4546 }
 0x87b   :  { %13330 = vmatprep.mubr.f32.mxu0 %v18509_v0  ;;  %13467 = vmatpush3.msra.mxu1 %v21379_v32  ;;  %v21421_v0 = vand.u32 4294901760, %v18624_v4  ;;  %v21423_v32 = vand.u32 4294901760, %v18628_v55 }
 0x87c   :  { %13389 = vmatprep.mubr.f32.mxu1 %v21419_v52  ;;  %13468 = vmatprep.subr.mxu1 %v21381_v44 }
 0x87d   :  { %13469 = vmatpush3.msra.mxu1 %v21381_v44  ;;  %v21424_v44 = vld [vmem:[#allocation119_spill] sm:$0xff] }
 0x87e   :  { %13331 = vmatmul.mubr.f32.vlgmr.msra.gmra.mxu0 %v18529_v53  ;;  %13470 = vmatprep.subr.mxu1 %v21383_v47  ;;  %v21422_v53 = vand.u32 4294901760, %v18684_v42 }
 0x87f   :  { %13390 = vmatmul.mubr.f32.gmra.mxu1 %v21420_v27  ;;  %13411 = vmatpush3.msra.mxu0 %v21405_v51  ;;  %v21431_v51 = vand.u32 4294901760, %v18706_v46  ;;  %v7747_v27 = vld [vmem:[#allocation8 + $0x28] sm:$0xff] }
 0x880   :  { %13471 = vmatpush3.msra.mxu1 %v21383_v47  ;;  %13392 = vmatprep.mubr.f32.mxu1 %v21421_v0  ;;  %v21425_v47 = vld [vmem:[#allocation121_spill] sm:$0xff]  ;;  %v21442_v0 = vld [vmem:[#allocation64_spill] sm:$0xff] }
 0x881   :  { %13472 = vmatprep.subr.mxu1 %v21385_v8  ;;  %13333 = vmatprep.mubr.f32.mxu0 %v18533_v12  ;;  %v21426_v12 = vand.u32 4294901760, %v18720_v2 }
 0x882   :  { %13473 = vmatpush3.msra.mxu1 %v21385_v8  ;;  %13412 = vmatprep.subr.mxu0 %v21424_v44  ;;  %v18857_v8 = vpop.permute.xlu1 %4548 }
 0x883   :  { %13474 = vmatprep.subr.mxu1 %v21387_v24  ;;  %13393 = vmatmul.mubr.f32.gmra.mxu1 %v21422_v53  ;;  %v21443_v53 = vld [vmem:[#allocation66_spill] sm:$0xff] }
 0x884   :  { %13475 = vmatpush3.msra.mxu1 %v21387_v24  ;;  %13395 = vmatprep.mubr.f32.mxu1 %v21423_v32  ;;  %v21427_v24 = vand.u32 4294901760, %v18669_v40  ;;  %v21444_v32 = vld [vmem:[#allocation143_spill] sm:$0xff] }
 0x885   :  { %13476 = vmatprep.subr.mxu1 %v21391_v10  ;;  %13413 = vmatpush3.msra.mxu0 %v21424_v44 }
 0x886   :  { %13477 = vmatpush3.msra.mxu1 %v21391_v10  ;;  %13414 = vmatprep.subr.mxu0 %v21425_v47  ;;  %v21428_v10 = vld [vmem:[#allocation125_spill] sm:$0xff] }
 0x887   :  { %13478 = vmatprep.subr.mxu1 %v21393_v57  ;;  %13334 = vmatmul.mubr.f32.gmra.mxu0 %v18650_v11  ;;  %v21429_v11 = vld [vmem:[#allocation48_spill] sm:$0xff] }
 0x888   :  { %13396 = vmatmul.mubr.f32.gmra.mxu1 %v21426_v12  ;;  %13415 = vmatpush3.msra.mxu0 %v21425_v47 }
 0x889   :  { %13479 = vmatpush3.msra.mxu1 %v21393_v57  ;;  %13336 = vmatprep.mubr.f32.mxu0 %v18624_v4  ;;  %v21430_v57 = vand.u32 4294901760, %v18751_v34  ;;  %v18873_v4 = vpop.permute.xlu1 %4554 }
 0x88a   :  { %13398 = vmatprep.mubr.f32.mxu1 %v21427_v24  ;;  %13416 = vmatprep.subr.mxu0 %v21428_v10  ;;  %v21446_v24 = vld [vmem:[#allocation147_spill] sm:$0xff] }
 0x88b   :  { %13480 = vmatprep.subr.mxu1 %v21395_v1  ;;  %13417 = vmatpush3.msra.mxu0 %v21428_v10  ;;  %v18934_v10 = vand.u32 4294901760, %v7747_v27 }
 0x88c   :  { %13481 = vmatpush3.msra.mxu1 %v21395_v1  ;;  %13418 = vmatprep.subr.mxu0 %v21429_v11  ;;  %v21432_v1 = vld [vmem:[#allocation129_spill] sm:$0xff] }
 0x88d   :  { %13482 = vmatprep.subr.mxu1 %v21397_v60  ;;  %13337 = vmatmul.mubr.f32.gmra.mxu0 %v18684_v42  ;;  %v21433_v42 = vld [vmem:[#allocation35_spill] sm:$0xff]  ;;  %21447 = vst [vmem:[#allocation101_spill] sm:$0xff] %v18934_v10 }
 0x88e   :  { %13399 = vmatmul.mubr.f32.gmra.mxu1 %v21430_v57  ;;  %13419 = vmatpush3.msra.mxu0 %v21429_v11 }
 0x88f   :  { %13483 = vmatpush3.msra.mxu1 %v21397_v60  ;;  %13339 = vmatprep.mubr.f32.mxu0 %v18628_v55  ;;  %v21434_v60 = vand.u32 4294901760, %v18776_v31  ;;  %v18891_v55 = vpop.permute.xlu1 %4556 }
 0x890   :  { %13401 = vmatprep.mubr.f32.mxu1 %v21431_v51  ;;  %13420 = vmatprep.subr.mxu0 %v21432_v1 }
 0x891   :  { %13484 = vmatprep.subr.mxu1 %v21399_v6  ;;  %13421 = vmatpush3.msra.mxu0 %v21432_v1  ;;  %v7745_v1 = vld [vmem:[#allocation8 + $0x18] sm:$0xff] }
 0x892   :  { %13485 = vmatpush3.msra.mxu1 %v21399_v6  ;;  %13422 = vmatprep.subr.mxu0 %v21433_v42  ;;  %v7749_v6 = vld [vmem:[#allocation8 + $0x38] sm:$0xff] }
 0x893   :  { %13486 = vmatprep.subr.mxu1 %v21401_v25  ;;  %13340 = vmatmul.mubr.f32.gmra.mxu0 %v18720_v2  ;;  %v18900_v2 = vpop.permute.xlu0 %4562  ;;  %v18911_v39 = vpop.permute.xlu1 %4564 }
 0x894   :  { %13402 = vmatmul.mubr.f32.gmra.mxu1 %v21434_v60  ;;  %13423 = vmatpush3.msra.mxu0 %v21433_v42  ;;  %v18957_v60 = vsub.f32 %v7747_v27, %v18934_v10 }
 0x895   :  { %13487 = vmatpush3.msra.mxu1 %v21401_v25  ;;  %13342 = vmatprep.mubr.f32.mxu0 %v18669_v40  ;;  %v18906_v25 = vand.u32 4294901760, %v7749_v6  ;;  %v7748_v40 = vld [vmem:[#allocation8 + $0x30] sm:$0xff] }
 0x896   :  { %13404 = vmatprep.mubr.f32.mxu1 %v21435_v48  ;;  %13424 = vmatprep.subr.mxu0 %v21436_v13  ;;  %v18918_v52 = vand.u32 4294901760, %v7748_v40 }
 0x897   :  { %13488 = vmatprep.subr.mxu1 %v21403_v43  ;;  %13425 = vmatpush3.msra.mxu0 %v21436_v13  ;;  %21438 = vst [vmem:[#allocation164_spill] sm:$0xff] %v18906_v25  ;;  %v18925_v44 = vsub.f32 %v7749_v6, %v18906_v25  ;;  %v18927_v47 = vpop.permute.xlu0 %4570  ;;  %v18942_v57 = vpop.permute.xlu1 %4572  ;;  %v18966_v6 = vand.u32 4294901760, %v7745_v1  ;;  %v21454_v13 = vld [vmem:[#allocation134_spill] sm:$0xff] }
 0x898   :  { %13489 = vmatpush3.msra.mxu1 %v21403_v43  ;;  %13426 = vmatprep.subr.mxu0 %v21437_v49  ;;  %v21440_v43 = vand.u32 4294901760, %v18766_v15  ;;  %21441 = vst [vmem:[#allocation170_spill] sm:$0xff] %v18918_v52  ;;  %v18940_v11 = vsub.f32 %v7748_v40, %v18918_v52 }
 0x899   :  { %13490 = vmatprep.subr.mxu1 %v18350_v54  ;;  %13343 = vmatmul.mubr.f32.gmra.mxu0 %v18751_v34  ;;  %v3647_v34 = vadd.f32 %v21443_v53, %v21442_v0  ;;  %21453 = vst [vmem:[#allocation162_spill] sm:$0xff] %v18966_v6  ;;  %v18992_v27 = vsub.f32 %v7745_v1, %v18966_v6  ;;  %v7743_v0 = vld [vmem:[#allocation8 + $0x8] sm:$0xff]  ;;  %v21457_v53 = vld [vmem:[#allocation124_spill] sm:$0xff]  ;;  %v7742_v1 = vld [vmem:[#allocation8] sm:$0xff] }
 0x89a   :  { %13405 = vmatmul.mubr.f32.gmra.mxu1 %v21439_v21  ;;  %13427 = vmatpush3.msra.mxu0 %v21437_v49 }
 0x89b   :  { %13491 = vmatpush3.msra.mxu1 %v18350_v54  ;;  %13345 = vmatprep.mubr.f32.mxu0 %v18706_v46  ;;  %v7746_v54 = vld [vmem:[#allocation8 + $0x20] sm:$0xff]  ;;  %v21445_v46 = vld [vmem:[#allocation51_spill] sm:$0xff]  ;;  %v18959_v48 = vpop.permute.xlu0 %4578 }
 0x89c   :  { %13407 = vmatprep.mubr.f32.mxu1 %v21440_v43  ;;  %13428 = vmatprep.subr.mxu0 %v21444_v32  ;;  %v3841_v12 = vadd.f32 %v21445_v46, %v3647_v34  ;;  %v18949_v51 = vand.u32 4294901760, %v7746_v54  ;;  %v18980_v43 = vpop.permute.xlu1 %4580 }
 0x89d   :  { %13492 = vmatprep.subr.mxu1 %v18354_v23  ;;  %13429 = vmatpush3.msra.mxu0 %v21444_v32 }
 0x89e   :  { %13493 = vmatpush3.msra.mxu1 %v18354_v23  ;;  %13430 = vmatprep.subr.mxu0 %v21446_v24  ;;  %v18947_v23 = vand.u32 4294901760, %v18925_v44  ;;  %21449 = vst [vmem:[#allocation165_spill] sm:$0xff] %v18949_v51  ;;  %v18974_v21 = vsub.f32 %v7746_v54, %v18949_v51 }
 0x89f   :  { %13494 = vmatprep.subr.mxu1 %v18488_v63  ;;  %13346 = vmatmul.mubr.f32.gmra.mxu0 %v18776_v31  ;;  %v21450_v31 = vld [vmem:[#allocation150_spill] sm:$0xff]  ;;  %v4587_v54 = vpop.permute.xlu0 %4586 }
 0x8a0   :  { %13408 = vmatmul.mubr.f32.gmra.mxu1 %v6543_v33  ;;  %13431 = vmatpush3.msra.mxu0 %v21446_v24  ;;  %21448 = vst [vmem:[#allocation102_spill] sm:$0xff] %v18947_v23  ;;  %v21451_v33 = vld [vmem:[#allocation106_spill] sm:$0xff]  ;;  %v7902_v40 = vsub.f32 %v18925_v44, %v18947_v23  ;;  %v18998_v32 = vand.u32 4294901760, %v18974_v21  ;;  %v19016_v24 = vand.u32 4294901760, %v18992_v27 }
 0x8a1   :  { %13495 = vmatpush3.msra.mxu1 %v18488_v63  ;;  %13348 = vmatprep.mubr.f32.mxu0 %v18740_v35  ;;  %v4035_v42 = vadd.f32 %v21451_v33, %v3841_v12  ;;  %v7744_v63 = vld [vmem:[#allocation8 + $0x10] sm:$0xff]  ;;  %v18964_v35 = vand.u32 4294901760, %v18940_v11  ;;  %v19011_v12 = vand.u32 4294901760, %v7743_v0 }
 0x8a2   :  { %13432 = vmatprep.subr.mxu0 %v21450_v31  ;;  %13496 = vmatprep.subr.mxu1 %v18545_v7  ;;  %21458 = vst [vmem:[#allocation161_spill] sm:$0xff] %v18998_v32  ;;  %21461 = vst [vmem:[#allocation166_spill] sm:$0xff] %v19016_v24 }
 0x8a3   :  { %13498 = vmatprep.mubr.f32.mxu1 %v18504_v38  ;;  %13433 = vmatpush3.msra.mxu0 %v21450_v31  ;;  %21452 = vst [vmem:[#allocation163_spill] sm:$0xff] %v18964_v35  ;;  %v4274_v49 = vadd.f32 %v21454_v13, %v4035_v42  ;;  %21460 = vst [vmem:[#allocation171_spill] sm:$0xff] %v19011_v12  ;;  %v19032_v42 = vsub.f32 %v7743_v0, %v19011_v12 }
 0x8a4   :  { %13497 = vmatpush3.msra.mxu1 %v18545_v7  ;;  %13434 = vmatprep.subr.mxu0 %v18369_v36  ;;  %v18978_v7 = vand.u32 4294901760, %v7744_v63 }
 0x8a5   :  { %13349 = vmatmul.mubr.f32.gmra.mxu0 %v18796_v56  ;;  %13499 = vmatmul.mubr.f32.vlgmr.msra.gmra.mxu1 %v18522_v9  ;;  %v18985_v56 = vand.u32 4294901760, %v18957_v60  ;;  %v4451_v34 = vadd.f32 %v21457_v53, %v4274_v49  ;;  %v4595_v49 = vpop.permute.xlu0 %4594 }
 0x8a6   :  { %13435 = vmatpush3.msra.mxu0 %v18369_v36  ;;  %21455 = vst [vmem:[#allocation103_spill] sm:$0xff] %v18978_v7  ;;  %13351 = vmatprep.mubr.f32.mxu0 %v18766_v15  ;;  %v7909_v36 = vsub.f32 %v18940_v11, %v18964_v35  ;;  %v7903_v15 = vand.u32 4294901760, %v7902_v40 }
 0x8a7   :  { %13436 = vmatprep.subr.mxu0 %v18375_v29  ;;  %21456 = vst [vmem:[#allocation104_spill] sm:$0xff] %v18985_v56  ;;  %13501 = vmatprep.mubr.f32.mxu1 %v18525_v26  ;;  %v4600_v46 = vsel %vm21459_vm0, %v4451_v34, %v18882_v45  ;;  %v4589_v45 = vpop.permute.xlu1 %4588  ;;  %vm21524_vm0 = vmmov %vm21467_vm1 }
 0x8a8   :  { %13437 = vmatpush3.msra.mxu0 %v18375_v29  ;;  %v19003_v29 = vsub.f32 %v7744_v63, %v18978_v7  ;;  %13544 = vmatprep.subr.mxu1 %v7903_v15  ;;  %v4603_v31 = vsel %vm4602_vm7, %v4600_v46, %v18873_v4  ;;  %v19034_v63 = vand.u32 4294901760, %v7742_v1  ;;  %v21464_v4 = vld [vmem:[#allocation135_spill] sm:$0xff] }
 0x8a9   :  { %13438 = vmatprep.subr.mxu0 %v18496_v28  ;;  %13352 = vmatmul.mubr.f32.gmra.mxu0 %v18812_v20  ;;  %v7916_v20 = vsub.f32 %v18957_v60, %v18985_v56  ;;  %v4606_v33 = vsel %vm4605_vm10, %v4603_v31, %v18900_v2  ;;  %v4601_v13 = vsel %vm21465_vm12, %v21464_v4, %v18857_v8  ;;  %vm21527_vm12 = vmmov %vm21524_vm0 }
 0x8aa   :  { %13439 = vmatpush3.msra.mxu0 %v18496_v28  ;;  %13502 = vmatmul.mubr.f32.gmra.mxu1 %v18633_v37  ;;  %v7910_v28 = vand.u32 4294901760, %v7909_v36  ;;  %21463 = vst [vmem:[#allocation172_spill] sm:$0xff] %v19034_v63  ;;  %v7930_v2 = vsub.f32 %v18992_v27, %v19016_v24  ;;  %v4604_v40 = vsel %vm4602_vm7, %v4601_v13, %v18891_v55 }
 0x8ab   :  { %13440 = vmatprep.subr.mxu0 %v18554_v59  ;;  %13442 = vmatprep.mubr.f32.mxu0 %v18504_v38  ;;  %v7923_v38 = vsub.f32 %v18974_v21, %v18998_v32  ;;  %v4597_v53 = vpop.permute.xlu1 %4596  ;;  %v19064_v34 = vsub.f32 %v7742_v1, %v19034_v63 }
 0x8ac   :  { %13504 = vmatprep.mubr.f32.mxu1 %v18603_v30  ;;  %13441 = vmatpush3.msra.mxu0 %v18554_v59  ;;  %v19026_v59 = vand.u32 4294901760, %v19003_v29 }
 0x8ad   :  { %13443 = vmatmul.mubr.f32.vlgmr.msra.gmra.mxu0 %v18522_v9  ;;  %13545 = vmatpush3.msra.mxu1 %v7903_v15  ;;  %v7917_v9 = vand.u32 4294901760, %v7916_v20  ;;  %v7924_v8 = vand.u32 4294901760, %v7923_v38  ;;  %v7931_v15 = vand.u32 4294901760, %v7930_v2 }
 0x8ae   :  { %13505 = vmatmul.mubr.f32.gmra.mxu1 %v18659_v14  ;;  %13445 = vmatprep.mubr.f32.mxu0 %v18525_v26  ;;  %21462 = vst [vmem:[#allocation167_spill] sm:$0xff] %v19026_v59  ;;  %v4609_v26 = vsel %vm4608_vm13, %v4606_v33, %v18927_v47  ;;  %v4607_v47 = vsel %vm4605_vm10, %v4604_v40, %v18911_v39  ;;  %v19061_v39 = vand.u32 4294901760, %v19032_v42 }
 0x8af   :  { %13507 = vmatprep.mubr.f32.mxu1 %v18606_v3  ;;  %13546 = vmatprep.subr.mxu1 %v7910_v28  ;;  %v4612_v36 = vsel %vm4611_vm15, %v4609_v26, %v18959_v48  ;;  %v7937_v55 = vsub.f32 %v19003_v29, %v19026_v59  ;;  %v4610_v48 = vsel %vm4608_vm13, %v4607_v47, %v18942_v57 }
 0x8b0   :  { %13522 = vmatprep.subr.mxu0 %v18906_v25  ;;  %13547 = vmatpush3.msra.mxu1 %v7910_v28  ;;  %v4615_v0 = vsel %vm4614_vm4, %v4612_v36, %v4587_v54  ;;  %21466 = vst [vmem:[#allocation105_spill] sm:$0xff] %v19061_v39  ;;  %v7944_v20 = vsub.f32 %v19032_v42, %v19061_v39  ;;  %v19079_v28 = vand.u32 4294901760, %v19064_v34 }
 0x8b1   :  { %13446 = vmatmul.mubr.f32.gmra.mxu0 %v18633_v37  ;;  %v4618_v37 = vsel %vm4617_vm5, %v4615_v0, %v4595_v49  ;;  %13548 = vmatprep.subr.mxu1 %v7917_v9 }
 0x8b2   :  { %13508 = vmatmul.mubr.f32.gmra.mxu1 %v18696_v5  ;;  %13448 = vmatprep.mubr.f32.mxu0 %v18603_v30  ;;  %v4613_v30 = vsel %vm4611_vm15, %v4610_v48, %v18980_v43  ;;  %v7758_v46 = vsel %vm21467_vm1, %v4618_v37, 0  ;;  %v7938_v43 = vand.u32 4294901760, %v7937_v55  ;;  %21468 = vst [vmem:[#allocation74_spill] sm:$0xff] %v19079_v28  ;;  %vm21531_vm1 = vmmov %vm21524_vm0 }
 0x8b3   :  { %13510 = vmatprep.mubr.f32.mxu1 %v18638_v62  ;;  %13549 = vmatpush3.msra.mxu1 %v7917_v9  ;;  %v4616_v57 = vsel %vm4614_vm4, %v4613_v30, %v4589_v45  ;;  %v19083_v1 = vand.u32 4294901760, %v7758_v46  ;;  %v7951_v45 = vsub.f32 %v19064_v34, %v19079_v28 }
 0x8b4   :  { %13523 = vmatpush3.msra.mxu0 %v18906_v25  ;;  %13550 = vmatprep.subr.mxu1 %v7924_v8  ;;  %v4619_v54 = vsel %vm4617_vm5, %v4616_v57, %v4597_v53 }
 0x8b5   :  { %13449 = vmatmul.mubr.f32.gmra.mxu0 %v18659_v14  ;;  %13551 = vmatpush3.msra.mxu1 %v7924_v8  ;;  %v7761_v14 = vsel %vm21469_vm14, %v4619_v54, 0  ;;  %21470 = vst [vmem:[#allocation168_spill] sm:$0xff] %v19083_v1  ;;  %v19095_v31 = vsub.f32 %v7758_v46, %v19083_v1  ;;  %vm21532_vm14 = vmmov %vm21524_vm0 }
 0x8b6   :  { %13511 = vmatmul.mubr.f32.gmra.mxu1 %v18727_v16  ;;  %13451 = vmatprep.mubr.f32.mxu0 %v18606_v3  ;;  %v7945_v3 = vand.u32 4294901760, %v7944_v20  ;;  %v19091_v38 = vand.u32 4294901760, %v7761_v14 }
 0x8b7   :  { %13513 = vmatprep.mubr.f32.mxu1 %v18665_v17  ;;  %13552 = vmatprep.subr.mxu1 %v7931_v15  ;;  %21472 = vst [vmem:[#allocation75_spill] sm:$0xff] %v19095_v31 }
 0x8b8   :  { %13524 = vmatprep.subr.mxu0 %v18918_v52  ;;  %13553 = vmatpush3.msra.mxu1 %v7931_v15  ;;  %21471 = vst [vmem:[#allocation71_spill] sm:$0xff] %v19091_v38 }
 0x8b9   :  { %13452 = vmatmul.mubr.f32.gmra.mxu0 %v18696_v5  ;;  %13554 = vmatprep.subr.mxu1 %v7938_v43  ;;  %v19103_v5 = vsub.f32 %v7761_v14, %v19091_v38 }
 0x8ba   :  { %13514 = vmatmul.mubr.f32.gmra.mxu1 %v18757_v50  ;;  %13454 = vmatprep.mubr.f32.mxu0 %v18638_v62  ;;  %v7952_v62 = vand.u32 4294901760, %v7951_v45 }
 0x8bb   :  { %13516 = vmatprep.mubr.f32.mxu1 %v18702_v18  ;;  %13525 = vmatpush3.msra.mxu0 %v18918_v52  ;;  %21473 = vst [vmem:[#allocation169_spill] sm:$0xff] %v19103_v5 }
 0x8bc   :  { %13555 = vmatpush3.msra.mxu1 %v7938_v43  ;;  %13526 = vmatprep.subr.mxu0 %v18934_v10 }
 0x8bd   :  { %13455 = vmatmul.mubr.f32.gmra.mxu0 %v18727_v16  ;;  %13556 = vmatprep.subr.mxu1 %v7945_v3  ;;  %v20637_v16 = vand.u32 4294901760, %v19095_v31 }
 0x8be   :  { %13517 = vmatmul.mubr.f32.gmra.mxu1 %v18781_v22  ;;  %13457 = vmatprep.mubr.f32.mxu0 %v18665_v17  ;;  %v20636_v17 = vand.u32 4294901760, %v19103_v5 }
 0x8bf   :  { %13519 = vmatprep.mubr.f32.mxu1 %v18736_v19  ;;  %13527 = vmatpush3.msra.mxu0 %v18934_v10 }
 0x8c0   :  { %13557 = vmatpush3.msra.mxu1 %v7945_v3  ;;  %13528 = vmatprep.subr.mxu0 %v18949_v51 }
 0x8c1   :  { %13458 = vmatmul.mubr.f32.gmra.mxu0 %v18757_v50  ;;  %13558 = vmatprep.subr.mxu1 %v7952_v62  ;;  %v7845_v50 = vsub.f32 %v19095_v31, %v20637_v16 }
 0x8c2   :  { %13520 = vmatmul.mubr.f32.gmra.mxu1 %v18801_v61  ;;  %13460 = vmatprep.mubr.f32.mxu0 %v18702_v18  ;;  %v7855_v18 = vsub.f32 %v19103_v5, %v20636_v17 }
 0x8c3   :  { %13560 = vmatprep.mubr.f32.mxu1 %v19083_v1  ;;  %13529 = vmatpush3.msra.mxu0 %v18949_v51 }
 0x8c4   :  { %13559 = vmatpush3.msra.mxu1 %v7952_v62  ;;  %13530 = vmatprep.subr.mxu0 %v18966_v6 }
 0x8c5   :  { %13461 = vmatmul.mubr.f32.gmra.mxu0 %v18781_v22  ;;  %13588 = vmatprep.subr.mxu1 %v18906_v25  ;;  %v7846_v22 = vand.u32 4294901760, %v7845_v50 }
 0x8c6   :  { %13561 = vmatmul.mubr.f32.vlgmr.msra.gmra.mxu1 %v19091_v38  ;;  %13463 = vmatprep.mubr.f32.mxu0 %v18736_v19  ;;  %v7856_v19 = vand.u32 4294901760, %v7855_v18 }
 0x8c7   :  { %13531 = vmatpush3.msra.mxu0 %v18966_v6  ;;  %13589 = vmatpush3.msra.mxu1 %v18906_v25 }
 0x8c8   :  { %13532 = vmatprep.subr.mxu0 %v18978_v7  ;;  %13590 = vmatprep.subr.mxu1 %v18918_v52 }
 0x8c9   :  { %13533 = vmatpush3.msra.mxu0 %v18978_v7  ;;  %13591 = vmatpush3.msra.mxu1 %v18918_v52 }
 0x8ca   :  { %13464 = vmatmul.mubr.f32.gmra.mxu0 %v18801_v61  ;;  %13534 = vmatprep.subr.mxu0 %v19011_v12 }
 0x8cb   :  { %13535 = vmatpush3.msra.mxu0 %v19011_v12  ;;  %13538 = vmatprep.mubr.f32.mxu0 %v7846_v22 }
 0x8cc   :  { %13536 = vmatprep.subr.mxu0 %v19034_v63  ;;  %13592 = vmatprep.subr.mxu1 %v18934_v10 }
 0x8cd   :  { %13537 = vmatpush3.msra.mxu0 %v19034_v63  ;;  %13593 = vmatpush3.msra.mxu1 %v18934_v10 }
 0x8ce   :  { %13539 = vmatmul.mubr.f32.vlgmr.msra.gmra.mxu0 %v7856_v19  ;;  %13594 = vmatprep.subr.mxu1 %v18949_v51 }
 0x8cf   :  { %13566 = vmatprep.subr.mxu0 %v18925_v44  ;;  %13595 = vmatpush3.msra.mxu1 %v18949_v51 }
 0x8d0   :  { %13567 = vmatpush3.msra.mxu0 %v18925_v44  ;;  %13596 = vmatprep.subr.mxu1 %v18966_v6 }
 0x8d1   :  { %13568 = vmatprep.subr.mxu0 %v18940_v11  ;;  %13597 = vmatpush3.msra.mxu1 %v18966_v6 }
 0x8d2   :  { %13569 = vmatpush3.msra.mxu0 %v18940_v11  ;;  %13598 = vmatprep.subr.mxu1 %v18978_v7 }
 0x8d3   :  { %13570 = vmatprep.subr.mxu0 %v18957_v60  ;;  %13599 = vmatpush3.msra.mxu1 %v18978_v7 }
 0x8d4   :  { %13571 = vmatpush3.msra.mxu0 %v18957_v60  ;;  %13600 = vmatprep.subr.mxu1 %v19011_v12 }
 0x8d5   :  { %13572 = vmatprep.subr.mxu0 %v18974_v21  ;;  %13601 = vmatpush3.msra.mxu1 %v19011_v12 }
 0x8d6   :  { %13573 = vmatpush3.msra.mxu0 %v18974_v21  ;;  %13602 = vmatprep.subr.mxu1 %v19034_v63 }
 0x8d7   :  { %13574 = vmatprep.subr.mxu0 %v18992_v27  ;;  %13603 = vmatpush3.msra.mxu1 %v19034_v63 }
 0x8d8   :  { %13575 = vmatpush3.msra.mxu0 %v18992_v27  ;;  %13632 = vmatprep.subr.mxu1 %v18906_v25 }
 0x8d9   :  { %13576 = vmatprep.subr.mxu0 %v19003_v29 }
 0x8da   :  { %13577 = vmatpush3.msra.mxu0 %v19003_v29 }
 0x8db   :  { %13578 = vmatprep.subr.mxu0 %v19032_v42 }
 0x8dc   :  { %13579 = vmatpush3.msra.mxu0 %v19032_v42 }
 0x8dd   :  { %13580 = vmatprep.subr.mxu0 %v19064_v34 }
 0x8de   :  { %13581 = vmatpush3.msra.mxu0 %v19064_v34 }
 0x8df   :  { %13610 = vmatprep.subr.mxu0 %v18947_v23 }
 0x8fc   :  { %v13220_v61 = vpop.f32.mrf.mxu0 }
 0x8fe   :  { %v6397_v60 = vpop.f32.mrf.mxu0 }
 0x904   :  { %v13276_v44 = vpop.f32.mrf.mxu1 }
 0x905   :  { %v6705_v11 = vadd.f32 %v13276_v44, %v13220_v61 }
 0x906   :  { %v6698_v21 = vpop.f32.mrf.mxu1 }
 0x907   :  { %v6699_v27 = vadd.f32 %v6698_v21, %v6397_v60 }
 0x91e   :  { %v19166_v33 = vpop.f32.mrf.mxu1 }
 0x920   :  { %v19168_v9 = vpop.f32.mrf.mxu1 }
 0x921   :  { %v19170_v29 = vpop.f32.mrf.mxu0 }
 0x922   :  { %v19172_v4 = vpop.f32.mrf.mxu1  ;;  %v6717_v10 = vadd.f32 %v19166_v33, %v19170_v29 }
 0x923   :  { %v19174_v42 = vpop.f32.mrf.mxu0 }
 0x924   :  { %v19176_v13 = vpop.f32.mrf.mxu1  ;;  %v6711_v5 = vadd.f32 %v19168_v9, %v19174_v42 }
 0x925   :  { %v19178_v26 = vpop.f32.mrf.mxu0 }
 0x926   :  { %v19180_v49 = vpop.f32.mrf.mxu1 }
 0x927   :  { %v19182_v2 = vpop.f32.mrf.mxu0 }
 0x928   :  { %v19184_v40 = vpop.f32.mrf.mxu1 }
 0x92a   :  { %v19186_v36 = vpop.f32.mrf.mxu0  ;;  %v19188_v8 = vpop.f32.mrf.mxu1 }
 0x92c   :  { %v19190_v47 = vpop.f32.mrf.mxu0  ;;  %v19192_v0 = vpop.f32.mrf.mxu1 }
 0x92e   :  { %v19194_v55 = vpop.f32.mrf.mxu0  ;;  %v19196_v48 = vpop.f32.mrf.mxu1 }
 0x930   :  { %v19198_v53 = vpop.f32.mrf.mxu0  ;;  %v19200_v37 = vpop.f32.mrf.mxu1 }
 0x932   :  { %v19202_v34 = vpop.f32.mrf.mxu0  ;;  %v19204_v30 = vpop.f32.mrf.mxu1 }
 0x934   :  { %v19206_v15 = vpop.f32.mrf.mxu0  ;;  %v19208_v57 = vpop.f32.mrf.mxu1 }
 0x936   :  { %v19210_v54 = vpop.f32.mrf.mxu0  ;;  %v19212_v46 = vpop.f32.mrf.mxu1 }
 0x937   :  { %21474 = vst [vmem:[#allocation77_spill] sm:$0xff] %v19212_v46 }
 0x938   :  { %v19214_v43 = vpop.f32.mrf.mxu0  ;;  %v19216_v20 = vpop.f32.mrf.mxu1 }
 0x939   :  { %21475 = vst [vmem:[#allocation72_spill] sm:$0xff] %v19216_v20 }
 0x93a   :  { %v19218_v14 = vpop.f32.mrf.mxu0  ;;  %v13388_v3 = vpop.f32.mrf.mxu1 }
 0x93b   :  { %21476 = vst [vmem:[#allocation76_spill] sm:$0xff] %v19218_v14 }
 0x93c   :  { %v19220_v45 = vpop.f32.mrf.mxu0  ;;  %v7086_v62 = vpop.f32.mrf.mxu1 }
 0x93d   :  { %21477 = vst [vmem:[#allocation79_spill] sm:$0xff] %v19220_v45 }
 0x93e   :  { %v13332_v50 = vpop.f32.mrf.mxu0 }
 0x93f   :  { %v13391_v18 = vpop.f32.mrf.mxu1  ;;  %v6900_v22 = vadd.f32 %v13332_v50, %v6705_v11 }
 0x940   :  { %v6892_v19 = vpop.f32.mrf.mxu0 }
 0x941   :  { %v7102_v61 = vpop.f32.mrf.mxu1  ;;  %v6893_v44 = vadd.f32 %v6892_v19, %v6699_v27  ;;  %v7095_v60 = vadd.f32 %v13388_v3, %v6900_v22 }
 0x943   :  { %v13394_v21 = vpop.f32.mrf.mxu1  ;;  %v7087_v17 = vadd.f32 %v7086_v62, %v6893_v44 }
 0x945   :  { %v19222_v16 = vpop.f32.mrf.mxu1 }
 0x947   :  { %v13335_v41 = vpop.f32.mrf.mxu0 }
 0x948   :  { %v19224_v58 = vpop.f32.mrf.mxu1  ;;  %v6914_v31 = vadd.f32 %v13335_v41, %v6717_v10  ;;  %v6741_v41 = vadd.f32 %v19180_v49, %v19186_v36 }
 0x949   :  { %v6906_v28 = vpop.f32.mrf.mxu0 }
 0x94a   :  { %v19226_v39 = vpop.f32.mrf.mxu1  ;;  %v6907_v20 = vadd.f32 %v6906_v28, %v6711_v5 }
 0x94c   :  { %v7103_v5 = vadd.f32 %v7102_v61, %v6907_v20 }
 0x94d   :  { %v13338_v59 = vpop.f32.mrf.mxu0 }
 0x94e   :  { %v19228_v38 = vpop.f32.mrf.mxu1 }
 0x94f   :  { %v6920_v24 = vpop.f32.mrf.mxu0 }
 0x950   :  { %v19230_v63 = vpop.f32.mrf.mxu1 }
 0x953   :  { %v13341_v11 = vpop.f32.mrf.mxu0 }
 0x954   :  { %v19232_v50 = vpop.f32.mrf.mxu1 }
 0x955   :  { %v6934_v27 = vpop.f32.mrf.mxu0 }
 0x956   :  { %v19234_v3 = vpop.f32.mrf.mxu1 }
 0x957   :  { %21478 = vst [vmem:[#allocation78_spill] sm:$0xff] %v19234_v3  ;;  %v7111_v3 = vadd.f32 %v13391_v18, %v6914_v31  ;;  %v6753_v31 = vadd.f32 %v19188_v8, %v19194_v55 }
 0x959   :  { %v13344_v62 = vpop.f32.mrf.mxu0 }
 0x95a   :  { %v19236_v22 = vpop.f32.mrf.mxu1 }
 0x95b   :  { %21479 = vst [vmem:[#allocation81_spill] sm:$0xff] %v19236_v22  ;;  %v6948_v19 = vpop.f32.mrf.mxu0 }
 0x95c   :  { %v19238_v44 = vpop.f32.mrf.mxu1 }
 0x95d   :  { %21480 = vst [vmem:[#allocation73_spill] sm:$0xff] %v19238_v44  ;;  %v6729_v44 = vadd.f32 %v19172_v4, %v19178_v26  ;;  %v6735_v4 = vadd.f32 %v19184_v40, %v19190_v47  ;;  %v6747_v40 = vadd.f32 %v19192_v0, %v19198_v53  ;;  %v6759_v53 = vadd.f32 %v19200_v37, %v19206_v15 }
 0x95f   :  { %v19240_v32 = vpop.f32.mrf.mxu0  ;;  %v6928_v33 = vadd.f32 %v13338_v59, %v6729_v44  ;;  %v6942_v59 = vadd.f32 %v13341_v11, %v6741_v41  ;;  %v6935_v36 = vadd.f32 %v6934_v27, %v6735_v4  ;;  %v6949_v18 = vadd.f32 %v6948_v19, %v6747_v40 }
 0x960   :  { %v19242_v12 = vpop.f32.mrf.mxu1 }
 0x961   :  { %21481 = vst [vmem:[#allocation80_spill] sm:$0xff] %v19242_v12  ;;  %v19244_v56 = vpop.f32.mrf.mxu0  ;;  %v7143_v8 = vadd.f32 %v19224_v58, %v6942_v59  ;;  %v7135_v0 = vadd.f32 %v19226_v39, %v6935_v36  ;;  %v7151_v37 = vadd.f32 %v19230_v63, %v6949_v18  ;;  %v21485_v63 = vld [vmem:[#allocation78_spill] sm:$0xff]  ;;  %v21490_v59 = vld [vmem:[#allocation72_spill] sm:$0xff] }
 0x962   :  { %v19246_v7 = vpop.f32.mrf.mxu1  ;;  %v21488_v4 = vld [vmem:[#allocation81_spill] sm:$0xff] }
 0x963   :  { %21482 = vst [vmem:[#allocation40_spill] sm:$0xff] %v19246_v7 }
 0x964   :  { %v21492_v36 = vld [vmem:[#allocation73_spill] sm:$0xff] }
 0x965   :  { %v19248_v35 = vpop.f32.mrf.mxu0  ;;  %v13500_v23 = vpop.f32.mrf.mxu1 }
 0x967   :  { %v19250_v6 = vpop.f32.mrf.mxu0  ;;  %v7502_v51 = vpop.f32.mrf.mxu1 }
 0x969   :  { %v19252_v1 = vpop.f32.mrf.mxu0 }
 0x96a   :  { %21483 = vst [vmem:[#allocation36_spill] sm:$0xff] %v19252_v1  ;;  %v13503_v52 = vpop.f32.mrf.mxu1  ;;  %v6723_v1 = vadd.f32 %v19176_v13, %v19182_v2  ;;  %v7127_v2 = vadd.f32 %v13394_v21, %v6928_v33 }
 0x96b   :  { %v19256_v25 = vpop.f32.mrf.mxu0 }
 0x96c   :  { %21484 = vst [vmem:[#allocation31_spill] sm:$0xff] %v19256_v25  ;;  %v7514_v12 = vpop.f32.mrf.mxu1  ;;  %v6921_v9 = vadd.f32 %v6920_v24, %v6723_v1 }
 0x96d   :  { %v13444_v7 = vpop.f32.mrf.mxu0 }
 0x96e   :  { %v7332_v45 = vadd.f32 %v13444_v7, %v7095_v60  ;;  %v13506_v22 = vpop.f32.mrf.mxu1  ;;  %v7119_v1 = vadd.f32 %v19222_v16, %v6921_v9 }
 0x96f   :  { %v7325_v46 = vpop.f32.mrf.mxu0 }
 0x970   :  { %v19264_v29 = vadd.f32 %v13500_v23, %v7332_v45  ;;  %v7326_v25 = vadd.f32 %v7325_v46, %v7087_v17  ;;  %v7526_v14 = vpop.f32.mrf.mxu1 }
 0x971   :  { %v13447_v10 = vpop.f32.mrf.mxu0 }
 0x972   :  { %v19268_v42 = vadd.f32 %v7502_v51, %v7326_v25  ;;  %v7344_v28 = vadd.f32 %v13447_v10, %v7111_v3  ;;  %v13509_v7 = vpop.f32.mrf.mxu1  ;;  %v6963_v3 = vadd.f32 %v19244_v56, %v6759_v53 }
 0x973   :  { %v7337_v13 = vpop.f32.mrf.mxu0 }
 0x974   :  { %v7521_v23 = vadd.f32 %v13503_v52, %v7344_v28  ;;  %v7338_v26 = vadd.f32 %v7337_v13, %v7103_v5  ;;  %v7538_v17 = vpop.f32.mrf.mxu1  ;;  %v6956_v52 = vadd.f32 %v13344_v62, %v6753_v31  ;;  %v7167_v9 = vadd.f32 %v21485_v63, %v6963_v3  ;;  %v21489_v13 = vld [vmem:[#allocation79_spill] sm:$0xff] }
 0x975   :  { %v13450_v49 = vpop.f32.mrf.mxu0 }
 0x976   :  { %v7515_v24 = vadd.f32 %v7514_v12, %v7338_v26  ;;  %v7356_v25 = vadd.f32 %v13450_v49, %v7127_v2  ;;  %v13512_v51 = vpop.f32.mrf.mxu1  ;;  %7600 = vrot.lane.b32.xlu1 %v7521_v23, %s14371_s15  ;;  %v6765_v12 = vadd.f32 %v19196_v48, %v19202_v34  ;;  %v7159_v48 = vadd.f32 %v19228_v38, %v6956_v52  ;;  %v21491_v23 = vld [vmem:[#allocation36_spill] sm:$0xff] }
 0x977   :  { %v7349_v47 = vpop.f32.mrf.mxu0  ;;  %v6777_v34 = vadd.f32 %v19204_v30, %v19210_v54  ;;  %v21494_v52 = vld [vmem:[#allocation80_spill] sm:$0xff] }
 0x978   :  { %v7533_v46 = vadd.f32 %v13506_v22, %v7356_v25  ;;  %v7350_v20 = vadd.f32 %v7349_v47, %v7119_v1  ;;  %v7550_v45 = vpop.f32.mrf.mxu1  ;;  %7598 = vrot.lane.b32.xlu0 %v7515_v24, %s14371_s15  ;;  %v6970_v11 = vadd.f32 %v19240_v32, %v6765_v12  ;;  %v6771_v32 = vadd.f32 %v19208_v57, %v19214_v43  ;;  %v21486_v57 = vld [vmem:[#allocation76_spill] sm:$0xff]  ;;  %v21487_v43 = vld [vmem:[#allocation77_spill] sm:$0xff]  ;;  %v21493_v25 = vld [vmem:[#allocation31_spill] sm:$0xff] }
 0x979   :  { %v13453_v55 = vpop.f32.mrf.mxu0  ;;  %v6984_v19 = vadd.f32 %v19248_v35, %v6777_v34  ;;  %v6789_v28 = vadd.f32 %v21487_v43, %v21486_v57 }
 0x97a   :  { %v7527_v61 = vadd.f32 %v7526_v14, %v7350_v20  ;;  %v7368_v60 = vadd.f32 %v13453_v55, %v7143_v8  ;;  %v13515_v16 = vpop.f32.mrf.mxu1  ;;  %7608 = vrot.lane.b32.xlu1 %v7533_v46, %s14384_s3  ;;  %v7175_v30 = vadd.f32 %v19232_v50, %v6970_v11  ;;  %v6977_v54 = vadd.f32 %v19250_v6, %v6771_v32  ;;  %v21495_v55 = vld [vmem:[#allocation40_spill] sm:$0xff] }
 0x97b   :  { %v7361_v21 = vpop.f32.mrf.mxu0  ;;  %v7191_v50 = vadd.f32 %v21488_v4, %v6984_v19  ;;  %v6783_v6 = vadd.f32 %v21490_v59, %v21489_v13  ;;  %v6998_v26 = vadd.f32 %v21491_v23, %v6789_v28  ;;  %v21500_v13 = vld [vmem:[#allocation75_spill] sm:$0xff] }
 0x97c   :  { %v7545_v27 = vadd.f32 %v13509_v7, %v7368_v60  ;;  %v7362_v58 = vadd.f32 %v7361_v21, %v7135_v0  ;;  %7606 = vrot.lane.b32.xlu0 %v7527_v61, %s14384_s3  ;;  %v7562_v39 = vpop.f32.mrf.mxu1  ;;  %v7183_v24 = vadd.f32 %v21492_v36, %v6977_v54  ;;  %v21501_v59 = vand.u32 4294901760, %v21500_v13  ;;  %v21505_v36 = vld [vmem:[#allocation170_spill] sm:$0xff] }
 0x97d   :  { %v13456_v14 = vpop.f32.mrf.mxu0  ;;  %v7207_v46 = vadd.f32 %v21494_v52, %v6998_v26  ;;  %v21511_v52 = vld [vmem:[#allocation163_spill] sm:$0xff] }
 0x97e   :  { %v7539_v62 = vadd.f32 %v7538_v17, %v7362_v58  ;;  %v7380_v22 = vadd.f32 %v13456_v14, %v7159_v48  ;;  %7616 = vrot.lane.b32.xlu1 %v7545_v27, %s14385_s21  ;;  %v13518_v33 = vpop.f32.mrf.mxu1 }
 0x97f   :  { %v7373_v15 = vpop.f32.mrf.mxu0 }
 0x980   :  { %v7557_v38 = vadd.f32 %v13512_v51, %v7380_v22  ;;  %v7374_v44 = vadd.f32 %v7373_v15, %v7151_v37  ;;  %7614 = vrot.lane.b32.xlu0 %v7539_v62, %s14385_s21  ;;  %v7574_v2 = vpop.f32.mrf.mxu1  ;;  %v6991_v51 = vadd.f32 %v21493_v25, %v6783_v6  ;;  %v21506_v25 = vld [vmem:[#allocation101_spill] sm:$0xff] }
 0x981   :  { %v13459_v56 = vpop.f32.mrf.mxu0 }
 0x982   :  { %v7551_v41 = vadd.f32 %v7550_v45, %v7374_v44  ;;  %v7392_v10 = vadd.f32 %v13459_v56, %v7175_v30  ;;  %7624 = vrot.lane.b32.xlu1 %v7557_v38, %s14386_s22  ;;  %v13521_v20 = vpop.f32.mrf.mxu1  ;;  %v7199_v18 = vadd.f32 %v21495_v55, %v6991_v51  ;;  %v21507_v51 = vld [vmem:[#allocation168_spill] sm:$0xff]  ;;  %v21517_v55 = vld [vmem:[#allocation166_spill] sm:$0xff] }
 0x983   :  { %v7385_v35 = vpop.f32.mrf.mxu0 }
 0x984   :  { %v7569_v7 = vadd.f32 %v13515_v16, %v7392_v10  ;;  %v7386_v5 = vadd.f32 %v7385_v35, %v7167_v9  ;;  %7622 = vrot.lane.b32.xlu0 %v7551_v41, %s14386_s22  ;;  %v7586_v0 = vpop.f32.mrf.mxu1 }
 0x985   :  { %v13462_v17 = vpop.f32.mrf.mxu0 }
 0x986   :  { %v7563_v31 = vadd.f32 %v7562_v39, %v7386_v5  ;;  %v7404_v49 = vadd.f32 %v13462_v17, %v7191_v50  ;;  %7632 = vrot.lane.b32.xlu1 %v7569_v7, %s14387_s23  ;;  %v21502_v17 = vld [vmem:[#allocation169_spill] sm:$0xff] }
 0x987   :  { %v7397_v1 = vpop.f32.mrf.mxu0 }
 0x988   :  { %v7581_v40 = vadd.f32 %v13518_v33, %v7404_v49  ;;  %v7398_v47 = vadd.f32 %v7397_v1, %v7183_v24  ;;  %7630 = vrot.lane.b32.xlu0 %v7563_v31, %s14387_s23  ;;  %v21504_v31 = vld [vmem:[#allocation164_spill] sm:$0xff]  ;;  %v21508_v1 = vld [vmem:[#allocation165_spill] sm:$0xff] }
 0x98a   :  { %v7575_v45 = vadd.f32 %v7574_v2, %v7398_v47  ;;  %v13465_v8 = vpop.f32.mrf.mxu0  ;;  %7640 = vrot.lane.b32.xlu1 %v7581_v40, %s14388_s24  ;;  %v21503_v2 = vand.u32 4294901760, %v21502_v17  ;;  %v21509_v40 = vld [vmem:[#allocation162_spill] sm:$0xff] }
 0x98b   :  { %v7416_v12 = vadd.f32 %v13465_v8, %v7207_v46  ;;  %v21510_v47 = vld [vmem:[#allocation102_spill] sm:$0xff]  ;;  %v21512_v46 = vld [vmem:[#allocation103_spill] sm:$0xff]  ;;  %v21515_v8 = vld [vmem:[#allocation161_spill] sm:$0xff] }
 0x98c   :  { %v7409_v61 = vpop.f32.mrf.mxu0  ;;  %7638 = vrot.lane.b32.xlu0 %v7575_v45, %s14388_s24  ;;  %v21514_v45 = vld [vmem:[#allocation171_spill] sm:$0xff] }
 0x98d   :  { %v7593_v60 = vadd.f32 %v13521_v20, %v7416_v12  ;;  %v7410_v16 = vadd.f32 %v7409_v61, %v7199_v18  ;;  %v21513_v20 = vld [vmem:[#allocation104_spill] sm:$0xff]  ;;  %v21518_v18 = vld [vmem:[#allocation71_spill] sm:$0xff] }
 0x98e   :  { %v21516_v12 = vld [vmem:[#allocation172_spill] sm:$0xff]  ;;  %v21519_v61 = vld [vmem:[#allocation167_spill] sm:$0xff] }
 0x98f   :  { %v7587_v53 = vadd.f32 %v7586_v0, %v7410_v16  ;;  %7648 = vrot.lane.b32.xlu1 %v7593_v60, %s14389_s25  ;;  %v21520_v60 = vld [vmem:[#allocation105_spill] sm:$0xff]  ;;  %v21521_v16 = vld [vmem:[#allocation74_spill] sm:$0xff]  ;;  %v13562_v0 = vpop.f32.mrf.mxu1 }
 0x991   :  { %7646 = vrot.lane.b32.xlu0 %v7587_v53, %s14389_s25  ;;  %v7989_v53 = vpop.f32.mrf.mxu1 }
 0x9e8   :  { %v7601_v21 = vpop.permute.xlu1 %7600 }
 0x9e9   :  { %v7653_v22 = vsel %vm21496_vm8, %v19264_v29, %v7601_v21  ;;  %v13540_v21 = vpop.f32.mrf.mxu0  ;;  %vm21533_vm8 = vmmov %vm21524_vm0 }
 0x9ea   :  { %v7599_v11 = vpop.permute.xlu0 %7598 }
 0x9eb   :  { %v7652_v15 = vsel %vm21497_vm2, %v19268_v42, %v7599_v11  ;;  %vm21534_vm2 = vmmov %vm21524_vm0 }
 0x9ec   :  { %v7609_v27 = vpop.permute.xlu1 %7608 }
 0x9ed   :  { %v7655_v32 = vsel %vm4602_vm7, %v7653_v22, %v7609_v27  ;;  %v7848_v27 = vpop.f32.mrf.mxu0 }
 0x9ee   :  { %v7607_v58 = vpop.permute.xlu0 %7606 }
 0x9ef   :  { %v7654_v44 = vsel %vm4602_vm7, %v7652_v15, %v7607_v58 }
 0x9f0   :  { %v7617_v48 = vpop.permute.xlu1 %7616 }
 0x9f1   :  { %v7657_v19 = vsel %vm4605_vm10, %v7655_v32, %v7617_v48 }
 0x9f2   :  { %v7615_v34 = vpop.permute.xlu0 %7614 }
 0x9f3   :  { %v7656_v56 = vsel %vm4605_vm10, %v7654_v44, %v7615_v34  ;;  %vm21525_vm10 = vmmov %vm21524_vm0 }
 0x9f4   :  { %v7625_v14 = vpop.permute.xlu1 %7624 }
 0x9f5   :  { %v7659_v30 = vsel %vm4608_vm13, %v7657_v19, %v7625_v14 }
 0x9f6   :  { %v7623_v3 = vpop.permute.xlu0 %7622 }
 0x9f7   :  { %v7658_v33 = vsel %vm4608_vm13, %v7656_v56, %v7623_v3  ;;  %v10704_v3 = vld [vmem:[%s20239_s7] ss:$0 sm:$0xff]  ;;  %vm21526_vm13 = vmmov %vm21524_vm0 }
 0x9f8   :  { %v7633_v62 = vpop.permute.xlu1 %7632  ;;  %v7859_v22 = vadd.f32 %v13540_v21, %v10704_v3  ;;  %v7849_v15 = vadd.f32 %v10704_v3, %v7848_v27 }
 0x9f9   :  { %v7661_v54 = vsel %vm4611_vm15, %v7659_v30, %v7633_v62 }
 0x9fa   :  { %v7631_v39 = vpop.permute.xlu0 %7630 }
 0x9fb   :  { %v7660_v10 = vsel %vm4611_vm15, %v7658_v33, %v7631_v39  ;;  %v7990_v33 = vadd.f32 %v7989_v53, %v7849_v15  ;;  %vm21528_vm15 = vmmov %vm21524_vm0 }
 0x9fc   :  { %v7641_v37 = vpop.permute.xlu1 %7640 }
 0x9fd   :  { %v7663_v29 = vsel %vm4614_vm4, %v7661_v54, %v7641_v37 }
 0x9fe   :  { %v7639_v38 = vpop.permute.xlu0 %7638 }
 0x9ff   :  { %v7662_v63 = vsel %vm4614_vm4, %v7660_v10, %v7639_v38  ;;  %v7996_v38 = vadd.f32 %v13562_v0, %v7859_v22  ;;  %vm21529_vm4 = vmmov %vm21524_vm0 }
 0xa01   :  { %v7649_v41 = vpop.permute.xlu1 %7648 }
 0xa02   :  { %v7665_v42 = vsel %vm4617_vm5, %v7663_v29, %v7649_v41 }
 0xa03   :  { %v7767_v9 = vsel %vm21498_vm3, %v7665_v42, 0  ;;  %v7647_v57 = vpop.permute.xlu0 %7646  ;;  %vm21535_vm3 = vmmov %vm21524_vm0 }
 0xa04   :  { %v7872_v43 = vand.u32 4294901760, %v7767_v9  ;;  %v7664_v28 = vsel %vm4617_vm5, %v7662_v63, %v7647_v57  ;;  %vm21530_vm5 = vmmov %vm21524_vm0 }
 0xa05   :  { %v7764_v35 = vsel %vm21499_vm9, %v7664_v28, 0  ;;  %vm21536_vm9 = vmmov %vm21524_vm0 }
 0xa06   :  { %v7873_v7 = vsub.f32 %v7767_v9, %v7872_v43  ;;  %v7862_v5 = vand.u32 4294901760, %v7764_v35 }
 0xa08   :  { %v7874_v4 = vand.u32 4294901760, %v7873_v7  ;;  %v7863_v50 = vsub.f32 %v7764_v35, %v7862_v5  ;;  %13563 = vmatprep.mubr.f32.mxu1 %v7862_v5 }
 0xa09   :  { %13564 = vmatmul.mubr.f32.gmra.mxu1 %v7872_v43 }
 0xa0a   :  { %13604 = vmatprep.mubr.f32.mxu1 %v21501_v59  ;;  %v7864_v6 = vand.u32 4294901760, %v7863_v50  ;;  %v7875_v23 = vsub.f32 %v7873_v7, %v7874_v4 }
 0xa0c   :  { %v7865_v26 = vsub.f32 %v7863_v50, %v7864_v6  ;;  %v7876_v24 = vand.u32 4294901760, %v7875_v23 }
 0xa0d   :  { %13605 = vmatmul.mubr.f32.vlgmr.msra.gmra.mxu1 %v21503_v2 }
 0xa0e   :  { %13633 = vmatpush3.msra.mxu1 %v21504_v31  ;;  %13607 = vmatprep.mubr.f32.mxu1 %v7864_v6  ;;  %v7866_v49 = vand.u32 4294901760, %v7865_v26  ;;  %v14234_v31 = vld [vmem:[#allocation3 + $0x8] sm:$0xff] }
 0xa0f   :  { %13634 = vmatprep.subr.mxu1 %v21505_v36 }
 0xa10   :  { %13635 = vmatpush3.msra.mxu1 %v21505_v36  ;;  %13541 = vmatprep.mubr.f32.mxu0 %v7866_v49 }
 0xa11   :  { %13636 = vmatprep.subr.mxu1 %v21506_v25  ;;  %13542 = vmatmul.mubr.f32.gmra.mxu0 %v7876_v24 }
 0xa12   :  { %13608 = vmatmul.mubr.f32.gmra.mxu1 %v7874_v4  ;;  %13582 = vmatprep.mubr.f32.mxu0 %v21500_v13 }
 0xa13   :  { %13637 = vmatpush3.msra.mxu1 %v21506_v25  ;;  %13648 = vmatprep.mubr.f32.mxu1 %v21507_v51 }
 0xa14   :  { %13638 = vmatprep.subr.mxu1 %v21508_v1 }
 0xa15   :  { %13639 = vmatpush3.msra.mxu1 %v21508_v1  ;;  %13583 = vmatmul.mubr.f32.vlgmr.msra.gmra.mxu0 %v21502_v17 }
 0xa16   :  { %13640 = vmatprep.subr.mxu1 %v21509_v40  ;;  %13611 = vmatpush3.msra.mxu0 %v21510_v47 }
 0xa17   :  { %13641 = vmatpush3.msra.mxu1 %v21509_v40  ;;  %13585 = vmatprep.mubr.f32.mxu0 %v7863_v50 }
 0xa18   :  { %13612 = vmatprep.subr.mxu0 %v21511_v52  ;;  %13642 = vmatprep.subr.mxu1 %v21512_v46 }
 0xa19   :  { %13613 = vmatpush3.msra.mxu0 %v21511_v52  ;;  %13643 = vmatpush3.msra.mxu1 %v21512_v46 }
 0xa1a   :  { %13614 = vmatprep.subr.mxu0 %v21513_v20  ;;  %13644 = vmatprep.subr.mxu1 %v21514_v45 }
 0xa1b   :  { %13586 = vmatmul.mubr.f32.gmra.mxu0 %v7873_v7  ;;  %13645 = vmatpush3.msra.mxu1 %v21514_v45 }
 0xa1c   :  { %13615 = vmatpush3.msra.mxu0 %v21513_v20  ;;  %13626 = vmatprep.mubr.f32.mxu0 %v21507_v51  ;;  %v14235_v51 = vld [vmem:[#allocation3] sm:$0xff]  ;;  %v14236_v20 = vld [vmem:[#allocation3 + $0x10] sm:$0xff] }
 0xa1d   :  { %13616 = vmatprep.subr.mxu0 %v21515_v8  ;;  %13646 = vmatprep.subr.mxu1 %v21516_v12 }
 0xa1e   :  { %13617 = vmatpush3.msra.mxu0 %v21515_v8  ;;  %13647 = vmatpush3.msra.mxu1 %v21516_v12  ;;  %v14237_v12 = vld [vmem:[#allocation3 + $0x18] sm:$0xff] }
 0xa1f   :  { %13618 = vmatprep.subr.mxu0 %v21517_v55  ;;  %13649 = vmatmul.mubr.f32.vlgmr.msra.gmra.mxu1 %v21518_v18 }
 0xa20   :  { %13619 = vmatpush3.msra.mxu0 %v21517_v55  ;;  %13651 = vmatprep.mubr.f32.mxu1 %v7862_v5 }
 0xa21   :  { %13620 = vmatprep.subr.mxu0 %v21519_v61 }
 0xa22   :  { %13621 = vmatpush3.msra.mxu0 %v21519_v61 }
 0xa23   :  { %13622 = vmatprep.subr.mxu0 %v21520_v60  ;;  %13652 = vmatmul.mubr.f32.gmra.mxu1 %v7872_v43 }
 0xa24   :  { %13623 = vmatpush3.msra.mxu0 %v21520_v60 }
 0xa25   :  { %13624 = vmatprep.subr.mxu0 %v21521_v16 }
 0xa26   :  { %13625 = vmatpush3.msra.mxu0 %v21521_v16 }
 0xa27   :  { %13627 = vmatmul.mubr.f32.vlgmr.msra.gmra.mxu0 %v21518_v18 }
 0xa28   :  { %13629 = vmatprep.mubr.f32.mxu0 %v7862_v5 }
 0xa2b   :  { %13630 = vmatmul.mubr.f32.gmra.mxu0 %v7872_v43 }
 0xac9   :  { %v13565_v11 = vpop.f32.mrf.mxu1 }
 0xacb   :  { %v8001_v58 = vpop.f32.mrf.mxu1 }
 0xacd   :  { %v13606_v34 = vpop.f32.mrf.mxu1 }
 0xacf   :  { %v8197_v62 = vpop.f32.mrf.mxu1 }
 0xad1   :  { %v13543_v48 = vpop.f32.mrf.mxu0 }
 0xad2   :  { %v13609_v37 = vpop.f32.mrf.mxu1  ;;  %v7879_v19 = vadd.f32 %v13543_v48, %v10704_v3 }
 0xad3   :  { %v7868_v14 = vpop.f32.mrf.mxu0 }
 0xad4   :  { %v8213_v44 = vpop.f32.mrf.mxu1  ;;  %v7869_v56 = vadd.f32 %v10704_v3, %v7868_v14  ;;  %v8008_v10 = vadd.f32 %v13565_v11, %v7879_v19 }
 0xad5   :  { %v13584_v39 = vpop.f32.mrf.mxu0 }
 0xad6   :  { %v8103_v54 = vadd.f32 %v13584_v39, %v7996_v38  ;;  %v8002_v9 = vadd.f32 %v8001_v58, %v7869_v56  ;;  %v8521_v38 = vld [vmem:[#allocation10 + $0x38] sm:$0xff] }
 0xad7   :  { %v8095_v32 = vpop.f32.mrf.mxu0 }
 0xad8   :  { %v8096_v41 = vadd.f32 %v8095_v32, %v7990_v33  ;;  %v8206_v57 = vadd.f32 %v13606_v34, %v8103_v54  ;;  %v8519_v33 = vld [vmem:[#allocation10 + $0x28] sm:$0xff] }
 0xada   :  { %v8198_v5 = vadd.f32 %v8197_v62, %v8096_v41 }
 0xadb   :  { %v13587_v30 = vpop.f32.mrf.mxu0 }
 0xadc   :  { %v8117_v63 = vadd.f32 %v13587_v30, %v8008_v10  ;;  %v8520_v30 = vld [vmem:[#allocation10 + $0x30] sm:$0xff]  ;;  %v19419_v10 = vand.u32 4294901760, %v8519_v33 }
 0xadd   :  { %v8109_v42 = vpop.f32.mrf.mxu0  ;;  %v19409_v54 = vand.u32 4294901760, %v8520_v30 }
 0xade   :  { %v8110_v35 = vadd.f32 %v8109_v42, %v8002_v9  ;;  %v8222_v59 = vadd.f32 %v13609_v37, %v8117_v63  ;;  %v8518_v42 = vld [vmem:[#allocation10 + $0x20] sm:$0xff] }
 0xadf   :  { %v13650_v29 = vpop.f32.mrf.mxu1  ;;  %v19417_v41 = vsub.f32 %v8520_v30, %v19409_v54  ;;  %v10705_v30 = vld [vmem:[%s20240_s8] ss:$0 sm:$0xff] }
 0xae0   :  { %v8214_v2 = vadd.f32 %v8213_v44, %v8110_v35  ;;  %v19404_v44 = vand.u32 4294901760, %v8521_v38 }
 0xae1   :  { %v8413_v43 = vpop.f32.mrf.mxu1  ;;  %v19426_v9 = vand.u32 4294901760, %v19417_v41 }
 0xae2   :  { %v19407_v56 = vsub.f32 %v8521_v38, %v19404_v44  ;;  %13654 = vmatprep.subr.mxu0 %v19404_v44 }
 0xae3   :  { %v13653_v6 = vpop.f32.mrf.mxu1  ;;  %13655 = vmatpush3.msra.mxu0 %v19404_v44 }
 0xae4   :  { %13656 = vmatprep.subr.mxu0 %v19409_v54 }
 0xae5   :  { %v8425_v40 = vpop.f32.mrf.mxu1  ;;  %13657 = vmatpush3.msra.mxu0 %v19409_v54 }
 0xae6   :  { %13658 = vmatprep.subr.mxu0 %v19419_v10 }
 0xae7   :  { %v13628_v28 = vpop.f32.mrf.mxu0  ;;  %13659 = vmatpush3.msra.mxu0 %v19419_v10 }
 0xae8   :  { %v8323_v7 = vadd.f32 %v13628_v28, %v8206_v57  ;;  %v19429_v57 = vsub.f32 %v8519_v33, %v19419_v10  ;;  %v8517_v28 = vld [vmem:[#allocation10 + $0x18] sm:$0xff] }
 0xae9   :  { %v8316_v4 = vpop.f32.mrf.mxu0 }
 0xaea   :  { %v8420_v50 = vadd.f32 %v13650_v29, %v8323_v7  ;;  %v8317_v13 = vadd.f32 %v8316_v4, %v8198_v5  ;;  %v19414_v29 = vand.u32 4294901760, %v19407_v56  ;;  %v8681_v7 = vsub.f32 %v19417_v41, %v19426_v9 }
 0xaeb   :  { %v13631_v23 = vpop.f32.mrf.mxu0  ;;  %v19438_v5 = vand.u32 4294901760, %v19429_v57 }
 0xaec   :  { %v8414_v26 = vadd.f32 %v8413_v43, %v8317_v13  ;;  %v8335_v17 = vadd.f32 %v13631_v23, %v8222_v59  ;;  %v8438_v49 = vadd.f32 %v14234_v31, %v8420_v50  ;;  %v8674_v63 = vsub.f32 %v19407_v56, %v19414_v29  ;;  %v8516_v13 = vld [vmem:[#allocation10 + $0x10] sm:$0xff] }
 0xaed   :  { %v8328_v36 = vpop.f32.mrf.mxu0  ;;  %v19431_v43 = vand.u32 4294901760, %v8518_v42  ;;  %v19444_v50 = vand.u32 4294901760, %v8517_v28  ;;  %v8682_v59 = vand.u32 4294901760, %v8681_v7 }
 0xaee   :  { %v8329_v24 = vadd.f32 %v8328_v36, %v8214_v2  ;;  %v8444_v25 = vsel %vm21522_vm6, %v8438_v49, 0.0  ;;  %v8437_v1 = vadd.f32 %v14235_v51, %v8414_v26  ;;  %v8432_v47 = vadd.f32 %v13653_v6, %v8335_v17  ;;  %v8515_v2 = vld [vmem:[#allocation10 + $0x8] sm:$0xff]  ;;  %v8514_v51 = vld [vmem:[#allocation10] sm:$0xff]  ;;  %vm21537_vm6 = vmmov %vm21524_vm0 }
 0xaef   :  { %8445 = vadd.xlane.f32.xlu1 %v8444_v25  ;;  %v8675_v35 = vand.u32 4294901760, %v8674_v63  ;;  %v19441_v4 = vsub.f32 %v8518_v42, %v19431_v43  ;;  %13660 = vmatprep.subr.mxu0 %v19431_v43  ;;  %v8688_v6 = vsub.f32 %v19429_v57, %v19438_v5  ;;  %v19452_v26 = vand.u32 4294901760, %v8516_v13  ;;  %v10706_v63 = vld [vmem:[%s20241_s9] ss:$0 sm:$0xff] }
 0xaf0   :  { %v8426_v52 = vadd.f32 %v8425_v40, %v8329_v24  ;;  %v8441_v46 = vsel %vm21523_vm11, %v8437_v1, 0.0  ;;  %v8440_v55 = vadd.f32 %v14237_v12, %v8432_v47  ;;  %13661 = vmatpush3.msra.mxu0 %v19431_v43  ;;  %v19455_v17 = vsub.f32 %v8517_v28, %v19444_v50  ;;  %vm21538_vm11 = vmmov %vm21524_vm0 }
 0xaf1   :  { %8442 = vadd.xlane.f32.xlu0 %v8441_v46  ;;  %13676 = vmatprep.subr.mxu1 %v8675_v35  ;;  %v19450_v23 = vand.u32 4294901760, %v19441_v4  ;;  %v8689_v31 = vand.u32 4294901760, %v8688_v6  ;;  %v19461_v36 = vsub.f32 %v8516_v13, %v19452_v26  ;;  %v19463_v24 = vand.u32 4294901760, %v8515_v2 }
 0xaf2   :  { %v8439_v45 = vadd.f32 %v14236_v20, %v8426_v52  ;;  %v8450_v18 = vsel %vm21525_vm10, %v8440_v55, 0.0  ;;  %13677 = vmatpush3.msra.mxu1 %v8675_v35  ;;  %13662 = vmatprep.subr.mxu0 %v19444_v50  ;;  %v19467_v25 = vand.u32 4294901760, %v19455_v17  ;;  %v19476_v52 = vand.u32 4294901760, %v8514_v51  ;;  %vm21539_vm10 = vmmov %vm21524_vm0 }
 0xaf3   :  { %13678 = vmatprep.subr.mxu1 %v8682_v59  ;;  %13663 = vmatpush3.msra.mxu0 %v19444_v50  ;;  %v19471_v40 = vand.u32 4294901760, %v19461_v36  ;;  %v19474_v47 = vsub.f32 %v8515_v2, %v19463_v24 }
 0xaf4   :  { %v8447_v8 = vsel %vm21524_vm0, %v8439_v45, 0.0  ;;  %13679 = vmatpush3.msra.mxu1 %v8682_v59  ;;  %13664 = vmatprep.subr.mxu0 %v19452_v26  ;;  %v8702_v46 = vsub.f32 %v19455_v17, %v19467_v25 }
 0xaf5   :  { %8448 = vadd.xlane.f32.xlu0 %v8447_v8  ;;  %13680 = vmatprep.subr.mxu1 %v8689_v31  ;;  %v8709_v20 = vsub.f32 %v19461_v36, %v19471_v40  ;;  %v19488_v8 = vsub.f32 %v8514_v51, %v19476_v52 }
 0xaf6   :  { %13665 = vmatpush3.msra.mxu0 %v19452_v26  ;;  %13681 = vmatpush3.msra.mxu1 %v8689_v31  ;;  %v8703_v12 = vand.u32 4294901760, %v8702_v46 }
 0xaf7   :  { %13666 = vmatprep.subr.mxu0 %v19463_v24 }
 0xaf8   :  { %13667 = vmatpush3.msra.mxu0 %v19463_v24 }
 0xaf9   :  { %8451 = vadd.xlane.f32.xlu0 %v8450_v18  ;;  %13668 = vmatprep.subr.mxu0 %v19476_v52 }
 0xafa   :  { %13669 = vmatpush3.msra.mxu0 %v19476_v52 }
 0xafb   :  { %13698 = vmatprep.subr.mxu0 %v19407_v56 }
 0xb78   :  { %v8446_v61 = vpop.xlane.xlu1 %8445 }
 0xb79   :  { %v8455_v60 = vmul.f32 0.015625, %v8446_v61  ;;  %v19495_v61 = vand.u32 4294901760, %v19488_v8 }
 0xb7a   :  { %v8443_v16 = vpop.xlane.xlu0 %8442 }
 0xb7b   :  { %v19384_v0 = vsub.f32 %v8438_v49, %v8455_v60  ;;  %v8454_v53 = vmul.f32 0.015625, %v8443_v16  ;;  %v8695_v49 = vsub.f32 %v19441_v4, %v19450_v23  ;;  %v8723_v16 = vsub.f32 %v19488_v8, %v19495_v61 }
 0xb7d   :  { %v19386_v21 = vsub.f32 %v8437_v1, %v8454_v53  ;;  %v8463_v11 = vmul.f32 %v19384_v0, %v19384_v0  ;;  %v8696_v1 = vand.u32 4294901760, %v8695_v49  ;;  %v8724_v53 = vand.u32 4294901760, %v8723_v16 }
 0xb7e   :  { %v8449_v27 = vpop.xlane.xlu0 %8448 }
 0xb7f   :  { %v8456_v58 = vmul.f32 0.015625, %v8449_v27  ;;  %v8469_v48 = vsel %vm21526_vm13, %v8463_v11, 0.0  ;;  %v8462_v34 = vmul.f32 %v19386_v21, %v19386_v21  ;;  %13682 = vmatprep.subr.mxu1 %v8696_v1  ;;  %vm21540_vm13 = vmmov %vm21524_vm0 }
 0xb80   :  { %8470 = vadd.xlane.f32.xlu0 %v8469_v48  ;;  %13683 = vmatpush3.msra.mxu1 %v8696_v1 }
 0xb81   :  { %v19393_v14 = vsub.f32 %v8439_v45, %v8456_v58  ;;  %v8466_v3 = vsel %vm21527_vm12, %v8462_v34, 0.0  ;;  %v19485_v45 = vand.u32 4294901760, %v19474_v47  ;;  %13684 = vmatprep.subr.mxu1 %v8703_v12  ;;  %vm21541_vm12 = vmmov %vm21524_vm0 }
 0xb82   :  { %8467 = vadd.xlane.f32.xlu1 %v8466_v3  ;;  %v8452_v62 = vpop.xlane.xlu0 %8451  ;;  %13685 = vmatpush3.msra.mxu1 %v8703_v12 }
 0xb83   :  { %v8457_v39 = vmul.f32 0.015625, %v8452_v62  ;;  %v8464_v22 = vmul.f32 %v19393_v14, %v19393_v14  ;;  %v8716_v18 = vsub.f32 %v19474_v47, %v19485_v45 }
 0xb85   :  { %v19398_v37 = vsub.f32 %v8440_v55, %v8457_v39  ;;  %v8472_v32 = vsel %vm21528_vm15, %v8464_v22, 0.0  ;;  %v8710_v55 = vand.u32 4294901760, %v8709_v20  ;;  %v8717_v60 = vand.u32 4294901760, %v8716_v18  ;;  %vm21542_vm15 = vmmov %vm21524_vm0 }
 0xb86   :  { %8473 = vadd.xlane.f32.xlu1 %v8472_v32 }
 0xb87   :  { %v8465_v15 = vmul.f32 %v19398_v37, %v19398_v37  ;;  %13686 = vmatprep.subr.mxu1 %v8710_v55 }
 0xb88   :  { %13687 = vmatpush3.msra.mxu1 %v8710_v55 }
 0xb89   :  { %v8475_v19 = vsel %vm21529_vm4, %v8465_v15, 0.0  ;;  %13688 = vmatprep.subr.mxu1 %v8717_v60  ;;  %vm21543_vm4 = vmmov %vm21524_vm0 }
 0xb8a   :  { %8476 = vadd.xlane.f32.xlu0 %v8475_v19  ;;  %13689 = vmatpush3.msra.mxu1 %v8717_v60 }
 0xb8b   :  { %13690 = vmatprep.subr.mxu1 %v8724_v53 }
 0xb8c   :  { %13691 = vmatpush3.msra.mxu1 %v8724_v53 }
 0xb8d   :  { %13720 = vmatprep.subr.mxu1 %v19404_v44 }
 0xc09   :  { %v8471_v11 = vpop.xlane.xlu0 %8470 }
 0xc0a   :  { %v8479_v27 = vmul.f32 0.015625, %v8471_v11 }
 0xc0b   :  { %v8468_v58 = vpop.xlane.xlu1 %8467 }
 0xc0c   :  { %v8483_v48 = vadd.f32 1e-05, %v8479_v27  ;;  %v8478_v34 = vmul.f32 0.015625, %v8468_v58 }
 0xc0e   :  { %14200 = vrsqrt.f32 %v8483_v48  ;;  %v8482_v3 = vadd.f32 1e-05, %v8478_v34 }
 0xc0f   :  { %v8474_v62 = vpop.xlane.xlu1 %8473 }
 0xc10   :  { %14202 = vrsqrt.f32 %v8482_v3  ;;  %v8480_v39 = vmul.f32 0.015625, %v8474_v62 }
 0xc12   :  { %v8484_v22 = vadd.f32 1e-05, %v8480_v39 }
 0xc13   :  { %v8477_v32 = vpop.xlane.xlu0 %8476 }
 0xc14   :  { %14204 = vrsqrt.f32 %v8484_v22  ;;  %v8481_v15 = vmul.f32 0.015625, %v8477_v32 }
 0xc16   :  { %v8485_v19 = vadd.f32 1e-05, %v8481_v15 }
 0xc18   :  { %14206 = vrsqrt.f32 %v8485_v19 }
 0xc1b   :  { %v14201_v38 = vpop.eup %14200 }
 0xc1c   :  { %v8491_v33 = vmul.f32 %v14201_v38, %v19384_v0 }
 0xc1d   :  { %v14203_v42 = vpop.eup %14202 }
 0xc1e   :  { %v8501_v28 = vmul.f32 %v10705_v30, %v8491_v33  ;;  %v8490_v35 = vmul.f32 %v14203_v42, %v19386_v21 }
 0xc20   :  { %v19510_v7 = vadd.f32 %v10706_v63, %v8501_v28  ;;  %v8500_v13 = vmul.f32 %v10705_v30, %v8490_v35 }
 0xc21   :  { %v14205_v59 = vpop.eup %14204 }
 0xc22   :  { %v19512_v6 = vadd.f32 %v10706_v63, %v8500_v13  ;;  %v8533_v2 = vsel %vm21530_vm5, %v19510_v7, 0  ;;  %v8492_v31 = vmul.f32 %v14205_v59, %v19393_v14  ;;  %vm21544_vm5 = vmmov %vm21524_vm0 }
 0xc23   :  { %v19517_v0 = vand.u32 4294901760, %v8533_v2 }
 0xc24   :  { %v8530_v49 = vsel %vm21531_vm1, %v19512_v6, 0  ;;  %v8502_v51 = vmul.f32 %v10705_v30, %v8492_v31  ;;  %v9211_v31 = vld [vmem:[#allocation11] sm:$0xff]  ;;  %vm21573_vm1 = vmmov %vm21524_vm0 }
 0xc25   :  { %v14207_v1 = vpop.eup %14206  ;;  %v19521_v46 = vand.u32 4294901760, %v8530_v49  ;;  %v19524_v21 = vsub.f32 %v8533_v2, %v19517_v0 }
 0xc26   :  { %v19526_v20 = vadd.f32 %v10706_v63, %v8502_v51  ;;  %v8493_v12 = vmul.f32 %v14207_v1, %v19398_v37  ;;  %v19691_v1 = vand.u32 4294901760, %v9211_v31 }
 0xc27   :  { %13692 = vmatprep.mubr.f32.mxu1 %v19521_v46  ;;  %v8615_v14 = vsub.f32 %v8530_v49, %v19521_v46  ;;  %v8626_v55 = vand.u32 4294901760, %v19524_v21 }
 0xc28   :  { %13693 = vmatmul.mubr.f32.vlgmr.msra.gmra.mxu1 %v19517_v0  ;;  %v8536_v18 = vsel %vm21532_vm14, %v19526_v20, 0  ;;  %v8503_v60 = vmul.f32 %v10705_v30, %v8493_v12  ;;  %vm21574_vm14 = vmmov %vm21524_vm0 }
 0xc29   :  { %13721 = vmatpush3.msra.mxu1 %v19404_v44  ;;  %v19536_v16 = vand.u32 4294901760, %v8536_v18  ;;  %v8616_v53 = vand.u32 4294901760, %v8615_v14  ;;  %v8627_v27 = vsub.f32 %v19524_v21, %v8626_v55 }
 0xc2a   :  { %13722 = vmatprep.subr.mxu1 %v19409_v54  ;;  %v19539_v37 = vadd.f32 %v10706_v63, %v8503_v60  ;;  %v9212_v63 = vld [vmem:[#allocation11 + $0x8] sm:$0xff] }
 0xc2b   :  { %13723 = vmatpush3.msra.mxu1 %v19409_v54  ;;  %13695 = vmatprep.mubr.f32.mxu1 %v19536_v16  ;;  %v8617_v11 = vsub.f32 %v8615_v14, %v8616_v53  ;;  %v8635_v58 = vsub.f32 %v8536_v18, %v19536_v16  ;;  %v8628_v22 = vand.u32 4294901760, %v8627_v27  ;;  %v19678_v59 = vand.u32 4294901760, %v9212_v63 }
 0xc2c   :  { %13724 = vmatprep.subr.mxu1 %v19419_v10  ;;  %v8539_v48 = vsel %vm21533_vm8, %v19539_v37, 0  ;;  %vm21575_vm8 = vmmov %vm21524_vm0 }
 0xc2d   :  { %13725 = vmatpush3.msra.mxu1 %v19419_v10  ;;  %v8618_v34 = vand.u32 4294901760, %v8617_v11  ;;  %v19549_v3 = vand.u32 4294901760, %v8539_v48  ;;  %v8636_v62 = vand.u32 4294901760, %v8635_v58  ;;  %v19689_v51 = vsub.f32 %v9212_v63, %v19678_v59 }
 0xc2e   :  { %13726 = vmatprep.subr.mxu1 %v19431_v43 }
 0xc2f   :  { %13727 = vmatpush3.msra.mxu1 %v19431_v43  ;;  %13670 = vmatprep.mubr.f32.mxu0 %v8618_v34  ;;  %v8645_v39 = vsub.f32 %v8539_v48, %v19549_v3  ;;  %v8637_v32 = vsub.f32 %v8635_v58, %v8636_v62  ;;  %v19700_v12 = vand.u32 4294901760, %v19689_v51 }
 0xc30   :  { %13696 = vmatmul.mubr.f32.gmra.mxu1 %v19549_v3  ;;  %13728 = vmatprep.subr.mxu1 %v19444_v50 }
 0xc31   :  { %13671 = vmatmul.mubr.f32.vlgmr.msra.gmra.mxu0 %v8628_v22  ;;  %13729 = vmatpush3.msra.mxu1 %v19444_v50  ;;  %v8638_v15 = vand.u32 4294901760, %v8637_v32  ;;  %v8646_v19 = vand.u32 4294901760, %v8645_v39  ;;  %v9413_v60 = vsub.f32 %v19689_v51, %v19700_v12 }
 0xc32   :  { %13699 = vmatpush3.msra.mxu0 %v19407_v56  ;;  %13736 = vmatprep.mubr.f32.mxu1 %v8616_v53 }
 0xc33   :  { %13700 = vmatprep.subr.mxu0 %v19417_v41  ;;  %13730 = vmatprep.subr.mxu1 %v19452_v26  ;;  %v8647_v38 = vsub.f32 %v8645_v39, %v8646_v19  ;;  %v9414_v53 = vand.u32 4294901760, %v9413_v60 }
 0xc34   :  { %13701 = vmatpush3.msra.mxu0 %v19417_v41  ;;  %13731 = vmatpush3.msra.mxu1 %v19452_v26 }
 0xc35   :  { %13673 = vmatprep.mubr.f32.mxu0 %v8638_v15  ;;  %13702 = vmatprep.subr.mxu0 %v19429_v57  ;;  %v8648_v30 = vand.u32 4294901760, %v8647_v38 }
 0xc36   :  { %13732 = vmatprep.subr.mxu1 %v19463_v24  ;;  %13703 = vmatpush3.msra.mxu0 %v19429_v57 }
 0xc37   :  { %13733 = vmatpush3.msra.mxu1 %v19463_v24  ;;  %13704 = vmatprep.subr.mxu0 %v19441_v4 }
 0xc38   :  { %13734 = vmatprep.subr.mxu1 %v19476_v52  ;;  %13705 = vmatpush3.msra.mxu0 %v19441_v4 }
 0xc39   :  { %13735 = vmatpush3.msra.mxu1 %v19476_v52  ;;  %13674 = vmatmul.mubr.f32.gmra.mxu0 %v8648_v30 }
 0xc3a   :  { %13706 = vmatprep.subr.mxu0 %v19455_v17  ;;  %13737 = vmatmul.mubr.f32.vlgmr.msra.gmra.mxu1 %v8626_v55 }
 0xc3b   :  { %13764 = vmatprep.subr.mxu1 %v19404_v44  ;;  %13707 = vmatpush3.msra.mxu0 %v19455_v17  ;;  %v9214_v17 = vld [vmem:[#allocation11 + $0x18] sm:$0xff] }
 0xc3c   :  { %13714 = vmatprep.mubr.f32.mxu0 %v8615_v14  ;;  %13739 = vmatprep.mubr.f32.mxu1 %v8636_v62  ;;  %v19703_v14 = vsub.f32 %v9211_v31, %v19691_v1 }
 0xc3d   :  { %13765 = vmatpush3.msra.mxu1 %v19404_v44  ;;  %13708 = vmatprep.subr.mxu0 %v19461_v36  ;;  %v9218_v44 = vld [vmem:[#allocation11 + $0x38] sm:$0xff] }
 0xc3e   :  { %13766 = vmatprep.subr.mxu1 %v19409_v54  ;;  %13709 = vmatpush3.msra.mxu0 %v19461_v36  ;;  %v19619_v56 = vand.u32 4294901760, %v9218_v44 }
 0xc3f   :  { %13767 = vmatpush3.msra.mxu1 %v19409_v54  ;;  %13710 = vmatprep.subr.mxu0 %v19474_v47  ;;  %v9217_v54 = vld [vmem:[#allocation11 + $0x30] sm:$0xff] }
 0xc40   :  { %13740 = vmatmul.mubr.f32.gmra.mxu1 %v8646_v19  ;;  %13768 = vmatprep.subr.mxu1 %v19419_v10  ;;  %v19624_v41 = vand.u32 4294901760, %v9217_v54  ;;  %v10707_v19 = vld [vmem:[%s20243_s11] ss:$0 sm:$0xff] }
 0xc41   :  { %13711 = vmatpush3.msra.mxu0 %v19474_v47  ;;  %13769 = vmatpush3.msra.mxu1 %v19419_v10  ;;  %v9216_v10 = vld [vmem:[#allocation11 + $0x28] sm:$0xff]  ;;  %v19659_v47 = vand.u32 4294901760, %v9214_v17 }
 0xc42   :  { %13780 = vmatprep.mubr.f32.mxu1 %v19521_v46  ;;  %13712 = vmatprep.subr.mxu0 %v19488_v8  ;;  %v19632_v57 = vsub.f32 %v9217_v54, %v19624_v41 }
 0xc43   :  { %13770 = vmatprep.subr.mxu1 %v19431_v43  ;;  %13713 = vmatpush3.msra.mxu0 %v19488_v8  ;;  %v19670_v42 = vsub.f32 %v9214_v17, %v19659_v47 }
 0xc44   :  { %13771 = vmatpush3.msra.mxu1 %v19431_v43  ;;  %13715 = vmatmul.mubr.f32.vlgmr.msra.gmra.mxu0 %v19524_v21  ;;  %v19634_v43 = vand.u32 4294901760, %v9216_v10 }
 0xc45   :  { %13742 = vmatprep.subr.mxu0 %v19414_v29  ;;  %13772 = vmatprep.subr.mxu1 %v19444_v50  ;;  %v19682_v2 = vand.u32 4294901760, %v19670_v42 }
 0xc46   :  { %13717 = vmatprep.mubr.f32.mxu0 %v8635_v58  ;;  %13743 = vmatpush3.msra.mxu0 %v19414_v29  ;;  %v19622_v29 = vsub.f32 %v9218_v44, %v19619_v56 }
 0xc47   :  { %13773 = vmatpush3.msra.mxu1 %v19444_v50  ;;  %13744 = vmatprep.subr.mxu0 %v19426_v9  ;;  %v19641_v50 = vand.u32 4294901760, %v19632_v57 }
 0xc48   :  { %13774 = vmatprep.subr.mxu1 %v19452_v26  ;;  %13745 = vmatpush3.msra.mxu0 %v19426_v9  ;;  %v19629_v9 = vand.u32 4294901760, %v19622_v29 }
 0xc49   :  { %13775 = vmatpush3.msra.mxu1 %v19452_v26  ;;  %13718 = vmatmul.mubr.f32.gmra.mxu0 %v8645_v39 }
 0xc4a   :  { %13746 = vmatprep.subr.mxu0 %v19438_v5  ;;  %13776 = vmatprep.subr.mxu1 %v19463_v24  ;;  %v9371_v4 = vsub.f32 %v19622_v29, %v19629_v9 }
 0xc4b   :  { %13747 = vmatpush3.msra.mxu0 %v19438_v5  ;;  %13758 = vmatprep.mubr.f32.mxu0 %v19521_v46  ;;  %v9215_v5 = vld [vmem:[#allocation11 + $0x20] sm:$0xff]  ;;  %v9399_v46 = vsub.f32 %v19670_v42, %v19682_v2 }
 0xc4c   :  { %13777 = vmatpush3.msra.mxu1 %v19463_v24  ;;  %13748 = vmatprep.subr.mxu0 %v19450_v23  ;;  %v19646_v26 = vand.u32 4294901760, %v9215_v5  ;;  %v9372_v36 = vand.u32 4294901760, %v9371_v4  ;;  %v9378_v24 = vsub.f32 %v19632_v57, %v19641_v50 }
 0xc4d   :  { %13778 = vmatprep.subr.mxu1 %v19476_v52  ;;  %13749 = vmatpush3.msra.mxu0 %v19450_v23  ;;  %v19644_v23 = vsub.f32 %v9216_v10, %v19634_v43  ;;  %v9400_v55 = vand.u32 4294901760, %v9399_v46 }
 0xc4e   :  { %13779 = vmatpush3.msra.mxu1 %v19476_v52  ;;  %13750 = vmatprep.subr.mxu0 %v19467_v25  ;;  %v9213_v52 = vld [vmem:[#allocation11 + $0x10] sm:$0xff] }
 0xc4f   :  { %13781 = vmatmul.mubr.f32.vlgmr.msra.gmra.mxu1 %v19517_v0  ;;  %13751 = vmatpush3.msra.mxu0 %v19467_v25  ;;  %v19653_v25 = vand.u32 4294901760, %v19644_v23  ;;  %v19667_v33 = vand.u32 4294901760, %v9213_v52 }
 0xc50   :  { %13783 = vmatprep.mubr.f32.mxu1 %v19536_v16  ;;  %13752 = vmatprep.subr.mxu0 %v19471_v40 }
 0xc51   :  { %13753 = vmatpush3.msra.mxu0 %v19471_v40  ;;  %v19656_v40 = vsub.f32 %v9215_v5, %v19646_v26  ;;  %13808 = vmatprep.subr.mxu1 %v9372_v36  ;;  %v9385_v8 = vsub.f32 %v19644_v23, %v19653_v25  ;;  %v19676_v13 = vsub.f32 %v9213_v52, %v19667_v33 }
 0xc52   :  { %13754 = vmatprep.subr.mxu0 %v19485_v45  ;;  %13809 = vmatpush3.msra.mxu1 %v9372_v36 }
 0xc53   :  { %13784 = vmatmul.mubr.f32.gmra.mxu1 %v19549_v3  ;;  %13755 = vmatpush3.msra.mxu0 %v19485_v45  ;;  %v9379_v45 = vand.u32 4294901760, %v9378_v24  ;;  %v9386_v28 = vand.u32 4294901760, %v9385_v8  ;;  %v19686_v49 = vand.u32 4294901760, %v19676_v13 }
 0xc54   :  { %13756 = vmatprep.subr.mxu0 %v19495_v61 }
 0xc55   :  { %13757 = vmatpush3.msra.mxu0 %v19495_v61  ;;  %v19665_v61 = vand.u32 4294901760, %v19656_v40  ;;  %13810 = vmatprep.subr.mxu1 %v9379_v45  ;;  %v9406_v21 = vsub.f32 %v19676_v13, %v19686_v49 }
 0xc56   :  { %13759 = vmatmul.mubr.f32.vlgmr.msra.gmra.mxu0 %v19517_v0  ;;  %13786 = vmatprep.subr.mxu0 %v19619_v56 }
 0xc57   :  { %13761 = vmatprep.mubr.f32.mxu0 %v19536_v16  ;;  %13787 = vmatpush3.msra.mxu0 %v19619_v56  ;;  %v9392_v35 = vsub.f32 %v19656_v40, %v19665_v61  ;;  %v9407_v18 = vand.u32 4294901760, %v9406_v21  ;;  %v19710_v16 = vand.u32 4294901760, %v19703_v14 }
 0xc58   :  { %13788 = vmatprep.subr.mxu0 %v19624_v41  ;;  %13811 = vmatpush3.msra.mxu1 %v9379_v45 }
 0xc59   :  { %13789 = vmatpush3.msra.mxu0 %v19624_v41  ;;  %13812 = vmatprep.subr.mxu1 %v9386_v28  ;;  %v9393_v0 = vand.u32 4294901760, %v9392_v35  ;;  %v9420_v11 = vsub.f32 %v19703_v14, %v19710_v16 }
 0xc5a   :  { %13762 = vmatmul.mubr.f32.gmra.mxu0 %v19549_v3  ;;  %13790 = vmatprep.subr.mxu0 %v19634_v43 }
 0xc5b   :  { %13791 = vmatpush3.msra.mxu0 %v19634_v43  ;;  %13813 = vmatpush3.msra.mxu1 %v9386_v28  ;;  %v9421_v27 = vand.u32 4294901760, %v9420_v11 }
 0xc5c   :  { %13792 = vmatprep.subr.mxu0 %v19646_v26  ;;  %13814 = vmatprep.subr.mxu1 %v9393_v0 }
 0xc5d   :  { %13793 = vmatpush3.msra.mxu0 %v19646_v26  ;;  %13815 = vmatpush3.msra.mxu1 %v9393_v0 }
 0xc5e   :  { %13794 = vmatprep.subr.mxu0 %v19659_v47  ;;  %13816 = vmatprep.subr.mxu1 %v9400_v55 }
 0xc5f   :  { %13795 = vmatpush3.msra.mxu0 %v19659_v47  ;;  %13817 = vmatpush3.msra.mxu1 %v9400_v55 }
 0xc60   :  { %13796 = vmatprep.subr.mxu0 %v19667_v33  ;;  %13818 = vmatprep.subr.mxu1 %v9407_v18 }
 0xc61   :  { %13797 = vmatpush3.msra.mxu0 %v19667_v33  ;;  %13819 = vmatpush3.msra.mxu1 %v9407_v18 }
 0xc62   :  { %13798 = vmatprep.subr.mxu0 %v19678_v59  ;;  %13820 = vmatprep.subr.mxu1 %v9414_v53 }
 0xc63   :  { %13799 = vmatpush3.msra.mxu0 %v19678_v59  ;;  %13821 = vmatpush3.msra.mxu1 %v9414_v53 }
 0xc64   :  { %13800 = vmatprep.subr.mxu0 %v19691_v1  ;;  %13822 = vmatprep.subr.mxu1 %v9421_v27 }
 0xc65   :  { %13801 = vmatpush3.msra.mxu0 %v19691_v1  ;;  %13823 = vmatpush3.msra.mxu1 %v9421_v27 }
 0xc66   :  { %13830 = vmatprep.subr.mxu0 %v19622_v29  ;;  %13852 = vmatprep.subr.mxu1 %v19619_v56 }
 0xce8   :  { %v13694_v58 = vpop.f32.mrf.mxu1 }
 0xcea   :  { %v8761_v48 = vpop.f32.mrf.mxu1 }
 0xcf0   :  { %v13697_v3 = vpop.f32.mrf.mxu1 }
 0xcf1   :  { %v13672_v34 = vpop.f32.mrf.mxu0 }
 0xcf2   :  { %v8773_v39 = vpop.f32.mrf.mxu1  ;;  %v8631_v44 = vadd.f32 %v13672_v34, %v10707_v19 }
 0xcf3   :  { %v8620_v62 = vpop.f32.mrf.mxu0 }
 0xcf4   :  { %v8621_v5 = vadd.f32 %v10707_v19, %v8620_v62  ;;  %v8768_v17 = vadd.f32 %v13694_v58, %v8631_v44 }
 0xcf6   :  { %v8762_v8 = vadd.f32 %v8761_v48, %v8621_v5 }
 0xcf9   :  { %v13675_v22 = vpop.f32.mrf.mxu0 }
 0xcfa   :  { %v13738_v32 = vpop.f32.mrf.mxu1  ;;  %v8651_v4 = vadd.f32 %v13675_v22, %v10707_v19 }
 0xcfb   :  { %v8640_v15 = vpop.f32.mrf.mxu0 }
 0xcfc   :  { %v8969_v38 = vpop.f32.mrf.mxu1  ;;  %v8641_v52 = vadd.f32 %v10707_v19, %v8640_v15  ;;  %v8780_v35 = vadd.f32 %v13697_v3, %v8651_v4 }
 0xcfe   :  { %v8774_v46 = vadd.f32 %v8773_v39, %v8641_v52 }
 0xd00   :  { %v13741_v54 = vpop.f32.mrf.mxu1 }
 0xd02   :  { %v8985_v36 = vpop.f32.mrf.mxu1 }
 0xd04   :  { %v13716_v30 = vpop.f32.mrf.mxu0 }
 0xd05   :  { %v8875_v45 = vadd.f32 %v13716_v30, %v8768_v17 }
 0xd06   :  { %v8867_v10 = vpop.f32.mrf.mxu0 }
 0xd07   :  { %v8868_v28 = vadd.f32 %v8867_v10, %v8762_v8  ;;  %v8978_v21 = vadd.f32 %v13738_v32, %v8875_v45 }
 0xd09   :  { %v13719_v24 = vpop.f32.mrf.mxu0  ;;  %v8970_v11 = vadd.f32 %v8969_v38, %v8868_v28 }
 0xd0a   :  { %v8889_v0 = vadd.f32 %v13719_v24, %v8780_v35 }
 0xd0b   :  { %v8881_v31 = vpop.f32.mrf.mxu0 }
 0xd0c   :  { %v8882_v60 = vadd.f32 %v8881_v31, %v8774_v46  ;;  %v8994_v62 = vadd.f32 %v13741_v54, %v8889_v0 }
 0xd0e   :  { %v8986_v44 = vadd.f32 %v8985_v36, %v8882_v60 }
 0xd0f   :  { %v13782_v63 = vpop.f32.mrf.mxu1 }
 0xd11   :  { %v9185_v55 = vpop.f32.mrf.mxu1 }
 0xd13   :  { %v13785_v22 = vpop.f32.mrf.mxu1 }
 0xd15   :  { %v9197_v4 = vpop.f32.mrf.mxu1 }
 0xd16   :  { %v13760_v18 = vpop.f32.mrf.mxu0 }
 0xd17   :  { %v9095_v53 = vadd.f32 %v13760_v18, %v8978_v21 }
 0xd18   :  { %v9088_v27 = vpop.f32.mrf.mxu0 }
 0xd19   :  { %v9192_v34 = vadd.f32 %v13782_v63, %v9095_v53  ;;  %v9089_v58 = vadd.f32 %v9088_v27, %v8970_v11 }
 0xd1a   :  { %v13763_v15 = vpop.f32.mrf.mxu0 }
 0xd1b   :  { %v9208_v19 = vmax.f32 %v9192_v34, 0.0  ;;  %v9186_v48 = vadd.f32 %v9185_v55, %v9089_v58  ;;  %v9107_v30 = vadd.f32 %v13763_v15, %v8994_v62 }
 0xd1c   :  { %v9100_v3 = vpop.f32.mrf.mxu0 }
 0xd1d   :  { %v9230_v10 = vsel %vm21534_vm2, %v9208_v19, 0  ;;  %v9207_v39 = vmax.f32 %v9186_v48, 0.0  ;;  %v9204_v32 = vadd.f32 %v13785_v22, %v9107_v30  ;;  %v9101_v5 = vadd.f32 %v9100_v3, %v8986_v44  ;;  %vm21576_vm2 = vmmov %vm21524_vm0 }
 0xd1e   :  { %v19721_v17 = vand.u32 4294901760, %v9230_v10 }
 0xd1f   :  { %v9227_v38 = vsel %vm21535_vm3, %v9207_v39, 0  ;;  %v9210_v24 = vmax.f32 %v9204_v32, 0.0  ;;  %v9198_v52 = vadd.f32 %v9197_v4, %v9101_v5 }
 0xd20   :  { %v19725_v54 = vsub.f32 %v9230_v10, %v19721_v17  ;;  %v19727_v45 = vand.u32 4294901760, %v9227_v38 }
 0xd21   :  { %v9236_v36 = vsel %vm21536_vm9, %v9210_v24, 0  ;;  %v9209_v8 = vmax.f32 %v9198_v52, 0.0 }
 0xd22   :  { %v9323_v63 = vand.u32 4294901760, %v19725_v54  ;;  %v9312_v28 = vsub.f32 %v9227_v38, %v19727_v45  ;;  %v19732_v35 = vand.u32 4294901760, %v9236_v36  ;;  %13824 = vmatprep.mubr.f32.mxu1 %v19727_v45 }
 0xd23   :  { %v9233_v31 = vsel %vm21537_vm6, %v9209_v8, 0  ;;  %13825 = vmatmul.mubr.f32.vlgmr.msra.gmra.mxu1 %v19721_v17 }
 0xd24   :  { %v19738_v0 = vsub.f32 %v9236_v36, %v19732_v35  ;;  %v19740_v46 = vand.u32 4294901760, %v9233_v31  ;;  %13853 = vmatpush3.msra.mxu1 %v19619_v56  ;;  %v9313_v21 = vand.u32 4294901760, %v9312_v28  ;;  %v9324_v55 = vsub.f32 %v19725_v54, %v9323_v63 }
 0xd25   :  { %13854 = vmatprep.subr.mxu1 %v19624_v41 }
 0xd26   :  { %v9332_v18 = vsub.f32 %v9233_v31, %v19740_v46  ;;  %13855 = vmatpush3.msra.mxu1 %v19624_v41  ;;  %13827 = vmatprep.mubr.f32.mxu1 %v19740_v46  ;;  %v9314_v60 = vsub.f32 %v9312_v28, %v9313_v21  ;;  %v9343_v53 = vand.u32 4294901760, %v19738_v0  ;;  %v9325_v34 = vand.u32 4294901760, %v9324_v55 }
 0xd27   :  { %13856 = vmatprep.subr.mxu1 %v19634_v43  ;;  %13828 = vmatmul.mubr.f32.gmra.mxu1 %v19732_v35 }
 0xd28   :  { %13857 = vmatpush3.msra.mxu1 %v19634_v43  ;;  %13868 = vmatprep.mubr.f32.mxu1 %v9313_v21  ;;  %v9315_v11 = vand.u32 4294901760, %v9314_v60  ;;  %v9333_v27 = vand.u32 4294901760, %v9332_v18  ;;  %v9344_v62 = vsub.f32 %v19738_v0, %v9343_v53 }
 0xd29   :  { %13858 = vmatprep.subr.mxu1 %v19646_v26 }
 0xd2a   :  { %13859 = vmatpush3.msra.mxu1 %v19646_v26  ;;  %13802 = vmatprep.mubr.f32.mxu0 %v9315_v11  ;;  %v9334_v58 = vsub.f32 %v9332_v18, %v9333_v27  ;;  %v9345_v15 = vand.u32 4294901760, %v9344_v62 }
 0xd2b   :  { %13860 = vmatprep.subr.mxu1 %v19659_v47  ;;  %13803 = vmatmul.mubr.f32.vlgmr.msra.gmra.mxu0 %v9325_v34 }
 0xd2c   :  { %13831 = vmatpush3.msra.mxu0 %v19622_v29  ;;  %13861 = vmatpush3.msra.mxu1 %v19659_v47  ;;  %v9335_v22 = vand.u32 4294901760, %v9334_v58 }
 0xd2d   :  { %13832 = vmatprep.subr.mxu0 %v19632_v57  ;;  %13862 = vmatprep.subr.mxu1 %v19667_v33 }
 0xd2e   :  { %13833 = vmatpush3.msra.mxu0 %v19632_v57  ;;  %13863 = vmatpush3.msra.mxu1 %v19667_v33 }
 0xd2f   :  { %13805 = vmatprep.mubr.f32.mxu0 %v9335_v22  ;;  %13834 = vmatprep.subr.mxu0 %v19644_v23 }
 0xd30   :  { %13864 = vmatprep.subr.mxu1 %v19678_v59  ;;  %13806 = vmatmul.mubr.f32.gmra.mxu0 %v9345_v15 }
 0xd31   :  { %13835 = vmatpush3.msra.mxu0 %v19644_v23  ;;  %13865 = vmatpush3.msra.mxu1 %v19678_v59 }
 0xd32   :  { %13836 = vmatprep.subr.mxu0 %v19656_v40  ;;  %13846 = vmatprep.mubr.f32.mxu0 %v9312_v28 }
 0xd33   :  { %13866 = vmatprep.subr.mxu1 %v19691_v1  ;;  %13837 = vmatpush3.msra.mxu0 %v19656_v40 }
 0xd34   :  { %13867 = vmatpush3.msra.mxu1 %v19691_v1  ;;  %13838 = vmatprep.subr.mxu0 %v19670_v42 }
 0xd35   :  { %13869 = vmatmul.mubr.f32.vlgmr.msra.gmra.mxu1 %v9323_v63  ;;  %13896 = vmatprep.subr.mxu1 %v19619_v56 }
 0xd36   :  { %13839 = vmatpush3.msra.mxu0 %v19670_v42  ;;  %13871 = vmatprep.mubr.f32.mxu1 %v9333_v27 }
 0xd37   :  { %13897 = vmatpush3.msra.mxu1 %v19619_v56  ;;  %13840 = vmatprep.subr.mxu0 %v19676_v13 }
 0xd38   :  { %13898 = vmatprep.subr.mxu1 %v19624_v41  ;;  %13841 = vmatpush3.msra.mxu0 %v19676_v13 }
 0xd39   :  { %13899 = vmatpush3.msra.mxu1 %v19624_v41  ;;  %13842 = vmatprep.subr.mxu0 %v19689_v51 }
 0xd3a   :  { %13872 = vmatmul.mubr.f32.gmra.mxu1 %v9343_v53  ;;  %13900 = vmatprep.subr.mxu1 %v19634_v43 }
 0xd3b   :  { %13843 = vmatpush3.msra.mxu0 %v19689_v51  ;;  %13901 = vmatpush3.msra.mxu1 %v19634_v43 }
 0xd3c   :  { %13912 = vmatprep.mubr.f32.mxu1 %v19727_v45  ;;  %13844 = vmatprep.subr.mxu0 %v19703_v14 }
 0xd3d   :  { %13902 = vmatprep.subr.mxu1 %v19646_v26  ;;  %13845 = vmatpush3.msra.mxu0 %v19703_v14 }
 0xd3e   :  { %13903 = vmatpush3.msra.mxu1 %v19646_v26  ;;  %13847 = vmatmul.mubr.f32.vlgmr.msra.gmra.mxu0 %v19725_v54 }
 0xd3f   :  { %13874 = vmatprep.subr.mxu0 %v19629_v9  ;;  %13904 = vmatprep.subr.mxu1 %v19659_v47 }
 0xd40   :  { %13849 = vmatprep.mubr.f32.mxu0 %v9332_v18  ;;  %13875 = vmatpush3.msra.mxu0 %v19629_v9 }
 0xd41   :  { %13905 = vmatpush3.msra.mxu1 %v19659_v47  ;;  %13876 = vmatprep.subr.mxu0 %v19641_v50 }
 0xd42   :  { %13906 = vmatprep.subr.mxu1 %v19667_v33  ;;  %13877 = vmatpush3.msra.mxu0 %v19641_v50 }
 0xd43   :  { %13907 = vmatpush3.msra.mxu1 %v19667_v33  ;;  %13850 = vmatmul.mubr.f32.gmra.mxu0 %v19738_v0 }
 0xd44   :  { %13878 = vmatprep.subr.mxu0 %v19653_v25  ;;  %13908 = vmatprep.subr.mxu1 %v19678_v59 }
 0xd45   :  { %13879 = vmatpush3.msra.mxu0 %v19653_v25  ;;  %13890 = vmatprep.mubr.f32.mxu0 %v19727_v45  ;;  %v10708_v25 = vld [vmem:[%s20245_s13] ss:$0 sm:$0xff] }
 0xd46   :  { %13909 = vmatpush3.msra.mxu1 %v19678_v59  ;;  %13880 = vmatprep.subr.mxu0 %v19665_v61 }
 0xd47   :  { %13910 = vmatprep.subr.mxu1 %v19691_v1  ;;  %13881 = vmatpush3.msra.mxu0 %v19665_v61 }
 0xd48   :  { %13911 = vmatpush3.msra.mxu1 %v19691_v1  ;;  %13882 = vmatprep.subr.mxu0 %v19682_v2 }
 0xd49   :  { %13913 = vmatmul.mubr.f32.vlgmr.msra.gmra.mxu1 %v19721_v17  ;;  %13883 = vmatpush3.msra.mxu0 %v19682_v2 }
 0xd4a   :  { %13915 = vmatprep.mubr.f32.mxu1 %v19740_v46  ;;  %13884 = vmatprep.subr.mxu0 %v19686_v49 }
 0xd4b   :  { %13885 = vmatpush3.msra.mxu0 %v19686_v49 }
 0xd4c   :  { %13886 = vmatprep.subr.mxu0 %v19700_v12 }
 0xd4d   :  { %13916 = vmatmul.mubr.f32.gmra.mxu1 %v19732_v35  ;;  %13887 = vmatpush3.msra.mxu0 %v19700_v12 }
 0xd4e   :  { %13888 = vmatprep.subr.mxu0 %v19710_v16 }
 0xd4f   :  { %13889 = vmatpush3.msra.mxu0 %v19710_v16 }
 0xd50   :  { %13891 = vmatmul.mubr.f32.vlgmr.msra.gmra.mxu0 %v19721_v17 }
 0xd51   :  { %13893 = vmatprep.mubr.f32.mxu0 %v19740_v46 }
 0xd54   :  { %13894 = vmatmul.mubr.f32.gmra.mxu0 %v19732_v35 }
 0xde3   :  { %v13826_v56 = vpop.f32.mrf.mxu1 }
 0xde5   :  { %v9458_v29 = vpop.f32.mrf.mxu1 }
 0xde7   :  { %v13829_v9 = vpop.f32.mrf.mxu1 }
 0xde9   :  { %v9470_v43 = vpop.f32.mrf.mxu1 }
 0xdeb   :  { %v13804_v41 = vpop.f32.mrf.mxu0 }
 0xdec   :  { %v9328_v61 = vadd.f32 %v13804_v41, %v10708_v25 }
 0xded   :  { %v9317_v57 = vpop.f32.mrf.mxu0 }
 0xdee   :  { %v9318_v13 = vadd.f32 %v10708_v25, %v9317_v57  ;;  %v9465_v2 = vadd.f32 %v13826_v56, %v9328_v61 }
 0xdf0   :  { %v13807_v50 = vpop.f32.mrf.mxu0  ;;  %v9459_v14 = vadd.f32 %v9458_v29, %v9318_v13  ;;  %v9974_v13 = vld [vmem:[%s20246_s14 + $0x30] sm:$0xff] }
 0xdf1   :  { %v9348_v59 = vadd.f32 %v13807_v50, %v10708_v25 }
 0xdf2   :  { %v9337_v26 = vpop.f32.mrf.mxu0 }
 0xdf3   :  { %v9338_v1 = vadd.f32 %v10708_v25, %v9337_v26  ;;  %v9477_v48 = vadd.f32 %v13829_v9, %v9348_v59 }
 0xdf5   :  { %v13870_v23 = vpop.f32.mrf.mxu1  ;;  %v9471_v3 = vadd.f32 %v9470_v43, %v9338_v1 }
 0xdf7   :  { %v9666_v40 = vpop.f32.mrf.mxu1 }
 0xdfa   :  { %v13873_v33 = vpop.f32.mrf.mxu1 }
 0xdfc   :  { %v9682_v49 = vpop.f32.mrf.mxu1 }
 0xdfe   :  { %v13848_v47 = vpop.f32.mrf.mxu0 }
 0xdff   :  { %v9572_v12 = vadd.f32 %v13848_v47, %v9465_v2  ;;  %v19862_v2 = vand.u32 4294901760, %v9974_v13 }
 0xe00   :  { %v9564_v42 = vpop.f32.mrf.mxu0 }
 0xe01   :  { %v9565_v19 = vadd.f32 %v9564_v42, %v9459_v14  ;;  %v9675_v10 = vadd.f32 %v13870_v23, %v9572_v12  ;;  %v19873_v1 = vsub.f32 %v9974_v13, %v19862_v2  ;;  %v9972_v14 = vld [vmem:[%s20246_s14 + $0x20] sm:$0xff]  ;;  %v21558_v13 = vld [vmem:[#allocation90_spill] sm:$0xff] }
 0xe03   :  { %v13851_v51 = vpop.f32.mrf.mxu0  ;;  %v9667_v17 = vadd.f32 %v9666_v40, %v9565_v19  ;;  %v19885_v19 = vand.u32 4294901760, %v19873_v1 }
 0xe04   :  { %v9586_v44 = vadd.f32 %v13851_v51, %v9477_v48 }
 0xe05   :  { %v9578_v30 = vpop.f32.mrf.mxu0 }
 0xe06   :  { %v9579_v5 = vadd.f32 %v9578_v30, %v9471_v3  ;;  %v9691_v54 = vadd.f32 %v13873_v33, %v9586_v44  ;;  %v9975_v33 = vld [vmem:[%s20246_s14 + $0x38] sm:$0xff]  ;;  %v19890_v30 = vand.u32 4294901760, %v9972_v14 }
 0xe07   :  { %v19854_v42 = vand.u32 4294901760, %v9975_v33  ;;  %v9971_v44 = vld [vmem:[%s20246_s14 + $0x18] sm:$0xff] }
 0xe08   :  { %v9683_v28 = vadd.f32 %v9682_v49, %v9579_v5  ;;  %v9973_v49 = vld [vmem:[%s20246_s14 + $0x28] sm:$0xff] }
 0xe09   :  { %v13914_v16 = vpop.f32.mrf.mxu1  ;;  %v19860_v59 = vsub.f32 %v9975_v33, %v19854_v42  ;;  %13918 = vmatprep.subr.mxu0 %v19854_v42  ;;  %v19875_v12 = vand.u32 4294901760, %v9973_v49  ;;  %v21545_v5 = vld [vmem:[#allocation30_spill] sm:$0xff]  ;;  %v21557_v33 = vld [vmem:[#allocation93_spill] sm:$0xff] }
 0xe0a   :  { %13919 = vmatpush3.msra.mxu0 %v19854_v42 }
 0xe0b   :  { %v9882_v39 = vpop.f32.mrf.mxu1  ;;  %v19870_v51 = vand.u32 4294901760, %v19860_v59  ;;  %13920 = vmatprep.subr.mxu0 %v19862_v2  ;;  %v19888_v48 = vsub.f32 %v9973_v49, %v19875_v12  ;;  %v21559_v49 = vld [vmem:[#allocation28_spill] sm:$0xff] }
 0xe0c   :  { %13921 = vmatpush3.msra.mxu0 %v19862_v2 }
 0xe0d   :  { %v13917_v45 = vpop.f32.mrf.mxu1  ;;  %13922 = vmatprep.subr.mxu0 %v19875_v12 }
 0xe0e   :  { %13923 = vmatpush3.msra.mxu0 %v19875_v12 }
 0xe0f   :  { %v9894_v18 = vpop.f32.mrf.mxu1  ;;  %13924 = vmatprep.subr.mxu0 %v19890_v30 }
 0xe10   :  { %v13892_v32 = vpop.f32.mrf.mxu0  ;;  %13925 = vmatpush3.msra.mxu0 %v19890_v30 }
 0xe11   :  { %v9792_v4 = vadd.f32 %v13892_v32, %v9675_v10  ;;  %v10135_v10 = vsub.f32 %v19873_v1, %v19885_v19  ;;  %v19903_v32 = vsub.f32 %v9972_v14, %v19890_v30  ;;  %v21560_v14 = vld [vmem:[#allocation23_spill] sm:$0xff] }
 0xe12   :  { %v9785_v38 = vpop.f32.mrf.mxu0 }
 0xe13   :  { %v9889_v24 = vadd.f32 %v13914_v16, %v9792_v4  ;;  %v9786_v52 = vadd.f32 %v9785_v38, %v9667_v17  ;;  %v10128_v16 = vsub.f32 %v19860_v59, %v19870_v51  ;;  %v19908_v4 = vand.u32 4294901760, %v9971_v44  ;;  %v9970_v17 = vld [vmem:[%s20246_s14 + $0x10] sm:$0xff] }
 0xe14   :  { %v13895_v36 = vpop.f32.mrf.mxu0  ;;  %v10136_v38 = vand.u32 4294901760, %v10135_v10  ;;  %v21564_v10 = vld [vmem:[#allocation21_spill] sm:$0xff] }
 0xe15   :  { %v9883_v8 = vadd.f32 %v9882_v39, %v9786_v52  ;;  %v9804_v63 = vadd.f32 %v13895_v36, %v9691_v54  ;;  %v9905_v35 = vadd.f32 %v9889_v24, %v19510_v7  ;;  %v10129_v3 = vand.u32 4294901760, %v10128_v16  ;;  %v9969_v36 = vld [vmem:[%s20246_s14 + $0x8] sm:$0xff]  ;;  %13926 = vmatprep.subr.mxu0 %v19908_v4 }
 0xe16   :  { %v9797_v31 = vpop.f32.mrf.mxu0  ;;  %v19900_v39 = vand.u32 4294901760, %v19888_v48  ;;  %v19917_v52 = vand.u32 4294901760, %v19903_v32  ;;  %v19919_v54 = vand.u32 4294901760, %v9970_v17  ;;  %13927 = vmatpush3.msra.mxu0 %v19908_v4  ;;  %v21561_v16 = vld [vmem:[#allocation97_spill] sm:$0xff] }
 0xe17   :  { %v9901_v0 = vadd.f32 %v13917_v45, %v9804_v63  ;;  %v9798_v46 = vadd.f32 %v9797_v31, %v9683_v28  ;;  %v9911_v21 = vsel %vm21538_vm11, %v9905_v35, 0.0  ;;  %v9904_v55 = vadd.f32 %v9883_v8, %v19512_v6  ;;  %13940 = vmatprep.subr.mxu1 %v10129_v3  ;;  %v21546_v8 = vld [vmem:[#allocation29_spill] sm:$0xff] }
 0xe18   :  { %9912 = vadd.xlane.f32.xlu0 %v9911_v21  ;;  %v10142_v24 = vsub.f32 %v19888_v48, %v19900_v39  ;;  %13941 = vmatpush3.msra.mxu1 %v10129_v3  ;;  %v19922_v45 = vsub.f32 %v9971_v44, %v19908_v4  ;;  %v10149_v28 = vsub.f32 %v19903_v32, %v19917_v52  ;;  %v19935_v31 = vand.u32 4294901760, %v9969_v36  ;;  %v9968_v21 = vld [vmem:[%s20246_s14] sm:$0xff] }
 0xe19   :  { %v9895_v60 = vadd.f32 %v9894_v18, %v9798_v46  ;;  %v9908_v53 = vsel %vm21524_vm0, %v9904_v55, 0.0  ;;  %v9907_v11 = vadd.f32 %v9901_v0, %v19539_v37  ;;  %13942 = vmatprep.subr.mxu1 %v10136_v38  ;;  %v21547_v0 = vld [vmem:[#allocation87_spill] sm:$0xff]  ;;  %13928 = vmatprep.subr.mxu0 %v19919_v54  ;;  %v21562_v44 = vld [vmem:[#allocation92_spill] sm:$0xff]  ;;  %v21563_v3 = vld [vmem:[#allocation17_spill] sm:$0xff] }
 0xe1a   :  { %9909 = vadd.xlane.f32.xlu1 %v9908_v53  ;;  %v10143_v63 = vand.u32 4294901760, %v10142_v24  ;;  %13943 = vmatpush3.msra.mxu1 %v10136_v38  ;;  %v19940_v46 = vand.u32 4294901760, %v19922_v45  ;;  %v19951_v53 = vand.u32 4294901760, %v9968_v21  ;;  %v21567_v38 = vld [vmem:[#allocation20_spill] sm:$0xff] }
 0xe1b   :  { %v9917_v27 = vsel %vm21539_vm10, %v9907_v11, 0.0  ;;  %v9906_v34 = vadd.f32 %v9895_v60, %v19526_v20  ;;  %v19949_v60 = vsub.f32 %v9969_v36, %v19935_v31  ;;  %13929 = vmatpush3.msra.mxu0 %v19919_v54  ;;  %v21568_v24 = vld [vmem:[#allocation52_spill] sm:$0xff]  ;;  %v21569_v36 = vld [vmem:[#allocation99_spill] sm:$0xff] }
 0xe1c   :  { %9918 = vadd.xlane.f32.xlu0 %v9917_v27  ;;  %13944 = vmatprep.subr.mxu1 %v10143_v63  ;;  %v21548_v27 = vld [vmem:[#allocation27_spill] sm:$0xff] }
 0xe1d   :  { %v9914_v7 = vsel %vm21540_vm13, %v9906_v34, 0.0  ;;  %13945 = vmatpush3.msra.mxu1 %v10143_v63  ;;  %13930 = vmatprep.subr.mxu0 %v19935_v31  ;;  %v21571_v63 = vld [vmem:[#allocation33_spill] sm:$0xff] }
 0xe1e   :  { %9915 = vadd.xlane.f32.xlu1 %v9914_v7  ;;  %v19962_v7 = vand.u32 4294901760, %v19949_v60  ;;  %13931 = vmatpush3.msra.mxu0 %v19935_v31 }
 0xe1f   :  { %13932 = vmatprep.subr.mxu0 %v19951_v53 }
 0xe20   :  { %13933 = vmatpush3.msra.mxu0 %v19951_v53 }
 0xe21   :  { %13962 = vmatprep.subr.mxu0 %v19860_v59 }
 0xea1   :  { %v9913_v58 = vpop.xlane.xlu0 %9912 }
 0xea2   :  { %v9921_v62 = vmul.f32 0.015625, %v9913_v58  ;;  %v19965_v58 = vsub.f32 %v9968_v21, %v19951_v53 }
 0xea3   :  { %v9910_v22 = vpop.xlane.xlu1 %9909 }
 0xea4   :  { %v19831_v6 = vsub.f32 %v9905_v35, %v9921_v62  ;;  %v9920_v15 = vmul.f32 0.015625, %v9910_v22  ;;  %v19933_v35 = vsub.f32 %v9970_v17, %v19919_v54  ;;  %v21549_v62 = vld [vmem:[#allocation91_spill] sm:$0xff]  ;;  %v21566_v17 = vld [vmem:[#allocation96_spill] sm:$0xff] }
 0xea5   :  { %v9919_v56 = vpop.xlane.xlu0 %9918 }
 0xea6   :  { %v19833_v29 = vsub.f32 %v9904_v55, %v9920_v15  ;;  %v9923_v41 = vmul.f32 0.015625, %v9919_v56  ;;  %v9929_v37 = vmul.f32 %v19831_v6, %v19831_v6  ;;  %v10150_v55 = vand.u32 4294901760, %v10149_v28  ;;  %v21572_v28 = vld [vmem:[#allocation100_spill] sm:$0xff] }
 0xea7   :  { %v9916_v9 = vpop.xlane.xlu1 %9915  ;;  %v19946_v18 = vand.u32 4294901760, %v19933_v35  ;;  %v10170_v56 = vsub.f32 %v19949_v60, %v19962_v7 }
 0xea8   :  { %v19837_v57 = vsub.f32 %v9907_v11, %v9923_v41  ;;  %v9922_v20 = vmul.f32 0.015625, %v9916_v9  ;;  %v9935_v43 = vsel %vm21541_vm12, %v9929_v37, 0.0  ;;  %v9928_v50 = vmul.f32 %v19833_v29, %v19833_v29  ;;  %13946 = vmatprep.subr.mxu1 %v10150_v55  ;;  %v21550_v37 = vld [vmem:[#allocation88_spill] sm:$0xff] }
 0xea9   :  { %9936 = vadd.xlane.f32.xlu0 %v9935_v43  ;;  %v10156_v11 = vsub.f32 %v19922_v45, %v19940_v46  ;;  %13947 = vmatpush3.msra.mxu1 %v10150_v55  ;;  %v19972_v41 = vand.u32 4294901760, %v19965_v58  ;;  %v10171_v9 = vand.u32 4294901760, %v10170_v56  ;;  %v21551_v43 = vld [vmem:[#allocation25_spill] sm:$0xff] }
 0xeaa   :  { %v19842_v23 = vsub.f32 %v9906_v34, %v9922_v20  ;;  %v9932_v26 = vsel %vm21542_vm15, %v9928_v50, 0.0  ;;  %v9931_v25 = vmul.f32 %v19837_v57, %v19837_v57  ;;  %v10163_v34 = vsub.f32 %v19933_v35, %v19946_v18 }
 0xeab   :  { %9933 = vadd.xlane.f32.xlu1 %v9932_v26  ;;  %v10157_v22 = vand.u32 4294901760, %v10156_v11  ;;  %v10177_v20 = vsub.f32 %v19965_v58, %v19972_v41  ;;  %v21552_v26 = vld [vmem:[#allocation69_spill] sm:$0xff] }
 0xeac   :  { %v9941_v40 = vsel %vm21543_vm4, %v9931_v25, 0.0  ;;  %v9930_v47 = vmul.f32 %v19842_v23, %v19842_v23  ;;  %v10164_v15 = vand.u32 4294901760, %v10163_v34  ;;  %v21553_v25 = vld [vmem:[#allocation95_spill] sm:$0xff] }
 0xead   :  { %9942 = vadd.xlane.f32.xlu0 %v9941_v40  ;;  %13948 = vmatprep.subr.mxu1 %v10157_v22  ;;  %v10178_v50 = vand.u32 4294901760, %v10177_v20  ;;  %v21554_v40 = vld [vmem:[#allocation89_spill] sm:$0xff] }
 0xeae   :  { %v9938_v61 = vsel %vm21544_vm5, %v9930_v47, 0.0  ;;  %13949 = vmatpush3.msra.mxu1 %v10157_v22  ;;  %v21555_v47 = vld [vmem:[#allocation26_spill] sm:$0xff] }
 0xeaf   :  { %9939 = vadd.xlane.f32.xlu1 %v9938_v61  ;;  %13950 = vmatprep.subr.mxu1 %v10164_v15  ;;  %v21556_v61 = vld [vmem:[#allocation18_spill] sm:$0xff] }
 0xeb0   :  { %13951 = vmatpush3.msra.mxu1 %v10164_v15 }
 0xeb1   :  { %13952 = vmatprep.subr.mxu1 %v10171_v9 }
 0xeb2   :  { %13953 = vmatpush3.msra.mxu1 %v10171_v9 }
 0xeb3   :  { %13954 = vmatprep.subr.mxu1 %v10178_v50 }
 0xeb4   :  { %13955 = vmatpush3.msra.mxu1 %v10178_v50 }
 0xeb5   :  { %13984 = vmatprep.subr.mxu1 %v19854_v42 }
 0xec0   :  { %4622 = vrot.lane.b32.xlu1 %v21545_v5, %s14381_s29  ;;  %v21565_v5 = vld [vmem:[#allocation98_spill] sm:$0xff] }
 0xec3   :  { %4624 = vrot.lane.b32.xlu0 %v21546_v8, %s14381_s29  ;;  %v21570_v8 = vld [vmem:[#allocation94_spill] sm:$0xff] }
 0xec4   :  { %7668 = vrot.lane.b32.xlu1 %v21547_v0, %s14381_s29 }
 0xec7   :  { %4632 = vrot.lane.b32.xlu0 %v21548_v27, %s14379_s18 }
 0xec8   :  { %7670 = vrot.lane.b32.xlu1 %v21549_v62, %s14381_s29 }
 0xecb   :  { %7678 = vrot.lane.b32.xlu0 %v21550_v37, %s14379_s18 }
 0xecc   :  { %4634 = vrot.lane.b32.xlu1 %v21551_v43, %s14379_s18 }
 0xecf   :  { %4642 = vrot.lane.b32.xlu0 %v21552_v26, %s14376_s10 }
 0xed0   :  { %7680 = vrot.lane.b32.xlu1 %v21553_v25, %s14379_s18 }
 0xed3   :  { %7688 = vrot.lane.b32.xlu0 %v21554_v40, %s14376_s10 }
 0xed4   :  { %4644 = vrot.lane.b32.xlu1 %v21555_v47, %s14376_s10 }
 0xed7   :  { %4652 = vrot.lane.b32.xlu0 %v21556_v61, %s14383_s30 }
 0xed8   :  { %7690 = vrot.lane.b32.xlu1 %v21557_v33, %s14376_s10 }
 0xedb   :  { %7698 = vrot.lane.b32.xlu0 %v21558_v13, %s14383_s30 }
 0xedc   :  { %4654 = vrot.lane.b32.xlu1 %v21559_v49, %s14383_s30  ;;  %v14238_v49 = vld [vmem:[%s20240_s8] ss:$0 sm:$0xff] }
 0xedf   :  { %4662 = vrot.lane.b32.xlu0 %v21560_v14, %s14388_s24 }
 0xee0   :  { %7700 = vrot.lane.b32.xlu1 %v21561_v16, %s14383_s30 }
 0xee3   :  { %7708 = vrot.lane.b32.xlu0 %v21562_v44, %s14388_s24 }
 0xee4   :  { %4664 = vrot.lane.b32.xlu1 %v21563_v3, %s14388_s24 }
 0xee7   :  { %4672 = vrot.lane.b32.xlu0 %v21564_v10, %s14386_s22  ;;  %v14239_v10 = vld [vmem:[%s20241_s9] ss:$0 sm:$0xff] }
 0xee8   :  { %7710 = vrot.lane.b32.xlu1 %v21565_v5, %s14388_s24 }
 0xeeb   :  { %7718 = vrot.lane.b32.xlu0 %v21566_v17, %s14386_s22 }
 0xeec   :  { %4674 = vrot.lane.b32.xlu1 %v21567_v38, %s14386_s22 }
 0xeef   :  { %4682 = vrot.lane.b32.xlu0 %v21568_v24, %s14384_s3 }
 0xef0   :  { %7720 = vrot.lane.b32.xlu1 %v21569_v36, %s14386_s22 }
 0xef3   :  { %7728 = vrot.lane.b32.xlu0 %v21570_v8, %s14384_s3 }
 0xef4   :  { %4684 = vrot.lane.b32.xlu1 %v21571_v63, %s14384_s3 }
 0xef8   :  { %7730 = vrot.lane.b32.xlu1 %v21572_v28, %s14384_s3 }
 0xf32   :  { %v9937_v0 = vpop.xlane.xlu0 %9936 }
 0xf33   :  { %v9945_v21 = vmul.f32 0.015625, %v9937_v0 }
 0xf34   :  { %v9934_v55 = vpop.xlane.xlu1 %9933 }
 0xf35   :  { %v9949_v11 = vadd.f32 1e-05, %v9945_v21  ;;  %v9944_v27 = vmul.f32 0.015625, %v9934_v55 }
 0xf36   :  { %v9943_v34 = vpop.xlane.xlu0 %9942 }
 0xf37   :  { %14208 = vrsqrt.f32 %v9949_v11  ;;  %v9948_v62 = vadd.f32 1e-05, %v9944_v27  ;;  %v9947_v22 = vmul.f32 0.015625, %v9943_v34 }
 0xf38   :  { %v9940_v15 = vpop.xlane.xlu1 %9939 }
 0xf39   :  { %14210 = vrsqrt.f32 %v9948_v62  ;;  %v9951_v56 = vadd.f32 1e-05, %v9947_v22  ;;  %v9946_v37 = vmul.f32 0.015625, %v9940_v15 }
 0xf3a   :  { %v20029_v9 = vpop.permute.xlu0 %4624 }
 0xf3b   :  { %14212 = vrsqrt.f32 %v9951_v56  ;;  %v9950_v20 = vadd.f32 1e-05, %v9946_v37 }
 0xf3c   :  { %v20031_v43 = vpop.permute.xlu1 %4622 }
 0xf3d   :  { %14214 = vrsqrt.f32 %v9950_v20 }
 0xf3e   :  { %v20033_v50 = vpop.permute.xlu0 %4632 }
 0xf40   :  { %v20035_v26 = vpop.permute.xlu1 %7668 }
 0xf42   :  { %v20037_v25 = vpop.permute.xlu0 %7678 }
 0xf44   :  { %v14209_v40 = vpop.eup %14208  ;;  %v20039_v47 = vpop.permute.xlu1 %7670 }
 0xf45   :  { %v9957_v61 = vmul.f32 %v14209_v40, %v19831_v6 }
 0xf46   :  { %v14211_v33 = vpop.eup %14210  ;;  %v20042_v13 = vpop.permute.xlu0 %4642 }
 0xf47   :  { %v9961_v14 = vmul.f32 %v14238_v49, %v9957_v61  ;;  %v9956_v16 = vmul.f32 %v14211_v33, %v19833_v29 }
 0xf48   :  { %v14213_v44 = vpop.eup %14212  ;;  %v20048_v3 = vpop.permute.xlu1 %4634 }
 0xf49   :  { %v9965_v5 = vadd.f32 %v14239_v10, %v9961_v14  ;;  %v9960_v17 = vmul.f32 %v14238_v49, %v9956_v16  ;;  %v9959_v6 = vmul.f32 %v14213_v44, %v19837_v57 }
 0xf4a   :  { %v14215_v38 = vpop.eup %14214  ;;  %v20054_v24 = vpop.permute.xlu0 %7688 }
 0xf4b   :  { %v9964_v36 = vadd.f32 %v14239_v10, %v9960_v17  ;;  %v9987_v8 = vsel %vm21573_vm1, %v9965_v5, 0  ;;  %v9958_v63 = vmul.f32 %v14215_v38, %v19842_v23  ;;  %v9963_v0 = vmul.f32 %v14238_v49, %v9959_v6 }
 0xf4c   :  { %v20058_v29 = vpop.permute.xlu1 %7680  ;;  %v20060_v28 = vand.u32 4294901760, %v9987_v8 }
 0xf4d   :  { %v9984_v21 = vsel %vm21574_vm14, %v9964_v36, 0  ;;  %v9962_v55 = vmul.f32 %v14238_v49, %v9958_v63  ;;  %v9967_v34 = vadd.f32 %v14239_v10, %v9963_v0 }
 0xf4e   :  { %v20063_v11 = vpop.permute.xlu0 %4652  ;;  %v20065_v27 = vand.u32 4294901760, %v9984_v21  ;;  %v20068_v57 = vsub.f32 %v9987_v8, %v20060_v28 }
 0xf4f   :  { %v9966_v62 = vadd.f32 %v14239_v10, %v9962_v55  ;;  %v9993_v22 = vsel %vm21575_vm8, %v9967_v34, 0 }
 0xf50   :  { %13956 = vmatprep.mubr.f32.mxu1 %v20065_v27  ;;  %v20071_v23 = vpop.permute.xlu1 %4644  ;;  %v10069_v15 = vsub.f32 %v9984_v21, %v20065_v27  ;;  %v10080_v56 = vand.u32 4294901760, %v20068_v57  ;;  %v20078_v20 = vand.u32 4294901760, %v9993_v22  ;;  %v21577_v21 = vld [vmem:[#allocation39_spill] sm:$0xff] }
 0xf51   :  { %13957 = vmatmul.mubr.f32.vlgmr.msra.gmra.mxu1 %v20060_v28  ;;  %v9990_v37 = vsel %vm21576_vm2, %v9966_v62, 0  ;;  %v4628_v55 = vadd.f32 %v20031_v43, %v21577_v21 }
 0xf52   :  { %13985 = vmatpush3.msra.mxu1 %v19854_v42  ;;  %v20081_v40 = vpop.permute.xlu0 %7698  ;;  %v20083_v61 = vand.u32 4294901760, %v9990_v37  ;;  %v10070_v33 = vand.u32 4294901760, %v10069_v15  ;;  %v20087_v49 = vsub.f32 %v9993_v22, %v20078_v20  ;;  %v10081_v14 = vsub.f32 %v20068_v57, %v10080_v56 }
 0xf53   :  { %13986 = vmatprep.subr.mxu1 %v19862_v2 }
 0xf54   :  { %13987 = vmatpush3.msra.mxu1 %v19862_v2  ;;  %13959 = vmatprep.mubr.f32.mxu1 %v20083_v61  ;;  %v20094_v16 = vpop.permute.xlu1 %7690  ;;  %v10071_v44 = vsub.f32 %v10069_v15, %v10070_v33  ;;  %v20097_v10 = vsub.f32 %v9990_v37, %v20083_v61  ;;  %v10100_v5 = vand.u32 4294901760, %v20087_v49  ;;  %v10082_v36 = vand.u32 4294901760, %v10081_v14 }
 0xf55   :  { %13988 = vmatprep.subr.mxu1 %v19875_v12  ;;  %13960 = vmatmul.mubr.f32.gmra.mxu1 %v20078_v20  ;;  %v4638_v37 = vadd.f32 %v20033_v50, %v4628_v55 }
 0xf56   :  { %13989 = vmatpush3.msra.mxu1 %v19875_v12  ;;  %v4663_v17 = vpop.permute.xlu0 %4662  ;;  %14000 = vmatprep.mubr.f32.mxu1 %v10070_v33  ;;  %v10072_v6 = vand.u32 4294901760, %v10071_v44  ;;  %v10090_v38 = vand.u32 4294901760, %v20097_v10  ;;  %v10101_v0 = vsub.f32 %v20087_v49, %v10100_v5  ;;  %v21578_v33 = vld [vmem:[#allocation85_spill] sm:$0xff] }
 0xf57   :  { %13990 = vmatprep.subr.mxu1 %v19890_v30  ;;  %v4648_v44 = vadd.f32 %v20042_v13, %v4638_v37 }
 0xf58   :  { %13991 = vmatpush3.msra.mxu1 %v19890_v30  ;;  %13934 = vmatprep.mubr.f32.mxu0 %v10072_v6  ;;  %v20106_v8 = vpop.permute.xlu1 %4654  ;;  %v10091_v63 = vsub.f32 %v20097_v10, %v10090_v38  ;;  %v10102_v43 = vand.u32 4294901760, %v10101_v0 }
 0xf59   :  { %13992 = vmatprep.subr.mxu1 %v19908_v4  ;;  %13935 = vmatmul.mubr.f32.vlgmr.msra.gmra.mxu0 %v10082_v36 }
 0xf5a   :  { %13963 = vmatpush3.msra.mxu0 %v19860_v59  ;;  %13993 = vmatpush3.msra.mxu1 %v19908_v4  ;;  %v7709_v34 = vpop.permute.xlu0 %7708  ;;  %v10092_v62 = vand.u32 4294901760, %v10091_v63  ;;  %v7674_v59 = vadd.f32 %v20035_v26, %v21578_v33  ;;  %v4658_v26 = vadd.f32 %v20063_v11, %v4648_v44  ;;  %v21579_v11 = vld [vmem:[#allocation41_spill] sm:$0xff] }
 0xf5b   :  { %13964 = vmatprep.subr.mxu0 %v19873_v1  ;;  %13994 = vmatprep.subr.mxu1 %v19919_v54 }
 0xf5c   :  { %13965 = vmatpush3.msra.mxu0 %v19873_v1  ;;  %13995 = vmatpush3.msra.mxu1 %v19919_v54  ;;  %v20121_v22 = vpop.permute.xlu1 %7700  ;;  %v7684_v50 = vadd.f32 %v20037_v25, %v7674_v59  ;;  %v4668_v6 = vadd.f32 %v4663_v17, %v4658_v26 }
 0xf5d   :  { %13937 = vmatprep.mubr.f32.mxu0 %v10092_v62  ;;  %13966 = vmatprep.subr.mxu0 %v19888_v48 }
 0xf5e   :  { %13996 = vmatprep.subr.mxu1 %v19935_v31  ;;  %13938 = vmatmul.mubr.f32.gmra.mxu0 %v10102_v43  ;;  %v4673_v14 = vpop.permute.xlu0 %4672 }
 0xf5f   :  { %13967 = vmatpush3.msra.mxu0 %v19888_v48  ;;  %13997 = vmatpush3.msra.mxu1 %v19935_v31  ;;  %v7694_v48 = vadd.f32 %v20054_v24, %v7684_v50  ;;  %v4678_v36 = vadd.f32 %v4673_v14, %v4668_v6 }
 0xf60   :  { %13968 = vmatprep.subr.mxu0 %v19903_v32  ;;  %13978 = vmatprep.mubr.f32.mxu0 %v10069_v15  ;;  %v4665_v1 = vpop.permute.xlu1 %4664 }
 0xf61   :  { %13998 = vmatprep.subr.mxu1 %v19951_v53  ;;  %13969 = vmatpush3.msra.mxu0 %v19903_v32  ;;  %v4629_v32 = vadd.f32 %v20029_v9, %v21579_v11  ;;  %v7704_v15 = vadd.f32 %v20081_v40, %v7694_v48  ;;  %v21580_v40 = vld [vmem:[#allocation86_spill] sm:$0xff] }
 0xf62   :  { %13999 = vmatpush3.msra.mxu1 %v19951_v53  ;;  %13970 = vmatprep.subr.mxu0 %v19922_v45  ;;  %v7719_v13 = vpop.permute.xlu0 %7718  ;;  %v7675_v17 = vadd.f32 %v20039_v47, %v21580_v40 }
 0xf63   :  { %14001 = vmatmul.mubr.f32.vlgmr.msra.gmra.mxu1 %v10080_v56  ;;  %14028 = vmatprep.subr.mxu1 %v19854_v42  ;;  %v4639_v56 = vadd.f32 %v20048_v3, %v4629_v32 }
 0xf64   :  { %13971 = vmatpush3.msra.mxu0 %v19922_v45  ;;  %14003 = vmatprep.mubr.f32.mxu1 %v10090_v38  ;;  %v7711_v25 = vpop.permute.xlu1 %7710  ;;  %v7714_v45 = vadd.f32 %v7709_v34, %v7704_v15 }
 0xf65   :  { %14029 = vmatpush3.msra.mxu1 %v19854_v42  ;;  %13972 = vmatprep.subr.mxu0 %v19933_v35 }
 0xf66   :  { %14030 = vmatprep.subr.mxu1 %v19862_v2  ;;  %13973 = vmatpush3.msra.mxu0 %v19933_v35  ;;  %v4683_v24 = vpop.permute.xlu0 %4682  ;;  %v4649_v35 = vadd.f32 %v20071_v23, %v4639_v56  ;;  %v7724_v38 = vadd.f32 %v7719_v13, %v7714_v45 }
 0xf67   :  { %14031 = vmatpush3.msra.mxu1 %v19862_v2  ;;  %13974 = vmatprep.subr.mxu0 %v19949_v60  ;;  %v4688_v9 = vadd.f32 %v4683_v24, %v4678_v36 }
 0xf68   :  { %14004 = vmatmul.mubr.f32.gmra.mxu1 %v10100_v5  ;;  %14032 = vmatprep.subr.mxu1 %v19875_v12  ;;  %v4675_v42 = vpop.permute.xlu1 %4674  ;;  %v7685_v5 = vadd.f32 %v20058_v29, %v7675_v17  ;;  %v4659_v63 = vadd.f32 %v20106_v8, %v4649_v35 }
 0xf69   :  { %13975 = vmatpush3.msra.mxu0 %v19949_v60  ;;  %14033 = vmatpush3.msra.mxu1 %v19875_v12  ;;  %v4690_v2 = vmul.f32 0.125, %v4688_v9 }
 0xf6a   :  { %14044 = vmatprep.mubr.f32.mxu1 %v20065_v27  ;;  %13976 = vmatprep.subr.mxu0 %v19965_v58  ;;  %v7729_v3 = vpop.permute.xlu0 %7728  ;;  %v7695_v47 = vadd.f32 %v20094_v16, %v7685_v5  ;;  %v4669_v29 = vadd.f32 %v4665_v1, %v4659_v63 }
 0xf6b   :  { %7738 = vst.msk [vmem:[%s20249_s17] sm:$0xff] %vm4602_vm7, %v4690_v2  ;;  %14034 = vmatprep.subr.mxu1 %v19890_v30  ;;  %13977 = vmatpush3.msra.mxu0 %v19965_v58  ;;  %v7734_v12 = vadd.f32 %v7729_v3, %v7724_v38 }
 0xf6c   :  { %14035 = vmatpush3.msra.mxu1 %v19890_v30  ;;  %13979 = vmatmul.mubr.f32.vlgmr.msra.gmra.mxu0 %v20068_v57  ;;  %v7721_v60 = vpop.permute.xlu1 %7720  ;;  %v7705_v58 = vadd.f32 %v20121_v22, %v7695_v47  ;;  %v4679_v8 = vadd.f32 %v4675_v42, %v4669_v29 }
 0xf6d   :  { %14006 = vmatprep.subr.mxu0 %v19870_v51  ;;  %14036 = vmatprep.subr.mxu1 %v19908_v4  ;;  %v7736_v23 = vmul.f32 0.125, %v7734_v12 }
 0xf6e   :  { %13981 = vmatprep.mubr.f32.mxu0 %v20097_v10  ;;  %14007 = vmatpush3.msra.mxu0 %v19870_v51  ;;  %v7715_v57 = vadd.f32 %v7711_v25, %v7705_v58 }
 0xf6f   :  { %14037 = vmatpush3.msra.mxu1 %v19908_v4  ;;  %7740 = vst.msk [vmem:[%s20249_s17 + $0x10] sm:$0xff] %vm4602_vm7, %v7736_v23  ;;  %14008 = vmatprep.subr.mxu0 %v19885_v19 }
 0xf70   :  { %14038 = vmatprep.subr.mxu1 %v19919_v54  ;;  %14009 = vmatpush3.msra.mxu0 %v19885_v19  ;;  %v4685_v30 = vpop.permute.xlu1 %4684  ;;  %v7725_v4 = vadd.f32 %v7721_v60, %v7715_v57 }
 0xf71   :  { %14039 = vmatpush3.msra.mxu1 %v19919_v54  ;;  %13982 = vmatmul.mubr.f32.gmra.mxu0 %v20087_v49  ;;  %v4689_v51 = vadd.f32 %v4685_v30, %v4679_v8 }
 0xf72   :  { %14010 = vmatprep.subr.mxu0 %v19900_v39  ;;  %14040 = vmatprep.subr.mxu1 %v19935_v31 }
 0xf73   :  { %14011 = vmatpush3.msra.mxu0 %v19900_v39  ;;  %14022 = vmatprep.mubr.f32.mxu0 %v20065_v27  ;;  %v4691_v16 = vmul.f32 0.125, %v4689_v51 }
 0xf74   :  { %14041 = vmatpush3.msra.mxu1 %v19935_v31  ;;  %14012 = vmatprep.subr.mxu0 %v19917_v52  ;;  %v7731_v19 = vpop.permute.xlu1 %7730 }
 0xf75   :  { %14042 = vmatprep.subr.mxu1 %v19951_v53  ;;  %14013 = vmatpush3.msra.mxu0 %v19917_v52  ;;  %7739 = vst.msk [vmem:[%s20249_s17 + $0x8] sm:$0xff] %vm4602_vm7, %v4691_v16  ;;  %v7735_v54 = vadd.f32 %v7731_v19, %v7725_v4 }
 0xf76   :  { %14043 = vmatpush3.msra.mxu1 %v19951_v53  ;;  %14014 = vmatprep.subr.mxu0 %v19940_v46 }
 0xf77   :  { %14045 = vmatmul.mubr.f32.vlgmr.msra.gmra.mxu1 %v20060_v28  ;;  %14015 = vmatpush3.msra.mxu0 %v19940_v46  ;;  %v7737_v39 = vmul.f32 0.125, %v7735_v54 }
 0xf78   :  { %14047 = vmatprep.mubr.f32.mxu1 %v20083_v61  ;;  %14016 = vmatprep.subr.mxu0 %v19946_v18 }
 0xf79   :  { %14017 = vmatpush3.msra.mxu0 %v19946_v18  ;;  %7741 = vst.msk [vmem:[%s20249_s17 + $0x18] sm:$0xff] %vm4602_vm7, %v7737_v39  ;;  %vm10685_vm7 = vcmask 7168  }
 0xf7a   :  { %14018 = vmatprep.subr.mxu0 %v19962_v7 }
 0xf7b   :  { %14048 = vmatmul.mubr.f32.gmra.mxu1 %v20078_v20  ;;  %14019 = vmatpush3.msra.mxu0 %v19962_v7  ;;  %v10709_v7 = vld [vmem:[#allocation2] ss:$0 sm:$0xff] }
 0xf7c   :  { %14020 = vmatprep.subr.mxu0 %v19972_v41 }
 0xf7d   :  { %14021 = vmatpush3.msra.mxu0 %v19972_v41 }
 0xf7e   :  { %14023 = vmatmul.mubr.f32.vlgmr.msra.gmra.mxu0 %v20060_v28 }
 0xf7f   :  { %14025 = vmatprep.mubr.f32.mxu0 %v20083_v61 }
 0xf82   :  { %14026 = vmatmul.mubr.f32.gmra.mxu0 %v20078_v20 }
0x1011   :  { %v13958_v52 = vpop.f32.mrf.mxu1 }
0x1013   :  { %v10215_v31 = vpop.f32.mrf.mxu1 }
0x1015   :  { %v13961_v18 = vpop.f32.mrf.mxu1 }
0x1017   :  { %v10227_v27 = vpop.f32.mrf.mxu1 }
0x1019   :  { %v13936_v46 = vpop.f32.mrf.mxu0 }
0x101a   :  { %v10085_v34 = vadd.f32 %v13936_v46, %v10709_v7 }
0x101b   :  { %v10074_v53 = vpop.f32.mrf.mxu0 }
0x101c   :  { %v10075_v28 = vadd.f32 %v10709_v7, %v10074_v53  ;;  %v10222_v61 = vadd.f32 %v13958_v52, %v10085_v34 }
0x101e   :  { %v13939_v49 = vpop.f32.mrf.mxu0  ;;  %v10216_v59 = vadd.f32 %v10215_v31, %v10075_v28 }
0x101f   :  { %v10105_v22 = vadd.f32 %v13939_v49, %v10709_v7 }
0x1020   :  { %v10094_v0 = vpop.f32.mrf.mxu0 }
0x1021   :  { %v10095_v37 = vadd.f32 %v10709_v7, %v10094_v0  ;;  %v10234_v1 = vadd.f32 %v13961_v18, %v10105_v22 }
0x1023   :  { %v14002_v10 = vpop.f32.mrf.mxu1  ;;  %v10228_v13 = vadd.f32 %v10227_v27, %v10095_v37 }
0x1025   :  { %v10423_v21 = vpop.f32.mrf.mxu1 }
0x1028   :  { %v14005_v41 = vpop.f32.mrf.mxu1 }
0x102a   :  { %v10439_v43 = vpop.f32.mrf.mxu1 }
0x102c   :  { %v13980_v55 = vpop.f32.mrf.mxu0 }
0x102d   :  { %v10329_v33 = vadd.f32 %v13980_v55, %v10222_v61 }
0x102e   :  { %v10321_v62 = vpop.f32.mrf.mxu0 }
0x102f   :  { %v10322_v44 = vadd.f32 %v10321_v62, %v10216_v59  ;;  %v10432_v48 = vadd.f32 %v14002_v10, %v10329_v33 }
0x1031   :  { %v13983_v20 = vpop.f32.mrf.mxu0  ;;  %v10424_v15 = vadd.f32 %v10423_v21, %v10322_v44 }
0x1032   :  { %v10343_v26 = vadd.f32 %v13983_v20, %v10234_v1 }
0x1033   :  { %v10335_v50 = vpop.f32.mrf.mxu0 }
0x1034   :  { %v10336_v11 = vadd.f32 %v10335_v50, %v10228_v13  ;;  %v10448_v45 = vadd.f32 %v14005_v41, %v10343_v26 }
0x1036   :  { %v10440_v38 = vadd.f32 %v10439_v43, %v10336_v11 }
0x1037   :  { %v14046_v14 = vpop.f32.mrf.mxu1 }
0x1039   :  { %v10639_v6 = vpop.f32.mrf.mxu1 }
0x103b   :  { %v14049_v9 = vpop.f32.mrf.mxu1 }
0x103d   :  { %v10651_v12 = vpop.f32.mrf.mxu1 }
0x103e   :  { %v14024_v25 = vpop.f32.mrf.mxu0 }
0x103f   :  { %v10549_v32 = vadd.f32 %v14024_v25, %v10432_v48 }
0x1040   :  { %v10542_v36 = vpop.f32.mrf.mxu0 }
0x1041   :  { %v10646_v24 = vadd.f32 %v14046_v14, %v10549_v32  ;;  %v10543_v56 = vadd.f32 %v10542_v36, %v10424_v15 }
0x1042   :  { %v14027_v42 = vpop.f32.mrf.mxu0 }
0x1043   :  { %v10711_v40 = vmul.f32 -1.442695, %v10646_v24  ;;  %v10640_v17 = vadd.f32 %v10639_v6, %v10543_v56  ;;  %v10561_v35 = vadd.f32 %v14027_v42, %v10448_v45 }
0x1044   :  { %v10554_v2 = vpop.f32.mrf.mxu0 }
0x1045   :  { %14216 = vpow2.f32 %v10711_v40  ;;  %v10710_v3 = vmul.f32 -1.442695, %v10640_v17  ;;  %v10658_v5 = vadd.f32 %v14049_v9, %v10561_v35  ;;  %v10555_v63 = vadd.f32 %v10554_v2, %v10440_v38 }
0x1047   :  { %14218 = vpow2.f32 %v10710_v3  ;;  %v10713_v60 = vmul.f32 -1.442695, %v10658_v5  ;;  %v10652_v47 = vadd.f32 %v10651_v12, %v10555_v63 }
0x1049   :  { %14220 = vpow2.f32 %v10713_v60  ;;  %v10712_v29 = vmul.f32 -1.442695, %v10652_v47 }
0x104b   :  { %14222 = vpow2.f32 %v10712_v29 }
0x1052   :  { %v14217_v23 = vpop.eup %14216 }
0x1053   :  { %v10674_v58 = vadd.f32 1.0, %v14217_v23 }
0x1054   :  { %v14219_v8 = vpop.eup %14218 }
0x1055   :  { %14224 = vrcp.f32 %v10674_v58  ;;  %v10673_v30 = vadd.f32 1.0, %v14219_v8 }
0x1056   :  { %v14221_v57 = vpop.eup %14220 }
0x1057   :  { %14226 = vrcp.f32 %v10673_v30  ;;  %v10676_v51 = vadd.f32 1.0, %v14221_v57 }
0x1058   :  { %v14223_v4 = vpop.eup %14222 }
0x1059   :  { %14228 = vrcp.f32 %v10676_v51  ;;  %v10675_v16 = vadd.f32 1.0, %v14223_v4 }
0x105b   :  { %14230 = vrcp.f32 %v10675_v16 }
0x1062   :  { %v14225_v19 = vpop.eup %14224 }
0x1063   :  { %10687 = vst.msk [vmem:[%s20248_s16 + $0x8] sm:$0xff] %vm10685_vm7, %v14225_v19 }
0x1064   :  { %v14227_v54 = vpop.eup %14226 }
0x1065   :  { %10686 = vst.msk [vmem:[%s20248_s16] sm:$0xff] %vm10685_vm7, %v14227_v54 }
0x1066   :  { %v14229_v39 = vpop.eup %14228 }
0x1067   :  { %10689 = vst.msk [vmem:[%s20248_s16 + $0x18] sm:$0xff] %vm10685_vm7, %v14229_v39 }
0x1068   :  { %v14231_v52 = vpop.eup %14230 }
0x1069   :  { %10688 = vst.msk [vmem:[%s20248_s16 + $0x10] sm:$0xff] %vm10685_vm7, %v14231_v52 }
0x106a   :  { %10698 = vsyncpa [#allocation4], 1 }
0x106b   :  { %10699 = vsyncpa [#allocation6], 1 }
0x106c   :  { %10700 = vsyncpa [#allocation9], 1 }
0x106d   :  { %10701 = vsyncpa [#allocation12], 1 }

</bundles_post_ra>
